<compile_context>
chip_gen: v7x
topology: tpu7x:2x2x1
jax: 0.10.0
libtpu: 0.0.40
codegen_flags: <defaults>
</compile_context>

<pallas_src>
import functools
from math import sqrt

import jax
import jax.numpy as jnp
from jax.experimental import pallas as pl
from jax.experimental.pallas import tpu as pltpu


_VMEM_LIMIT_BYTES = 32 * 1024 * 1024   # safe on v5e/v6e (128 MiB) and v7x (64 MiB)


# ----------------------------------------------------------------------------
# In-kernel helpers (operate on loaded values; statistics in f32)
# ----------------------------------------------------------------------------
def _layernorm(v, gamma, beta):
    mu = jnp.mean(v, axis=-1, keepdims=True)
    c = v - mu
    var = jnp.mean(c * c, axis=-1, keepdims=True)
    return c * jax.lax.rsqrt(var + 1e-5) * gamma + beta


def _gelu(h):
    # exact GELU (matches nn.GELU default)
    return 0.5 * h * (1.0 + jax.lax.erf(h * (1.0 / sqrt(2.0))))


def _attn_core(q3, k3, v3, wo, bo, ho_ref, n_heads, mm_dtype):
    """Multi-head full attention.  q3:(bsub,lq,d), k3/v3:(bsub,lk,d) in f32.
    Per-head outputs are assembled lane-wise in ho_ref (VMEM scratch) so the
    output projection is ONE (rows,d)@(d,d) matmul instead of n_heads K=dh
    matmuls with vreg accumulation."""
    bsub, lq, d = q3.shape
    dh = d // n_heads
    rows = bsub * lq
    scale = 1.0 / sqrt(dh)

    qm = q3.astype(mm_dtype)
    km = k3.astype(mm_dtype)
    vm = v3.astype(mm_dtype)

    for h in range(n_heads):                         # static unroll, n_heads small
        sl = slice(h * dh, (h + 1) * dh)
        s = jnp.einsum('bqe,bke->bqk', qm[:, :, sl], km[:, :, sl],
                       preferred_element_type=jnp.float32) * scale
        s = s - jnp.max(s, axis=-1, keepdims=True)
        p = jnp.exp(s)
        p = p * pl.reciprocal(jnp.sum(p, axis=-1, keepdims=True), approx=True)
        oh = jnp.einsum('bqk,bkd->bqd', p.astype(mm_dtype), vm[:, :, sl],
                        preferred_element_type=jnp.float32)
        ho_ref[0:rows, sl] = oh.reshape(rows, dh)

    o = ho_ref[0:rows, :]
    return jnp.dot(o.astype(mm_dtype), wo, preferred_element_type=jnp.float32) + bo


def _mlp_residual_ln(y, w1, bm1, w2, bm2, gamma, beta, mm_dtype):
    h = jnp.dot(y.astype(mm_dtype), w1, preferred_element_type=jnp.float32) + bm1
    h = _gelu(h)
    y2 = y + jnp.dot(h.astype(mm_dtype), w2, preferred_element_type=jnp.float32) + bm2
    return _layernorm(y2, gamma, beta)


# ----------------------------------------------------------------------------
# Stage 1: fused [cross-time attention -> add&LN -> MLP -> add&LN]
# Input block  (block_b, ts_d, seg*d); output block (block_b, seg, ts_d*d)
# (already permuted for stage 2, both lane-dense).
# ----------------------------------------------------------------------------
def _stage1_kernel(x_ref, w_ref, w2_ref, vec_ref, o_ref, xs_ref, ho_ref,
                   *, d, dff, n_heads, mm_dtype):
    bb, t, ld = x_ref.shape
    l = ld // d
    bsub = bb * t
    rows = bsub * l

    # lane-dense (bb, t, l*d) block -> (rows, d) via a tiny VMEM relayout
    for il in range(l):
        xs_ref[:, :, il, :] = x_ref[:, :, il * d:(il + 1) * d].astype(jnp.float32)
    x = xs_ref[...].reshape(rows, d)

    w = w_ref[...]                                   # mm_dtype weight slab
    wqkv = w[:, :3 * d]
    wo = w[:, 3 * d:4 * d]
    w1 = w[:, 4 * d:4 * d + dff]
    w2 = w2_ref[...]
    vec = vec_ref[...]                               # f32 bias/LN slab
    bqkv = vec[0:1, :3 * d]
    bo = vec[1:2, :d]
    g1, be1 = vec[2:3, :d], vec[3:4, :d]
    bm1 = vec[4:5, :dff]
    bm2 = vec[5:6, :d]
    g2, be2 = vec[6:7, :d], vec[7:8, :d]

    # fused QKV projection
    qkv = jnp.dot(x.astype(mm_dtype), wqkv, preferred_element_type=jnp.float32) + bqkv
    q3 = qkv[:, :d].reshape(bsub, l, d)
    k3 = qkv[:, d:2 * d].reshape(bsub, l, d)
    v3 = qkv[:, 2 * d:3 * d].reshape(bsub, l, d)

    attn = _attn_core(q3, k3, v3, wo, bo, ho_ref, n_heads, mm_dtype)
    y = _layernorm(x + attn, g1, be1)
    out = _mlp_residual_ln(y, w1, bm1, w2, bm2, g2, be2, mm_dtype)

    # store already permuted to (bb, seg, ts_d*d): lane-dense and no HBM
    # transpose is needed before stage 2.
    out4 = out.reshape(bb, t, l, d)
    for it in range(t):
        o_ref[:, :, it * d:(it + 1) * d] = out4[:, it].astype(o_ref.dtype)


# ----------------------------------------------------------------------------
# Stage 2: fused [router sender attn -> receiver attn -> add&LN -> MLP -> add&LN]
# Input block (block_b, seg, ts_d*d); output block (block_b, ts_d, seg*d).
# Router stays VMEM-resident (constant index_map); its Q projection is hoisted.
# ----------------------------------------------------------------------------
def _stage2_kernel(x_ref, r_ref, w_ref, w2_ref, vec_ref, o_ref, xs_ref, ho_ref,
                   *, d, dff, n_heads, mm_dtype):
    bb, s, td = x_ref.shape
    t = td // d
    bsub = bb * s
    rows = bsub * t
    f = r_ref.shape[0] // s

    for it in range(t):
        xs_ref[:, :, it, :] = x_ref[:, :, it * d:(it + 1) * d].astype(jnp.float32)
    x = xs_ref[...].reshape(rows, d)

    w = w_ref[...]
    s_wq = w[:, 0:d]
    s_wkv = w[:, d:3 * d]
    s_wo = w[:, 3 * d:4 * d]
    r_wq = w[:, 4 * d:5 * d]
    r_wkv = w[:, 5 * d:7 * d]
    r_wo = w[:, 7 * d:8 * d]
    w1 = w[:, 8 * d:8 * d + dff]
    w2 = w2_ref[...]
    vec = vec_ref[...]
    s_bq, s_bkv = vec[0:1, :d], vec[0:1, d:3 * d]
    s_bo = vec[1:2, :d]
    r_bq, r_bkv = vec[2:3, :d], vec[2:3, d:3 * d]
    r_bo = vec[3:4, :d]
    g3, be3 = vec[4:5, :d], vec[5:6, :d]
    bm1 = vec[6:7, :dff]
    bm2 = vec[7:8, :d]
    g4, be4 = vec[8:9, :d], vec[9:10, :d]

    # --- sender: router queries (projected ONCE, then broadcast), K/V from x
    r = r_ref[...].astype(jnp.float32)                        # (seg*factor, d)
    rq = jnp.dot(r.astype(mm_dtype), s_wq, preferred_element_type=jnp.float32) + s_bq
    rq3 = rq.reshape(s, f, d)
    if bb > 1:
        rq3 = jnp.broadcast_to(rq3[None], (bb, s, f, d)).reshape(bsub, f, d)
    kv = jnp.dot(x.astype(mm_dtype), s_wkv, preferred_element_type=jnp.float32) + s_bkv
    k3 = kv[:, :d].reshape(bsub, t, d)
    v3 = kv[:, d:2 * d].reshape(bsub, t, d)
    buf = _attn_core(rq3, k3, v3, s_wo, s_bo, ho_ref, n_heads, mm_dtype)   # (bsub*f, d)

    # --- receiver: queries from x, K/V from buffer
    q = jnp.dot(x.astype(mm_dtype), r_wq, preferred_element_type=jnp.float32) + r_bq
    q3 = q.reshape(bsub, t, d)
    kvb = jnp.dot(buf.astype(mm_dtype), r_wkv, preferred_element_type=jnp.float32) + r_bkv
    kb3 = kvb[:, :d].reshape(bsub, f, d)
    vb3 = kvb[:, d:2 * d].reshape(bsub, f, d)
    recv = _attn_core(q3, kb3, vb3, r_wo, r_bo, ho_ref, n_heads, mm_dtype)  # (rows, d)

    y = _layernorm(x + recv, g3, be3)
    out = _mlp_residual_ln(y, w1, bm1, w2, bm2, g4, be4, mm_dtype)

    # store already permuted back to (bb, ts_d, seg*d), lane-dense
    out4 = out.reshape(bb, s, t, d)
    for is_ in range(s):
        o_ref[:, :, is_ * d:(is_ + 1) * d] = out4[:, is_].astype(o_ref.dtype)


# ----------------------------------------------------------------------------
# pallas_call wrappers
# ----------------------------------------------------------------------------
def _const_spec(shape):
    nd = len(shape)
    return pl.BlockSpec(shape, lambda i, _nd=nd: (0,) * _nd)


def _pick_block_b(b, rows_per_batch, d, dff, budget_bytes=16 << 20):
    # rough f32 footprint per batch element (x, qkv, attn, MLP hidden, out,
    # double-buffered in/out blocks) inside the fused kernel
    per_b = 4 * rows_per_batch * (12 * d + 4 * dff)
    cap = max(1, budget_bytes // max(per_b, 1))
    if b >= 2:
        cap = min(cap, max(1, b // 2))   # >=2 grid steps so both v7x TCs get work
    bb = 1
    for cand in range(1, min(b, int(cap)) + 1):
        if b % cand == 0:
            bb = cand
    return bb


def _stage1_call(x3, wslab, w2, vec, *, block_b, d, dff, n_heads, mm_dtype):
    b, t, ld = x3.shape
    l = ld // d
    kern = functools.partial(_stage1_kernel, d=d, dff=dff,
                             n_heads=n_heads, mm_dtype=mm_dtype)
    return pl.pallas_call(
        kern,
        out_shape=jax.ShapeDtypeStruct((b, l, t * d), x3.dtype),
        grid=(b // block_b,),
        in_specs=[
            pl.BlockSpec((block_b, t, ld), lambda i: (i, 0, 0)),
            _const_spec(wslab.shape),
            _const_spec(w2.shape),
            _const_spec(vec.shape),
        ],
        out_specs=pl.BlockSpec((block_b, l, t * d), lambda i: (i, 0, 0)),
        scratch_shapes=[
            pltpu.VMEM((block_b, t, l, d), jnp.float32),     # input relayout
            pltpu.VMEM((block_b * t * l, d), jnp.float32),   # head-output assembly
        ],
        compiler_params=pltpu.CompilerParams(
            dimension_semantics=("parallel",),
            vmem_limit_bytes=_VMEM_LIMIT_BYTES),
    )(x3, wslab, w2, vec)


def _stage2_call(x3, router2d, wslab, w2, vec, *, block_b, d, dff, n_heads, mm_dtype):
    b, s, td = x3.shape
    t = td // d
    f = router2d.shape[0] // s
    kern = functools.partial(_stage2_kernel, d=d, dff=dff,
                             n_heads=n_heads, mm_dtype=mm_dtype)
    return pl.pallas_call(
        kern,
        out_shape=jax.ShapeDtypeStruct((b, t, s * d), x3.dtype),
        grid=(b // block_b,),
        in_specs=[
            pl.BlockSpec((block_b, s, td), lambda i: (i, 0, 0)),
            _const_spec(router2d.shape),
            _const_spec(wslab.shape),
            _const_spec(w2.shape),
            _const_spec(vec.shape),
        ],
        out_specs=pl.BlockSpec((block_b, t, s * d), lambda i: (i, 0, 0)),
        scratch_shapes=[
            pltpu.VMEM((block_b, s, t, d), jnp.float32),
            pltpu.VMEM((block_b * s * max(t, f), d), jnp.float32),
        ],
        compiler_params=pltpu.CompilerParams(
            dimension_semantics=("parallel",),
            vmem_limit_bytes=_VMEM_LIMIT_BYTES),
    )(x3, router2d, wslab, w2, vec)


# ----------------------------------------------------------------------------
# Parameter packing (wrapper side, traced JAX — tiny, done once per jit call)
# ----------------------------------------------------------------------------
def _pack_rows(vectors, width):
    rows = []
    for v in vectors:
        v = jnp.asarray(v, jnp.float32).reshape(1, -1)
        pad = width - v.shape[1]
        rows.append(jnp.pad(v, ((0, 0), (0, pad))) if pad > 0 else v)
    return jnp.concatenate(rows, axis=0)


def _pack_stage1(attn, n1, mlp, n2, d, dff, mm_dtype):
    wqkv = jnp.concatenate([attn["wq"], attn["wk"], attn["wv"]], axis=1)
    wslab = jnp.concatenate([wqkv, attn["wo"], mlp["w1"]], axis=1).astype(mm_dtype)
    w2 = mlp["w2"].astype(mm_dtype)
    bqkv = jnp.concatenate([attn["bq"], attn["bk"], attn["bv"]], axis=1)
    width = max(3 * d, dff)
    vec = _pack_rows([bqkv, attn["bo"], n1["gamma"], n1["beta"],
                      mlp["b1"], mlp["b2"], n2["gamma"], n2["beta"]], width)
    return wslab, w2, vec


def _pack_stage2(snd, rcv, n3, mlp, n4, d, dff, mm_dtype):
    s_wqkv = jnp.concatenate([snd["wq"], snd["wk"], snd["wv"]], axis=1)
    r_wqkv = jnp.concatenate([rcv["wq"], rcv["wk"], rcv["wv"]], axis=1)
    wslab = jnp.concatenate([s_wqkv, snd["wo"], r_wqkv, rcv["wo"], mlp["w1"]],
                            axis=1).astype(mm_dtype)
    w2 = mlp["w2"].astype(mm_dtype)
    s_bqkv = jnp.concatenate([snd["bq"], snd["bk"], snd["bv"]], axis=1)
    r_bqkv = jnp.concatenate([rcv["bq"], rcv["bk"], rcv["bv"]], axis=1)
    width = max(3 * d, dff)
    vec = _pack_rows([s_bqkv, snd["bo"], r_bqkv, rcv["bo"],
                      n3["gamma"], n3["beta"], mlp["b1"], mlp["b2"],
                      n4["gamma"], n4["beta"]], width)
    return wslab, w2, vec


# ----------------------------------------------------------------------------
# Parameter construction (deterministic, synthetic)
# ----------------------------------------------------------------------------
def _init_attn_params(key, d_model):
    ks = jax.random.split(key, 4)

    def lin(k):
        # stored pre-transposed: (in, out), so the kernel does x @ W + b
        return jax.random.normal(k, (d_model, d_model), jnp.float32) * 0.02

    return {
        "wq": lin(ks[0]), "bq": jnp.zeros((1, d_model), jnp.float32),
        "wk": lin(ks[1]), "bk": jnp.zeros((1, d_model), jnp.float32),
        "wv": lin(ks[2]), "bv": jnp.zeros((1, d_model), jnp.float32),
        "wo": lin(ks[3]), "bo": jnp.zeros((1, d_model), jnp.float32),
    }


def _init_ln_params(d_model):
    return {"gamma": jnp.ones((1, d_model), jnp.float32),
            "beta": jnp.zeros((1, d_model), jnp.float32)}


def _init_mlp_params(key, d_model, d_ff):
    k1, k2 = jax.random.split(key)
    return {
        "w1": jax.random.normal(k1, (d_model, d_ff), jnp.float32) * 0.02,
        "b1": jnp.zeros((1, d_ff), jnp.float32),
        "w2": jax.random.normal(k2, (d_ff, d_model), jnp.float32) * 0.02,
        "b2": jnp.zeros((1, d_model), jnp.float32),
    }


def init_params(key, seg_num, factor, d_model, d_ff):
    ks = jax.random.split(key, 5)
    return {
        "time_attn": _init_attn_params(ks[0], d_model),
        "dim_sender": _init_attn_params(ks[1], d_model),
        "dim_receiver": _init_attn_params(ks[2], d_model),
        "router": jax.random.normal(ks[3], (seg_num, factor, d_model), jnp.float32),
        "norm1": _init_ln_params(d_model),
        "norm2": _init_ln_params(d_model),
        "norm3": _init_ln_params(d_model),
        "norm4": _init_ln_params(d_model),
        "mlp1": _init_mlp_params(ks[4], d_model, d_ff),
        "mlp2": _init_mlp_params(jax.random.fold_in(ks[4], 1), d_model, d_ff),
    }


# ----------------------------------------------------------------------------
# Full TwoStageAttentionLayer forward
# ----------------------------------------------------------------------------
def two_stage_attention(x, params, n_heads, block_b=None, mm_dtype=jnp.bfloat16):
    b, ts_d, seg_num, d = x.shape
    d_ff = params["mlp1"]["w1"].shape[1]

    if block_b is None:
        block_b = _pick_block_b(b, ts_d * seg_num, d, d_ff)

    w1s, w1m2, v1 = _pack_stage1(params["time_attn"], params["norm1"],
                                 params["mlp1"], params["norm2"], d, d_ff, mm_dtype)
    w2s, w2m2, v2 = _pack_stage2(params["dim_sender"], params["dim_receiver"],
                                 params["norm3"], params["mlp2"], params["norm4"],
                                 d, d_ff, mm_dtype)
    router2d = params["router"].reshape(seg_num * params["router"].shape[1], d)

    # lane-dense 3-D activation layout: (b, ts_d, seg*d)  (contiguous reshape)
    x3 = x.reshape(b, ts_d, seg_num * d)

    # stage 1: cross-time attention + LN + MLP + LN; output already in
    # (b, seg, ts_d*d) order -> no HBM transpose before stage 2.
    dim_send = _stage1_call(x3, w1s, w1m2, v1, block_b=block_b, d=d, dff=d_ff,
                            n_heads=n_heads, mm_dtype=mm_dtype)

    # stage 2: router sender/receiver attention + LN + MLP + LN; output already
    # back in (b, ts_d, seg*d) order.
    out3 = _stage2_call(dim_send, router2d, w2s, w2m2, v2, block_b=block_b,
                        d=d, dff=d_ff, n_heads=n_heads, mm_dtype=mm_dtype)

    return out3.reshape(b, ts_d, seg_num, d)


if __name__ == "__main__":
    batch, ts_d, seg_num, d_model = 2, 4, 8, 32
    n_heads, factor = 4, 2
    d_ff = 4 * d_model

    key = jax.random.PRNGKey(0)
    kx, kp = jax.random.split(key)
    x = jax.random.normal(kx, (batch, ts_d, seg_num, d_model), jnp.float32)
    params = init_params(kp, seg_num, factor, d_model, d_ff)

    fwd = jax.jit(functools.partial(two_stage_attention, n_heads=n_heads))
    out = jax.block_until_ready(fwd(x, params))
    assert out.shape == (batch, ts_d, seg_num, d_model)
    assert bool(jnp.all(jnp.isfinite(out)))
    print("KERNEL_OK")
</pallas_src>

<mosaic_0001>
module attributes {stable_mosaic.version = 11 : i64} {
  func.func @_stage1_kernel(%arg0: i32, %arg1: memref<1x4x256xf32, #tpu.memory_space<vmem>>, %arg2: memref<32x256xbf16, #tpu.memory_space<vmem>>, %arg3: memref<128x32xbf16, #tpu.memory_space<vmem>>, %arg4: memref<8x128xf32, #tpu.memory_space<vmem>>, %arg5: memref<1x8x128xf32, #tpu.memory_space<vmem>>, %arg6: memref<1x4x8x32xf32, #tpu.memory_space<vmem>>, %arg7: memref<32x32xf32, #tpu.memory_space<vmem>>) attributes {dimension_semantics = [#tpu.dimension_semantics<parallel>], iteration_bounds = array<i64: 2>, scalar_prefetch = 0 : i64, scratch_operands = 2 : i64, tpu.core_type = #tpu.core_type<tc>, window_params = [{transform_indices = @transform_0, window_bounds = array<i64: 1, 4, 256>}, {pipeline_mode = #tpu.pipeline_mode<synchronous>, transform_indices = @transform_1, window_bounds = array<i64: 32, 256>}, {pipeline_mode = #tpu.pipeline_mode<synchronous>, transform_indices = @transform_2, window_bounds = array<i64: 128, 32>}, {pipeline_mode = #tpu.pipeline_mode<synchronous>, transform_indices = @transform_3, window_bounds = array<i64: 8, 128>}, {transform_indices = @transform_4, window_bounds = array<i64: 1, 8, 128>}]} {
    %c0 = arith.constant 0 : index
    %c0_0 = arith.constant 0 : index
    %c0_1 = arith.constant 0 : index
    %0 = vector.load %arg1[%c0, %c0_0, %c0_1] : memref<1x4x256xf32, #tpu.memory_space<vmem>>, vector<1x4x32xf32>
    %c0_2 = arith.constant 0 : index
    %c0_3 = arith.constant 0 : index
    %c0_4 = arith.constant 0 : index
    %c0_5 = arith.constant 0 : index
    %1 = vector.load %arg6[%c0_2, %c0_3, %c0_4, %c0_5] : memref<1x4x8x32xf32, #tpu.memory_space<vmem>>, vector<1x4x1x32xf32>
    %2 = vector.shape_cast %1 : vector<1x4x1x32xf32> to vector<1x4x32xf32>
    %3 = vector.shape_cast %0 : vector<1x4x32xf32> to vector<1x4x1x32xf32>
    tpu.vector_store %arg6[%c0_2, %c0_3, %c0_4, %c0_5], %3 {strides = array<i32>} : memref<1x4x8x32xf32, #tpu.memory_space<vmem>>, vector<1x4x1x32xf32>,
    %c0_6 = arith.constant 0 : index
    %c0_7 = arith.constant 0 : index
    %c32 = arith.constant 32 : index
    %4 = vector.load %arg1[%c0_6, %c0_7, %c32] : memref<1x4x256xf32, #tpu.memory_space<vmem>>, vector<1x4x32xf32>
    %c0_8 = arith.constant 0 : index
    %c0_9 = arith.constant 0 : index
    %c1 = arith.constant 1 : index
    %c0_10 = arith.constant 0 : index
    %5 = vector.load %arg6[%c0_8, %c0_9, %c1, %c0_10] : memref<1x4x8x32xf32, #tpu.memory_space<vmem>>, vector<1x4x1x32xf32>
    %6 = vector.shape_cast %5 : vector<1x4x1x32xf32> to vector<1x4x32xf32>
    %7 = vector.shape_cast %4 : vector<1x4x32xf32> to vector<1x4x1x32xf32>
    tpu.vector_store %arg6[%c0_8, %c0_9, %c1, %c0_10], %7 {strides = array<i32>} : memref<1x4x8x32xf32, #tpu.memory_space<vmem>>, vector<1x4x1x32xf32>,
    %c0_11 = arith.constant 0 : index
    %c0_12 = arith.constant 0 : index
    %c64 = arith.constant 64 : index
    %8 = vector.load %arg1[%c0_11, %c0_12, %c64] : memref<1x4x256xf32, #tpu.memory_space<vmem>>, vector<1x4x32xf32>
    %c0_13 = arith.constant 0 : index
    %c0_14 = arith.constant 0 : index
    %c2 = arith.constant 2 : index
    %c0_15 = arith.constant 0 : index
    %9 = vector.load %arg6[%c0_13, %c0_14, %c2, %c0_15] : memref<1x4x8x32xf32, #tpu.memory_space<vmem>>, vector<1x4x1x32xf32>
    %10 = vector.shape_cast %9 : vector<1x4x1x32xf32> to vector<1x4x32xf32>
    %11 = vector.shape_cast %8 : vector<1x4x32xf32> to vector<1x4x1x32xf32>
    tpu.vector_store %arg6[%c0_13, %c0_14, %c2, %c0_15], %11 {strides = array<i32>} : memref<1x4x8x32xf32, #tpu.memory_space<vmem>>, vector<1x4x1x32xf32>,
    %c0_16 = arith.constant 0 : index
    %c0_17 = arith.constant 0 : index
    %c96 = arith.constant 96 : index
    %12 = vector.load %arg1[%c0_16, %c0_17, %c96] : memref<1x4x256xf32, #tpu.memory_space<vmem>>, vector<1x4x32xf32>
    %c0_18 = arith.constant 0 : index
    %c0_19 = arith.constant 0 : index
    %c3 = arith.constant 3 : index
    %c0_20 = arith.constant 0 : index
    %13 = vector.load %arg6[%c0_18, %c0_19, %c3, %c0_20] : memref<1x4x8x32xf32, #tpu.memory_space<vmem>>, vector<1x4x1x32xf32>
    %14 = vector.shape_cast %13 : vector<1x4x1x32xf32> to vector<1x4x32xf32>
    %15 = vector.shape_cast %12 : vector<1x4x32xf32> to vector<1x4x1x32xf32>
    tpu.vector_store %arg6[%c0_18, %c0_19, %c3, %c0_20], %15 {strides = array<i32>} : memref<1x4x8x32xf32, #tpu.memory_space<vmem>>, vector<1x4x1x32xf32>,
    %c0_21 = arith.constant 0 : index
    %c0_22 = arith.constant 0 : index
    %c128 = arith.constant 128 : index
    %16 = vector.load %arg1[%c0_21, %c0_22, %c128] : memref<1x4x256xf32, #tpu.memory_space<vmem>>, vector<1x4x32xf32>
    %c0_23 = arith.constant 0 : index
    %c0_24 = arith.constant 0 : index
    %c4 = arith.constant 4 : index
    %c0_25 = arith.constant 0 : index
    %17 = vector.load %arg6[%c0_23, %c0_24, %c4, %c0_25] : memref<1x4x8x32xf32, #tpu.memory_space<vmem>>, vector<1x4x1x32xf32>
    %18 = vector.shape_cast %17 : vector<1x4x1x32xf32> to vector<1x4x32xf32>
    %19 = vector.shape_cast %16 : vector<1x4x32xf32> to vector<1x4x1x32xf32>
    tpu.vector_store %arg6[%c0_23, %c0_24, %c4, %c0_25], %19 {strides = array<i32>} : memref<1x4x8x32xf32, #tpu.memory_space<vmem>>, vector<1x4x1x32xf32>,
    %c0_26 = arith.constant 0 : index
    %c0_27 = arith.constant 0 : index
    %c160 = arith.constant 160 : index
    %20 = vector.load %arg1[%c0_26, %c0_27, %c160] : memref<1x4x256xf32, #tpu.memory_space<vmem>>, vector<1x4x32xf32>
    %c0_28 = arith.constant 0 : index
    %c0_29 = arith.constant 0 : index
    %c5 = arith.constant 5 : index
    %c0_30 = arith.constant 0 : index
    %21 = vector.load %arg6[%c0_28, %c0_29, %c5, %c0_30] : memref<1x4x8x32xf32, #tpu.memory_space<vmem>>, vector<1x4x1x32xf32>
    %22 = vector.shape_cast %21 : vector<1x4x1x32xf32> to vector<1x4x32xf32>
    %23 = vector.shape_cast %20 : vector<1x4x32xf32> to vector<1x4x1x32xf32>
    tpu.vector_store %arg6[%c0_28, %c0_29, %c5, %c0_30], %23 {strides = array<i32>} : memref<1x4x8x32xf32, #tpu.memory_space<vmem>>, vector<1x4x1x32xf32>,
    %c0_31 = arith.constant 0 : index
    %c0_32 = arith.constant 0 : index
    %c192 = arith.constant 192 : index
    %24 = vector.load %arg1[%c0_31, %c0_32, %c192] : memref<1x4x256xf32, #tpu.memory_space<vmem>>, vector<1x4x32xf32>
    %c0_33 = arith.constant 0 : index
    %c0_34 = arith.constant 0 : index
    %c6 = arith.constant 6 : index
    %c0_35 = arith.constant 0 : index
    %25 = vector.load %arg6[%c0_33, %c0_34, %c6, %c0_35] : memref<1x4x8x32xf32, #tpu.memory_space<vmem>>, vector<1x4x1x32xf32>
    %26 = vector.shape_cast %25 : vector<1x4x1x32xf32> to vector<1x4x32xf32>
    %27 = vector.shape_cast %24 : vector<1x4x32xf32> to vector<1x4x1x32xf32>
    tpu.vector_store %arg6[%c0_33, %c0_34, %c6, %c0_35], %27 {strides = array<i32>} : memref<1x4x8x32xf32, #tpu.memory_space<vmem>>, vector<1x4x1x32xf32>,
    %c0_36 = arith.constant 0 : index
    %c0_37 = arith.constant 0 : index
    %c224 = arith.constant 224 : index
    %28 = vector.load %arg1[%c0_36, %c0_37, %c224] : memref<1x4x256xf32, #tpu.memory_space<vmem>>, vector<1x4x32xf32>
    %c0_38 = arith.constant 0 : index
    %c0_39 = arith.constant 0 : index
    %c7 = arith.constant 7 : index
    %c0_40 = arith.constant 0 : index
    %29 = vector.load %arg6[%c0_38, %c0_39, %c7, %c0_40] : memref<1x4x8x32xf32, #tpu.memory_space<vmem>>, vector<1x4x1x32xf32>
    %30 = vector.shape_cast %29 : vector<1x4x1x32xf32> to vector<1x4x32xf32>
    %31 = vector.shape_cast %28 : vector<1x4x32xf32> to vector<1x4x1x32xf32>
    tpu.vector_store %arg6[%c0_38, %c0_39, %c7, %c0_40], %31 {strides = array<i32>} : memref<1x4x8x32xf32, #tpu.memory_space<vmem>>, vector<1x4x1x32xf32>,
    %c0_41 = arith.constant 0 : index
    %c0_42 = arith.constant 0 : index
    %c0_43 = arith.constant 0 : index
    %c0_44 = arith.constant 0 : index
    %32 = vector.load %arg6[%c0_41, %c0_42, %c0_43, %c0_44] : memref<1x4x8x32xf32, #tpu.memory_space<vmem>>, vector<1x4x8x32xf32>
    %33 = vector.shape_cast %32 : vector<1x4x8x32xf32> to vector<32x32xf32>
    %c0_45 = arith.constant 0 : index
    %c0_46 = arith.constant 0 : index
    %34 = vector.load %arg2[%c0_45, %c0_46] : memref<32x256xbf16, #tpu.memory_space<vmem>>, vector<32x256xbf16>
    %35 = vector.extract_strided_slice %34 {offsets = [0, 0], sizes = [32, 96], strides = [1, 1]} : vector<32x256xbf16> to vector<32x96xbf16>
    %36 = vector.extract_strided_slice %34 {offsets = [0, 96], sizes = [32, 32], strides = [1, 1]} : vector<32x256xbf16> to vector<32x32xbf16>
    %37 = vector.extract_strided_slice %34 {offsets = [0, 128], sizes = [32, 128], strides = [1, 1]} : vector<32x256xbf16> to vector<32x128xbf16>
    %c0_47 = arith.constant 0 : index
    %c0_48 = arith.constant 0 : index
    %38 = vector.load %arg3[%c0_47, %c0_48] : memref<128x32xbf16, #tpu.memory_space<vmem>>, vector<128x32xbf16>
    %c0_49 = arith.constant 0 : index
    %c0_50 = arith.constant 0 : index
    %39 = vector.load %arg4[%c0_49, %c0_50] : memref<8x128xf32, #tpu.memory_space<vmem>>, vector<8x128xf32>
    %40 = vector.extract_strided_slice %39 {offsets = [0, 0], sizes = [1, 96], strides = [1, 1]} : vector<8x128xf32> to vector<1x96xf32>
    %41 = vector.extract_strided_slice %39 {offsets = [1, 0], sizes = [1, 32], strides = [1, 1]} : vector<8x128xf32> to vector<1x32xf32>
    %42 = vector.extract_strided_slice %39 {offsets = [2, 0], sizes = [1, 32], strides = [1, 1]} : vector<8x128xf32> to vector<1x32xf32>
    %43 = vector.extract_strided_slice %39 {offsets = [3, 0], sizes = [1, 32], strides = [1, 1]} : vector<8x128xf32> to vector<1x32xf32>
    %44 = vector.extract_strided_slice %39 {offsets = [4, 0], sizes = [1, 128], strides = [1, 1]} : vector<8x128xf32> to vector<1x128xf32>
    %45 = vector.extract_strided_slice %39 {offsets = [5, 0], sizes = [1, 32], strides = [1, 1]} : vector<8x128xf32> to vector<1x32xf32>
    %46 = vector.extract_strided_slice %39 {offsets = [6, 0], sizes = [1, 32], strides = [1, 1]} : vector<8x128xf32> to vector<1x32xf32>
    %47 = vector.extract_strided_slice %39 {offsets = [7, 0], sizes = [1, 32], strides = [1, 1]} : vector<8x128xf32> to vector<1x32xf32>
    %48 = arith.truncf %33 : vector<32x32xf32> to vector<32x32xbf16>
    %cst = arith.constant dense<0.000000e+00> : vector<32x96xf32>
    %49 = tpu.matmul %48, %35, %cst {dimension_numbers = #tpu.dot_dimension_numbers<[1], [0], [0], [1], [0, 0, 1, 1], [], []>} : vector<32x32xbf16>, vector<32x96xbf16>, vector<32x96xf32> -> vector<32x96xf32>
    %50 = vector.broadcast %40 : vector<1x96xf32> to vector<32x96xf32>
    %51 = arith.addf %49, %50 : vector<32x96xf32>
    %52 = vector.extract_strided_slice %51 {offsets = [0, 0], sizes = [32, 32], strides = [1, 1]} : vector<32x96xf32> to vector<32x32xf32>
    %53 = vector.shape_cast %52 : vector<32x32xf32> to vector<4x8x32xf32>
    %54 = vector.extract_strided_slice %51 {offsets = [0, 32], sizes = [32, 32], strides = [1, 1]} : vector<32x96xf32> to vector<32x32xf32>
    %55 = vector.shape_cast %54 : vector<32x32xf32> to vector<4x8x32xf32>
    %56 = vector.extract_strided_slice %51 {offsets = [0, 64], sizes = [32, 32], strides = [1, 1]} : vector<32x96xf32> to vector<32x32xf32>
    %57 = vector.shape_cast %56 : vector<32x32xf32> to vector<4x8x32xf32>
    %58 = arith.truncf %53 : vector<4x8x32xf32> to vector<4x8x32xbf16>
    %59 = arith.truncf %55 : vector<4x8x32xf32> to vector<4x8x32xbf16>
    %60 = arith.truncf %57 : vector<4x8x32xf32> to vector<4x8x32xbf16>
    %61 = vector.extract_strided_slice %58 {offsets = [0, 0, 0], sizes = [4, 8, 8], strides = [1, 1, 1]} : vector<4x8x32xbf16> to vector<4x8x8xbf16>
    %62 = vector.extract_strided_slice %59 {offsets = [0, 0, 0], sizes = [4, 8, 8], strides = [1, 1, 1]} : vector<4x8x32xbf16> to vector<4x8x8xbf16>
    "tpu.trace_start"() <{level = 10 : i32, message = "bqe,bke->bqk"}> : () -> ()
    %cst_51 = arith.constant dense<0.000000e+00> : vector<4x8x8xf32>
    %63 = tpu.matmul %61, %62, %cst_51 {dimension_numbers = #tpu.dot_dimension_numbers<[2], [2], [1], [1], [0, 0, 0, 1, 1, 1], [0], [0]>} : vector<4x8x8xbf16>, vector<4x8x8xbf16>, vector<4x8x8xf32> -> vector<4x8x8xf32>
    "tpu.trace_stop"() : () -> ()
    %cst_52 = arith.constant 0.353553385 : f32
    %64 = vector.broadcast %cst_52 : f32 to vector<4x8x8xf32>
    %65 = arith.mulf %63, %64 : vector<4x8x8xf32>
    %cst_53 = arith.constant dense<0xFF800000> : vector<4x8xf32>
    %66 = vector.multi_reduction <maximumf>, %65, %cst_53 [2] : vector<4x8x8xf32> to vector<4x8xf32>
    %67 = vector.shape_cast %66 : vector<4x8xf32> to vector<4x8x1xf32>
    %68 = vector.broadcast %67 : vector<4x8x1xf32> to vector<4x8x8xf32>
    %69 = arith.subf %65, %68 : vector<4x8x8xf32>
    %70 = math.exp %69 : vector<4x8x8xf32>
    %cst_54 = arith.constant dense<0.000000e+00> : vector<4x8xf32>
    %71 = vector.multi_reduction <add>, %70, %cst_54 [2] : vector<4x8x8xf32> to vector<4x8xf32>
    %72 = vector.shape_cast %71 : vector<4x8xf32> to vector<4x8x1xf32>
    %73 = tpu.reciprocal %72 {approx = true} : vector<4x8x1xf32> -> vector<4x8x1xf32>
    %74 = vector.broadcast %73 : vector<4x8x1xf32> to vector<4x8x8xf32>
    %75 = arith.mulf %70, %74 : vector<4x8x8xf32>
    %76 = arith.truncf %75 : vector<4x8x8xf32> to vector<4x8x8xbf16>
    %77 = vector.extract_strided_slice %60 {offsets = [0, 0, 0], sizes = [4, 8, 8], strides = [1, 1, 1]} : vector<4x8x32xbf16> to vector<4x8x8xbf16>
    "tpu.trace_start"() <{level = 10 : i32, message = "bqk,bkd->bqd"}> : () -> ()
    %cst_55 = arith.constant dense<0.000000e+00> : vector<4x8x8xf32>
    %78 = tpu.matmul %76, %77, %cst_55 {dimension_numbers = #tpu.dot_dimension_numbers<[2], [1], [1], [2], [0, 0, 0, 1, 1, 2], [0], [0]>} : vector<4x8x8xbf16>, vector<4x8x8xbf16>, vector<4x8x8xf32> -> vector<4x8x8xf32>
    "tpu.trace_stop"() : () -> ()
    %79 = vector.shape_cast %78 : vector<4x8x8xf32> to vector<32x8xf32>
    %c0_56 = arith.constant 0 : index
    %c0_57 = arith.constant 0 : index
    %80 = vector.load %arg7[%c0_56, %c0_57] : memref<32x32xf32, #tpu.memory_space<vmem>>, vector<32x8xf32>
    tpu.vector_store %arg7[%c0_56, %c0_57], %79 {strides = array<i32>} : memref<32x32xf32, #tpu.memory_space<vmem>>, vector<32x8xf32>,
    %81 = vector.extract_strided_slice %58 {offsets = [0, 0, 8], sizes = [4, 8, 8], strides = [1, 1, 1]} : vector<4x8x32xbf16> to vector<4x8x8xbf16>
    %82 = vector.extract_strided_slice %59 {offsets = [0, 0, 8], sizes = [4, 8, 8], strides = [1, 1, 1]} : vector<4x8x32xbf16> to vector<4x8x8xbf16>
    "tpu.trace_start"() <{level = 10 : i32, message = "bqe,bke->bqk"}> : () -> ()
    %cst_58 = arith.constant dense<0.000000e+00> : vector<4x8x8xf32>
    %83 = tpu.matmul %81, %82, %cst_58 {dimension_numbers = #tpu.dot_dimension_numbers<[2], [2], [1], [1], [0, 0, 0, 1, 1, 1], [0], [0]>} : vector<4x8x8xbf16>, vector<4x8x8xbf16>, vector<4x8x8xf32> -> vector<4x8x8xf32>
    "tpu.trace_stop"() : () -> ()
    %cst_59 = arith.constant 0.353553385 : f32
    %84 = vector.broadcast %cst_59 : f32 to vector<4x8x8xf32>
    %85 = arith.mulf %83, %84 : vector<4x8x8xf32>
    %cst_60 = arith.constant dense<0xFF800000> : vector<4x8xf32>
    %86 = vector.multi_reduction <maximumf>, %85, %cst_60 [2] : vector<4x8x8xf32> to vector<4x8xf32>
    %87 = vector.shape_cast %86 : vector<4x8xf32> to vector<4x8x1xf32>
    %88 = vector.broadcast %87 : vector<4x8x1xf32> to vector<4x8x8xf32>
    %89 = arith.subf %85, %88 : vector<4x8x8xf32>
    %90 = math.exp %89 : vector<4x8x8xf32>
    %cst_61 = arith.constant dense<0.000000e+00> : vector<4x8xf32>
    %91 = vector.multi_reduction <add>, %90, %cst_61 [2] : vector<4x8x8xf32> to vector<4x8xf32>
    %92 = vector.shape_cast %91 : vector<4x8xf32> to vector<4x8x1xf32>
    %93 = tpu.reciprocal %92 {approx = true} : vector<4x8x1xf32> -> vector<4x8x1xf32>
    %94 = vector.broadcast %93 : vector<4x8x1xf32> to vector<4x8x8xf32>
    %95 = arith.mulf %90, %94 : vector<4x8x8xf32>
    %96 = arith.truncf %95 : vector<4x8x8xf32> to vector<4x8x8xbf16>
    %97 = vector.extract_strided_slice %60 {offsets = [0, 0, 8], sizes = [4, 8, 8], strides = [1, 1, 1]} : vector<4x8x32xbf16> to vector<4x8x8xbf16>
    "tpu.trace_start"() <{level = 10 : i32, message = "bqk,bkd->bqd"}> : () -> ()
    %cst_62 = arith.constant dense<0.000000e+00> : vector<4x8x8xf32>
    %98 = tpu.matmul %96, %97, %cst_62 {dimension_numbers = #tpu.dot_dimension_numbers<[2], [1], [1], [2], [0, 0, 0, 1, 1, 2], [0], [0]>} : vector<4x8x8xbf16>, vector<4x8x8xbf16>, vector<4x8x8xf32> -> vector<4x8x8xf32>
    "tpu.trace_stop"() : () -> ()
    %99 = vector.shape_cast %98 : vector<4x8x8xf32> to vector<32x8xf32>
    %c0_63 = arith.constant 0 : index
    %c8 = arith.constant 8 : index
    %100 = vector.load %arg7[%c0_63, %c8] : memref<32x32xf32, #tpu.memory_space<vmem>>, vector<32x8xf32>
    tpu.vector_store %arg7[%c0_63, %c8], %99 {strides = array<i32>} : memref<32x32xf32, #tpu.memory_space<vmem>>, vector<32x8xf32>,
    %101 = vector.extract_strided_slice %58 {offsets = [0, 0, 16], sizes = [4, 8, 8], strides = [1, 1, 1]} : vector<4x8x32xbf16> to vector<4x8x8xbf16>
    %102 = vector.extract_strided_slice %59 {offsets = [0, 0, 16], sizes = [4, 8, 8], strides = [1, 1, 1]} : vector<4x8x32xbf16> to vector<4x8x8xbf16>
    "tpu.trace_start"() <{level = 10 : i32, message = "bqe,bke->bqk"}> : () -> ()
    %cst_64 = arith.constant dense<0.000000e+00> : vector<4x8x8xf32>
    %103 = tpu.matmul %101, %102, %cst_64 {dimension_numbers = #tpu.dot_dimension_numbers<[2], [2], [1], [1], [0, 0, 0, 1, 1, 1], [0], [0]>} : vector<4x8x8xbf16>, vector<4x8x8xbf16>, vector<4x8x8xf32> -> vector<4x8x8xf32>
    "tpu.trace_stop"() : () -> ()
    %cst_65 = arith.constant 0.353553385 : f32
    %104 = vector.broadcast %cst_65 : f32 to vector<4x8x8xf32>
    %105 = arith.mulf %103, %104 : vector<4x8x8xf32>
    %cst_66 = arith.constant dense<0xFF800000> : vector<4x8xf32>
    %106 = vector.multi_reduction <maximumf>, %105, %cst_66 [2] : vector<4x8x8xf32> to vector<4x8xf32>
    %107 = vector.shape_cast %106 : vector<4x8xf32> to vector<4x8x1xf32>
    %108 = vector.broadcast %107 : vector<4x8x1xf32> to vector<4x8x8xf32>
    %109 = arith.subf %105, %108 : vector<4x8x8xf32>
    %110 = math.exp %109 : vector<4x8x8xf32>
    %cst_67 = arith.constant dense<0.000000e+00> : vector<4x8xf32>
    %111 = vector.multi_reduction <add>, %110, %cst_67 [2] : vector<4x8x8xf32> to vector<4x8xf32>
    %112 = vector.shape_cast %111 : vector<4x8xf32> to vector<4x8x1xf32>
    %113 = tpu.reciprocal %112 {approx = true} : vector<4x8x1xf32> -> vector<4x8x1xf32>
    %114 = vector.broadcast %113 : vector<4x8x1xf32> to vector<4x8x8xf32>
    %115 = arith.mulf %110, %114 : vector<4x8x8xf32>
    %116 = arith.truncf %115 : vector<4x8x8xf32> to vector<4x8x8xbf16>
    %117 = vector.extract_strided_slice %60 {offsets = [0, 0, 16], sizes = [4, 8, 8], strides = [1, 1, 1]} : vector<4x8x32xbf16> to vector<4x8x8xbf16>
    "tpu.trace_start"() <{level = 10 : i32, message = "bqk,bkd->bqd"}> : () -> ()
    %cst_68 = arith.constant dense<0.000000e+00> : vector<4x8x8xf32>
    %118 = tpu.matmul %116, %117, %cst_68 {dimension_numbers = #tpu.dot_dimension_numbers<[2], [1], [1], [2], [0, 0, 0, 1, 1, 2], [0], [0]>} : vector<4x8x8xbf16>, vector<4x8x8xbf16>, vector<4x8x8xf32> -> vector<4x8x8xf32>
    "tpu.trace_stop"() : () -> ()
    %119 = vector.shape_cast %118 : vector<4x8x8xf32> to vector<32x8xf32>
    %c0_69 = arith.constant 0 : index
    %c16 = arith.constant 16 : index
    %120 = vector.load %arg7[%c0_69, %c16] : memref<32x32xf32, #tpu.memory_space<vmem>>, vector<32x8xf32>
    tpu.vector_store %arg7[%c0_69, %c16], %119 {strides = array<i32>} : memref<32x32xf32, #tpu.memory_space<vmem>>, vector<32x8xf32>,
    %121 = vector.extract_strided_slice %58 {offsets = [0, 0, 24], sizes = [4, 8, 8], strides = [1, 1, 1]} : vector<4x8x32xbf16> to vector<4x8x8xbf16>
    %122 = vector.extract_strided_slice %59 {offsets = [0, 0, 24], sizes = [4, 8, 8], strides = [1, 1, 1]} : vector<4x8x32xbf16> to vector<4x8x8xbf16>
    "tpu.trace_start"() <{level = 10 : i32, message = "bqe,bke->bqk"}> : () -> ()
    %cst_70 = arith.constant dense<0.000000e+00> : vector<4x8x8xf32>
    %123 = tpu.matmul %121, %122, %cst_70 {dimension_numbers = #tpu.dot_dimension_numbers<[2], [2], [1], [1], [0, 0, 0, 1, 1, 1], [0], [0]>} : vector<4x8x8xbf16>, vector<4x8x8xbf16>, vector<4x8x8xf32> -> vector<4x8x8xf32>
    "tpu.trace_stop"() : () -> ()
    %cst_71 = arith.constant 0.353553385 : f32
    %124 = vector.broadcast %cst_71 : f32 to vector<4x8x8xf32>
    %125 = arith.mulf %123, %124 : vector<4x8x8xf32>
    %cst_72 = arith.constant dense<0xFF800000> : vector<4x8xf32>
    %126 = vector.multi_reduction <maximumf>, %125, %cst_72 [2] : vector<4x8x8xf32> to vector<4x8xf32>
    %127 = vector.shape_cast %126 : vector<4x8xf32> to vector<4x8x1xf32>
    %128 = vector.broadcast %127 : vector<4x8x1xf32> to vector<4x8x8xf32>
    %129 = arith.subf %125, %128 : vector<4x8x8xf32>
    %130 = math.exp %129 : vector<4x8x8xf32>
    %cst_73 = arith.constant dense<0.000000e+00> : vector<4x8xf32>
    %131 = vector.multi_reduction <add>, %130, %cst_73 [2] : vector<4x8x8xf32> to vector<4x8xf32>
    %132 = vector.shape_cast %131 : vector<4x8xf32> to vector<4x8x1xf32>
    %133 = tpu.reciprocal %132 {approx = true} : vector<4x8x1xf32> -> vector<4x8x1xf32>
    %134 = vector.broadcast %133 : vector<4x8x1xf32> to vector<4x8x8xf32>
    %135 = arith.mulf %130, %134 : vector<4x8x8xf32>
    %136 = arith.truncf %135 : vector<4x8x8xf32> to vector<4x8x8xbf16>
    %137 = vector.extract_strided_slice %60 {offsets = [0, 0, 24], sizes = [4, 8, 8], strides = [1, 1, 1]} : vector<4x8x32xbf16> to vector<4x8x8xbf16>
    "tpu.trace_start"() <{level = 10 : i32, message = "bqk,bkd->bqd"}> : () -> ()
    %cst_74 = arith.constant dense<0.000000e+00> : vector<4x8x8xf32>
    %138 = tpu.matmul %136, %137, %cst_74 {dimension_numbers = #tpu.dot_dimension_numbers<[2], [1], [1], [2], [0, 0, 0, 1, 1, 2], [0], [0]>} : vector<4x8x8xbf16>, vector<4x8x8xbf16>, vector<4x8x8xf32> -> vector<4x8x8xf32>
    "tpu.trace_stop"() : () -> ()
    %139 = vector.shape_cast %138 : vector<4x8x8xf32> to vector<32x8xf32>
    %c0_75 = arith.constant 0 : index
    %c24 = arith.constant 24 : index
    %140 = vector.load %arg7[%c0_75, %c24] : memref<32x32xf32, #tpu.memory_space<vmem>>, vector<32x8xf32>
    tpu.vector_store %arg7[%c0_75, %c24], %139 {strides = array<i32>} : memref<32x32xf32, #tpu.memory_space<vmem>>, vector<32x8xf32>,
    %c0_76 = arith.constant 0 : index
    %c0_77 = arith.constant 0 : index
    %141 = vector.load %arg7[%c0_76, %c0_77] : memref<32x32xf32, #tpu.memory_space<vmem>>, vector<32x32xf32>
    %142 = arith.truncf %141 : vector<32x32xf32> to vector<32x32xbf16>
    %cst_78 = arith.constant dense<0.000000e+00> : vector<32x32xf32>
    %143 = tpu.matmul %142, %36, %cst_78 {dimension_numbers = #tpu.dot_dimension_numbers<[1], [0], [0], [1], [0, 0, 1, 1], [], []>} : vector<32x32xbf16>, vector<32x32xbf16>, vector<32x32xf32> -> vector<32x32xf32>
    %144 = vector.broadcast %41 : vector<1x32xf32> to vector<32x32xf32>
    %145 = arith.addf %143, %144 : vector<32x32xf32>
    %146 = arith.addf %33, %145 : vector<32x32xf32>
    %cst_79 = arith.constant dense<0.000000e+00> : vector<32xf32>
    %147 = vector.multi_reduction <add>, %146, %cst_79 [1] : vector<32x32xf32> to vector<32xf32>
    %148 = vector.shape_cast %147 : vector<32xf32> to vector<32x1xf32>
    %cst_80 = arith.constant 3.200000e+01 : f32
    %149 = vector.broadcast %cst_80 : f32 to vector<32x1xf32>
    %150 = arith.divf %148, %149 : vector<32x1xf32>
    %151 = vector.broadcast %150 : vector<32x1xf32> to vector<32x32xf32>
    %152 = arith.subf %146, %151 : vector<32x32xf32>
    %153 = arith.mulf %152, %152 : vector<32x32xf32>
    %cst_81 = arith.constant dense<0.000000e+00> : vector<32xf32>
    %154 = vector.multi_reduction <add>, %153, %cst_81 [1] : vector<32x32xf32> to vector<32xf32>
    %155 = vector.shape_cast %154 : vector<32xf32> to vector<32x1xf32>
    %cst_82 = arith.constant 3.200000e+01 : f32
    %156 = vector.broadcast %cst_82 : f32 to vector<32x1xf32>
    %157 = arith.divf %155, %156 : vector<32x1xf32>
    %cst_83 = arith.constant 9.99999974E-6 : f32
    %158 = vector.broadcast %cst_83 : f32 to vector<32x1xf32>
    %159 = arith.addf %157, %158 : vector<32x1xf32>
    %160 = math.rsqrt %159 : vector<32x1xf32>
    %161 = vector.broadcast %160 : vector<32x1xf32> to vector<32x32xf32>
    %162 = arith.mulf %152, %161 : vector<32x32xf32>
    %163 = vector.broadcast %42 : vector<1x32xf32> to vector<32x32xf32>
    %164 = arith.mulf %162, %163 : vector<32x32xf32>
    %165 = vector.broadcast %43 : vector<1x32xf32> to vector<32x32xf32>
    %166 = arith.addf %164, %165 : vector<32x32xf32>
    %167 = arith.truncf %166 : vector<32x32xf32> to vector<32x32xbf16>
    %cst_84 = arith.constant dense<0.000000e+00> : vector<32x128xf32>
    %168 = tpu.matmul %167, %37, %cst_84 {dimension_numbers = #tpu.dot_dimension_numbers<[1], [0], [0], [1], [0, 0, 1, 1], [], []>} : vector<32x32xbf16>, vector<32x128xbf16>, vector<32x128xf32> -> vector<32x128xf32>
    %169 = vector.broadcast %44 : vector<1x128xf32> to vector<32x128xf32>
    %170 = arith.addf %168, %169 : vector<32x128xf32>
    %cst_85 = arith.constant 5.000000e-01 : f32
    %171 = vector.broadcast %cst_85 : f32 to vector<32x128xf32>
    %172 = arith.mulf %171, %170 : vector<32x128xf32>
    %cst_86 = arith.constant 0.707106769 : f32
    %173 = vector.broadcast %cst_86 : f32 to vector<32x128xf32>
    %174 = arith.mulf %170, %173 : vector<32x128xf32>
    %175 = math.erf %174 : vector<32x128xf32>
    %cst_87 = arith.constant 1.000000e+00 : f32
    %176 = vector.broadcast %cst_87 : f32 to vector<32x128xf32>
    %177 = arith.addf %176, %175 : vector<32x128xf32>
    %178 = arith.mulf %172, %177 : vector<32x128xf32>
    %179 = arith.truncf %178 : vector<32x128xf32> to vector<32x128xbf16>
    %cst_88 = arith.constant dense<0.000000e+00> : vector<32x32xf32>
    %180 = tpu.matmul %179, %38, %cst_88 {dimension_numbers = #tpu.dot_dimension_numbers<[1], [0], [0], [1], [0, 0, 1, 1], [], []>} : vector<32x128xbf16>, vector<128x32xbf16>, vector<32x32xf32> -> vector<32x32xf32>
    %181 = arith.addf %166, %180 : vector<32x32xf32>
    %182 = vector.broadcast %45 : vector<1x32xf32> to vector<32x32xf32>
    %183 = arith.addf %181, %182 : vector<32x32xf32>
    %cst_89 = arith.constant dense<0.000000e+00> : vector<32xf32>
    %184 = vector.multi_reduction <add>, %183, %cst_89 [1] : vector<32x32xf32> to vector<32xf32>
    %185 = vector.shape_cast %184 : vector<32xf32> to vector<32x1xf32>
    %cst_90 = arith.constant 3.200000e+01 : f32
    %186 = vector.broadcast %cst_90 : f32 to vector<32x1xf32>
    %187 = arith.divf %185, %186 : vector<32x1xf32>
    %188 = vector.broadcast %187 : vector<32x1xf32> to vector<32x32xf32>
    %189 = arith.subf %183, %188 : vector<32x32xf32>
    %190 = arith.mulf %189, %189 : vector<32x32xf32>
    %cst_91 = arith.constant dense<0.000000e+00> : vector<32xf32>
    %191 = vector.multi_reduction <add>, %190, %cst_91 [1] : vector<32x32xf32> to vector<32xf32>
    %192 = vector.shape_cast %191 : vector<32xf32> to vector<32x1xf32>
    %cst_92 = arith.constant 3.200000e+01 : f32
    %193 = vector.broadcast %cst_92 : f32 to vector<32x1xf32>
    %194 = arith.divf %192, %193 : vector<32x1xf32>
    %cst_93 = arith.constant 9.99999974E-6 : f32
    %195 = vector.broadcast %cst_93 : f32 to vector<32x1xf32>
    %196 = arith.addf %194, %195 : vector<32x1xf32>
    %197 = math.rsqrt %196 : vector<32x1xf32>
    %198 = vector.broadcast %197 : vector<32x1xf32> to vector<32x32xf32>
    %199 = arith.mulf %189, %198 : vector<32x32xf32>
    %200 = vector.broadcast %46 : vector<1x32xf32> to vector<32x32xf32>
    %201 = arith.mulf %199, %200 : vector<32x32xf32>
    %202 = vector.broadcast %47 : vector<1x32xf32> to vector<32x32xf32>
    %203 = arith.addf %201, %202 : vector<32x32xf32>
    %204 = vector.shape_cast %203 : vector<32x32xf32> to vector<1x4x8x32xf32>
    %205 = vector.extract_strided_slice %204 {offsets = [0, 0, 0, 0], sizes = [1, 1, 8, 32], strides = [1, 1, 1, 1]} : vector<1x4x8x32xf32> to vector<1x1x8x32xf32>
    %206 = vector.shape_cast %205 : vector<1x1x8x32xf32> to vector<1x8x32xf32>
    %c0_94 = arith.constant 0 : index
    %c0_95 = arith.constant 0 : index
    %c0_96 = arith.constant 0 : index
    %207 = vector.load %arg5[%c0_94, %c0_95, %c0_96] : memref<1x8x128xf32, #tpu.memory_space<vmem>>, vector<1x8x32xf32>
    tpu.vector_store %arg5[%c0_94, %c0_95, %c0_96], %206 {strides = array<i32>} : memref<1x8x128xf32, #tpu.memory_space<vmem>>, vector<1x8x32xf32>,
    %208 = vector.extract_strided_slice %204 {offsets = [0, 1, 0, 0], sizes = [1, 1, 8, 32], strides = [1, 1, 1, 1]} : vector<1x4x8x32xf32> to vector<1x1x8x32xf32>
    %209 = vector.shape_cast %208 : vector<1x1x8x32xf32> to vector<1x8x32xf32>
    %c0_97 = arith.constant 0 : index
    %c0_98 = arith.constant 0 : index
    %c32_99 = arith.constant 32 : index
    %210 = vector.load %arg5[%c0_97, %c0_98, %c32_99] : memref<1x8x128xf32, #tpu.memory_space<vmem>>, vector<1x8x32xf32>
    tpu.vector_store %arg5[%c0_97, %c0_98, %c32_99], %209 {strides = array<i32>} : memref<1x8x128xf32, #tpu.memory_space<vmem>>, vector<1x8x32xf32>,
    %211 = vector.extract_strided_slice %204 {offsets = [0, 2, 0, 0], sizes = [1, 1, 8, 32], strides = [1, 1, 1, 1]} : vector<1x4x8x32xf32> to vector<1x1x8x32xf32>
    %212 = vector.shape_cast %211 : vector<1x1x8x32xf32> to vector<1x8x32xf32>
    %c0_100 = arith.constant 0 : index
    %c0_101 = arith.constant 0 : index
    %c64_102 = arith.constant 64 : index
    %213 = vector.load %arg5[%c0_100, %c0_101, %c64_102] : memref<1x8x128xf32, #tpu.memory_space<vmem>>, vector<1x8x32xf32>
    tpu.vector_store %arg5[%c0_100, %c0_101, %c64_102], %212 {strides = array<i32>} : memref<1x8x128xf32, #tpu.memory_space<vmem>>, vector<1x8x32xf32>,
    %214 = vector.extract_strided_slice %204 {offsets = [0, 3, 0, 0], sizes = [1, 1, 8, 32], strides = [1, 1, 1, 1]} : vector<1x4x8x32xf32> to vector<1x1x8x32xf32>
    %215 = vector.shape_cast %214 : vector<1x1x8x32xf32> to vector<1x8x32xf32>
    %c0_103 = arith.constant 0 : index
    %c0_104 = arith.constant 0 : index
    %c96_105 = arith.constant 96 : index
    %216 = vector.load %arg5[%c0_103, %c0_104, %c96_105] : memref<1x8x128xf32, #tpu.memory_space<vmem>>, vector<1x8x32xf32>
    tpu.vector_store %arg5[%c0_103, %c0_104, %c96_105], %215 {strides = array<i32>} : memref<1x8x128xf32, #tpu.memory_space<vmem>>, vector<1x8x32xf32>,
    return
  }
  func.func @transform_0(%arg0: i32) -> (i32, i32, i32) {
    %c0_i32 = arith.constant 0 : i32
    %c0_i32_0 = arith.constant 0 : i32
    %c0_i32_1 = arith.constant 0 : i32
    return %arg0, %c0_i32, %c0_i32_0 : i32, i32, i32
  }
  func.func @transform_1(%arg0: i32) -> (i32, i32) {
    %c0_i32 = arith.constant 0 : i32
    %c0_i32_0 = arith.constant 0 : i32
    %c0_i32_1 = arith.constant 0 : i32
    return %c0_i32, %c0_i32_0 : i32, i32
  }
  func.func @transform_2(%arg0: i32) -> (i32, i32) {
    %c0_i32 = arith.constant 0 : i32
    %c0_i32_0 = arith.constant 0 : i32
    %c0_i32_1 = arith.constant 0 : i32
    return %c0_i32, %c0_i32_0 : i32, i32
  }
  func.func @transform_3(%arg0: i32) -> (i32, i32) {
    %c0_i32 = arith.constant 0 : i32
    %c0_i32_0 = arith.constant 0 : i32
    %c0_i32_1 = arith.constant 0 : i32
    return %c0_i32, %c0_i32_0 : i32, i32
  }
  func.func @transform_4(%arg0: i32) -> (i32, i32, i32) {
    %c0_i32 = arith.constant 0 : i32
    %c0_i32_0 = arith.constant 0 : i32
    %c0_i32_1 = arith.constant 0 : i32
    return %arg0, %c0_i32, %c0_i32_0 : i32, i32, i32
  }
}

module attributes {stable_mosaic.version = 11 : i64} {
  func.func @_stage2_kernel(%arg0: i32, %arg1: memref<1x8x128xf32, #tpu.memory_space<vmem>>, %arg2: memref<16x32xf32, #tpu.memory_space<vmem>>, %arg3: memref<32x384xbf16, #tpu.memory_space<vmem>>, %arg4: memref<128x32xbf16, #tpu.memory_space<vmem>>, %arg5: memref<10x128xf32, #tpu.memory_space<vmem>>, %arg6: memref<1x4x256xf32, #tpu.memory_space<vmem>>, %arg7: memref<1x8x4x32xf32, #tpu.memory_space<vmem>>, %arg8: memref<32x32xf32, #tpu.memory_space<vmem>>) attributes {dimension_semantics = [#tpu.dimension_semantics<parallel>], iteration_bounds = array<i64: 2>, scalar_prefetch = 0 : i64, scratch_operands = 2 : i64, tpu.core_type = #tpu.core_type<tc>, window_params = [{transform_indices = @transform_0, window_bounds = array<i64: 1, 8, 128>}, {pipeline_mode = #tpu.pipeline_mode<synchronous>, transform_indices = @transform_1, window_bounds = array<i64: 16, 32>}, {pipeline_mode = #tpu.pipeline_mode<synchronous>, transform_indices = @transform_2, window_bounds = array<i64: 32, 384>}, {pipeline_mode = #tpu.pipeline_mode<synchronous>, transform_indices = @transform_3, window_bounds = array<i64: 128, 32>}, {pipeline_mode = #tpu.pipeline_mode<synchronous>, transform_indices = @transform_4, window_bounds = array<i64: 10, 128>}, {transform_indices = @transform_5, window_bounds = array<i64: 1, 4, 256>}]} {
    %c0 = arith.constant 0 : index
    %c0_0 = arith.constant 0 : index
    %c0_1 = arith.constant 0 : index
    %0 = vector.load %arg1[%c0, %c0_0, %c0_1] : memref<1x8x128xf32, #tpu.memory_space<vmem>>, vector<1x8x32xf32>
    %c0_2 = arith.constant 0 : index
    %c0_3 = arith.constant 0 : index
    %c0_4 = arith.constant 0 : index
    %c0_5 = arith.constant 0 : index
    %1 = vector.load %arg7[%c0_2, %c0_3, %c0_4, %c0_5] : memref<1x8x4x32xf32, #tpu.memory_space<vmem>>, vector<1x8x1x32xf32>
    %2 = vector.shape_cast %1 : vector<1x8x1x32xf32> to vector<1x8x32xf32>
    %3 = vector.shape_cast %0 : vector<1x8x32xf32> to vector<1x8x1x32xf32>
    tpu.vector_store %arg7[%c0_2, %c0_3, %c0_4, %c0_5], %3 {strides = array<i32>} : memref<1x8x4x32xf32, #tpu.memory_space<vmem>>, vector<1x8x1x32xf32>,
    %c0_6 = arith.constant 0 : index
    %c0_7 = arith.constant 0 : index
    %c32 = arith.constant 32 : index
    %4 = vector.load %arg1[%c0_6, %c0_7, %c32] : memref<1x8x128xf32, #tpu.memory_space<vmem>>, vector<1x8x32xf32>
    %c0_8 = arith.constant 0 : index
    %c0_9 = arith.constant 0 : index
    %c1 = arith.constant 1 : index
    %c0_10 = arith.constant 0 : index
    %5 = vector.load %arg7[%c0_8, %c0_9, %c1, %c0_10] : memref<1x8x4x32xf32, #tpu.memory_space<vmem>>, vector<1x8x1x32xf32>
    %6 = vector.shape_cast %5 : vector<1x8x1x32xf32> to vector<1x8x32xf32>
    %7 = vector.shape_cast %4 : vector<1x8x32xf32> to vector<1x8x1x32xf32>
    tpu.vector_store %arg7[%c0_8, %c0_9, %c1, %c0_10], %7 {strides = array<i32>} : memref<1x8x4x32xf32, #tpu.memory_space<vmem>>, vector<1x8x1x32xf32>,
    %c0_11 = arith.constant 0 : index
    %c0_12 = arith.constant 0 : index
    %c64 = arith.constant 64 : index
    %8 = vector.load %arg1[%c0_11, %c0_12, %c64] : memref<1x8x128xf32, #tpu.memory_space<vmem>>, vector<1x8x32xf32>
    %c0_13 = arith.constant 0 : index
    %c0_14 = arith.constant 0 : index
    %c2 = arith.constant 2 : index
    %c0_15 = arith.constant 0 : index
    %9 = vector.load %arg7[%c0_13, %c0_14, %c2, %c0_15] : memref<1x8x4x32xf32, #tpu.memory_space<vmem>>, vector<1x8x1x32xf32>
    %10 = vector.shape_cast %9 : vector<1x8x1x32xf32> to vector<1x8x32xf32>
    %11 = vector.shape_cast %8 : vector<1x8x32xf32> to vector<1x8x1x32xf32>
    tpu.vector_store %arg7[%c0_13, %c0_14, %c2, %c0_15], %11 {strides = array<i32>} : memref<1x8x4x32xf32, #tpu.memory_space<vmem>>, vector<1x8x1x32xf32>,
    %c0_16 = arith.constant 0 : index
    %c0_17 = arith.constant 0 : index
    %c96 = arith.constant 96 : index
    %12 = vector.load %arg1[%c0_16, %c0_17, %c96] : memref<1x8x128xf32, #tpu.memory_space<vmem>>, vector<1x8x32xf32>
    %c0_18 = arith.constant 0 : index
    %c0_19 = arith.constant 0 : index
    %c3 = arith.constant 3 : index
    %c0_20 = arith.constant 0 : index
    %13 = vector.load %arg7[%c0_18, %c0_19, %c3, %c0_20] : memref<1x8x4x32xf32, #tpu.memory_space<vmem>>, vector<1x8x1x32xf32>
    %14 = vector.shape_cast %13 : vector<1x8x1x32xf32> to vector<1x8x32xf32>
    %15 = vector.shape_cast %12 : vector<1x8x32xf32> to vector<1x8x1x32xf32>
    tpu.vector_store %arg7[%c0_18, %c0_19, %c3, %c0_20], %15 {strides = array<i32>} : memref<1x8x4x32xf32, #tpu.memory_space<vmem>>, vector<1x8x1x32xf32>,
    %c0_21 = arith.constant 0 : index
    %c0_22 = arith.constant 0 : index
    %c0_23 = arith.constant 0 : index
    %c0_24 = arith.constant 0 : index
    %16 = vector.load %arg7[%c0_21, %c0_22, %c0_23, %c0_24] : memref<1x8x4x32xf32, #tpu.memory_space<vmem>>, vector<1x8x4x32xf32>
    %17 = vector.shape_cast %16 : vector<1x8x4x32xf32> to vector<32x32xf32>
    %c0_25 = arith.constant 0 : index
    %c0_26 = arith.constant 0 : index
    %18 = vector.load %arg3[%c0_25, %c0_26] : memref<32x384xbf16, #tpu.memory_space<vmem>>, vector<32x384xbf16>
    %19 = vector.extract_strided_slice %18 {offsets = [0, 0], sizes = [32, 32], strides = [1, 1]} : vector<32x384xbf16> to vector<32x32xbf16>
    %20 = vector.extract_strided_slice %18 {offsets = [0, 32], sizes = [32, 64], strides = [1, 1]} : vector<32x384xbf16> to vector<32x64xbf16>
    %21 = vector.extract_strided_slice %18 {offsets = [0, 96], sizes = [32, 32], strides = [1, 1]} : vector<32x384xbf16> to vector<32x32xbf16>
    %22 = vector.extract_strided_slice %18 {offsets = [0, 128], sizes = [32, 32], strides = [1, 1]} : vector<32x384xbf16> to vector<32x32xbf16>
    %23 = vector.extract_strided_slice %18 {offsets = [0, 160], sizes = [32, 64], strides = [1, 1]} : vector<32x384xbf16> to vector<32x64xbf16>
    %24 = vector.extract_strided_slice %18 {offsets = [0, 224], sizes = [32, 32], strides = [1, 1]} : vector<32x384xbf16> to vector<32x32xbf16>
    %25 = vector.extract_strided_slice %18 {offsets = [0, 256], sizes = [32, 128], strides = [1, 1]} : vector<32x384xbf16> to vector<32x128xbf16>
    %c0_27 = arith.constant 0 : index
    %c0_28 = arith.constant 0 : index
    %26 = vector.load %arg4[%c0_27, %c0_28] : memref<128x32xbf16, #tpu.memory_space<vmem>>, vector<128x32xbf16>
    %c0_29 = arith.constant 0 : index
    %c0_30 = arith.constant 0 : index
    %27 = vector.load %arg5[%c0_29, %c0_30] : memref<10x128xf32, #tpu.memory_space<vmem>>, vector<10x128xf32>
    %28 = vector.extract_strided_slice %27 {offsets = [0, 0], sizes = [1, 32], strides = [1, 1]} : vector<10x128xf32> to vector<1x32xf32>
    %29 = vector.extract_strided_slice %27 {offsets = [0, 32], sizes = [1, 64], strides = [1, 1]} : vector<10x128xf32> to vector<1x64xf32>
    %30 = vector.extract_strided_slice %27 {offsets = [1, 0], sizes = [1, 32], strides = [1, 1]} : vector<10x128xf32> to vector<1x32xf32>
    %31 = vector.extract_strided_slice %27 {offsets = [2, 0], sizes = [1, 32], strides = [1, 1]} : vector<10x128xf32> to vector<1x32xf32>
    %32 = vector.extract_strided_slice %27 {offsets = [2, 32], sizes = [1, 64], strides = [1, 1]} : vector<10x128xf32> to vector<1x64xf32>
    %33 = vector.extract_strided_slice %27 {offsets = [3, 0], sizes = [1, 32], strides = [1, 1]} : vector<10x128xf32> to vector<1x32xf32>
    %34 = vector.extract_strided_slice %27 {offsets = [4, 0], sizes = [1, 32], strides = [1, 1]} : vector<10x128xf32> to vector<1x32xf32>
    %35 = vector.extract_strided_slice %27 {offsets = [5, 0], sizes = [1, 32], strides = [1, 1]} : vector<10x128xf32> to vector<1x32xf32>
    %36 = vector.extract_strided_slice %27 {offsets = [6, 0], sizes = [1, 128], strides = [1, 1]} : vector<10x128xf32> to vector<1x128xf32>
    %37 = vector.extract_strided_slice %27 {offsets = [7, 0], sizes = [1, 32], strides = [1, 1]} : vector<10x128xf32> to vector<1x32xf32>
    %38 = vector.extract_strided_slice %27 {offsets = [8, 0], sizes = [1, 32], strides = [1, 1]} : vector<10x128xf32> to vector<1x32xf32>
    %39 = vector.extract_strided_slice %27 {offsets = [9, 0], sizes = [1, 32], strides = [1, 1]} : vector<10x128xf32> to vector<1x32xf32>
    %c0_31 = arith.constant 0 : index
    %c0_32 = arith.constant 0 : index
    %40 = vector.load %arg2[%c0_31, %c0_32] : memref<16x32xf32, #tpu.memory_space<vmem>>, vector<16x32xf32>
    %41 = arith.truncf %40 : vector<16x32xf32> to vector<16x32xbf16>
    %cst = arith.constant dense<0.000000e+00> : vector<16x32xf32>
    %42 = tpu.matmul %41, %19, %cst {dimension_numbers = #tpu.dot_dimension_numbers<[1], [0], [0], [1], [0, 0, 1, 1], [], []>} : vector<16x32xbf16>, vector<32x32xbf16>, vector<16x32xf32> -> vector<16x32xf32>
    %43 = vector.broadcast %28 : vector<1x32xf32> to vector<16x32xf32>
    %44 = arith.addf %42, %43 : vector<16x32xf32>
    %45 = vector.shape_cast %44 : vector<16x32xf32> to vector<8x2x32xf32>
    %46 = arith.truncf %17 : vector<32x32xf32> to vector<32x32xbf16>
    %cst_33 = arith.constant dense<0.000000e+00> : vector<32x64xf32>
    %47 = tpu.matmul %46, %20, %cst_33 {dimension_numbers = #tpu.dot_dimension_numbers<[1], [0], [0], [1], [0, 0, 1, 1], [], []>} : vector<32x32xbf16>, vector<32x64xbf16>, vector<32x64xf32> -> vector<32x64xf32>
    %48 = vector.broadcast %29 : vector<1x64xf32> to vector<32x64xf32>
    %49 = arith.addf %47, %48 : vector<32x64xf32>
    %50 = vector.extract_strided_slice %49 {offsets = [0, 0], sizes = [32, 32], strides = [1, 1]} : vector<32x64xf32> to vector<32x32xf32>
    %51 = vector.shape_cast %50 : vector<32x32xf32> to vector<8x4x32xf32>
    %52 = vector.extract_strided_slice %49 {offsets = [0, 32], sizes = [32, 32], strides = [1, 1]} : vector<32x64xf32> to vector<32x32xf32>
    %53 = vector.shape_cast %52 : vector<32x32xf32> to vector<8x4x32xf32>
    %54 = arith.truncf %45 : vector<8x2x32xf32> to vector<8x2x32xbf16>
    %55 = arith.truncf %51 : vector<8x4x32xf32> to vector<8x4x32xbf16>
    %56 = arith.truncf %53 : vector<8x4x32xf32> to vector<8x4x32xbf16>
    %57 = vector.extract_strided_slice %54 {offsets = [0, 0, 0], sizes = [8, 2, 8], strides = [1, 1, 1]} : vector<8x2x32xbf16> to vector<8x2x8xbf16>
    %58 = vector.extract_strided_slice %55 {offsets = [0, 0, 0], sizes = [8, 4, 8], strides = [1, 1, 1]} : vector<8x4x32xbf16> to vector<8x4x8xbf16>
    "tpu.trace_start"() <{level = 10 : i32, message = "bqe,bke->bqk"}> : () -> ()
    %cst_34 = arith.constant dense<0.000000e+00> : vector<8x2x4xf32>
    %59 = tpu.matmul %57, %58, %cst_34 {dimension_numbers = #tpu.dot_dimension_numbers<[2], [2], [1], [1], [0, 0, 0, 1, 1, 1], [0], [0]>} : vector<8x2x8xbf16>, vector<8x4x8xbf16>, vector<8x2x4xf32> -> vector<8x2x4xf32>
    "tpu.trace_stop"() : () -> ()
    %cst_35 = arith.constant 0.353553385 : f32
    %60 = vector.broadcast %cst_35 : f32 to vector<8x2x4xf32>
    %61 = arith.mulf %59, %60 : vector<8x2x4xf32>
    %cst_36 = arith.constant dense<0xFF800000> : vector<8x2xf32>
    %62 = vector.multi_reduction <maximumf>, %61, %cst_36 [2] : vector<8x2x4xf32> to vector<8x2xf32>
    %63 = vector.shape_cast %62 : vector<8x2xf32> to vector<8x2x1xf32>
    %64 = vector.broadcast %63 : vector<8x2x1xf32> to vector<8x2x4xf32>
    %65 = arith.subf %61, %64 : vector<8x2x4xf32>
    %66 = math.exp %65 : vector<8x2x4xf32>
    %cst_37 = arith.constant dense<0.000000e+00> : vector<8x2xf32>
    %67 = vector.multi_reduction <add>, %66, %cst_37 [2] : vector<8x2x4xf32> to vector<8x2xf32>
    %68 = vector.shape_cast %67 : vector<8x2xf32> to vector<8x2x1xf32>
    %69 = tpu.reciprocal %68 {approx = true} : vector<8x2x1xf32> -> vector<8x2x1xf32>
    %70 = vector.broadcast %69 : vector<8x2x1xf32> to vector<8x2x4xf32>
    %71 = arith.mulf %66, %70 : vector<8x2x4xf32>
    %72 = arith.truncf %71 : vector<8x2x4xf32> to vector<8x2x4xbf16>
    %73 = vector.extract_strided_slice %56 {offsets = [0, 0, 0], sizes = [8, 4, 8], strides = [1, 1, 1]} : vector<8x4x32xbf16> to vector<8x4x8xbf16>
    "tpu.trace_start"() <{level = 10 : i32, message = "bqk,bkd->bqd"}> : () -> ()
    %cst_38 = arith.constant dense<0.000000e+00> : vector<8x2x8xf32>
    %74 = tpu.matmul %72, %73, %cst_38 {dimension_numbers = #tpu.dot_dimension_numbers<[2], [1], [1], [2], [0, 0, 0, 1, 1, 2], [0], [0]>} : vector<8x2x4xbf16>, vector<8x4x8xbf16>, vector<8x2x8xf32> -> vector<8x2x8xf32>
    "tpu.trace_stop"() : () -> ()
    %75 = vector.shape_cast %74 : vector<8x2x8xf32> to vector<16x8xf32>
    %c0_39 = arith.constant 0 : index
    %c0_40 = arith.constant 0 : index
    %76 = vector.load %arg8[%c0_39, %c0_40] : memref<32x32xf32, #tpu.memory_space<vmem>>, vector<16x8xf32>
    tpu.vector_store %arg8[%c0_39, %c0_40], %75 {strides = array<i32>} : memref<32x32xf32, #tpu.memory_space<vmem>>, vector<16x8xf32>,
    %77 = vector.extract_strided_slice %54 {offsets = [0, 0, 8], sizes = [8, 2, 8], strides = [1, 1, 1]} : vector<8x2x32xbf16> to vector<8x2x8xbf16>
    %78 = vector.extract_strided_slice %55 {offsets = [0, 0, 8], sizes = [8, 4, 8], strides = [1, 1, 1]} : vector<8x4x32xbf16> to vector<8x4x8xbf16>
    "tpu.trace_start"() <{level = 10 : i32, message = "bqe,bke->bqk"}> : () -> ()
    %cst_41 = arith.constant dense<0.000000e+00> : vector<8x2x4xf32>
    %79 = tpu.matmul %77, %78, %cst_41 {dimension_numbers = #tpu.dot_dimension_numbers<[2], [2], [1], [1], [0, 0, 0, 1, 1, 1], [0], [0]>} : vector<8x2x8xbf16>, vector<8x4x8xbf16>, vector<8x2x4xf32> -> vector<8x2x4xf32>
    "tpu.trace_stop"() : () -> ()
    %cst_42 = arith.constant 0.353553385 : f32
    %80 = vector.broadcast %cst_42 : f32 to vector<8x2x4xf32>
    %81 = arith.mulf %79, %80 : vector<8x2x4xf32>
    %cst_43 = arith.constant dense<0xFF800000> : vector<8x2xf32>
    %82 = vector.multi_reduction <maximumf>, %81, %cst_43 [2] : vector<8x2x4xf32> to vector<8x2xf32>
    %83 = vector.shape_cast %82 : vector<8x2xf32> to vector<8x2x1xf32>
    %84 = vector.broadcast %83 : vector<8x2x1xf32> to vector<8x2x4xf32>
    %85 = arith.subf %81, %84 : vector<8x2x4xf32>
    %86 = math.exp %85 : vector<8x2x4xf32>
    %cst_44 = arith.constant dense<0.000000e+00> : vector<8x2xf32>
    %87 = vector.multi_reduction <add>, %86, %cst_44 [2] : vector<8x2x4xf32> to vector<8x2xf32>
    %88 = vector.shape_cast %87 : vector<8x2xf32> to vector<8x2x1xf32>
    %89 = tpu.reciprocal %88 {approx = true} : vector<8x2x1xf32> -> vector<8x2x1xf32>
    %90 = vector.broadcast %89 : vector<8x2x1xf32> to vector<8x2x4xf32>
    %91 = arith.mulf %86, %90 : vector<8x2x4xf32>
    %92 = arith.truncf %91 : vector<8x2x4xf32> to vector<8x2x4xbf16>
    %93 = vector.extract_strided_slice %56 {offsets = [0, 0, 8], sizes = [8, 4, 8], strides = [1, 1, 1]} : vector<8x4x32xbf16> to vector<8x4x8xbf16>
    "tpu.trace_start"() <{level = 10 : i32, message = "bqk,bkd->bqd"}> : () -> ()
    %cst_45 = arith.constant dense<0.000000e+00> : vector<8x2x8xf32>
    %94 = tpu.matmul %92, %93, %cst_45 {dimension_numbers = #tpu.dot_dimension_numbers<[2], [1], [1], [2], [0, 0, 0, 1, 1, 2], [0], [0]>} : vector<8x2x4xbf16>, vector<8x4x8xbf16>, vector<8x2x8xf32> -> vector<8x2x8xf32>
    "tpu.trace_stop"() : () -> ()
    %95 = vector.shape_cast %94 : vector<8x2x8xf32> to vector<16x8xf32>
    %c0_46 = arith.constant 0 : index
    %c8 = arith.constant 8 : index
    %96 = vector.load %arg8[%c0_46, %c8] : memref<32x32xf32, #tpu.memory_space<vmem>>, vector<16x8xf32>
    tpu.vector_store %arg8[%c0_46, %c8], %95 {strides = array<i32>} : memref<32x32xf32, #tpu.memory_space<vmem>>, vector<16x8xf32>,
    %97 = vector.extract_strided_slice %54 {offsets = [0, 0, 16], sizes = [8, 2, 8], strides = [1, 1, 1]} : vector<8x2x32xbf16> to vector<8x2x8xbf16>
    %98 = vector.extract_strided_slice %55 {offsets = [0, 0, 16], sizes = [8, 4, 8], strides = [1, 1, 1]} : vector<8x4x32xbf16> to vector<8x4x8xbf16>
    "tpu.trace_start"() <{level = 10 : i32, message = "bqe,bke->bqk"}> : () -> ()
    %cst_47 = arith.constant dense<0.000000e+00> : vector<8x2x4xf32>
    %99 = tpu.matmul %97, %98, %cst_47 {dimension_numbers = #tpu.dot_dimension_numbers<[2], [2], [1], [1], [0, 0, 0, 1, 1, 1], [0], [0]>} : vector<8x2x8xbf16>, vector<8x4x8xbf16>, vector<8x2x4xf32> -> vector<8x2x4xf32>
    "tpu.trace_stop"() : () -> ()
    %cst_48 = arith.constant 0.353553385 : f32
    %100 = vector.broadcast %cst_48 : f32 to vector<8x2x4xf32>
    %101 = arith.mulf %99, %100 : vector<8x2x4xf32>
    %cst_49 = arith.constant dense<0xFF800000> : vector<8x2xf32>
    %102 = vector.multi_reduction <maximumf>, %101, %cst_49 [2] : vector<8x2x4xf32> to vector<8x2xf32>
    %103 = vector.shape_cast %102 : vector<8x2xf32> to vector<8x2x1xf32>
    %104 = vector.broadcast %103 : vector<8x2x1xf32> to vector<8x2x4xf32>
    %105 = arith.subf %101, %104 : vector<8x2x4xf32>
    %106 = math.exp %105 : vector<8x2x4xf32>
    %cst_50 = arith.constant dense<0.000000e+00> : vector<8x2xf32>
    %107 = vector.multi_reduction <add>, %106, %cst_50 [2] : vector<8x2x4xf32> to vector<8x2xf32>
    %108 = vector.shape_cast %107 : vector<8x2xf32> to vector<8x2x1xf32>
    %109 = tpu.reciprocal %108 {approx = true} : vector<8x2x1xf32> -> vector<8x2x1xf32>
    %110 = vector.broadcast %109 : vector<8x2x1xf32> to vector<8x2x4xf32>
    %111 = arith.mulf %106, %110 : vector<8x2x4xf32>
    %112 = arith.truncf %111 : vector<8x2x4xf32> to vector<8x2x4xbf16>
    %113 = vector.extract_strided_slice %56 {offsets = [0, 0, 16], sizes = [8, 4, 8], strides = [1, 1, 1]} : vector<8x4x32xbf16> to vector<8x4x8xbf16>
    "tpu.trace_start"() <{level = 10 : i32, message = "bqk,bkd->bqd"}> : () -> ()
    %cst_51 = arith.constant dense<0.000000e+00> : vector<8x2x8xf32>
    %114 = tpu.matmul %112, %113, %cst_51 {dimension_numbers = #tpu.dot_dimension_numbers<[2], [1], [1], [2], [0, 0, 0, 1, 1, 2], [0], [0]>} : vector<8x2x4xbf16>, vector<8x4x8xbf16>, vector<8x2x8xf32> -> vector<8x2x8xf32>
    "tpu.trace_stop"() : () -> ()
    %115 = vector.shape_cast %114 : vector<8x2x8xf32> to vector<16x8xf32>
    %c0_52 = arith.constant 0 : index
    %c16 = arith.constant 16 : index
    %116 = vector.load %arg8[%c0_52, %c16] : memref<32x32xf32, #tpu.memory_space<vmem>>, vector<16x8xf32>
    tpu.vector_store %arg8[%c0_52, %c16], %115 {strides = array<i32>} : memref<32x32xf32, #tpu.memory_space<vmem>>, vector<16x8xf32>,
    %117 = vector.extract_strided_slice %54 {offsets = [0, 0, 24], sizes = [8, 2, 8], strides = [1, 1, 1]} : vector<8x2x32xbf16> to vector<8x2x8xbf16>
    %118 = vector.extract_strided_slice %55 {offsets = [0, 0, 24], sizes = [8, 4, 8], strides = [1, 1, 1]} : vector<8x4x32xbf16> to vector<8x4x8xbf16>
    "tpu.trace_start"() <{level = 10 : i32, message = "bqe,bke->bqk"}> : () -> ()
    %cst_53 = arith.constant dense<0.000000e+00> : vector<8x2x4xf32>
    %119 = tpu.matmul %117, %118, %cst_53 {dimension_numbers = #tpu.dot_dimension_numbers<[2], [2], [1], [1], [0, 0, 0, 1, 1, 1], [0], [0]>} : vector<8x2x8xbf16>, vector<8x4x8xbf16>, vector<8x2x4xf32> -> vector<8x2x4xf32>
    "tpu.trace_stop"() : () -> ()
    %cst_54 = arith.constant 0.353553385 : f32
    %120 = vector.broadcast %cst_54 : f32 to vector<8x2x4xf32>
    %121 = arith.mulf %119, %120 : vector<8x2x4xf32>
    %cst_55 = arith.constant dense<0xFF800000> : vector<8x2xf32>
    %122 = vector.multi_reduction <maximumf>, %121, %cst_55 [2] : vector<8x2x4xf32> to vector<8x2xf32>
    %123 = vector.shape_cast %122 : vector<8x2xf32> to vector<8x2x1xf32>
    %124 = vector.broadcast %123 : vector<8x2x1xf32> to vector<8x2x4xf32>
    %125 = arith.subf %121, %124 : vector<8x2x4xf32>
    %126 = math.exp %125 : vector<8x2x4xf32>
    %cst_56 = arith.constant dense<0.000000e+00> : vector<8x2xf32>
    %127 = vector.multi_reduction <add>, %126, %cst_56 [2] : vector<8x2x4xf32> to vector<8x2xf32>
    %128 = vector.shape_cast %127 : vector<8x2xf32> to vector<8x2x1xf32>
    %129 = tpu.reciprocal %128 {approx = true} : vector<8x2x1xf32> -> vector<8x2x1xf32>
    %130 = vector.broadcast %129 : vector<8x2x1xf32> to vector<8x2x4xf32>
    %131 = arith.mulf %126, %130 : vector<8x2x4xf32>
    %132 = arith.truncf %131 : vector<8x2x4xf32> to vector<8x2x4xbf16>
    %133 = vector.extract_strided_slice %56 {offsets = [0, 0, 24], sizes = [8, 4, 8], strides = [1, 1, 1]} : vector<8x4x32xbf16> to vector<8x4x8xbf16>
    "tpu.trace_start"() <{level = 10 : i32, message = "bqk,bkd->bqd"}> : () -> ()
    %cst_57 = arith.constant dense<0.000000e+00> : vector<8x2x8xf32>
    %134 = tpu.matmul %132, %133, %cst_57 {dimension_numbers = #tpu.dot_dimension_numbers<[2], [1], [1], [2], [0, 0, 0, 1, 1, 2], [0], [0]>} : vector<8x2x4xbf16>, vector<8x4x8xbf16>, vector<8x2x8xf32> -> vector<8x2x8xf32>
    "tpu.trace_stop"() : () -> ()
    %135 = vector.shape_cast %134 : vector<8x2x8xf32> to vector<16x8xf32>
    %c0_58 = arith.constant 0 : index
    %c24 = arith.constant 24 : index
    %136 = vector.load %arg8[%c0_58, %c24] : memref<32x32xf32, #tpu.memory_space<vmem>>, vector<16x8xf32>
    tpu.vector_store %arg8[%c0_58, %c24], %135 {strides = array<i32>} : memref<32x32xf32, #tpu.memory_space<vmem>>, vector<16x8xf32>,
    %c0_59 = arith.constant 0 : index
    %c0_60 = arith.constant 0 : index
    %137 = vector.load %arg8[%c0_59, %c0_60] : memref<32x32xf32, #tpu.memory_space<vmem>>, vector<16x32xf32>
    %138 = arith.truncf %137 : vector<16x32xf32> to vector<16x32xbf16>
    %cst_61 = arith.constant dense<0.000000e+00> : vector<16x32xf32>
    %139 = tpu.matmul %138, %21, %cst_61 {dimension_numbers = #tpu.dot_dimension_numbers<[1], [0], [0], [1], [0, 0, 1, 1], [], []>} : vector<16x32xbf16>, vector<32x32xbf16>, vector<16x32xf32> -> vector<16x32xf32>
    %140 = vector.broadcast %30 : vector<1x32xf32> to vector<16x32xf32>
    %141 = arith.addf %139, %140 : vector<16x32xf32>
    %142 = arith.truncf %17 : vector<32x32xf32> to vector<32x32xbf16>
    %cst_62 = arith.constant dense<0.000000e+00> : vector<32x32xf32>
    %143 = tpu.matmul %142, %22, %cst_62 {dimension_numbers = #tpu.dot_dimension_numbers<[1], [0], [0], [1], [0, 0, 1, 1], [], []>} : vector<32x32xbf16>, vector<32x32xbf16>, vector<32x32xf32> -> vector<32x32xf32>
    %144 = vector.broadcast %31 : vector<1x32xf32> to vector<32x32xf32>
    %145 = arith.addf %143, %144 : vector<32x32xf32>
    %146 = vector.shape_cast %145 : vector<32x32xf32> to vector<8x4x32xf32>
    %147 = arith.truncf %141 : vector<16x32xf32> to vector<16x32xbf16>
    %cst_63 = arith.constant dense<0.000000e+00> : vector<16x64xf32>
    %148 = tpu.matmul %147, %23, %cst_63 {dimension_numbers = #tpu.dot_dimension_numbers<[1], [0], [0], [1], [0, 0, 1, 1], [], []>} : vector<16x32xbf16>, vector<32x64xbf16>, vector<16x64xf32> -> vector<16x64xf32>
    %149 = vector.broadcast %32 : vector<1x64xf32> to vector<16x64xf32>
    %150 = arith.addf %148, %149 : vector<16x64xf32>
    %151 = vector.extract_strided_slice %150 {offsets = [0, 0], sizes = [16, 32], strides = [1, 1]} : vector<16x64xf32> to vector<16x32xf32>
    %152 = vector.shape_cast %151 : vector<16x32xf32> to vector<8x2x32xf32>
    %153 = vector.extract_strided_slice %150 {offsets = [0, 32], sizes = [16, 32], strides = [1, 1]} : vector<16x64xf32> to vector<16x32xf32>
    %154 = vector.shape_cast %153 : vector<16x32xf32> to vector<8x2x32xf32>
    %155 = arith.truncf %146 : vector<8x4x32xf32> to vector<8x4x32xbf16>
    %156 = arith.truncf %152 : vector<8x2x32xf32> to vector<8x2x32xbf16>
    %157 = arith.truncf %154 : vector<8x2x32xf32> to vector<8x2x32xbf16>
    %158 = vector.extract_strided_slice %155 {offsets = [0, 0, 0], sizes = [8, 4, 8], strides = [1, 1, 1]} : vector<8x4x32xbf16> to vector<8x4x8xbf16>
    %159 = vector.extract_strided_slice %156 {offsets = [0, 0, 0], sizes = [8, 2, 8], strides = [1, 1, 1]} : vector<8x2x32xbf16> to vector<8x2x8xbf16>
    "tpu.trace_start"() <{level = 10 : i32, message = "bqe,bke->bqk"}> : () -> ()
    %cst_64 = arith.constant dense<0.000000e+00> : vector<8x4x2xf32>
    %160 = tpu.matmul %158, %159, %cst_64 {dimension_numbers = #tpu.dot_dimension_numbers<[2], [2], [1], [1], [0, 0, 0, 1, 1, 1], [0], [0]>} : vector<8x4x8xbf16>, vector<8x2x8xbf16>, vector<8x4x2xf32> -> vector<8x4x2xf32>
    "tpu.trace_stop"() : () -> ()
    %cst_65 = arith.constant 0.353553385 : f32
    %161 = vector.broadcast %cst_65 : f32 to vector<8x4x2xf32>
    %162 = arith.mulf %160, %161 : vector<8x4x2xf32>
    %cst_66 = arith.constant dense<0xFF800000> : vector<8x4xf32>
    %163 = vector.multi_reduction <maximumf>, %162, %cst_66 [2] : vector<8x4x2xf32> to vector<8x4xf32>
    %164 = vector.shape_cast %163 : vector<8x4xf32> to vector<8x4x1xf32>
    %165 = vector.broadcast %164 : vector<8x4x1xf32> to vector<8x4x2xf32>
    %166 = arith.subf %162, %165 : vector<8x4x2xf32>
    %167 = math.exp %166 : vector<8x4x2xf32>
    %cst_67 = arith.constant dense<0.000000e+00> : vector<8x4xf32>
    %168 = vector.multi_reduction <add>, %167, %cst_67 [2] : vector<8x4x2xf32> to vector<8x4xf32>
    %169 = vector.shape_cast %168 : vector<8x4xf32> to vector<8x4x1xf32>
    %170 = tpu.reciprocal %169 {approx = true} : vector<8x4x1xf32> -> vector<8x4x1xf32>
    %171 = vector.broadcast %170 : vector<8x4x1xf32> to vector<8x4x2xf32>
    %172 = arith.mulf %167, %171 : vector<8x4x2xf32>
    %173 = arith.truncf %172 : vector<8x4x2xf32> to vector<8x4x2xbf16>
    %174 = vector.extract_strided_slice %157 {offsets = [0, 0, 0], sizes = [8, 2, 8], strides = [1, 1, 1]} : vector<8x2x32xbf16> to vector<8x2x8xbf16>
    "tpu.trace_start"() <{level = 10 : i32, message = "bqk,bkd->bqd"}> : () -> ()
    %cst_68 = arith.constant dense<0.000000e+00> : vector<8x4x8xf32>
    %175 = tpu.matmul %173, %174, %cst_68 {dimension_numbers = #tpu.dot_dimension_numbers<[2], [1], [1], [2], [0, 0, 0, 1, 1, 2], [0], [0]>} : vector<8x4x2xbf16>, vector<8x2x8xbf16>, vector<8x4x8xf32> -> vector<8x4x8xf32>
    "tpu.trace_stop"() : () -> ()
    %176 = vector.shape_cast %175 : vector<8x4x8xf32> to vector<32x8xf32>
    %c0_69 = arith.constant 0 : index
    %c0_70 = arith.constant 0 : index
    %177 = vector.load %arg8[%c0_69, %c0_70] : memref<32x32xf32, #tpu.memory_space<vmem>>, vector<32x8xf32>
    tpu.vector_store %arg8[%c0_69, %c0_70], %176 {strides = array<i32>} : memref<32x32xf32, #tpu.memory_space<vmem>>, vector<32x8xf32>,
    %178 = vector.extract_strided_slice %155 {offsets = [0, 0, 8], sizes = [8, 4, 8], strides = [1, 1, 1]} : vector<8x4x32xbf16> to vector<8x4x8xbf16>
    %179 = vector.extract_strided_slice %156 {offsets = [0, 0, 8], sizes = [8, 2, 8], strides = [1, 1, 1]} : vector<8x2x32xbf16> to vector<8x2x8xbf16>
    "tpu.trace_start"() <{level = 10 : i32, message = "bqe,bke->bqk"}> : () -> ()
    %cst_71 = arith.constant dense<0.000000e+00> : vector<8x4x2xf32>
    %180 = tpu.matmul %178, %179, %cst_71 {dimension_numbers = #tpu.dot_dimension_numbers<[2], [2], [1], [1], [0, 0, 0, 1, 1, 1], [0], [0]>} : vector<8x4x8xbf16>, vector<8x2x8xbf16>, vector<8x4x2xf32> -> vector<8x4x2xf32>
    "tpu.trace_stop"() : () -> ()
    %cst_72 = arith.constant 0.353553385 : f32
    %181 = vector.broadcast %cst_72 : f32 to vector<8x4x2xf32>
    %182 = arith.mulf %180, %181 : vector<8x4x2xf32>
    %cst_73 = arith.constant dense<0xFF800000> : vector<8x4xf32>
    %183 = vector.multi_reduction <maximumf>, %182, %cst_73 [2] : vector<8x4x2xf32> to vector<8x4xf32>
    %184 = vector.shape_cast %183 : vector<8x4xf32> to vector<8x4x1xf32>
    %185 = vector.broadcast %184 : vector<8x4x1xf32> to vector<8x4x2xf32>
    %186 = arith.subf %182, %185 : vector<8x4x2xf32>
    %187 = math.exp %186 : vector<8x4x2xf32>
    %cst_74 = arith.constant dense<0.000000e+00> : vector<8x4xf32>
    %188 = vector.multi_reduction <add>, %187, %cst_74 [2] : vector<8x4x2xf32> to vector<8x4xf32>
    %189 = vector.shape_cast %188 : vector<8x4xf32> to vector<8x4x1xf32>
    %190 = tpu.reciprocal %189 {approx = true} : vector<8x4x1xf32> -> vector<8x4x1xf32>
    %191 = vector.broadcast %190 : vector<8x4x1xf32> to vector<8x4x2xf32>
    %192 = arith.mulf %187, %191 : vector<8x4x2xf32>
    %193 = arith.truncf %192 : vector<8x4x2xf32> to vector<8x4x2xbf16>
    %194 = vector.extract_strided_slice %157 {offsets = [0, 0, 8], sizes = [8, 2, 8], strides = [1, 1, 1]} : vector<8x2x32xbf16> to vector<8x2x8xbf16>
    "tpu.trace_start"() <{level = 10 : i32, message = "bqk,bkd->bqd"}> : () -> ()
    %cst_75 = arith.constant dense<0.000000e+00> : vector<8x4x8xf32>
    %195 = tpu.matmul %193, %194, %cst_75 {dimension_numbers = #tpu.dot_dimension_numbers<[2], [1], [1], [2], [0, 0, 0, 1, 1, 2], [0], [0]>} : vector<8x4x2xbf16>, vector<8x2x8xbf16>, vector<8x4x8xf32> -> vector<8x4x8xf32>
    "tpu.trace_stop"() : () -> ()
    %196 = vector.shape_cast %195 : vector<8x4x8xf32> to vector<32x8xf32>
    %c0_76 = arith.constant 0 : index
    %c8_77 = arith.constant 8 : index
    %197 = vector.load %arg8[%c0_76, %c8_77] : memref<32x32xf32, #tpu.memory_space<vmem>>, vector<32x8xf32>
    tpu.vector_store %arg8[%c0_76, %c8_77], %196 {strides = array<i32>} : memref<32x32xf32, #tpu.memory_space<vmem>>, vector<32x8xf32>,
    %198 = vector.extract_strided_slice %155 {offsets = [0, 0, 16], sizes = [8, 4, 8], strides = [1, 1, 1]} : vector<8x4x32xbf16> to vector<8x4x8xbf16>
    %199 = vector.extract_strided_slice %156 {offsets = [0, 0, 16], sizes = [8, 2, 8], strides = [1, 1, 1]} : vector<8x2x32xbf16> to vector<8x2x8xbf16>
    "tpu.trace_start"() <{level = 10 : i32, message = "bqe,bke->bqk"}> : () -> ()
    %cst_78 = arith.constant dense<0.000000e+00> : vector<8x4x2xf32>
    %200 = tpu.matmul %198, %199, %cst_78 {dimension_numbers = #tpu.dot_dimension_numbers<[2], [2], [1], [1], [0, 0, 0, 1, 1, 1], [0], [0]>} : vector<8x4x8xbf16>, vector<8x2x8xbf16>, vector<8x4x2xf32> -> vector<8x4x2xf32>
    "tpu.trace_stop"() : () -> ()
    %cst_79 = arith.constant 0.353553385 : f32
    %201 = vector.broadcast %cst_79 : f32 to vector<8x4x2xf32>
    %202 = arith.mulf %200, %201 : vector<8x4x2xf32>
    %cst_80 = arith.constant dense<0xFF800000> : vector<8x4xf32>
    %203 = vector.multi_reduction <maximumf>, %202, %cst_80 [2] : vector<8x4x2xf32> to vector<8x4xf32>
    %204 = vector.shape_cast %203 : vector<8x4xf32> to vector<8x4x1xf32>
    %205 = vector.broadcast %204 : vector<8x4x1xf32> to vector<8x4x2xf32>
    %206 = arith.subf %202, %205 : vector<8x4x2xf32>
    %207 = math.exp %206 : vector<8x4x2xf32>
    %cst_81 = arith.constant dense<0.000000e+00> : vector<8x4xf32>
    %208 = vector.multi_reduction <add>, %207, %cst_81 [2] : vector<8x4x2xf32> to vector<8x4xf32>
    %209 = vector.shape_cast %208 : vector<8x4xf32> to vector<8x4x1xf32>
    %210 = tpu.reciprocal %209 {approx = true} : vector<8x4x1xf32> -> vector<8x4x1xf32>
    %211 = vector.broadcast %210 : vector<8x4x1xf32> to vector<8x4x2xf32>
    %212 = arith.mulf %207, %211 : vector<8x4x2xf32>
    %213 = arith.truncf %212 : vector<8x4x2xf32> to vector<8x4x2xbf16>
    %214 = vector.extract_strided_slice %157 {offsets = [0, 0, 16], sizes = [8, 2, 8], strides = [1, 1, 1]} : vector<8x2x32xbf16> to vector<8x2x8xbf16>
    "tpu.trace_start"() <{level = 10 : i32, message = "bqk,bkd->bqd"}> : () -> ()
    %cst_82 = arith.constant dense<0.000000e+00> : vector<8x4x8xf32>
    %215 = tpu.matmul %213, %214, %cst_82 {dimension_numbers = #tpu.dot_dimension_numbers<[2], [1], [1], [2], [0, 0, 0, 1, 1, 2], [0], [0]>} : vector<8x4x2xbf16>, vector<8x2x8xbf16>, vector<8x4x8xf32> -> vector<8x4x8xf32>
    "tpu.trace_stop"() : () -> ()
    %216 = vector.shape_cast %215 : vector<8x4x8xf32> to vector<32x8xf32>
    %c0_83 = arith.constant 0 : index
    %c16_84 = arith.constant 16 : index
    %217 = vector.load %arg8[%c0_83, %c16_84] : memref<32x32xf32, #tpu.memory_space<vmem>>, vector<32x8xf32>
    tpu.vector_store %arg8[%c0_83, %c16_84], %216 {strides = array<i32>} : memref<32x32xf32, #tpu.memory_space<vmem>>, vector<32x8xf32>,
    %218 = vector.extract_strided_slice %155 {offsets = [0, 0, 24], sizes = [8, 4, 8], strides = [1, 1, 1]} : vector<8x4x32xbf16> to vector<8x4x8xbf16>
    %219 = vector.extract_strided_slice %156 {offsets = [0, 0, 24], sizes = [8, 2, 8], strides = [1, 1, 1]} : vector<8x2x32xbf16> to vector<8x2x8xbf16>
    "tpu.trace_start"() <{level = 10 : i32, message = "bqe,bke->bqk"}> : () -> ()
    %cst_85 = arith.constant dense<0.000000e+00> : vector<8x4x2xf32>
    %220 = tpu.matmul %218, %219, %cst_85 {dimension_numbers = #tpu.dot_dimension_numbers<[2], [2], [1], [1], [0, 0, 0, 1, 1, 1], [0], [0]>} : vector<8x4x8xbf16>, vector<8x2x8xbf16>, vector<8x4x2xf32> -> vector<8x4x2xf32>
    "tpu.trace_stop"() : () -> ()
    %cst_86 = arith.constant 0.353553385 : f32
    %221 = vector.broadcast %cst_86 : f32 to vector<8x4x2xf32>
    %222 = arith.mulf %220, %221 : vector<8x4x2xf32>
    %cst_87 = arith.constant dense<0xFF800000> : vector<8x4xf32>
    %223 = vector.multi_reduction <maximumf>, %222, %cst_87 [2] : vector<8x4x2xf32> to vector<8x4xf32>
    %224 = vector.shape_cast %223 : vector<8x4xf32> to vector<8x4x1xf32>
    %225 = vector.broadcast %224 : vector<8x4x1xf32> to vector<8x4x2xf32>
    %226 = arith.subf %222, %225 : vector<8x4x2xf32>
    %227 = math.exp %226 : vector<8x4x2xf32>
    %cst_88 = arith.constant dense<0.000000e+00> : vector<8x4xf32>
    %228 = vector.multi_reduction <add>, %227, %cst_88 [2] : vector<8x4x2xf32> to vector<8x4xf32>
    %229 = vector.shape_cast %228 : vector<8x4xf32> to vector<8x4x1xf32>
    %230 = tpu.reciprocal %229 {approx = true} : vector<8x4x1xf32> -> vector<8x4x1xf32>
    %231 = vector.broadcast %230 : vector<8x4x1xf32> to vector<8x4x2xf32>
    %232 = arith.mulf %227, %231 : vector<8x4x2xf32>
    %233 = arith.truncf %232 : vector<8x4x2xf32> to vector<8x4x2xbf16>
    %234 = vector.extract_strided_slice %157 {offsets = [0, 0, 24], sizes = [8, 2, 8], strides = [1, 1, 1]} : vector<8x2x32xbf16> to vector<8x2x8xbf16>
    "tpu.trace_start"() <{level = 10 : i32, message = "bqk,bkd->bqd"}> : () -> ()
    %cst_89 = arith.constant dense<0.000000e+00> : vector<8x4x8xf32>
    %235 = tpu.matmul %233, %234, %cst_89 {dimension_numbers = #tpu.dot_dimension_numbers<[2], [1], [1], [2], [0, 0, 0, 1, 1, 2], [0], [0]>} : vector<8x4x2xbf16>, vector<8x2x8xbf16>, vector<8x4x8xf32> -> vector<8x4x8xf32>
    "tpu.trace_stop"() : () -> ()
    %236 = vector.shape_cast %235 : vector<8x4x8xf32> to vector<32x8xf32>
    %c0_90 = arith.constant 0 : index
    %c24_91 = arith.constant 24 : index
    %237 = vector.load %arg8[%c0_90, %c24_91] : memref<32x32xf32, #tpu.memory_space<vmem>>, vector<32x8xf32>
    tpu.vector_store %arg8[%c0_90, %c24_91], %236 {strides = array<i32>} : memref<32x32xf32, #tpu.memory_space<vmem>>, vector<32x8xf32>,
    %c0_92 = arith.constant 0 : index
    %c0_93 = arith.constant 0 : index
    %238 = vector.load %arg8[%c0_92, %c0_93] : memref<32x32xf32, #tpu.memory_space<vmem>>, vector<32x32xf32>
    %239 = arith.truncf %238 : vector<32x32xf32> to vector<32x32xbf16>
    %cst_94 = arith.constant dense<0.000000e+00> : vector<32x32xf32>
    %240 = tpu.matmul %239, %24, %cst_94 {dimension_numbers = #tpu.dot_dimension_numbers<[1], [0], [0], [1], [0, 0, 1, 1], [], []>} : vector<32x32xbf16>, vector<32x32xbf16>, vector<32x32xf32> -> vector<32x32xf32>
    %241 = vector.broadcast %33 : vector<1x32xf32> to vector<32x32xf32>
    %242 = arith.addf %240, %241 : vector<32x32xf32>
    %243 = arith.addf %17, %242 : vector<32x32xf32>
    %cst_95 = arith.constant dense<0.000000e+00> : vector<32xf32>
    %244 = vector.multi_reduction <add>, %243, %cst_95 [1] : vector<32x32xf32> to vector<32xf32>
    %245 = vector.shape_cast %244 : vector<32xf32> to vector<32x1xf32>
    %cst_96 = arith.constant 3.200000e+01 : f32
    %246 = vector.broadcast %cst_96 : f32 to vector<32x1xf32>
    %247 = arith.divf %245, %246 : vector<32x1xf32>
    %248 = vector.broadcast %247 : vector<32x1xf32> to vector<32x32xf32>
    %249 = arith.subf %243, %248 : vector<32x32xf32>
    %250 = arith.mulf %249, %249 : vector<32x32xf32>
    %cst_97 = arith.constant dense<0.000000e+00> : vector<32xf32>
    %251 = vector.multi_reduction <add>, %250, %cst_97 [1] : vector<32x32xf32> to vector<32xf32>
    %252 = vector.shape_cast %251 : vector<32xf32> to vector<32x1xf32>
    %cst_98 = arith.constant 3.200000e+01 : f32
    %253 = vector.broadcast %cst_98 : f32 to vector<32x1xf32>
    %254 = arith.divf %252, %253 : vector<32x1xf32>
    %cst_99 = arith.constant 9.99999974E-6 : f32
    %255 = vector.broadcast %cst_99 : f32 to vector<32x1xf32>
    %256 = arith.addf %254, %255 : vector<32x1xf32>
    %257 = math.rsqrt %256 : vector<32x1xf32>
    %258 = vector.broadcast %257 : vector<32x1xf32> to vector<32x32xf32>
    %259 = arith.mulf %249, %258 : vector<32x32xf32>
    %260 = vector.broadcast %34 : vector<1x32xf32> to vector<32x32xf32>
    %261 = arith.mulf %259, %260 : vector<32x32xf32>
    %262 = vector.broadcast %35 : vector<1x32xf32> to vector<32x32xf32>
    %263 = arith.addf %261, %262 : vector<32x32xf32>
    %264 = arith.truncf %263 : vector<32x32xf32> to vector<32x32xbf16>
    %cst_100 = arith.constant dense<0.000000e+00> : vector<32x128xf32>
    %265 = tpu.matmul %264, %25, %cst_100 {dimension_numbers = #tpu.dot_dimension_numbers<[1], [0], [0], [1], [0, 0, 1, 1], [], []>} : vector<32x32xbf16>, vector<32x128xbf16>, vector<32x128xf32> -> vector<32x128xf32>
    %266 = vector.broadcast %36 : vector<1x128xf32> to vector<32x128xf32>
    %267 = arith.addf %265, %266 : vector<32x128xf32>
    %cst_101 = arith.constant 5.000000e-01 : f32
    %268 = vector.broadcast %cst_101 : f32 to vector<32x128xf32>
    %269 = arith.mulf %268, %267 : vector<32x128xf32>
    %cst_102 = arith.constant 0.707106769 : f32
    %270 = vector.broadcast %cst_102 : f32 to vector<32x128xf32>
    %271 = arith.mulf %267, %270 : vector<32x128xf32>
    %272 = math.erf %271 : vector<32x128xf32>
    %cst_103 = arith.constant 1.000000e+00 : f32
    %273 = vector.broadcast %cst_103 : f32 to vector<32x128xf32>
    %274 = arith.addf %273, %272 : vector<32x128xf32>
    %275 = arith.mulf %269, %274 : vector<32x128xf32>
    %276 = arith.truncf %275 : vector<32x128xf32> to vector<32x128xbf16>
    %cst_104 = arith.constant dense<0.000000e+00> : vector<32x32xf32>
    %277 = tpu.matmul %276, %26, %cst_104 {dimension_numbers = #tpu.dot_dimension_numbers<[1], [0], [0], [1], [0, 0, 1, 1], [], []>} : vector<32x128xbf16>, vector<128x32xbf16>, vector<32x32xf32> -> vector<32x32xf32>
    %278 = arith.addf %263, %277 : vector<32x32xf32>
    %279 = vector.broadcast %37 : vector<1x32xf32> to vector<32x32xf32>
    %280 = arith.addf %278, %279 : vector<32x32xf32>
    %cst_105 = arith.constant dense<0.000000e+00> : vector<32xf32>
    %281 = vector.multi_reduction <add>, %280, %cst_105 [1] : vector<32x32xf32> to vector<32xf32>
    %282 = vector.shape_cast %281 : vector<32xf32> to vector<32x1xf32>
    %cst_106 = arith.constant 3.200000e+01 : f32
    %283 = vector.broadcast %cst_106 : f32 to vector<32x1xf32>
    %284 = arith.divf %282, %283 : vector<32x1xf32>
    %285 = vector.broadcast %284 : vector<32x1xf32> to vector<32x32xf32>
    %286 = arith.subf %280, %285 : vector<32x32xf32>
    %287 = arith.mulf %286, %286 : vector<32x32xf32>
    %cst_107 = arith.constant dense<0.000000e+00> : vector<32xf32>
    %288 = vector.multi_reduction <add>, %287, %cst_107 [1] : vector<32x32xf32> to vector<32xf32>
    %289 = vector.shape_cast %288 : vector<32xf32> to vector<32x1xf32>
    %cst_108 = arith.constant 3.200000e+01 : f32
    %290 = vector.broadcast %cst_108 : f32 to vector<32x1xf32>
    %291 = arith.divf %289, %290 : vector<32x1xf32>
    %cst_109 = arith.constant 9.99999974E-6 : f32
    %292 = vector.broadcast %cst_109 : f32 to vector<32x1xf32>
    %293 = arith.addf %291, %292 : vector<32x1xf32>
    %294 = math.rsqrt %293 : vector<32x1xf32>
    %295 = vector.broadcast %294 : vector<32x1xf32> to vector<32x32xf32>
    %296 = arith.mulf %286, %295 : vector<32x32xf32>
    %297 = vector.broadcast %38 : vector<1x32xf32> to vector<32x32xf32>
    %298 = arith.mulf %296, %297 : vector<32x32xf32>
    %299 = vector.broadcast %39 : vector<1x32xf32> to vector<32x32xf32>
    %300 = arith.addf %298, %299 : vector<32x32xf32>
    %301 = vector.shape_cast %300 : vector<32x32xf32> to vector<1x8x4x32xf32>
    %302 = vector.extract_strided_slice %301 {offsets = [0, 0, 0, 0], sizes = [1, 1, 4, 32], strides = [1, 1, 1, 1]} : vector<1x8x4x32xf32> to vector<1x1x4x32xf32>
    %303 = vector.shape_cast %302 : vector<1x1x4x32xf32> to vector<1x4x32xf32>
    %c0_110 = arith.constant 0 : index
    %c0_111 = arith.constant 0 : index
    %c0_112 = arith.constant 0 : index
    %304 = vector.load %arg6[%c0_110, %c0_111, %c0_112] : memref<1x4x256xf32, #tpu.memory_space<vmem>>, vector<1x4x32xf32>
    tpu.vector_store %arg6[%c0_110, %c0_111, %c0_112], %303 {strides = array<i32>} : memref<1x4x256xf32, #tpu.memory_space<vmem>>, vector<1x4x32xf32>,
    %305 = vector.extract_strided_slice %301 {offsets = [0, 1, 0, 0], sizes = [1, 1, 4, 32], strides = [1, 1, 1, 1]} : vector<1x8x4x32xf32> to vector<1x1x4x32xf32>
    %306 = vector.shape_cast %305 : vector<1x1x4x32xf32> to vector<1x4x32xf32>
    %c0_113 = arith.constant 0 : index
    %c0_114 = arith.constant 0 : index
    %c32_115 = arith.constant 32 : index
    %307 = vector.load %arg6[%c0_113, %c0_114, %c32_115] : memref<1x4x256xf32, #tpu.memory_space<vmem>>, vector<1x4x32xf32>
    tpu.vector_store %arg6[%c0_113, %c0_114, %c32_115], %306 {strides = array<i32>} : memref<1x4x256xf32, #tpu.memory_space<vmem>>, vector<1x4x32xf32>,
    %308 = vector.extract_strided_slice %301 {offsets = [0, 2, 0, 0], sizes = [1, 1, 4, 32], strides = [1, 1, 1, 1]} : vector<1x8x4x32xf32> to vector<1x1x4x32xf32>
    %309 = vector.shape_cast %308 : vector<1x1x4x32xf32> to vector<1x4x32xf32>
    %c0_116 = arith.constant 0 : index
    %c0_117 = arith.constant 0 : index
    %c64_118 = arith.constant 64 : index
    %310 = vector.load %arg6[%c0_116, %c0_117, %c64_118] : memref<1x4x256xf32, #tpu.memory_space<vmem>>, vector<1x4x32xf32>
    tpu.vector_store %arg6[%c0_116, %c0_117, %c64_118], %309 {strides = array<i32>} : memref<1x4x256xf32, #tpu.memory_space<vmem>>, vector<1x4x32xf32>,
    %311 = vector.extract_strided_slice %301 {offsets = [0, 3, 0, 0], sizes = [1, 1, 4, 32], strides = [1, 1, 1, 1]} : vector<1x8x4x32xf32> to vector<1x1x4x32xf32>
    %312 = vector.shape_cast %311 : vector<1x1x4x32xf32> to vector<1x4x32xf32>
    %c0_119 = arith.constant 0 : index
    %c0_120 = arith.constant 0 : index
    %c96_121 = arith.constant 96 : index
    %313 = vector.load %arg6[%c0_119, %c0_120, %c96_121] : memref<1x4x256xf32, #tpu.memory_space<vmem>>, vector<1x4x32xf32>
    tpu.vector_store %arg6[%c0_119, %c0_120, %c96_121], %312 {strides = array<i32>} : memref<1x4x256xf32, #tpu.memory_space<vmem>>, vector<1x4x32xf32>,
    %314 = vector.extract_strided_slice %301 {offsets = [0, 4, 0, 0], sizes = [1, 1, 4, 32], strides = [1, 1, 1, 1]} : vector<1x8x4x32xf32> to vector<1x1x4x32xf32>
    %315 = vector.shape_cast %314 : vector<1x1x4x32xf32> to vector<1x4x32xf32>
    %c0_122 = arith.constant 0 : index
    %c0_123 = arith.constant 0 : index
    %c128 = arith.constant 128 : index
    %316 = vector.load %arg6[%c0_122, %c0_123, %c128] : memref<1x4x256xf32, #tpu.memory_space<vmem>>, vector<1x4x32xf32>
    tpu.vector_store %arg6[%c0_122, %c0_123, %c128], %315 {strides = array<i32>} : memref<1x4x256xf32, #tpu.memory_space<vmem>>, vector<1x4x32xf32>,
    %317 = vector.extract_strided_slice %301 {offsets = [0, 5, 0, 0], sizes = [1, 1, 4, 32], strides = [1, 1, 1, 1]} : vector<1x8x4x32xf32> to vector<1x1x4x32xf32>
    %318 = vector.shape_cast %317 : vector<1x1x4x32xf32> to vector<1x4x32xf32>
    %c0_124 = arith.constant 0 : index
    %c0_125 = arith.constant 0 : index
    %c160 = arith.constant 160 : index
    %319 = vector.load %arg6[%c0_124, %c0_125, %c160] : memref<1x4x256xf32, #tpu.memory_space<vmem>>, vector<1x4x32xf32>
    tpu.vector_store %arg6[%c0_124, %c0_125, %c160], %318 {strides = array<i32>} : memref<1x4x256xf32, #tpu.memory_space<vmem>>, vector<1x4x32xf32>,
    %320 = vector.extract_strided_slice %301 {offsets = [0, 6, 0, 0], sizes = [1, 1, 4, 32], strides = [1, 1, 1, 1]} : vector<1x8x4x32xf32> to vector<1x1x4x32xf32>
    %321 = vector.shape_cast %320 : vector<1x1x4x32xf32> to vector<1x4x32xf32>
    %c0_126 = arith.constant 0 : index
    %c0_127 = arith.constant 0 : index
    %c192 = arith.constant 192 : index
    %322 = vector.load %arg6[%c0_126, %c0_127, %c192] : memref<1x4x256xf32, #tpu.memory_space<vmem>>, vector<1x4x32xf32>
    tpu.vector_store %arg6[%c0_126, %c0_127, %c192], %321 {strides = array<i32>} : memref<1x4x256xf32, #tpu.memory_space<vmem>>, vector<1x4x32xf32>,
    %323 = vector.extract_strided_slice %301 {offsets = [0, 7, 0, 0], sizes = [1, 1, 4, 32], strides = [1, 1, 1, 1]} : vector<1x8x4x32xf32> to vector<1x1x4x32xf32>
    %324 = vector.shape_cast %323 : vector<1x1x4x32xf32> to vector<1x4x32xf32>
    %c0_128 = arith.constant 0 : index
    %c0_129 = arith.constant 0 : index
    %c224 = arith.constant 224 : index
    %325 = vector.load %arg6[%c0_128, %c0_129, %c224] : memref<1x4x256xf32, #tpu.memory_space<vmem>>, vector<1x4x32xf32>
    tpu.vector_store %arg6[%c0_128, %c0_129, %c224], %324 {strides = array<i32>} : memref<1x4x256xf32, #tpu.memory_space<vmem>>, vector<1x4x32xf32>,
    return
  }
  func.func @transform_0(%arg0: i32) -> (i32, i32, i32) {
    %c0_i32 = arith.constant 0 : i32
    %c0_i32_0 = arith.constant 0 : i32
    %c0_i32_1 = arith.constant 0 : i32
    return %arg0, %c0_i32, %c0_i32_0 : i32, i32, i32
  }
  func.func @transform_1(%arg0: i32) -> (i32, i32) {
    %c0_i32 = arith.constant 0 : i32
    %c0_i32_0 = arith.constant 0 : i32
    %c0_i32_1 = arith.constant 0 : i32
    return %c0_i32, %c0_i32_0 : i32, i32
  }
  func.func @transform_2(%arg0: i32) -> (i32, i32) {
    %c0_i32 = arith.constant 0 : i32
    %c0_i32_0 = arith.constant 0 : i32
    %c0_i32_1 = arith.constant 0 : i32
    return %c0_i32, %c0_i32_0 : i32, i32
  }
  func.func @transform_3(%arg0: i32) -> (i32, i32) {
    %c0_i32 = arith.constant 0 : i32
    %c0_i32_0 = arith.constant 0 : i32
    %c0_i32_1 = arith.constant 0 : i32
    return %c0_i32, %c0_i32_0 : i32, i32
  }
  func.func @transform_4(%arg0: i32) -> (i32, i32) {
    %c0_i32 = arith.constant 0 : i32
    %c0_i32_0 = arith.constant 0 : i32
    %c0_i32_1 = arith.constant 0 : i32
    return %c0_i32, %c0_i32_0 : i32, i32
  }
  func.func @transform_5(%arg0: i32) -> (i32, i32, i32) {
    %c0_i32 = arith.constant 0 : i32
    %c0_i32_0 = arith.constant 0 : i32
    %c0_i32_1 = arith.constant 0 : i32
    return %arg0, %c0_i32, %c0_i32_0 : i32, i32, i32
  }
}

</mosaic_0001>

<bundles_post_ra>
// kernel: two_stage_attention.2
= control target key start
LH: loop header
LB: loop body
LE: loop exit
PB: predicated region body
PF: predicated region fallthrough
CT: control target
= control target key end

     0   :  { %s3617_s15 = smov 0   ;;  %s4118_s0 = inlined_call_operand.vmem [shape: f32[2,4,256], index: 0, kind: input, shape index: {}]   ;;  %s4119_s1 = inlined_call_operand.vmem [shape: bf16[32,256], index: 1, kind: input, shape index: {}]   ;;  %s4120_s2 = inlined_call_operand.vmem [shape: bf16[128,32], index: 2, kind: input, shape index: {}]   ;;  %s4121_s3 = inlined_call_operand.vmem [shape: f32[8,128], index: 3, kind: input, shape index: {}]   ;;  %s4122_s4 = inlined_call_operand.vmem [shape: f32[2,8,128], index: 4, kind: output, shape index: {}]  }
   0x1 LB: > { %s3042_s16 = sadd.s32 4294967295, %s3572_s15   ;;  %p3046_p0 = scmp.ge.s32.totalorder %s3572_s15, 1  ;;  %s3572_s15 = sphi %s3617_s15, %s14_s15  }
   0x2   : > { %p162_p1 = scmp.lt.s32.totalorder %s3572_s15, 3 }
   0x4   : > { %p163_p2 = pnand %p3046_p0, %p162_p1 }
   0x5   : > { %p187_p3 = scmp.lt.s32.totalorder (!%p163_p2), %s3042_s16, 1  ;;  %v210_v0 = vlaneseq (!%p163_p2)  ;;  %v3574_v1 = vmov (!%p163_p2), 1966171168   ;;  %vm227_vm0 = vcmask (!%p163_p2), 253952   ;;  %s3575_s21 = smov (!%p163_p2), 64   ;;  %vm657_vm1 = vcmask (!%p163_p2), 261120  }
   0x6   : > { %166 = sbr.rel (%p163_p2) target bundleno = 4617 (0x1209), region = 36  ;;  %v208_v2 = vunpack.c.l.s4 (!%p163_p2), %v3574_v1  ;;  %s3576_s22 = smov (!%p163_p2), 96   ;;  %v3459_v25 = vld [vmem:[%s4119_s1] ss:$8 sps:$4 sm:$0xff] (!%p163_p2)   ;;  %v3461_v28 = vld [vmem:[%s4119_s1 + $0x10] ss:$8 sps:$4 sm:$0xff] (!%p163_p2)  }
   0x7   : > { %v3627_v3 = vshrl.u32 (!%p163_p2), %v210_v0, 7  ;;  %s3577_s23 = smov (!%p163_p2), 32   ;;  %3197 = vmatprep.subr.bf16.mxu0 (!%p163_p2), %v3459_v25  ;;  %v3578_v59 = vmov (!%p163_p2), 0.0   ;;  %v638_v60 = vld [vmem:[%s4121_s3] sm:$0xff] (!%p163_p2)  ;;  %vm3579_vm2 = vmmov (!%p163_p2), 0   ;;  %vm720_vm3 = vcmask (!%p163_p2), 64512  }
   0x8   : > { %v209_v4 = vunpack.c.0.s8 (!%p163_p2), %v208_v2  ;;  %3198 = vmatpush3.bf16.msra.mxu0 (!%p163_p2), %v3459_v25  ;;  %3217 = vmatprep.subr.bf16.mxu1 (!%p163_p2), %v3578_v59  ;;  %vm971_vm4 = vcmask (!%p163_p2), 1043456   ;;  %s3580_s30 = smov (!%p163_p2), 88   ;;  %s3581_s5 = smov (!%p163_p2), 120   ;;  %vm1623_vm5 = vcmask (!%p163_p2), 130112   ;;  %vm2088_vm6 = vcmask (!%p163_p2), 195712  }
   0x9   : > { %v3631_v5 = vsub.s32 (!%p163_p2), 0, %v3627_v3  ;;  %3199 = vmatprep.subr.bf16.mxu0 (!%p163_p2), %v3461_v28  ;;  %3219 = vmatprep.mubr.msk.bf16.mxu1 (!%p163_p2), %vm3579_vm2, %v3578_v59  ;;  %s3582_s6 = smov (!%p163_p2), 56   ;;  %s3583_s7 = smov (!%p163_p2), 80   ;;  %vm2553_vm7 = vcmask (!%p163_p2), 261312   ;;  %vm2975_vm8 = vcmask (!%p163_p2), 523520   ;;  %vm2981_vm9 = vcmask (!%p163_p2), 785920  }
   0xa   : > { %v212_v6 = vsub.s32 (!%p163_p2), %v209_v4, %v3627_v3  ;;  %s3584_s8 = smov (!%p163_p2), 112   ;;  %s3585_s9 = smov (!%p163_p2), 48   ;;  %vm2987_vm10 = vcmask (!%p163_p2), 1048320  }
   0xb   : > { %v644_v61 = vrot.slane (!%p163_p2), %v638_v60, %v3631_v5  ;;  %s3586_s10 = smov (!%p163_p2), 72   ;;  %s3587_s11 = smov (!%p163_p2), 104  }
   0xc   : > { %3200 = vmatpush3.bf16.msra.mxu0 (!%p163_p2), %v3461_v28  ;;  %s3588_s12 = smov (!%p163_p2), 40   ;;  %s3589_s13 = smov (!%p163_p2), 8  }
   0xd   : > { %s4124_s16 = smov (!%p187_p3, %s3042_s16), 1  ;;  %3205 = vmatprep.subr.bf16.mxu0 %v3578_v59  ;;  %s3590_s14 = smov 16  }
   0xe   : > { %s3110_s17 = sshll.u32 %s4124_s16, 3  ;;  %s3591_s18 = smov 24  }
   0xf   : > { %s191_s20 = scalar_lea.vmem %s4118_s0, %s3110_s17 }
  0x10   : > { %v3052_v7 = vld.sshfl [vmem:[%s191_s20] sm:$0x33 pattern:$0x75316420] }
  0x11   : > { %v306_v8 = vrot.slane %v3052_v7, %v212_v6  ;;  %v3054_v9 = vld.sshfl [vmem:[%s191_s20 + $0x4] sm:$0x33 pattern:$0x75316420]  ;;  %v206_v10 = vcombine.high %v3052_v7, %v3052_v7 }
  0x12   : > { %v456_v11 = vrot.slane %v3054_v9, %v212_v6  ;;  %v415_v15 = vcombine.high %v3054_v9, %v3054_v9 }
  0x13   : > { %v319_v12 = vrot.slane %v306_v8, %v3631_v5  ;;  %v314_v13 = vcombine.high %v306_v8, %v306_v8  ;;  %v313_v14 = vrot.slane %v206_v10, %v212_v6  ;;  %228 = vst.msk [vmem:[#allocation2] sm:$0x1] %vm227_vm0, %v306_v8 }
  0x14   : > { %436 = vst.msk [vmem:[#allocation2 + $0x4] sm:$0x1] %vm227_vm0, %v456_v11  ;;  %v469_v17 = vrot.slane %v456_v11, %v3631_v5  ;;  %v464_v18 = vcombine.high %v456_v11, %v456_v11  ;;  %v463_v19 = vrot.slane %v415_v15, %v212_v6 }
  0x15   : > { %332 = vrot.lane.b32.xlu1 %v319_v12, %s3575_s21  ;;  %274 = vrot.lane.b32.xlu0 %v319_v12, %s3576_s22  ;;  %v323_v16 = vrot.slane %v313_v14, %v3631_v5  ;;  %230 = vst.msk [vmem:[#allocation2 + $0x10] sm:$0x1] %vm227_vm0, %v314_v13  ;;  %229 = vst.msk [vmem:[#allocation2 + $0x8] sm:$0x1] %vm227_vm0, %v313_v14  ;;  %v222_v21 = vcombine.high %v313_v14, %v313_v14 }
  0x16   : > { %438 = vst.msk [vmem:[#allocation2 + $0x14] sm:$0x1] %vm227_vm0, %v464_v18  ;;  %v473_v20 = vrot.slane %v463_v19, %v3631_v5  ;;  %437 = vst.msk [vmem:[#allocation2 + $0xc] sm:$0x1] %vm227_vm0, %v463_v19  ;;  %v431_v22 = vcombine.high %v463_v19, %v463_v19  ;;  %v269_v23 = vrot.slane %v314_v13, %v3631_v5 }
  0x17   : > { %231 = vst.msk [vmem:[#allocation2 + $0x18] sm:$0x1] %vm227_vm0, %v222_v21  ;;  %v273_v24 = vrot.slane %v222_v21, %v3631_v5  ;;  %v477_v26 = vrot.slane %v464_v18, %v3631_v5 }
  0x18   : > { %439 = vst.msk [vmem:[#allocation2 + $0x1c] sm:$0x1] %vm227_vm0, %v431_v22  ;;  %v481_v27 = vrot.slane %v431_v22, %v3631_v5 }
  0x19   : > { %334 = vrot.lane.b32.xlu1 %v323_v16, %s3575_s21  ;;  %390 = vrot.lane.b32.xlu0 %v319_v12, %s3577_s23 }
  0x1d   : > { %392 = vrot.lane.b32.xlu1 %v323_v16, %s3577_s23  ;;  %482 = vrot.lane.b32.xlu0 %v469_v17, %s3576_s22 }
  0x21   : > { %484 = vrot.lane.b32.xlu1 %v473_v20, %s3576_s22  ;;  %276 = vrot.lane.b32.xlu0 %v323_v16, %s3576_s22 }
  0x25   : > { %542 = vrot.lane.b32.xlu1 %v473_v20, %s3575_s21  ;;  %540 = vrot.lane.b32.xlu0 %v469_v17, %s3575_s21 }
  0x29   : > { %600 = vrot.lane.b32.xlu1 %v473_v20, %s3577_s23  ;;  %598 = vrot.lane.b32.xlu0 %v469_v17, %s3577_s23 }
  0x2d   : > { %278 = vrot.lane.b32.xlu0 %v269_v23, %s3576_s22  ;;  %280 = vrot.lane.b32.xlu1 %v273_v24, %s3576_s22 }
  0x31   : > { %336 = vrot.lane.b32.xlu0 %v269_v23, %s3575_s21  ;;  %338 = vrot.lane.b32.xlu1 %v273_v24, %s3575_s21 }
  0x35   : > { %394 = vrot.lane.b32.xlu0 %v269_v23, %s3577_s23  ;;  %396 = vrot.lane.b32.xlu1 %v273_v24, %s3577_s23 }
  0x39   : > { %486 = vrot.lane.b32.xlu0 %v477_v26, %s3576_s22  ;;  %488 = vrot.lane.b32.xlu1 %v481_v27, %s3576_s22 }
  0x3d   : > { %544 = vrot.lane.b32.xlu0 %v477_v26, %s3575_s21  ;;  %546 = vrot.lane.b32.xlu1 %v481_v27, %s3575_s21 }
  0x41   : > { %602 = vrot.lane.b32.xlu0 %v477_v26, %s3577_s23  ;;  %604 = vrot.lane.b32.xlu1 %v481_v27, %s3577_s23 }
  0x87   : > { %v333_v29 = vpop.permute.xlu1 %332  ;;  %v275_v30 = vpop.permute.xlu0 %274 }
  0x88   : > { %344 = vst.msk [vmem:[#allocation2 + $0x2] sm:$0x1] %vm227_vm0, %v333_v29  ;;  %286 = vst.msk [vmem:[#allocation2 + $0x1] sm:$0x1] %vm227_vm0, %v275_v30 }
  0x8b   : > { %v335_v31 = vpop.permute.xlu1 %334  ;;  %v391_v32 = vpop.permute.xlu0 %390 }
  0x8c   : > { %345 = vst.msk [vmem:[#allocation2 + $0xa] sm:$0x1] %vm227_vm0, %v335_v31  ;;  %402 = vst.msk [vmem:[#allocation2 + $0x3] sm:$0x1] %vm227_vm0, %v391_v32 }
  0x8f   : > { %v393_v33 = vpop.permute.xlu1 %392  ;;  %v483_v34 = vpop.permute.xlu0 %482 }
  0x90   : > { %403 = vst.msk [vmem:[#allocation2 + $0xb] sm:$0x1] %vm227_vm0, %v393_v33  ;;  %494 = vst.msk [vmem:[#allocation2 + $0x5] sm:$0x1] %vm227_vm0, %v483_v34 }
  0x93   : > { %v485_v35 = vpop.permute.xlu1 %484  ;;  %v277_v36 = vpop.permute.xlu0 %276 }
  0x94   : > { %495 = vst.msk [vmem:[#allocation2 + $0xd] sm:$0x1] %vm227_vm0, %v485_v35  ;;  %287 = vst.msk [vmem:[#allocation2 + $0x9] sm:$0x1] %vm227_vm0, %v277_v36 }
  0x97   : > { %v543_v37 = vpop.permute.xlu1 %542  ;;  %v541_v38 = vpop.permute.xlu0 %540 }
  0x98   : > { %553 = vst.msk [vmem:[#allocation2 + $0xe] sm:$0x1] %vm227_vm0, %v543_v37  ;;  %552 = vst.msk [vmem:[#allocation2 + $0x6] sm:$0x1] %vm227_vm0, %v541_v38 }
  0x9b   : > { %v601_v39 = vpop.permute.xlu1 %600  ;;  %v599_v40 = vpop.permute.xlu0 %598 }
  0x9c   : > { %611 = vst.msk [vmem:[#allocation2 + $0xf] sm:$0x1] %vm227_vm0, %v601_v39  ;;  %610 = vst.msk [vmem:[#allocation2 + $0x7] sm:$0x1] %vm227_vm0, %v599_v40 }
  0x9f   : > { %v279_v41 = vpop.permute.xlu0 %278  ;;  %v281_v42 = vpop.permute.xlu1 %280 }
  0xa0   : > { %288 = vst.msk [vmem:[#allocation2 + $0x11] sm:$0x1] %vm227_vm0, %v279_v41  ;;  %289 = vst.msk [vmem:[#allocation2 + $0x19] sm:$0x1] %vm227_vm0, %v281_v42 }
  0xa3   : > { %v337_v43 = vpop.permute.xlu0 %336  ;;  %v339_v44 = vpop.permute.xlu1 %338  ;;  %v614_v45 = vld [vmem:[#allocation2] sm:$0xff]  ;;  %v615_v46 = vld [vmem:[#allocation2 + $0x8] sm:$0xff] }
  0xa4   : > { %346 = vst.msk [vmem:[#allocation2 + $0x12] sm:$0x1] %vm227_vm0, %v337_v43  ;;  %347 = vst.msk [vmem:[#allocation2 + $0x1a] sm:$0x1] %vm227_vm0, %v339_v44  ;;  %v639_v47 = vpack.c.bf16 %v615_v46, %v614_v45 }
  0xa6   : > { %3201 = vmatprep.mubr.msk.bf16.mxu0 %vm657_vm1, %v639_v47 }
  0xa7   : > { %v395_v48 = vpop.permute.xlu0 %394  ;;  %v397_v49 = vpop.permute.xlu1 %396 }
  0xa8   : > { %404 = vst.msk [vmem:[#allocation2 + $0x13] sm:$0x1] %vm227_vm0, %v395_v48  ;;  %405 = vst.msk [vmem:[#allocation2 + $0x1b] sm:$0x1] %vm227_vm0, %v397_v49 }
  0xab   : > { %v487_v50 = vpop.permute.xlu0 %486  ;;  %v489_v51 = vpop.permute.xlu1 %488 }
  0xac   : > { %496 = vst.msk [vmem:[#allocation2 + $0x15] sm:$0x1] %vm227_vm0, %v487_v50  ;;  %497 = vst.msk [vmem:[#allocation2 + $0x1d] sm:$0x1] %vm227_vm0, %v489_v51 }
  0xaf   : > { %v545_v52 = vpop.permute.xlu0 %544  ;;  %v547_v53 = vpop.permute.xlu1 %546 }
  0xb0   : > { %554 = vst.msk [vmem:[#allocation2 + $0x16] sm:$0x1] %vm227_vm0, %v545_v52  ;;  %555 = vst.msk [vmem:[#allocation2 + $0x1e] sm:$0x1] %vm227_vm0, %v547_v53 }
  0xb3   : > { %v603_v54 = vpop.permute.xlu0 %602  ;;  %v605_v55 = vpop.permute.xlu1 %604 }
  0xb4   : > { %612 = vst.msk [vmem:[#allocation2 + $0x17] sm:$0x1] %vm227_vm0, %v603_v54  ;;  %613 = vst.msk [vmem:[#allocation2 + $0x1f] sm:$0x1] %vm227_vm0, %v605_v55 }
  0xbb   : > { %v616_v56 = vld [vmem:[#allocation2 + $0x10] sm:$0xff]  ;;  %v617_v57 = vld [vmem:[#allocation2 + $0x18] sm:$0xff] }
  0xbc   : > { %v640_v58 = vpack.c.bf16 %v617_v57, %v616_v56 }
  0xbe   : > { %3202 = vmatmul.mubr.msk.bf16.vlgmr.msra.gmra.mrb[0].mxu0 %vm657_vm1, %v640_v58 }
  0xbf   : > { %3207 = vmatprep.mubr.msk.bf16.mxu0 %vm3579_vm2, %v3578_v59 }
 0x191   : > { %v3203_v62 = vpop.f32.mrb[0].mxu0 }
 0x192   : > { %v707_v63 = vadd.f32 %v3203_v62, %v644_v61  ;;  %v698_v0 = vpop.f32.mrb[1].mxu0 }
 0x193   : > { %v699_v1 = vadd.f32 %v698_v0, %v644_v61  ;;  %v3204_v2 = vpop.f32.mrb[2].mxu0 }
 0x194   : > { %v710_v4 = vadd.f32 %v3204_v2, %v644_v61  ;;  %v701_v6 = vpop.f32.mrb[3].mxu0  ;;  %v3727_v5 = vpack.c.bf16 %v707_v63, %v707_v63 }
 0x195   : > { %v3721_v7 = vpack.c.bf16 %v699_v1, %v699_v1  ;;  %v702_v8 = vadd.f32 %v701_v6, %v644_v61 }
 0x196   : > { %v3731_v10 = vpack.c.bf16 %v710_v4, %v710_v4 }
 0x197   : > { %v3723_v9 = vpack.c.bf16 %v702_v8, %v702_v8  ;;  %718 = vrot.lane.b32.xlu0 %v3721_v7, %s3576_s22 }
 0x199   : > { %768 = vrot.lane.b32.xlu1 %v3723_v9, %s3576_s22 }
 0x19b   : > { %817 = vrot.lane.b32.xlu0 %v3727_v5, %s3576_s22 }
 0x19d   : > { %866 = vrot.lane.b32.xlu1 %v3731_v10, %s3576_s22 }
 0x209   : > { %v719_v11 = vpop.permute.xlu0 %718 }
 0x20a   : > { %v725_v12 = vsel %vm720_vm3, %v719_v11, 0 }
 0x20b   : > { %3206 = vmatpush3.bf16.xpose.msra.mxu0 %v725_v12  ;;  %v769_v15 = vpop.permute.xlu1 %768 }
 0x20c   : > { %3211 = vmatprep.subr.bf16.mxu0 %v3578_v59  ;;  %v774_v16 = vsel %vm720_vm3, %v769_v15, 0 }
 0x20d   : > { %v818_v13 = vpop.permute.xlu0 %817 }
 0x20e   : > { %v823_v14 = vsel %vm720_vm3, %v818_v13, 0 }
 0x20f   : > { %3218 = vmatpush3.bf16.xpose.msra.mxu1 %v823_v14  ;;  %v867_v17 = vpop.permute.xlu1 %866 }
 0x210   : > { %3229 = vmatprep.subr.bf16.mxu1 %v3578_v59  ;;  %v872_v18 = vsel %vm720_vm3, %v867_v17, 0 }
 0x212   : > { %3208 = vmatmul.mubr.msk.bf16.vlgmr.msra.gmra.mrb[4].mxu0 %vm720_vm3, %v3721_v7 }
 0x213   : > { %3212 = vmatpush3.bf16.xpose.msra.mxu0 %v774_v16  ;;  %3213 = vmatprep.mubr.msk.bf16.mxu0 %vm3579_vm2, %v3578_v59 }
 0x214   : > { %3223 = vmatprep.subr.bf16.mxu0 %v3578_v59 }
 0x216   : > { %3220 = vmatmul.mubr.msk.bf16.vlgmr.msra.gmra.mrb[0].mxu1 %vm720_vm3, %v3727_v5 }
 0x217   : > { %3231 = vmatprep.mubr.msk.bf16.mxu1 %vm3579_vm2, %v3578_v59 }
 0x21a   : > { %3214 = vmatmul.mubr.msk.bf16.vlgmr.msra.gmra.mrb[8].mxu0 %vm720_vm3, %v3723_v9 }
 0x21b   : > { %3224 = vmatpush3.bf16.xpose.msra.mxu0 %v872_v18  ;;  %3225 = vmatprep.mubr.msk.bf16.mxu0 %vm3579_vm2, %v3578_v59 }
 0x21c   : > { %3235 = vmatprep.subr.bf16.mxu0 %v3578_v59 }
 0x222   : > { %3226 = vmatmul.mubr.msk.bf16.vlgmr.msra.gmra.mrb[12].mxu0 %vm720_vm3, %v3731_v10 }
 0x223   : > { %3237 = vmatprep.mubr.msk.bf16.mxu0 %vm3579_vm2, %v3578_v59 }
 0x2e5   : > { %v761_v19 = vpop.f32.mrb[4].mxu0 }
 0x2e6   : > { %v914_v20 = vmul.f32 0.35355338, %v761_v19  ;;  %v3209_v21 = vpop.f32.mrb[5].mxu0 }
 0x2e7   : > { %v764_v22 = vpop.f32.mrb[6].mxu0 }
 0x2e8   : > { %v3210_v23 = vpop.f32.mrb[7].mxu0  ;;  %v918_v24 = vsel %vm720_vm3, %v914_v20, -inf }
 0x2e9   : > { %919 = vmax.xlane.f32.xlu0 %v918_v24  ;;  %v859_v25 = vpop.f32.mrb[0].mxu1 }
 0x2ea   : > { %v916_v26 = vmul.f32 0.35355338, %v859_v25  ;;  %v3221_v27 = vpop.f32.mrb[1].mxu1 }
 0x2eb   : > { %v862_v28 = vpop.f32.mrb[2].mxu1 }
 0x2ec   : > { %v3222_v29 = vpop.f32.mrb[3].mxu1  ;;  %v924_v30 = vsel %vm720_vm3, %v916_v26, -inf }
 0x2ed   : > { %v810_v31 = vpop.f32.mrb[8].mxu0  ;;  %925 = vmax.xlane.f32.xlu0 %v924_v30 }
 0x2ee   : > { %v915_v32 = vmul.f32 0.35355338, %v810_v31  ;;  %v3215_v33 = vpop.f32.mrb[9].mxu0 }
 0x2ef   : > { %v813_v34 = vpop.f32.mrb[10].mxu0 }
 0x2f0   : > { %v3216_v35 = vpop.f32.mrb[11].mxu0  ;;  %v921_v36 = vsel %vm720_vm3, %v915_v32, -inf }
 0x2f1   : > { %922 = vmax.xlane.f32.xlu1 %v921_v36 }
 0x2f5   : > { %v908_v37 = vpop.f32.mrb[12].mxu0 }
 0x2f6   : > { %v917_v38 = vmul.f32 0.35355338, %v908_v37  ;;  %v3227_v39 = vpop.f32.mrb[13].mxu0 }
 0x2f7   : > { %v911_v40 = vpop.f32.mrb[14].mxu0 }
 0x2f8   : > { %v3228_v41 = vpop.f32.mrb[15].mxu0  ;;  %v927_v42 = vsel %vm720_vm3, %v917_v38, -inf }
 0x2f9   : > { %928 = vmax.xlane.f32.xlu0 %v927_v42 }
 0x302   : > { %966 = vrot.lane.b32.xlu1 %v3721_v7, %s3575_s21 }
 0x376   : > { %v920_v43 = vpop.xlane.xlu0 %919 }
 0x377   : > { %v930_v44 = vsub.f32 %v914_v20, %v920_v43 }
 0x379   : > { %v934_v47 = vmul.f32 1.442695, %v930_v44 }
 0x37a   : > { %v926_v45 = vpop.xlane.xlu0 %925 }
 0x37b   : > { %v932_v46 = vsub.f32 %v916_v26, %v926_v45 }
 0x37d   : > { %v938_v48 = vmul.f32 1.442695, %v932_v46 }
 0x37e   : > { %v923_v49 = vpop.xlane.xlu1 %922 }
 0x37f   : > { %3471 = vpow2.f32 %v938_v48  ;;  %v931_v50 = vsub.f32 %v915_v32, %v923_v49 }
 0x380   : > { %3473 = vpow2.f32 %v934_v47 }
 0x381   : > { %v936_v51 = vmul.f32 1.442695, %v931_v50 }
 0x382   : > { %v967_v52 = vpop.permute.xlu1 %966 }
 0x383   : > { %3475 = vpow2.f32 %v936_v51  ;;  %v973_v53 = vsel %vm971_vm4, %v967_v52, 0 }
 0x384   : > { %3230 = vmatpush3.bf16.msra.mxu1 %v973_v53 }
 0x385   : > { %3241 = vmatprep.subr.bf16.mxu1 %v3578_v59 }
 0x386   : > { %v929_v61 = vpop.xlane.xlu0 %928 }
 0x387   : > { %v933_v62 = vsub.f32 %v917_v38, %v929_v61 }
 0x389   : > { %v3472_v54 = vpop.eup %3471  ;;  %v940_v63 = vmul.f32 1.442695, %v933_v62 }
 0x38a   : > { %v948_v55 = vsel %vm720_vm3, %v3472_v54, 0.0  ;;  %v3474_v56 = vpop.eup %3473 }
 0x38b   : > { %949 = vadd.xlane.f32.xlu1 %v948_v55  ;;  %v942_v60 = vsel %vm720_vm3, %v3474_v56, 0.0  ;;  %3477 = vpow2.f32 %v940_v63 }
 0x38d   : > { %v3476_v57 = vpop.eup %3475 }
 0x38e   : > { %v945_v58 = vsel %vm720_vm3, %v3476_v57, 0.0 }
 0x38f   : > { %946 = vadd.xlane.f32.xlu0 %v945_v58  ;;  %943 = vadd.xlane.f32.xlu1 %v942_v60 }
 0x395   : > { %v3478_v0 = vpop.eup %3477 }
 0x396   : > { %v951_v1 = vsel %vm720_vm3, %v3478_v0, 0.0 }
 0x3a0   : > { %1063 = vrot.lane.b32.xlu1 %v3727_v5, %s3575_s21 }
 0x3a4   : > { %1111 = vrot.lane.b32.xlu1 %v3731_v10, %s3575_s21 }
 0x3a5   : > { %1015 = vrot.lane.b32.xlu0 %v3723_v9, %s3575_s21 }
 0x3a8   : > { %1215 = vrot.lane.b32.xlu1 %v3723_v9, %s3580_s30 }
 0x3ac   : > { %1213 = vrot.lane.b32.xlu1 %v3723_v9, %s3581_s5 }
 0x3b0   : > { %1315 = vrot.lane.b32.xlu1 %v3731_v10, %s3580_s30 }
 0x3b4   : > { %1313 = vrot.lane.b32.xlu1 %v3731_v10, %s3581_s5 }
 0x3c4   : > { %952 = vadd.xlane.f32.xlu0 %v951_v1 }
 0x3da   : > { %1165 = vrot.lane.b32.xlu0 %v3721_v7, %s3580_s30 }
 0x3de   : > { %1163 = vrot.lane.b32.xlu0 %v3721_v7, %s3581_s5 }
 0x3e2   : > { %1265 = vrot.lane.b32.xlu0 %v3727_v5, %s3580_s30 }
 0x3e6   : > { %1263 = vrot.lane.b32.xlu0 %v3727_v5, %s3581_s5 }
 0x418   : > { %v950_v2 = vpop.xlane.xlu1 %949 }
 0x41c   : > { %v944_v4 = vpop.xlane.xlu1 %943  ;;  %v947_v6 = vpop.xlane.xlu0 %946 }
 0x41d   : > { %3479 = vrcp.f32 %v944_v4 }
 0x41e   : > { %3481 = vrcp.f32 %v947_v6 }
 0x41f   : > { %3483 = vrcp.f32 %v950_v2 }
 0x420   : > { %v1016_v8 = vpop.permute.xlu0 %1015  ;;  %v1064_v12 = vpop.permute.xlu1 %1063 }
 0x421   : > { %v1021_v11 = vsel %vm971_vm4, %v1016_v8, 0  ;;  %v1069_v21 = vsel %vm971_vm4, %v1064_v12, 0 }
 0x422   : > { %3236 = vmatpush3.bf16.msra.mxu0 %v1021_v11 }
 0x423   : > { %3247 = vmatprep.subr.bf16.mxu0 %v3578_v59 }
 0x424   : > { %v1112_v17 = vpop.permute.xlu1 %1111 }
 0x425   : > { %v1117_v22 = vsel %vm971_vm4, %v1112_v17, 0 }
 0x427   : > { %v3480_v13 = vpop.eup %3479 }
 0x428   : > { %v3482_v14 = vpop.eup %3481  ;;  %v958_v15 = vmul.f32 %v3480_v13, %v3474_v56  ;;  %v1216_v29 = vpop.permute.xlu1 %1215 }
 0x429   : > { %v959_v16 = vmul.f32 %v3482_v14, %v3476_v57  ;;  %v3484_v19 = vpop.eup %3483  ;;  %v1221_v36 = vsel %vm720_vm3, %v1216_v29, 0 }
 0x42a   : > { %v962_v18 = vpack.c.bf16 %v958_v15, %v958_v15  ;;  %v960_v23 = vmul.f32 %v3484_v19, %v3472_v54 }
 0x42b   : > { %v963_v20 = vpack.c.bf16 %v959_v16, %v959_v16 }
 0x42c   : > { %3232 = vmatmul.mubr.msk.bf16.vlgmr.msra.gmra.mrb[4].mxu1 %vm720_vm3, %v962_v18  ;;  %v964_v24 = vpack.c.bf16 %v960_v23, %v960_v23  ;;  %v1214_v35 = vpop.permute.xlu1 %1213 }
 0x42d   : > { %3242 = vmatpush3.bf16.msra.mxu1 %v1069_v21  ;;  %3238 = vmatmul.mubr.msk.bf16.vlgmr.msra.gmra.mrb[16].mxu0 %vm720_vm3, %v963_v20 }
 0x42e   : > { %3248 = vmatpush3.bf16.msra.mxu0 %v1117_v22  ;;  %3243 = vmatprep.mubr.msk.bf16.mxu1 %vm3579_vm2, %v3578_v59 }
 0x42f   : > { %3253 = vmatprep.subr.bf16.mxu1 %v3578_v59  ;;  %3249 = vmatprep.mubr.msk.bf16.mxu0 %vm3579_vm2, %v3578_v59 }
 0x430   : > { %3259 = vmatprep.subr.bf16.mxu0 %v3578_v59  ;;  %v1316_v38 = vpop.permute.xlu1 %1315 }
 0x431   : > { %v1321_v39 = vsel %vm720_vm3, %v1316_v38, 0 }
 0x434   : > { %3244 = vmatmul.mubr.msk.bf16.vlgmr.msra.gmra.mrb[8].mxu1 %vm720_vm3, %v964_v24  ;;  %v1314_v40 = vpop.permute.xlu1 %1313 }
 0x435   : > { %3255 = vmatprep.mubr.msk.bf16.mxu1 %vm3579_vm2, %v3578_v59 }
 0x451   : > { %v953_v25 = vpop.xlane.xlu0 %952 }
 0x452   : > { %3485 = vrcp.f32 %v953_v25 }
 0x455   : > { %v1166_v26 = vpop.permute.xlu0 %1165 }
 0x456   : > { %v1171_v27 = vsel %vm720_vm3, %v1166_v26, 0 }
 0x457   : > { %3254 = vmatpush3.bf16.xpose.msra.mxu1 %v1171_v27 }
 0x458   : > { %3265 = vmatprep.subr.bf16.mxu1 %v3578_v59 }
 0x459   : > { %v1164_v28 = vpop.permute.xlu0 %1163 }
 0x45c   : > { %v3486_v30 = vpop.eup %3485 }
 0x45d   : > { %v961_v31 = vmul.f32 %v3486_v30, %v3478_v0  ;;  %v1266_v32 = vpop.permute.xlu0 %1265 }
 0x45e   : > { %v1271_v33 = vsel %vm720_vm3, %v1266_v32, 0  ;;  %3256 = vmatmul.mubr.msk.bf16.vlgmr.msra.gmra.mrb[12].mxu1 %vm720_vm3, %v1164_v28 }
 0x45f   : > { %3266 = vmatpush3.bf16.xpose.msra.mxu1 %v1271_v33  ;;  %v965_v34 = vpack.c.bf16 %v961_v31, %v961_v31  ;;  %3267 = vmatprep.mubr.msk.bf16.mxu1 %vm3579_vm2, %v3578_v59 }
 0x460   : > { %3277 = vmatprep.subr.bf16.mxu1 %v3578_v59 }
 0x461   : > { %3250 = vmatmul.mubr.msk.bf16.vlgmr.msra.gmra.mrb[20].mxu0 %vm720_vm3, %v965_v34  ;;  %v1264_v37 = vpop.permute.xlu0 %1263 }
 0x462   : > { %3260 = vmatpush3.bf16.xpose.msra.mxu0 %v1221_v36  ;;  %3261 = vmatprep.mubr.msk.bf16.mxu0 %vm3579_vm2, %v3578_v59 }
 0x463   : > { %3271 = vmatprep.subr.bf16.mxu0 %v3578_v59 }
 0x466   : > { %3268 = vmatmul.mubr.msk.bf16.vlgmr.msra.gmra.mrb[16].mxu1 %vm720_vm3, %v1264_v37 }
 0x467   : > { %3279 = vmatprep.mubr.msk.bf16.mxu1 %vm3579_vm2, %v3578_v59 }
 0x469   : > { %3262 = vmatmul.mubr.msk.bf16.vlgmr.msra.gmra.mrb[24].mxu0 %vm720_vm3, %v1214_v35 }
 0x46a   : > { %3272 = vmatpush3.bf16.xpose.msra.mxu0 %v1321_v39  ;;  %3273 = vmatprep.mubr.msk.bf16.mxu0 %vm3579_vm2, %v3578_v59 }
 0x46b   : > { %3283 = vmatprep.subr.bf16.mxu0 %v3578_v59 }
 0x471   : > { %3274 = vmatmul.mubr.msk.bf16.vlgmr.msra.gmra.mrb[28].mxu0 %vm720_vm3, %v1314_v40 }
 0x472   : > { %3285 = vmatprep.mubr.msk.bf16.mxu0 %vm3579_vm2, %v3578_v59 }
 0x4ff   : > { %v1009_v41 = vpop.f32.mrb[4].mxu1 }
 0x500   : > { %1159 = vst.msk [vmem:[#allocation3] sm:$0xff] %vm720_vm3, %v1009_v41  ;;  %v1057_v42 = vpop.f32.mrb[16].mxu0  ;;  %v3233_v43 = vpop.f32.mrb[5].mxu1 }
 0x501   : > { %1160 = vst.msk [vmem:[#allocation3 + $0x8] sm:$0xff] %vm720_vm3, %v1057_v42  ;;  %v3239_v44 = vpop.f32.mrb[17].mxu0  ;;  %v1012_v45 = vpop.f32.mrb[6].mxu1 }
 0x502   : > { %v1060_v46 = vpop.f32.mrb[18].mxu0  ;;  %v3234_v47 = vpop.f32.mrb[7].mxu1 }
 0x503   : > { %v3240_v48 = vpop.f32.mrb[19].mxu0 }
 0x507   : > { %v1105_v49 = vpop.f32.mrb[8].mxu1 }
 0x508   : > { %1161 = vst.msk [vmem:[#allocation3 + $0x10] sm:$0xff] %vm720_vm3, %v1105_v49  ;;  %v3245_v50 = vpop.f32.mrb[9].mxu1 }
 0x509   : > { %v1108_v51 = vpop.f32.mrb[10].mxu1 }
 0x50a   : > { %v3246_v52 = vpop.f32.mrb[11].mxu1 }
 0x531   : > { %v1207_v53 = vpop.f32.mrb[12].mxu1 }
 0x532   : > { %v1363_v54 = vmul.f32 0.35355338, %v1207_v53  ;;  %v3257_v55 = vpop.f32.mrb[13].mxu1 }
 0x533   : > { %v1210_v56 = vpop.f32.mrb[14].mxu1 }
 0x534   : > { %v1153_v57 = vpop.f32.mrb[20].mxu0  ;;  %v3258_v58 = vpop.f32.mrb[15].mxu1  ;;  %v1367_v60 = vsel %vm720_vm3, %v1363_v54, -inf }
 0x535   : > { %1162 = vst.msk [vmem:[#allocation3 + $0x18] sm:$0xff] %vm720_vm3, %v1153_v57  ;;  %v3251_v61 = vpop.f32.mrb[21].mxu0  ;;  %1368 = vmax.xlane.f32.xlu0 %v1367_v60 }
 0x536   : > { %v1156_v62 = vpop.f32.mrb[22].mxu0 }
 0x537   : > { %v3252_v63 = vpop.f32.mrb[23].mxu0 }
 0x539   : > { %v1307_v0 = vpop.f32.mrb[16].mxu1 }
 0x53a   : > { %v1365_v1 = vmul.f32 0.35355338, %v1307_v0  ;;  %v3269_v2 = vpop.f32.mrb[17].mxu1 }
 0x53b   : > { %v1310_v4 = vpop.f32.mrb[18].mxu1 }
 0x53c   : > { %v1257_v6 = vpop.f32.mrb[24].mxu0  ;;  %v3270_v8 = vpop.f32.mrb[19].mxu1  ;;  %v1373_v11 = vsel %vm720_vm3, %v1365_v1, -inf }
 0x53d   : > { %v1364_v12 = vmul.f32 0.35355338, %v1257_v6  ;;  %v3263_v13 = vpop.f32.mrb[25].mxu0  ;;  %1374 = vmax.xlane.f32.xlu0 %v1373_v11 }
 0x53e   : > { %v1260_v14 = vpop.f32.mrb[26].mxu0 }
 0x53f   : > { %v3264_v15 = vpop.f32.mrb[27].mxu0  ;;  %v1370_v16 = vsel %vm720_vm3, %v1364_v12, -inf }
 0x540   : > { %1371 = vmax.xlane.f32.xlu1 %v1370_v16 }
 0x544   : > { %v1357_v17 = vpop.f32.mrb[28].mxu0 }
 0x545   : > { %v1366_v18 = vmul.f32 0.35355338, %v1357_v17  ;;  %v3275_v19 = vpop.f32.mrb[29].mxu0 }
 0x546   : > { %v1360_v20 = vpop.f32.mrb[30].mxu0 }
 0x547   : > { %v3276_v21 = vpop.f32.mrb[31].mxu0  ;;  %v1376_v22 = vsel %vm720_vm3, %v1366_v18, -inf }
 0x548   : > { %1377 = vmax.xlane.f32.xlu0 %v1376_v22 }
 0x551   : > { %1415 = vrot.lane.b32.xlu1 %v3721_v7, %s3582_s6 }
 0x5c2   : > { %v1369_v23 = vpop.xlane.xlu0 %1368 }
 0x5c3   : > { %v1379_v24 = vsub.f32 %v1363_v54, %v1369_v23 }
 0x5c5   : > { %v1383_v25 = vmul.f32 1.442695, %v1379_v24 }
 0x5c7   : > { %3487 = vpow2.f32 %v1383_v25 }
 0x5ca   : > { %v1375_v35 = vpop.xlane.xlu0 %1374 }
 0x5cb   : > { %v1381_v36 = vsub.f32 %v1365_v1, %v1375_v35 }
 0x5cd   : > { %v1372_v26 = vpop.xlane.xlu1 %1371  ;;  %v1387_v37 = vmul.f32 1.442695, %v1381_v36 }
 0x5ce   : > { %v1380_v27 = vsub.f32 %v1364_v12, %v1372_v26 }
 0x5d0   : > { %v1385_v28 = vmul.f32 1.442695, %v1380_v27 }
 0x5d1   : > { %v3488_v29 = vpop.eup %3487  ;;  %v1416_v30 = vpop.permute.xlu1 %1415 }
 0x5d2   : > { %3489 = vpow2.f32 %v1385_v28  ;;  %v1421_v31 = vsel %vm971_vm4, %v1416_v30, 0  ;;  %v1391_v32 = vsel %vm720_vm3, %v3488_v29, 0.0 }
 0x5d3   : > { %3278 = vmatpush3.bf16.msra.mxu1 %v1421_v31  ;;  %1392 = vadd.xlane.f32.xlu1 %v1391_v32  ;;  %3491 = vpow2.f32 %v1387_v37 }
 0x5d4   : > { %3289 = vmatprep.subr.bf16.mxu1 %v3578_v59 }
 0x5d5   : > { %v1378_v38 = vpop.xlane.xlu0 %1377 }
 0x5d6   : > { %v1382_v39 = vsub.f32 %v1366_v18, %v1378_v38 }
 0x5d8   : > { %v1389_v40 = vmul.f32 1.442695, %v1382_v39 }
 0x5da   : > { %3493 = vpow2.f32 %v1389_v40 }
 0x5dc   : > { %v3490_v33 = vpop.eup %3489 }
 0x5dd   : > { %v1394_v34 = vsel %vm720_vm3, %v3490_v33, 0.0  ;;  %v3492_v41 = vpop.eup %3491 }
 0x5de   : > { %1395 = vadd.xlane.f32.xlu0 %v1394_v34  ;;  %v1397_v42 = vsel %vm720_vm3, %v3492_v41, 0.0 }
 0x5e4   : > { %1511 = vrot.lane.b32.xlu1 %v3727_v5, %s3582_s6  ;;  %v3494_v43 = vpop.eup %3493 }
 0x5e5   : > { %v1400_v44 = vsel %vm720_vm3, %v3494_v43, 0.0 }
 0x5e8   : > { %1559 = vrot.lane.b32.xlu1 %v3731_v10, %s3582_s6 }
 0x5f4   : > { %1463 = vrot.lane.b32.xlu0 %v3723_v9, %s3582_s6 }
 0x60c   : > { %1398 = vadd.xlane.f32.xlu1 %v1397_v42 }
 0x613   : > { %1401 = vadd.xlane.f32.xlu0 %v1400_v44 }
 0x61d   : > { %1680 = vrot.lane.b32.xlu1 %v3723_v9, %s3583_s7 }
 0x621   : > { %1678 = vrot.lane.b32.xlu1 %v3723_v9, %s3584_s8 }
 0x625   : > { %1780 = vrot.lane.b32.xlu1 %v3731_v10, %s3583_s7 }
 0x629   : > { %1778 = vrot.lane.b32.xlu1 %v3731_v10, %s3584_s8  ;;  %1630 = vrot.lane.b32.xlu0 %v3721_v7, %s3583_s7 }
 0x62d   : > { %1628 = vrot.lane.b32.xlu0 %v3721_v7, %s3584_s8 }
 0x631   : > { %1730 = vrot.lane.b32.xlu0 %v3727_v5, %s3583_s7 }
 0x635   : > { %1728 = vrot.lane.b32.xlu0 %v3727_v5, %s3584_s8  ;;  %s195_s8 = scalar_lea.vmem %s4122_s4, %s3110_s17 }
 0x660   : > { %v1393_v45 = vpop.xlane.xlu1 %1392 }
 0x661   : > { %3495 = vrcp.f32 %v1393_v45 }
 0x664   : > { %v1512_v49 = vpop.permute.xlu1 %1511 }
 0x665   : > { %v1517_v52 = vsel %vm971_vm4, %v1512_v49, 0 }
 0x668   : > { %v1560_v56 = vpop.permute.xlu1 %1559 }
 0x669   : > { %v1565_v58 = vsel %vm971_vm4, %v1560_v56, 0 }
 0x66b   : > { %v3496_v46 = vpop.eup %3495  ;;  %v1396_v47 = vpop.xlane.xlu0 %1395 }
 0x66c   : > { %v1407_v48 = vmul.f32 %v3496_v46, %v3488_v29  ;;  %3497 = vrcp.f32 %v1396_v47 }
 0x66e   : > { %v1411_v50 = vpack.c.bf16 %v1407_v48, %v1407_v48 }
 0x66f   : > { %v1464_v51 = vpop.permute.xlu0 %1463 }
 0x670   : > { %v1469_v53 = vsel %vm971_vm4, %v1464_v51, 0  ;;  %3280 = vmatmul.mubr.msk.bf16.vlgmr.msra.gmra.mrb[20].mxu1 %vm720_vm3, %v1411_v50 }
 0x671   : > { %3290 = vmatpush3.bf16.msra.mxu1 %v1517_v52  ;;  %3284 = vmatpush3.bf16.msra.mxu0 %v1469_v53 }
 0x672   : > { %3295 = vmatprep.subr.bf16.mxu0 %v3578_v59  ;;  %3291 = vmatprep.mubr.msk.bf16.mxu1 %vm3579_vm2, %v3578_v59 }
 0x673   : > { %3301 = vmatprep.subr.bf16.mxu1 %v3578_v59 }
 0x676   : > { %v3498_v54 = vpop.eup %3497 }
 0x677   : > { %v1408_v55 = vmul.f32 %v3498_v54, %v3490_v33 }
 0x679   : > { %v1412_v57 = vpack.c.bf16 %v1408_v55, %v1408_v55 }
 0x67b   : > { %3286 = vmatmul.mubr.msk.bf16.vlgmr.msra.gmra.mrb[32].mxu0 %vm720_vm3, %v1412_v57 }
 0x67c   : > { %3296 = vmatpush3.bf16.msra.mxu0 %v1565_v58  ;;  %3297 = vmatprep.mubr.msk.bf16.mxu0 %vm3579_vm2, %v3578_v59 }
 0x67d   : > { %3307 = vmatprep.subr.bf16.mxu0 %v3578_v59 }
 0x699   : > { %v1399_v60 = vpop.xlane.xlu1 %1398 }
 0x69a   : > { %3499 = vrcp.f32 %v1399_v60 }
 0x69d   : > { %v1681_v4 = vpop.permute.xlu1 %1680 }
 0x69e   : > { %v1686_v15 = vsel %vm720_vm3, %v1681_v4, 0 }
 0x6a0   : > { %v1402_v61 = vpop.xlane.xlu0 %1401 }
 0x6a1   : > { %3501 = vrcp.f32 %v1402_v61  ;;  %v1679_v14 = vpop.permute.xlu1 %1678 }
 0x6a4   : > { %v3500_v62 = vpop.eup %3499  ;;  %v1631_v63 = vpop.permute.xlu0 %1630 }
 0x6a5   : > { %v1409_v0 = vmul.f32 %v3500_v62, %v3492_v41  ;;  %v1636_v6 = vsel %vm720_vm3, %v1631_v63, 0  ;;  %v1781_v17 = vpop.permute.xlu1 %1780 }
 0x6a6   : > { %v1786_v18 = vsel %vm720_vm3, %v1781_v17, 0 }
 0x6a7   : > { %v1413_v1 = vpack.c.bf16 %v1409_v0, %v1409_v0 }
 0x6a8   : > { %v1629_v2 = vpop.permute.xlu0 %1628 }
 0x6a9   : > { %3292 = vmatmul.mubr.msk.bf16.vlgmr.msra.gmra.mrb[24].mxu1 %vm720_vm3, %v1413_v1  ;;  %v1779_v20 = vpop.permute.xlu1 %1778 }
 0x6aa   : > { %3302 = vmatpush3.bf16.xpose.msra.mxu1 %v1636_v6  ;;  %3303 = vmatprep.mubr.msk.bf16.mxu1 %vm3579_vm2, %v3578_v59 }
 0x6ab   : > { %v3502_v8 = vpop.eup %3501  ;;  %3313 = vmatprep.subr.bf16.mxu1 %v3578_v59 }
 0x6ac   : > { %v1410_v11 = vmul.f32 %v3502_v8, %v3494_v43  ;;  %v1731_v12 = vpop.permute.xlu0 %1730 }
 0x6ad   : > { %v1736_v16 = vsel %vm720_vm3, %v1731_v12, 0 }
 0x6ae   : > { %v1414_v13 = vpack.c.bf16 %v1410_v11, %v1410_v11 }
 0x6b0   : > { %3298 = vmatmul.mubr.msk.bf16.vlgmr.msra.gmra.mrb[36].mxu0 %vm720_vm3, %v1414_v13  ;;  %v1729_v19 = vpop.permute.xlu0 %1728 }
 0x6b1   : > { %3308 = vmatpush3.bf16.xpose.msra.mxu0 %v1686_v15  ;;  %3304 = vmatmul.mubr.msk.bf16.vlgmr.msra.gmra.mrb[28].mxu1 %vm720_vm3, %v1629_v2 }
 0x6b2   : > { %3314 = vmatpush3.bf16.xpose.msra.mxu1 %v1736_v16  ;;  %3309 = vmatprep.mubr.msk.bf16.mxu0 %vm3579_vm2, %v3578_v59 }
 0x6b3   : > { %3319 = vmatprep.subr.bf16.mxu0 %v3578_v59  ;;  %3315 = vmatprep.mubr.msk.bf16.mxu1 %vm3579_vm2, %v3578_v59 }
 0x6b4   : > { %3325 = vmatprep.subr.bf16.mxu1 %v3578_v59 }
 0x6b8   : > { %3310 = vmatmul.mubr.msk.bf16.vlgmr.msra.gmra.mrb[40].mxu0 %vm720_vm3, %v1679_v14 }
 0x6b9   : > { %3320 = vmatpush3.bf16.xpose.msra.mxu0 %v1786_v18  ;;  %3316 = vmatmul.mubr.msk.bf16.vlgmr.msra.gmra.mrb[32].mxu1 %vm720_vm3, %v1729_v19 }
 0x6ba   : > { %3321 = vmatprep.mubr.msk.bf16.mxu0 %vm3579_vm2, %v3578_v59  ;;  %3331 = vmatprep.subr.bf16.mxu0 %v3578_v59 }
 0x6bb   : > { %3327 = vmatprep.mubr.msk.bf16.mxu1 %vm3579_vm2, %v3578_v59 }
 0x6c0   : > { %3322 = vmatmul.mubr.msk.bf16.vlgmr.msra.gmra.mrb[44].mxu0 %vm720_vm3, %v1779_v20 }
 0x6c1   : > { %3333 = vmatprep.mubr.msk.bf16.mxu0 %vm3579_vm2, %v3578_v59 }
 0x743   : > { %v3889_v21 = vpop.f32.mrb[20].mxu1 }
 0x744   : > { %v3281_v22 = vpop.f32.mrb[21].mxu1 }
 0x745   : > { %v1460_v23 = vpop.f32.mrb[22].mxu1 }
 0x746   : > { %v3282_v24 = vpop.f32.mrb[23].mxu1 }
 0x74e   : > { %v3891_v25 = vpop.f32.mrb[32].mxu0 }
 0x74f   : > { %v3287_v26 = vpop.f32.mrb[33].mxu0 }
 0x750   : > { %v1508_v27 = vpop.f32.mrb[34].mxu0 }
 0x751   : > { %v3288_v28 = vpop.f32.mrb[35].mxu0 }
 0x77c   : > { %v3893_v29 = vpop.f32.mrb[24].mxu1 }
 0x77d   : > { %v3293_v30 = vpop.f32.mrb[25].mxu1 }
 0x77e   : > { %v1556_v31 = vpop.f32.mrb[26].mxu1 }
 0x77f   : > { %v3294_v32 = vpop.f32.mrb[27].mxu1 }
 0x783   : > { %v3895_v33 = vpop.f32.mrb[36].mxu0 }
 0x784   : > { %v3299_v34 = vpop.f32.mrb[37].mxu0  ;;  %v1672_v35 = vpop.f32.mrb[28].mxu1 }
 0x785   : > { %v1828_v36 = vmul.f32 0.35355338, %v1672_v35  ;;  %v1604_v37 = vpop.f32.mrb[38].mxu0  ;;  %v3305_v38 = vpop.f32.mrb[29].mxu1 }
 0x786   : > { %v3300_v39 = vpop.f32.mrb[39].mxu0  ;;  %v1675_v40 = vpop.f32.mrb[30].mxu1 }
 0x787   : > { %v3306_v41 = vpop.f32.mrb[31].mxu1  ;;  %v1832_v42 = vsel %vm720_vm3, %v1828_v36, -inf }
 0x788   : > { %1833 = vmax.xlane.f32.xlu0 %v1832_v42 }
 0x78b   : > { %v1722_v43 = vpop.f32.mrb[40].mxu0 }
 0x78c   : > { %v1829_v44 = vmul.f32 0.35355338, %v1722_v43  ;;  %v3311_v45 = vpop.f32.mrb[41].mxu0  ;;  %v1772_v46 = vpop.f32.mrb[32].mxu1 }
 0x78d   : > { %v1830_v47 = vmul.f32 0.35355338, %v1772_v46  ;;  %v1725_v48 = vpop.f32.mrb[42].mxu0  ;;  %v3317_v49 = vpop.f32.mrb[33].mxu1 }
 0x78e   : > { %v3312_v50 = vpop.f32.mrb[43].mxu0  ;;  %v1775_v51 = vpop.f32.mrb[34].mxu1  ;;  %v1835_v52 = vsel %vm720_vm3, %v1829_v44, -inf }
 0x78f   : > { %1836 = vmax.xlane.f32.xlu1 %v1835_v52  ;;  %v3318_v53 = vpop.f32.mrb[35].mxu1  ;;  %v1838_v54 = vsel %vm720_vm3, %v1830_v47, -inf }
 0x790   : > { %1839 = vmax.xlane.f32.xlu0 %v1838_v54 }
 0x793   : > { %v1822_v55 = vpop.f32.mrb[44].mxu0 }
 0x794   : > { %v1831_v56 = vmul.f32 0.35355338, %v1822_v55  ;;  %v3323_v57 = vpop.f32.mrb[45].mxu0 }
 0x795   : > { %v1825_v58 = vpop.f32.mrb[46].mxu0 }
 0x796   : > { %v3324_v60 = vpop.f32.mrb[47].mxu0  ;;  %v1841_v61 = vsel %vm720_vm3, %v1831_v56, -inf }
 0x797   : > { %1842 = vmax.xlane.f32.xlu0 %v1841_v61 }
 0x7a0   : > { %1880 = vrot.lane.b32.xlu1 %v3721_v7, %s3585_s9 }
 0x815   : > { %v1834_v62 = vpop.xlane.xlu0 %1833 }
 0x816   : > { %v1844_v63 = vsub.f32 %v1828_v36, %v1834_v62 }
 0x818   : > { %v1848_v0 = vmul.f32 1.442695, %v1844_v63 }
 0x81a   : > { %3503 = vpow2.f32 %v1848_v0 }
 0x81c   : > { %v1837_v1 = vpop.xlane.xlu1 %1836 }
 0x81d   : > { %v1845_v2 = vsub.f32 %v1829_v44, %v1837_v1  ;;  %v1840_v15 = vpop.xlane.xlu0 %1839 }
 0x81e   : > { %v1846_v16 = vsub.f32 %v1830_v47, %v1840_v15 }
 0x81f   : > { %v1850_v4 = vmul.f32 1.442695, %v1845_v2 }
 0x820   : > { %v1881_v6 = vpop.permute.xlu1 %1880  ;;  %v1852_v19 = vmul.f32 1.442695, %v1846_v16 }
 0x821   : > { %3505 = vpow2.f32 %v1850_v4  ;;  %v1886_v8 = vsel %vm971_vm4, %v1881_v6, 0 }
 0x822   : > { %3326 = vmatpush3.bf16.msra.mxu1 %v1886_v8  ;;  %3507 = vpow2.f32 %v1852_v19 }
 0x823   : > { %3337 = vmatprep.subr.bf16.mxu1 %v3578_v59 }
 0x824   : > { %v3504_v11 = vpop.eup %3503  ;;  %v1843_v17 = vpop.xlane.xlu0 %1842 }
 0x825   : > { %v1856_v12 = vsel %vm720_vm3, %v3504_v11, 0.0  ;;  %v1847_v18 = vsub.f32 %v1831_v56, %v1843_v17 }
 0x826   : > { %1857 = vadd.xlane.f32.xlu1 %v1856_v12 }
 0x827   : > { %v1854_v20 = vmul.f32 1.442695, %v1847_v18 }
 0x829   : > { %3509 = vpow2.f32 %v1854_v20 }
 0x82b   : > { %v3506_v13 = vpop.eup %3505 }
 0x82c   : > { %v1859_v14 = vsel %vm720_vm3, %v3506_v13, 0.0  ;;  %v3508_v22 = vpop.eup %3507 }
 0x82d   : > { %1860 = vadd.xlane.f32.xlu0 %v1859_v14  ;;  %v1862_v24 = vsel %vm720_vm3, %v3508_v22, 0.0 }
 0x833   : > { %v3510_v23 = vpop.eup %3509 }
 0x834   : > { %v1865_v26 = vsel %vm720_vm3, %v3510_v23, 0.0 }
 0x837   : > { %1976 = vrot.lane.b32.xlu1 %v3727_v5, %s3585_s9 }
 0x83b   : > { %2024 = vrot.lane.b32.xlu1 %v3731_v10, %s3585_s9 }
 0x843   : > { %1928 = vrot.lane.b32.xlu0 %v3723_v9, %s3585_s9 }
 0x85f   : > { %1863 = vadd.xlane.f32.xlu1 %v1862_v24 }
 0x862   : > { %1866 = vadd.xlane.f32.xlu0 %v1865_v26 }
 0x870   : > { %2145 = vrot.lane.b32.xlu1 %v3723_v9, %s3586_s10 }
 0x874   : > { %2143 = vrot.lane.b32.xlu1 %v3723_v9, %s3587_s11 }
 0x878   : > { %2245 = vrot.lane.b32.xlu1 %v3731_v10, %s3586_s10  ;;  %2095 = vrot.lane.b32.xlu0 %v3721_v7, %s3586_s10 }
 0x87c   : > { %2243 = vrot.lane.b32.xlu1 %v3731_v10, %s3587_s11  ;;  %2093 = vrot.lane.b32.xlu0 %v3721_v7, %s3587_s11 }
 0x880   : > { %2195 = vrot.lane.b32.xlu0 %v3727_v5, %s3586_s10 }
 0x884   : > { %2193 = vrot.lane.b32.xlu0 %v3727_v5, %s3587_s11 }
 0x8b3   : > { %v1858_v27 = vpop.xlane.xlu1 %1857 }
 0x8b4   : > { %3511 = vrcp.f32 %v1858_v27 }
 0x8b7   : > { %v1977_v35 = vpop.permute.xlu1 %1976 }
 0x8b8   : > { %v1982_v37 = vsel %vm971_vm4, %v1977_v35, 0 }
 0x8ba   : > { %v1861_v28 = vpop.xlane.xlu0 %1860 }
 0x8bb   : > { %3513 = vrcp.f32 %v1861_v28  ;;  %v2025_v40 = vpop.permute.xlu1 %2024 }
 0x8bc   : > { %v2030_v42 = vsel %vm971_vm4, %v2025_v40, 0 }
 0x8be   : > { %v3512_v30 = vpop.eup %3511  ;;  %v1929_v31 = vpop.permute.xlu0 %1928 }
 0x8bf   : > { %v1872_v32 = vmul.f32 %v3512_v30, %v3504_v11  ;;  %v1934_v34 = vsel %vm971_vm4, %v1929_v31, 0 }
 0x8c0   : > { %3332 = vmatpush3.bf16.msra.mxu0 %v1934_v34 }
 0x8c1   : > { %v1876_v36 = vpack.c.bf16 %v1872_v32, %v1872_v32  ;;  %3343 = vmatprep.subr.bf16.mxu0 %v3578_v59 }
 0x8c3   : > { %3328 = vmatmul.mubr.msk.bf16.vlgmr.msra.gmra.mrb[36].mxu1 %vm720_vm3, %v1876_v36 }
 0x8c4   : > { %3338 = vmatpush3.bf16.msra.mxu1 %v1982_v37  ;;  %3339 = vmatprep.mubr.msk.bf16.mxu1 %vm3579_vm2, %v3578_v59 }
 0x8c5   : > { %v3514_v38 = vpop.eup %3513  ;;  %3349 = vmatprep.subr.bf16.mxu1 %v3578_v59 }
 0x8c6   : > { %v1873_v39 = vmul.f32 %v3514_v38, %v3506_v13 }
 0x8c8   : > { %v1877_v41 = vpack.c.bf16 %v1873_v39, %v1873_v39 }
 0x8ca   : > { %3334 = vmatmul.mubr.msk.bf16.vlgmr.msra.gmra.mrb[48].mxu0 %vm720_vm3, %v1877_v41 }
 0x8cb   : > { %3344 = vmatpush3.bf16.msra.mxu0 %v2030_v42  ;;  %3345 = vmatprep.mubr.msk.bf16.mxu0 %vm3579_vm2, %v3578_v59 }
 0x8cc   : > { %3355 = vmatprep.subr.bf16.mxu0 %v3578_v59 }
 0x8ec   : > { %v1864_v43 = vpop.xlane.xlu1 %1863 }
 0x8ed   : > { %3515 = vrcp.f32 %v1864_v43 }
 0x8ef   : > { %v1867_v44 = vpop.xlane.xlu0 %1866 }
 0x8f0   : > { %3517 = vrcp.f32 %v1867_v44  ;;  %v2146_v48 = vpop.permute.xlu1 %2145 }
 0x8f1   : > { %v2151_v56 = vsel %vm720_vm3, %v2146_v48, 0 }
 0x8f3   : > { %v2096_v45 = vpop.permute.xlu0 %2095 }
 0x8f4   : > { %v2101_v53 = vsel %vm720_vm3, %v2096_v45, 0  ;;  %v2144_v55 = vpop.permute.xlu1 %2143 }
 0x8f7   : > { %v3516_v46 = vpop.eup %3515  ;;  %v2094_v52 = vpop.permute.xlu0 %2093 }
 0x8f8   : > { %v1874_v47 = vmul.f32 %v3516_v46, %v3508_v22  ;;  %v2246_v58 = vpop.permute.xlu1 %2245 }
 0x8f9   : > { %v2251_v61 = vsel %vm720_vm3, %v2246_v58, 0 }
 0x8fa   : > { %v3518_v49 = vpop.eup %3517  ;;  %v1878_v50 = vpack.c.bf16 %v1874_v47, %v1874_v47 }
 0x8fb   : > { %v1875_v51 = vmul.f32 %v3518_v49, %v3510_v23  ;;  %v2196_v57 = vpop.permute.xlu0 %2195 }
 0x8fc   : > { %3340 = vmatmul.mubr.msk.bf16.vlgmr.msra.gmra.mrb[40].mxu1 %vm720_vm3, %v1878_v50  ;;  %v2201_v60 = vsel %vm720_vm3, %v2196_v57, 0  ;;  %v2244_v63 = vpop.permute.xlu1 %2243 }
 0x8fd   : > { %3350 = vmatpush3.bf16.xpose.msra.mxu1 %v2101_v53  ;;  %v1879_v54 = vpack.c.bf16 %v1875_v51, %v1875_v51  ;;  %3351 = vmatprep.mubr.msk.bf16.mxu1 %vm3579_vm2, %v3578_v59 }
 0x8fe   : > { %3361 = vmatprep.subr.bf16.mxu1 %v3578_v59 }
 0x8ff   : > { %3346 = vmatmul.mubr.msk.bf16.vlgmr.msra.gmra.mrb[52].mxu0 %vm720_vm3, %v1879_v54  ;;  %v2194_v62 = vpop.permute.xlu0 %2193 }
 0x900   : > { %3356 = vmatpush3.bf16.xpose.msra.mxu0 %v2151_v56  ;;  %3357 = vmatprep.mubr.msk.bf16.mxu0 %vm3579_vm2, %v3578_v59 }
 0x901   : > { %3367 = vmatprep.subr.bf16.mxu0 %v3578_v59 }
 0x904   : > { %3352 = vmatmul.mubr.msk.bf16.vlgmr.msra.gmra.mrb[44].mxu1 %vm720_vm3, %v2094_v52 }
 0x905   : > { %3362 = vmatpush3.bf16.xpose.msra.mxu1 %v2201_v60  ;;  %3363 = vmatprep.mubr.msk.bf16.mxu1 %vm3579_vm2, %v3578_v59 }
 0x906   : > { %3373 = vmatprep.subr.bf16.mxu1 %v3578_v59 }
 0x907   : > { %3358 = vmatmul.mubr.msk.bf16.vlgmr.msra.gmra.mrb[56].mxu0 %vm720_vm3, %v2144_v55 }
 0x908   : > { %3368 = vmatpush3.bf16.xpose.msra.mxu0 %v2251_v61  ;;  %3369 = vmatprep.mubr.msk.bf16.mxu0 %vm3579_vm2, %v3578_v59 }
 0x909   : > { %3379 = vmatprep.subr.bf16.mxu0 %v3578_v59 }
 0x90c   : > { %3364 = vmatmul.mubr.msk.bf16.vlgmr.msra.gmra.mrb[48].mxu1 %vm720_vm3, %v2194_v62 }
 0x90d   : > { %3375 = vmatprep.mubr.msk.bf16.mxu1 %vm3579_vm2, %v3578_v59 }
 0x90f   : > { %3370 = vmatmul.mubr.msk.bf16.vlgmr.msra.gmra.mrb[60].mxu0 %vm720_vm3, %v2244_v63 }
 0x910   : > { %3381 = vmatprep.mubr.msk.bf16.mxu0 %vm3579_vm2, %v3578_v59 }
 0x996   : > { %v3957_v0 = vpop.f32.mrb[36].mxu1 }
 0x997   : > { %v3329_v1 = vpop.f32.mrb[37].mxu1 }
 0x998   : > { %v1925_v2 = vpop.f32.mrb[38].mxu1 }
 0x999   : > { %v3330_v4 = vpop.f32.mrb[39].mxu1 }
 0x99d   : > { %v3959_v6 = vpop.f32.mrb[48].mxu0 }
 0x99e   : > { %v3335_v8 = vpop.f32.mrb[49].mxu0 }
 0x99f   : > { %v1973_v11 = vpop.f32.mrb[50].mxu0 }
 0x9a0   : > { %v3336_v12 = vpop.f32.mrb[51].mxu0 }
 0x9cf   : > { %v3961_v13 = vpop.f32.mrb[40].mxu1 }
 0x9d0   : > { %v3341_v14 = vpop.f32.mrb[41].mxu1 }
 0x9d1   : > { %v2021_v15 = vpop.f32.mrb[42].mxu1 }
 0x9d2   : > { %v3342_v16 = vpop.f32.mrb[43].mxu1  ;;  %v3963_v17 = vpop.f32.mrb[52].mxu0 }
 0x9d3   : > { %v3347_v18 = vpop.f32.mrb[53].mxu0 }
 0x9d4   : > { %v2069_v19 = vpop.f32.mrb[54].mxu0 }
 0x9d5   : > { %v3348_v20 = vpop.f32.mrb[55].mxu0 }
 0x9d7   : > { %v2137_v22 = vpop.f32.mrb[44].mxu1 }
 0x9d8   : > { %v2293_v23 = vmul.f32 0.35355338, %v2137_v22  ;;  %v3353_v24 = vpop.f32.mrb[45].mxu1 }
 0x9d9   : > { %v2140_v26 = vpop.f32.mrb[46].mxu1 }
 0x9da   : > { %v3354_v27 = vpop.f32.mrb[47].mxu1  ;;  %v2187_v28 = vpop.f32.mrb[56].mxu0  ;;  %v2297_v30 = vsel %vm720_vm3, %v2293_v23, -inf }
 0x9db   : > { %v2294_v31 = vmul.f32 0.35355338, %v2187_v28  ;;  %v3359_v32 = vpop.f32.mrb[57].mxu0  ;;  %2298 = vmax.xlane.f32.xlu0 %v2297_v30 }
 0x9dc   : > { %v2190_v34 = vpop.f32.mrb[58].mxu0 }
 0x9dd   : > { %v3360_v35 = vpop.f32.mrb[59].mxu0  ;;  %v2300_v36 = vsel %vm720_vm3, %v2294_v31, -inf }
 0x9de   : > { %2301 = vmax.xlane.f32.xlu1 %v2300_v36 }
 0x9df   : > { %v2237_v37 = vpop.f32.mrb[48].mxu1 }
 0x9e0   : > { %v2295_v38 = vmul.f32 0.35355338, %v2237_v37  ;;  %v3365_v39 = vpop.f32.mrb[49].mxu1 }
 0x9e1   : > { %v2240_v40 = vpop.f32.mrb[50].mxu1 }
 0x9e2   : > { %v3366_v41 = vpop.f32.mrb[51].mxu1  ;;  %v2287_v42 = vpop.f32.mrb[60].mxu0  ;;  %v2303_v43 = vsel %vm720_vm3, %v2295_v38, -inf }
 0x9e3   : > { %v2296_v44 = vmul.f32 0.35355338, %v2287_v42  ;;  %v3371_v45 = vpop.f32.mrb[61].mxu0  ;;  %2304 = vmax.xlane.f32.xlu0 %v2303_v43 }
 0x9e4   : > { %v2290_v46 = vpop.f32.mrb[62].mxu0 }
 0x9e5   : > { %v3372_v47 = vpop.f32.mrb[63].mxu0  ;;  %v2306_v48 = vsel %vm720_vm3, %v2296_v44, -inf }
 0x9e7   : > { %2307 = vmax.xlane.f32.xlu0 %v2306_v48 }
 0x9ef   : > { %2345 = vrot.lane.b32.xlu1 %v3721_v7, %s3588_s12 }
 0xa68   : > { %v2299_v49 = vpop.xlane.xlu0 %2298 }
 0xa69   : > { %v2309_v50 = vsub.f32 %v2293_v23, %v2299_v49 }
 0xa6b   : > { %v2313_v51 = vmul.f32 1.442695, %v2309_v50  ;;  %v2302_v52 = vpop.xlane.xlu1 %2301 }
 0xa6c   : > { %v2310_v53 = vsub.f32 %v2294_v31, %v2302_v52 }
 0xa6d   : > { %3519 = vpow2.f32 %v2313_v51  ;;  %v3559_v51 = vld [vmem:[%s4119_s1] ss:$8 sps:$4 sm:$0xff]  }
 0xa6e   : > { %v2315_v54 = vmul.f32 1.442695, %v2310_v53 }
 0xa6f   : > { %v2346_v55 = vpop.permute.xlu1 %2345 }
 0xa70   : > { %3521 = vpow2.f32 %v2315_v54  ;;  %v2351_v56 = vsel %vm971_vm4, %v2346_v55, 0  ;;  %v2305_v57 = vpop.xlane.xlu0 %2304  ;;  %v3560_v55 = vld [vmem:[%s4119_s1 + $0x10] ss:$8 sps:$4 sm:$0xff]  }
 0xa71   : > { %v2311_v58 = vsub.f32 %v2295_v38, %v2305_v57  ;;  %3374 = vmatpush3.bf16.msra.mxu1 %v2351_v56 }
 0xa72   : > { %3385 = vmatprep.subr.bf16.mxu1 %v3578_v59 }
 0xa73   : > { %v2317_v60 = vmul.f32 1.442695, %v2311_v58 }
 0xa74   : > { %v2308_v61 = vpop.xlane.xlu0 %2307 }
 0xa75   : > { %3523 = vpow2.f32 %v2317_v60  ;;  %v2312_v7 = vsub.f32 %v2296_v44, %v2308_v61 }
 0xa77   : > { %v3520_v62 = vpop.eup %3519  ;;  %v2319_v63 = vmul.f32 1.442695, %v2312_v7 }
 0xa78   : > { %v2321_v1 = vsel %vm720_vm3, %v3520_v62, 0.0 }
 0xa79   : > { %3525 = vpow2.f32 %v2319_v63  ;;  %2322 = vadd.xlane.f32.xlu1 %v2321_v1 }
 0xa7a   : > { %v3522_v2 = vpop.eup %3521 }
 0xa7b   : > { %v2324_v4 = vsel %vm720_vm3, %v3522_v2, 0.0 }
 0xa7c   : > { %2325 = vadd.xlane.f32.xlu0 %v2324_v4 }
 0xa7f   : > { %v3524_v8 = vpop.eup %3523 }
 0xa80   : > { %v2327_v11 = vsel %vm720_vm3, %v3524_v8, 0.0 }
 0xa81   : > { %2328 = vadd.xlane.f32.xlu1 %v2327_v11  ;;  %v2566_v11 = vsub.s32 1, %v3627_v3 }
 0xa83   : > { %v3526_v12 = vpop.eup %3525 }
 0xa84   : > { %v2330_v14 = vsel %vm720_vm3, %v3526_v12, 0.0 }
 0xa85   : > { %2331 = vadd.xlane.f32.xlu0 %v2330_v14 }
 0xa92   : > { %2441 = vrot.lane.b32.xlu1 %v3727_v5, %s3588_s12 }
 0xa96   : > { %2489 = vrot.lane.b32.xlu1 %v3731_v10, %s3588_s12 }
 0xa9a   : > { %1613 = vrot.lane.b32.xlu1 %v3891_v25, %s3589_s13 }
 0xa9b   : > { %2393 = vrot.lane.b32.xlu0 %v3723_v9, %s3588_s12 }
 0xa9e   : > { %1617 = vrot.lane.b32.xlu1 %v3895_v33, %s3589_s13 }
 0xa9f   : > { %1611 = vrot.lane.b32.xlu0 %v3889_v21, %s3589_s13 }
 0xaa2   : > { %2078 = vrot.lane.b32.xlu1 %v3959_v6, %s3590_s14 }
 0xaa3   : > { %1615 = vrot.lane.b32.xlu0 %v3893_v29, %s3589_s13 }
 0xaa6   : > { %2082 = vrot.lane.b32.xlu1 %v3963_v17, %s3590_s14 }
 0xaa7   : > { %2076 = vrot.lane.b32.xlu0 %v3957_v0, %s3590_s14 }
 0xaab   : > { %2080 = vrot.lane.b32.xlu0 %v3961_v13, %s3590_s14 }
 0xb06   : > { %v2323_v5 = vpop.xlane.xlu1 %2322 }
 0xb07   : > { %3527 = vrcp.f32 %v2323_v5 }
 0xb09   : > { %v2326_v10 = vpop.xlane.xlu0 %2325 }
 0xb0a   : > { %3529 = vrcp.f32 %v2326_v10 }
 0xb0e   : > { %v2329_v9 = vpop.xlane.xlu1 %2328 }
 0xb0f   : > { %3531 = vrcp.f32 %v2329_v9 }
 0xb11   : > { %v3528_v25 = vpop.eup %3527 }
 0xb12   : > { %v2337_v33 = vmul.f32 %v3528_v25, %v3520_v62  ;;  %v2442_v21 = vpop.permute.xlu1 %2441  ;;  %v2332_v15 = vpop.xlane.xlu0 %2331 }
 0xb13   : > { %3533 = vrcp.f32 %v2332_v15  ;;  %v2447_v17 = vsel %vm971_vm4, %v2442_v21, 0  ;;  %v3562_v15 = vld [vmem:[#allocation2] sm:$0xff] }
 0xb14   : > { %v3530_v6 = vpop.eup %3529  ;;  %v2341_v16 = vpack.c.bf16 %v2337_v33, %v2337_v33 }
 0xb15   : > { %v2338_v29 = vmul.f32 %v3530_v6, %v3522_v2 }
 0xb16   : > { %3376 = vmatmul.mubr.msk.bf16.vlgmr.msra.gmra.mrb[52].mxu1 %vm720_vm3, %v2341_v16  ;;  %v2490_v0 = vpop.permute.xlu1 %2489  ;;  %v2394_v13 = vpop.permute.xlu0 %2393 }
 0xb17   : > { %3386 = vmatpush3.bf16.msra.mxu1 %v2447_v17  ;;  %v2399_v18 = vsel %vm971_vm4, %v2394_v13, 0  ;;  %3387 = vmatprep.mubr.msk.bf16.mxu1 %vm3579_vm2, %v3578_v59  ;;  %v2342_v20 = vpack.c.bf16 %v2338_v29, %v2338_v29  ;;  %v2495_v26 = vsel %vm971_vm4, %v2490_v0, 0  ;;  %v3563_v29 = vld [vmem:[#allocation2 + $0x10] sm:$0xff]  ;;  %v3564_v13 = vld [vmem:[#allocation2 + $0x8] sm:$0xff] }
 0xb18   : > { %3380 = vmatpush3.bf16.msra.mxu0 %v2399_v18 }
 0xb19   : > { %v3532_v19 = vpop.eup %3531  ;;  %3391 = vmatprep.subr.bf16.mxu0 %v3578_v59 }
 0xb1a   : > { %v2339_v22 = vmul.f32 %v3532_v19, %v3524_v8  ;;  %v1614_v23 = vpop.permute.xlu1 %1613  ;;  %v1612_v24 = vpop.permute.xlu0 %1611 }
 0xb1b   : > { %1625 = vst.msk [vmem:[#allocation3 + $0x8] sm:$0xff] %vm1623_vm5, %v1614_v23  ;;  %1624 = vst.msk [vmem:[#allocation3] sm:$0xff] %vm1623_vm5, %v1612_v24  ;;  %3382 = vmatmul.mubr.msk.bf16.vlgmr.msra.gmra.mrb[64].mxu0 %vm720_vm3, %v2342_v20 }
 0xb1c   : > { %3392 = vmatpush3.bf16.msra.mxu0 %v2495_v26  ;;  %v2343_v27 = vpack.c.bf16 %v2339_v22, %v2339_v22  ;;  %3393 = vmatprep.mubr.msk.bf16.mxu0 %vm3579_vm2, %v3578_v59  ;;  %v3565_v22 = vld [vmem:[#allocation2 + $0x18] sm:$0xff] }
 0xb1d   : > { %v3534_v28 = vpop.eup %3533 }
 0xb1e   : > { %v2340_v30 = vmul.f32 %v3534_v28, %v3526_v12  ;;  %3388 = vmatmul.mubr.msk.bf16.vlgmr.msra.gmra.mrb[56].mxu1 %vm720_vm3, %v2343_v27  ;;  %v1618_v31 = vpop.permute.xlu1 %1617  ;;  %v1616_v32 = vpop.permute.xlu0 %1615  ;;  %v4021_v12 = vld [vmem:[%s4121_s3] sm:$0xff] }
 0xb1f   : > { %1627 = vst.msk [vmem:[#allocation3 + $0x18] sm:$0xff] %vm1623_vm5, %v1618_v31  ;;  %1626 = vst.msk [vmem:[#allocation3 + $0x10] sm:$0xff] %vm1623_vm5, %v1616_v32  ;;  %v2567_v14 = vrot.slane %v4021_v12, %v2566_v11 }
 0xb20   : > { %v2344_v34 = vpack.c.bf16 %v2340_v30, %v2340_v30 }
 0xb22   : > { %v2079_v35 = vpop.permute.xlu1 %2078  ;;  %v2077_v36 = vpop.permute.xlu0 %2076 }
 0xb23   : > { %2090 = vst.msk [vmem:[#allocation3 + $0x8] sm:$0xff] %vm2088_vm6, %v2079_v35  ;;  %2089 = vst.msk [vmem:[#allocation3] sm:$0xff] %vm2088_vm6, %v2077_v36  ;;  %3394 = vmatmul.mubr.msk.bf16.vlgmr.msra.gmra.mrb[68].mxu0 %vm720_vm3, %v2344_v34 }
 0xb26   : > { %v2083_v37 = vpop.permute.xlu1 %2082  ;;  %v2081_v59 = vpop.permute.xlu0 %2080 }
 0xb27   : > { %2092 = vst.msk [vmem:[#allocation3 + $0x18] sm:$0xff] %vm2088_vm6, %v2083_v37  ;;  %2091 = vst.msk [vmem:[#allocation3 + $0x10] sm:$0xff] %vm2088_vm6, %v2081_v59 }
 0xbe9   : > { %v2387_v38 = vpop.f32.mrb[52].mxu1 }
 0xbea   : > { %v3377_v39 = vpop.f32.mrb[53].mxu1  ;;  %2541 = vrot.lane.b32.xlu0 %v2387_v38, %s3591_s18 }
 0xbeb   : > { %v2390_v40 = vpop.f32.mrb[54].mxu1 }
 0xbec   : > { %v3378_v41 = vpop.f32.mrb[55].mxu1 }
 0xbee   : > { %v2435_v42 = vpop.f32.mrb[64].mxu0 }
 0xbef   : > { %2543 = vrot.lane.b32.xlu1 %v2435_v42, %s3591_s18  ;;  %v3383_v43 = vpop.f32.mrb[65].mxu0 }
 0xbf0   : > { %v2438_v44 = vpop.f32.mrb[66].mxu0 }
 0xbf1   : > { %v3384_v45 = vpop.f32.mrb[67].mxu0  ;;  %v2483_v46 = vpop.f32.mrb[56].mxu1 }
 0xbf2   : > { %v3389_v47 = vpop.f32.mrb[57].mxu1  ;;  %2545 = vrot.lane.b32.xlu0 %v2483_v46, %s3591_s18 }
 0xbf3   : > { %v2486_v48 = vpop.f32.mrb[58].mxu1 }
 0xbf4   : > { %v3390_v49 = vpop.f32.mrb[59].mxu1  ;;  %v618_v48 = vld [vmem:[%s4119_s1] sm:$0xff] }
 0xbf5   : > { %v619_v49 = vld [vmem:[%s4119_s1 + $0x8] sm:$0xff] }
 0xbf6   : > { %v2531_v50 = vpop.f32.mrb[68].mxu0  ;;  %2568 = vrot.lane.b32.xlu0 %v3559_v51, %s3577_s23  ;;  %v621_v51 = vld [vmem:[%s4119_s1 + $0x18] sm:$0xff] }
 0xbf7   : > { %2547 = vrot.lane.b32.xlu1 %v2531_v50, %s3591_s18  ;;  %v3395_v52 = vpop.f32.mrb[69].mxu0  ;;  %v620_v50 = vld [vmem:[%s4119_s1 + $0x10] sm:$0xff] }
 0xbf8   : > { %v2534_v53 = vpop.f32.mrb[70].mxu0  ;;  %v3096_v52 = vcombine.high %v618_v48, %v619_v49 }
 0xbf9   : > { %v3396_v54 = vpop.f32.mrb[71].mxu0  ;;  %v3097_v53 = vcombine.high %v620_v50, %v621_v51 }
 0xbfa   : > { %3405 = vmatprep.subr.bf16.mxu0 %v3096_v52  ;;  %v3463_v54 = vld [vmem:[%s4120_s2] sm:$0xff]  }
 0xbfb   : > { %2570 = vrot.lane.b32.xlu1 %v3560_v55, %s3577_s23  ;;  %3406 = vmatpush3.bf16.msra.mxu0 %v3096_v52  ;;  %v3464_v55 = vld [vmem:[%s4120_s2 + $0x8] sm:$0xff]  }
 0xbfc   : > { %3407 = vmatprep.subr.bf16.mxu0 %v3097_v53 }
 0xbff   : > { %3408 = vmatpush3.bf16.msra.mxu0 %v3097_v53 }
 0xc5c   : > { %v2542_v56 = vpop.permute.xlu0 %2541 }
 0xc5d   : > { %2554 = vst.msk [vmem:[#allocation3] sm:$0xff] %vm2553_vm7, %v2542_v56 }
 0xc61   : > { %v2544_v57 = vpop.permute.xlu1 %2543 }
 0xc62   : > { %2555 = vst.msk [vmem:[#allocation3 + $0x8] sm:$0xff] %vm2553_vm7, %v2544_v57 }
 0xc64   : > { %v2546_v58 = vpop.permute.xlu0 %2545  ;;  %v2558_v7 = vld [vmem:[#allocation3] sm:$0xff] }
 0xc65   : > { %2556 = vst.msk [vmem:[#allocation3 + $0x10] sm:$0xff] %vm2553_vm7, %v2546_v58 }
 0xc68   : > { %v2569_v60 = vpop.permute.xlu0 %2568 }
 0xc69   : > { %v2548_v61 = vpop.permute.xlu1 %2547  ;;  %3397 = vmatprep.subr.bf16.mxu1 %v2569_v60  ;;  %v2559_v62 = vld [vmem:[#allocation3 + $0x8] sm:$0xff] }
 0xc6a   : > { %2557 = vst.msk [vmem:[#allocation3 + $0x18] sm:$0xff] %vm2553_vm7, %v2548_v61  ;;  %v2562_v63 = vpack.c.bf16 %v2559_v62, %v2558_v7  ;;  %3398 = vmatpush3.bf16.msra.mxu1 %v2569_v60 }
 0xc6c   : > { %3401 = vmatprep.mubr.msk.bf16.mxu1 %vm657_vm1, %v2562_v63  ;;  %v2560_v2 = vld [vmem:[#allocation3 + $0x10] sm:$0xff] }
 0xc6d   : > { %v2571_v1 = vpop.permute.xlu1 %2570 }
 0xc6e   : > { %3399 = vmatprep.subr.bf16.mxu1 %v2571_v1 }
 0xc6f   : > { %3400 = vmatpush3.bf16.msra.mxu1 %v2571_v1 }
 0xc70   : > { %3413 = vmatprep.subr.bf16.mxu1 %v3463_v54 }
 0xc71   : > { %v2561_v4 = vld [vmem:[#allocation3 + $0x18] sm:$0xff] }
 0xc72   : > { %v2563_v8 = vpack.c.bf16 %v2561_v4, %v2560_v2 }
 0xc74   : > { %3402 = vmatmul.mubr.msk.bf16.vlgmr.msra.gmra.mrb[60].mxu1 %vm657_vm1, %v2563_v8  ;;  %v2688_v8 = vsub.s32 2, %v3627_v3 }
 0xc75   : > { %3414 = vmatpush3.bf16.msra.mxu1 %v3463_v54 }
 0xc76   : > { %3415 = vmatprep.subr.bf16.mxu1 %v3464_v55 }
 0xc79   : > { %3416 = vmatpush3.bf16.msra.mxu1 %v3464_v55 }
 0xd47   : > { %v3403_v5 = vpop.f32.mrb[60].mxu1 }
 0xd48   : > { %v2614_v10 = vpop.f32.mrb[61].mxu1  ;;  %v2623_v9 = vadd.f32 %v3403_v5, %v2567_v14  ;;  %v2696_v5 = vsub.s32 3, %v3627_v3 }
 0xd49   : > { %v2615_v25 = vadd.f32 %v2614_v10, %v2567_v14  ;;  %v3404_v33 = vpop.f32.mrb[62].mxu1 }
 0xd4a   : > { %v2617_v21 = vpop.f32.mrb[63].mxu1  ;;  %v2631_v17 = vadd.f32 %v3563_v29, %v2623_v9  ;;  %v2626_v0 = vadd.f32 %v3404_v33, %v2567_v14 }
 0xd4b   : > { %v2629_v6 = vadd.f32 %v3562_v15, %v2615_v25  ;;  %v2618_v16 = vadd.f32 %v2617_v21, %v2567_v14  ;;  %v2689_v14 = vrot.slane %v4021_v12, %v2688_v8  ;;  %v2697_v15 = vrot.slane %v4021_v12, %v2696_v5 }
 0xd4c   : > { %v2632_v23 = vadd.f32 %v3565_v22, %v2626_v0  ;;  %v2639_v24 = vsel %vm657_vm1, %v2631_v17, 0.0 }
 0xd4d   : > { %v2630_v18 = vadd.f32 %v3564_v13, %v2618_v16  ;;  %v2633_v19 = vsel %vm657_vm1, %v2629_v6, 0.0 }
 0xd4e   : > { %2634 = vadd.xlane.f32.xlu0 %v2633_v19  ;;  %v2642_v26 = vsel %vm657_vm1, %v2632_v23, 0.0 }
 0xd4f   : > { %v2636_v20 = vsel %vm657_vm1, %v2630_v18, 0.0 }
 0xd50   : > { %2637 = vadd.xlane.f32.xlu1 %v2636_v20 }
 0xd52   : > { %2640 = vadd.xlane.f32.xlu0 %v2639_v24 }
 0xd56   : > { %2643 = vadd.xlane.f32.xlu0 %v2642_v26 }
 0xddb   : > { %v2635_v27 = vpop.xlane.xlu0 %2634 }
 0xddc   : > { %v2646_v28 = vmul.f32 0.03125, %v2635_v27  ;;  %v3465_v27 = vld [vmem:[%s4120_s2 + $0x10] sm:$0xff]  }
 0xddd   : > { %v2638_v30 = vpop.xlane.xlu1 %2637  ;;  %3417 = vmatprep.subr.bf16.mxu1 %v3465_v27 }
 0xdde   : > { %v2650_v31 = vsub.f32 %v2629_v6, %v2646_v28  ;;  %v2647_v32 = vmul.f32 0.03125, %v2638_v30  ;;  %3418 = vmatpush3.bf16.msra.mxu1 %v3465_v27  ;;  %v3466_v28 = vld [vmem:[%s4120_s2 + $0x18] sm:$0xff]   ;;  %v3467_v30 = vld [vmem:[%s4120_s2 + $0x20] sm:$0xff]  }
 0xddf   : > { %v2641_v34 = vpop.xlane.xlu0 %2640  ;;  %3419 = vmatprep.subr.bf16.mxu1 %v3466_v28 }
 0xde0   : > { %v2651_v35 = vsub.f32 %v2630_v18, %v2647_v32  ;;  %v2648_v36 = vmul.f32 0.03125, %v2641_v34  ;;  %v2654_v37 = vmul.f32 %v2650_v31, %v2650_v31  ;;  %v3469_v32 = vld [vmem:[%s4120_s2 + $0x30] sm:$0xff]   ;;  %v3470_v34 = vld [vmem:[%s4120_s2 + $0x38] sm:$0xff]  }
 0xde2   : > { %v2652_v59 = vsub.f32 %v2631_v17, %v2648_v36  ;;  %v2658_v38 = vsel %vm657_vm1, %v2654_v37, 0.0  ;;  %v2655_v39 = vmul.f32 %v2651_v35, %v2651_v35  ;;  %3420 = vmatpush3.bf16.msra.mxu1 %v3466_v28 }
 0xde3   : > { %2659 = vadd.xlane.f32.xlu1 %v2658_v38  ;;  %v2644_v40 = vpop.xlane.xlu0 %2643  ;;  %3421 = vmatprep.subr.bf16.mxu1 %v3467_v30 }
 0xde4   : > { %v2649_v41 = vmul.f32 0.03125, %v2644_v40  ;;  %v2661_v42 = vsel %vm657_vm1, %v2655_v39, 0.0  ;;  %v2656_v43 = vmul.f32 %v2652_v59, %v2652_v59 }
 0xde5   : > { %2662 = vadd.xlane.f32.xlu0 %v2661_v42 }
 0xde6   : > { %v2653_v44 = vsub.f32 %v2632_v23, %v2649_v41  ;;  %v2664_v45 = vsel %vm657_vm1, %v2656_v43, 0.0  ;;  %3422 = vmatpush3.bf16.msra.mxu1 %v3467_v30 }
 0xde7   : > { %2665 = vadd.xlane.f32.xlu1 %v2664_v45 }
 0xde8   : > { %v2657_v46 = vmul.f32 %v2653_v44, %v2653_v44 }
 0xdea   : > { %v2667_v47 = vsel %vm657_vm1, %v2657_v46, 0.0 }
 0xdeb   : > { %2668 = vadd.xlane.f32.xlu0 %v2667_v47 }
 0xe70   : > { %v2660_v56 = vpop.xlane.xlu1 %2659 }
 0xe71   : > { %v2670_v57 = vmul.f32 0.03125, %v2660_v56 }
 0xe72   : > { %v2663_v58 = vpop.xlane.xlu0 %2662 }
 0xe73   : > { %v2674_v60 = vadd.f32 1e-05, %v2670_v57  ;;  %v2671_v61 = vmul.f32 0.03125, %v2663_v58 }
 0xe74   : > { %v2666_v7 = vpop.xlane.xlu1 %2665 }
 0xe75   : > { %3535 = vrsqrt.f32 %v2674_v60  ;;  %v2675_v62 = vadd.f32 1e-05, %v2671_v61  ;;  %v2672_v63 = vmul.f32 0.03125, %v2666_v7 }
 0xe77   : > { %3537 = vrsqrt.f32 %v2675_v62  ;;  %v2676_v1 = vadd.f32 1e-05, %v2672_v63 }
 0xe78   : > { %v2669_v2 = vpop.xlane.xlu0 %2668 }
 0xe79   : > { %3539 = vrsqrt.f32 %v2676_v1  ;;  %v2673_v4 = vmul.f32 0.03125, %v2669_v2 }
 0xe7b   : > { %v2677_v11 = vadd.f32 1e-05, %v2673_v4  ;;  %v2896_v4 = vsub.s32 5, %v3627_v3 }
 0xe7d   : > { %3541 = vrsqrt.f32 %v2677_v11  ;;  %v2897_v8 = vrot.slane %v4021_v12, %v2896_v4 }
 0xe7f   : > { %v3536_v10 = vpop.eup %3535 }
 0xe80   : > { %v2682_v9 = vmul.f32 %v3536_v10, %v2650_v31  ;;  %v3468_v31 = vld [vmem:[%s4120_s2 + $0x28] sm:$0xff]  }
 0xe81   : > { %v3538_v25 = vpop.eup %3537  ;;  %3423 = vmatprep.subr.bf16.mxu1 %v3468_v31 }
 0xe82   : > { %v2683_v33 = vmul.f32 %v3538_v25, %v2651_v35  ;;  %v2690_v21 = vmul.f32 %v2689_v14, %v2682_v9  ;;  %3424 = vmatpush3.bf16.msra.mxu1 %v3468_v31  ;;  %v2706_v35 = vsub.s32 4, %v3627_v3 }
 0xe83   : > { %v3540_v6 = vpop.eup %3539  ;;  %3425 = vmatprep.subr.bf16.mxu1 %v3469_v32 }
 0xe84   : > { %v2684_v16 = vmul.f32 %v3540_v6, %v2652_v59  ;;  %v2691_v29 = vmul.f32 %v2689_v14, %v2683_v33  ;;  %v4054_v17 = vadd.f32 %v2697_v15, %v2690_v21  ;;  %v2707_v36 = vrot.slane %v4021_v12, %v2706_v35 }
 0xe86   : > { %v4056_v0 = vadd.f32 %v2697_v15, %v2691_v29  ;;  %v2692_v18 = vmul.f32 %v2689_v14, %v2684_v16  ;;  %3426 = vmatpush3.bf16.msra.mxu1 %v3469_v32 }
 0xe87   : > { %v3542_v13 = vpop.eup %3541  ;;  %3427 = vmatprep.subr.bf16.mxu1 %v3470_v34 }
 0xe88   : > { %v2685_v19 = vmul.f32 %v3542_v13, %v2653_v44  ;;  %v2702_v20 = vpack.c.bf16 %v4056_v0, %v4054_v17  ;;  %v4061_v23 = vadd.f32 %v2697_v15, %v2692_v18 }
 0xe8a   : > { %v2693_v22 = vmul.f32 %v2689_v14, %v2685_v19  ;;  %3409 = vmatprep.mubr.msk.bf16.mxu0 %vm657_vm1, %v2702_v20  ;;  %3428 = vmatpush3.bf16.msra.mxu1 %v3470_v34 }
 0xe8c   : > { %v4063_v24 = vadd.f32 %v2697_v15, %v2693_v22 }
 0xe8e   : > { %v2703_v26 = vpack.c.bf16 %v4063_v24, %v4061_v23 }
 0xe90   : > { %3410 = vmatmul.mubr.msk.bf16.vlgmr.msra.gmra.mrb[72].mxu0 %vm657_vm1, %v2703_v26 }
 0xf63   : > { %v3411_v37 = vpop.f32.mrb[72].mxu0 }
 0xf64   : > { %v2765_v59 = vadd.f32 %v3411_v37, %v2707_v36  ;;  %v2756_v38 = vpop.f32.mrb[73].mxu0 }
 0xf65   : > { %v2757_v39 = vadd.f32 %v2756_v38, %v2707_v36  ;;  %v3412_v40 = vpop.f32.mrb[74].mxu0 }
 0xf66   : > { %v2777_v41 = vmul.f32 0.70710677, %v2765_v59  ;;  %v2768_v42 = vadd.f32 %v3412_v40, %v2707_v36  ;;  %v2759_v43 = vpop.f32.mrb[75].mxu0  ;;  %v2773_v54 = vmul.f32 0.5, %v2765_v59 }
 0xf67   : > { %v2775_v44 = vmul.f32 0.70710677, %v2757_v39  ;;  %v2760_v45 = vadd.f32 %v2759_v43, %v2707_v36  ;;  %v2771_v57 = vmul.f32 0.5, %v2757_v39 }
 0xf68   : > { %3543 = verf.f32 %v2777_v41  ;;  %v2778_v46 = vmul.f32 0.70710677, %v2768_v42  ;;  %v2774_v55 = vmul.f32 0.5, %v2768_v42 }
 0xf69   : > { %3545 = verf.f32 %v2775_v44  ;;  %v2776_v47 = vmul.f32 0.70710677, %v2760_v45  ;;  %v2772_v58 = vmul.f32 0.5, %v2760_v45 }
 0xf6a   : > { %3547 = verf.f32 %v2778_v46 }
 0xf6b   : > { %3549 = verf.f32 %v2776_v47 }
 0xf72   : > { %v3544_v48 = vpop.eup %3543 }
 0xf73   : > { %v3546_v49 = vpop.eup %3545  ;;  %v2785_v50 = vadd.f32 1.0, %v3544_v48 }
 0xf74   : > { %v3548_v51 = vpop.eup %3547  ;;  %v2783_v52 = vadd.f32 1.0, %v3546_v49 }
 0xf75   : > { %v3550_v53 = vpop.eup %3549  ;;  %v2786_v56 = vadd.f32 1.0, %v3548_v51  ;;  %v2789_v61 = vmul.f32 %v2785_v50, %v2773_v54  ;;  %v2956_v54 = vsub.s32 6, %v3627_v3 }
 0xf76   : > { %v2784_v60 = vadd.f32 1.0, %v3550_v53  ;;  %v2787_v62 = vmul.f32 %v2783_v52, %v2771_v57 }
 0xf77   : > { %v2790_v7 = vmul.f32 %v2786_v56, %v2774_v55  ;;  %v2964_v55 = vsub.s32 7, %v3627_v3  ;;  %v2957_v56 = vrot.slane %v4021_v12, %v2956_v54 }
 0xf78   : > { %v2788_v63 = vmul.f32 %v2784_v60, %v2772_v58 }
 0xf79   : > { %v2792_v1 = vpack.c.bf16 %v2790_v7, %v2789_v61  ;;  %v2965_v60 = vrot.slane %v4021_v12, %v2964_v55 }
 0xf7a   : > { %v2791_v2 = vpack.c.bf16 %v2788_v63, %v2787_v62 }
 0xf7c   : > { %3429 = vmatprep.mubr.bf16.mxu1 %v2791_v2 }
 0xf7d   : > { %3430 = vmatmul.mubr.bf16.vlgmr.msra.gmra.mrb[64].mxu1 %v2792_v1 }
0x1050   : > { %v3431_v11 = vpop.f32.mrb[64].mxu1 }
0x1051   : > { %v2892_v14 = vadd.f32 %v3431_v11, %v4061_v23  ;;  %v2875_v5 = vpop.f32.mrb[65].mxu1 }
0x1052   : > { %v2890_v10 = vadd.f32 %v2875_v5, %v4054_v17  ;;  %v3432_v9 = vpop.f32.mrb[66].mxu1 }
0x1053   : > { %v2900_v25 = vadd.f32 %v2897_v8, %v2892_v14  ;;  %v2878_v33 = vpop.f32.mrb[67].mxu1  ;;  %v2893_v21 = vadd.f32 %v3432_v9, %v4063_v24 }
0x1054   : > { %v2891_v15 = vadd.f32 %v2878_v33, %v4056_v0  ;;  %v2898_v6 = vadd.f32 %v2897_v8, %v2890_v10 }
0x1055   : > { %v2908_v16 = vsel %vm657_vm1, %v2900_v25, 0.0  ;;  %v2901_v13 = vadd.f32 %v2897_v8, %v2893_v21 }
0x1056   : > { %v2899_v29 = vadd.f32 %v2897_v8, %v2891_v15  ;;  %2909 = vadd.xlane.f32.xlu0 %v2908_v16  ;;  %v2902_v19 = vsel %vm657_vm1, %v2898_v6, 0.0 }
0x1057   : > { %v2911_v17 = vsel %vm657_vm1, %v2901_v13, 0.0 }
0x1058   : > { %v2905_v18 = vsel %vm657_vm1, %v2899_v29, 0.0 }
0x1059   : > { %2906 = vadd.xlane.f32.xlu1 %v2905_v18 }
0x105a   : > { %2903 = vadd.xlane.f32.xlu0 %v2902_v19 }
0x105d   : > { %2912 = vadd.xlane.f32.xlu1 %v2911_v17 }
0x10e3   : > { %v2910_v20 = vpop.xlane.xlu0 %2909 }
0x10e4   : > { %v2916_v22 = vmul.f32 0.03125, %v2910_v20 }
0x10e6   : > { %v2920_v23 = vsub.f32 %v2900_v25, %v2916_v22  ;;  %v2907_v24 = vpop.xlane.xlu1 %2906 }
0x10e7   : > { %v2915_v0 = vmul.f32 0.03125, %v2907_v24  ;;  %v2904_v26 = vpop.xlane.xlu0 %2903 }
0x10e8   : > { %v2914_v27 = vmul.f32 0.03125, %v2904_v26  ;;  %v2924_v28 = vmul.f32 %v2920_v23, %v2920_v23 }
0x10e9   : > { %v2919_v30 = vsub.f32 %v2899_v29, %v2915_v0 }
0x10ea   : > { %v2918_v31 = vsub.f32 %v2898_v6, %v2914_v27  ;;  %v2913_v32 = vpop.xlane.xlu1 %2912  ;;  %v2932_v34 = vsel %vm657_vm1, %v2924_v28, 0.0 }
0x10eb   : > { %v2917_v35 = vmul.f32 0.03125, %v2913_v32  ;;  %2933 = vadd.xlane.f32.xlu0 %v2932_v34  ;;  %v2923_v36 = vmul.f32 %v2919_v30, %v2919_v30 }
0x10ec   : > { %v2922_v37 = vmul.f32 %v2918_v31, %v2918_v31 }
0x10ed   : > { %v2921_v59 = vsub.f32 %v2901_v13, %v2917_v35  ;;  %v2929_v38 = vsel %vm657_vm1, %v2923_v36, 0.0 }
0x10ee   : > { %2930 = vadd.xlane.f32.xlu1 %v2929_v38  ;;  %v2926_v39 = vsel %vm657_vm1, %v2922_v37, 0.0 }
0x10ef   : > { %2927 = vadd.xlane.f32.xlu0 %v2926_v39  ;;  %v2925_v40 = vmul.f32 %v2921_v59, %v2921_v59 }
0x10f1   : > { %v2935_v41 = vsel %vm657_vm1, %v2925_v40, 0.0 }
0x10f2   : > { %2936 = vadd.xlane.f32.xlu1 %v2935_v41 }
0x1178   : > { %v2934_v42 = vpop.xlane.xlu0 %2933 }
0x1179   : > { %v2940_v43 = vmul.f32 0.03125, %v2934_v42 }
0x117b   : > { %v2944_v44 = vadd.f32 1e-05, %v2940_v43  ;;  %v2931_v45 = vpop.xlane.xlu1 %2930 }
0x117c   : > { %v2939_v46 = vmul.f32 0.03125, %v2931_v45  ;;  %v2928_v47 = vpop.xlane.xlu0 %2927 }
0x117d   : > { %3551 = vrsqrt.f32 %v2944_v44  ;;  %v2938_v48 = vmul.f32 0.03125, %v2928_v47 }
0x117e   : > { %v2943_v49 = vadd.f32 1e-05, %v2939_v46 }
0x117f   : > { %v2942_v50 = vadd.f32 1e-05, %v2938_v48  ;;  %v2937_v51 = vpop.xlane.xlu1 %2936 }
0x1180   : > { %3553 = vrsqrt.f32 %v2943_v49  ;;  %v2941_v52 = vmul.f32 0.03125, %v2937_v51 }
0x1181   : > { %3555 = vrsqrt.f32 %v2942_v50 }
0x1182   : > { %v2945_v53 = vadd.f32 1e-05, %v2941_v52 }
0x1184   : > { %3557 = vrsqrt.f32 %v2945_v53 }
0x1187   : > { %v3552_v57 = vpop.eup %3551 }
0x1188   : > { %v2952_v58 = vmul.f32 %v3552_v57, %v2920_v23 }
0x118a   : > { %v3554_v61 = vpop.eup %3553  ;;  %v2960_v7 = vmul.f32 %v2957_v56, %v2952_v58 }
0x118b   : > { %v3556_v62 = vpop.eup %3555  ;;  %v2951_v63 = vmul.f32 %v3554_v61, %v2919_v30 }
0x118c   : > { %v2950_v1 = vmul.f32 %v3556_v62, %v2918_v31  ;;  %v2968_v2 = vadd.f32 %v2965_v60, %v2960_v7 }
0x118d   : > { %v2959_v4 = vmul.f32 %v2957_v56, %v2951_v63 }
0x118e   : > { %v3558_v8 = vpop.eup %3557  ;;  %2978 = vrot.lane.b32.xlu0 %v2968_v2, %s3575_s21  ;;  %v2958_v11 = vmul.f32 %v2957_v56, %v2950_v1 }
0x118f   : > { %v2967_v14 = vadd.f32 %v2965_v60, %v2959_v4  ;;  %v2953_v3 = vmul.f32 %v3558_v8, %v2921_v59 }
0x1190   : > { %v2966_v5 = vadd.f32 %v2965_v60, %v2958_v11 }
0x1191   : > { %2972 = vrot.lane.b32.xlu1 %v2967_v14, %s3577_s23  ;;  %v2961_v12 = vmul.f32 %v2957_v56, %v2953_v3 }
0x1192   : > { %2970 = vst.msk [vmem:[%s195_s8] sm:$0xff] %vm657_vm1, %v2966_v5 }
0x1193   : > { %v2969_v10 = vadd.f32 %v2965_v60, %v2961_v12 }
0x1195   : > { %2984 = vrot.lane.b32.xlu1 %v2969_v10, %s3576_s22 }
0x1200   : > { %v2979_v25 = vpop.permute.xlu0 %2978 }
0x1203   : > { %v2973_v9 = vpop.permute.xlu1 %2972 }
0x1204   : > { %2976 = vst.msk [vmem:[%s195_s8] sm:$0xff] %vm2975_vm8, %v2973_v9 }
0x1205   : > { %2982 = vst.msk [vmem:[%s195_s8] sm:$0xff] %vm2981_vm9, %v2979_v25 }
0x1207   : > { %v2985_v33 = vpop.permute.xlu1 %2984 }
0x1208   : > { %2988 = vst.msk [vmem:[%s195_s8] sm:$0xff] %vm2987_vm10, %v2985_v33 }
0x1209 PF: > { %s14_s15 = sadd.s32 1, %s3572_s15  }
0x120a   : > { %p11_p4 = scmp.ge.s32.totalorder %s14_s15, 4  }
0x120c   :  { %13 = sbr.rel (!%p11_p4) target bundleno = 1 (0x1), region = 66 }

// kernel: two_stage_attention.3
= control target key start
LH: loop header
LB: loop body
LE: loop exit
PB: predicated region body
PF: predicated region fallthrough
CT: control target
= control target key end

     0   :  { %s11162_s18 = smov 0   ;;  %s13326_s0 = inlined_call_operand.vmem [shape: f32[2,8,128], index: 0, kind: input, shape index: {}]   ;;  %s13327_s1 = inlined_call_operand.vmem [shape: f32[16,32], index: 1, kind: input, shape index: {}]   ;;  %s13328_s2 = inlined_call_operand.vmem [shape: bf16[32,384], index: 2, kind: input, shape index: {}]   ;;  %s13329_s3 = inlined_call_operand.vmem [shape: bf16[128,32], index: 3, kind: input, shape index: {}]   ;;  %s13330_s4 = inlined_call_operand.vmem [shape: f32[10,128], index: 4, kind: input, shape index: {}]   ;;  %s13331_s5 = inlined_call_operand.vmem [shape: f32[2,4,256], index: 5, kind: output, shape index: {}]  }
   0x1 LB: > { %s9466_s19 = sadd.s32 4294967295, %s11112_s18   ;;  %p9470_p0 = scmp.ge.s32.totalorder %s11112_s18, 1  ;;  %s11112_s18 = sphi %s11162_s18, %s15_s18  }
   0x2   : > { %p186_p1 = scmp.lt.s32.totalorder %s11112_s18, 3 }
   0x4   : > { %p187_p2 = pnand %p9470_p0, %p186_p1 }
   0x5   : > { %p213_p3 = scmp.lt.s32.totalorder (!%p187_p2), %s9466_s19, 1  ;;  %v229_v0 = vlaneseq (!%p187_p2)  ;;  %v11114_v1 = vmov (!%p187_p2), 1966171168   ;;  %vm282_vm0 = vcmask (!%p187_p2), 253952   ;;  %s11115_s24 = smov (!%p187_p2), 96   ;;  %v11118_v26 = vmov (!%p187_p2), 0.0  }
   0x6   : > { %190 = sbr.rel (%p187_p2) target bundleno = 7852 (0x1eac), region = 40  ;;  %v227_v2 = vunpack.c.l.s4 (!%p187_p2), %v11114_v1  ;;  %s11116_s25 = smov (!%p187_p2), 64   ;;  %v10792_v25 = vld [vmem:[%s13328_s2] ss:$12 sps:$4 sm:$0xff] (!%p187_p2)   ;;  %9921 = vmatprep.subr.bf16.mxu0 (!%p187_p2), %v11118_v26  ;;  %9943 = vmatprep.subr.bf16.mxu1 (!%p187_p2), %v11118_v26  ;;  %v10795_v27 = vld [vmem:[%s13328_s2 + $0x18] ss:$12 sps:$4 sm:$0xff] (!%p187_p2)  }
   0x7   : > { %v11172_v3 = vshrl.u32 (!%p187_p2), %v229_v0, 7  ;;  %s11117_s26 = smov (!%p187_p2), 32   ;;  %9922 = vmatpush3.bf16.msra.mxu0 (!%p187_p2), %v10792_v25  ;;  %v670_v28 = vld [vmem:[%s13327_s1] sm:$0xff] (!%p187_p2)  ;;  %v671_v29 = vld [vmem:[%s13327_s1 + $0x8] sm:$0xff] (!%p187_p2)  ;;  %vm689_vm1 = vcmask (!%p187_p2), 261120   ;;  %vm11119_vm2 = vmmov (!%p187_p2), 0  }
   0x8   : > { %v228_v4 = vunpack.c.0.s8 (!%p187_p2), %v227_v2  ;;  %9923 = vmatprep.subr.bf16.mxu0 (!%p187_p2), %v11118_v26  ;;  %v672_v30 = vpack.c.bf16 (!%p187_p2), %v671_v29, %v670_v28  ;;  %9925 = vmatprep.mubr.msk.bf16.mxu0 (!%p187_p2), %vm11119_vm2, %v11118_v26  ;;  %v668_v35 = vld [vmem:[%s13330_s4] sm:$0xff] (!%p187_p2)  ;;  %vm889_vm3 = vcmask (!%p187_p2), 64512   ;;  %vm1370_vm4 = vcmask (!%p187_p2), 1041408   ;;  %s11121_s12 = smov (!%p187_p2), 120   ;;  %s11122_s13 = smov (!%p187_p2), 88  }
   0x9   : > { %v11182_v7 = vsub.s32 (!%p187_p2), 0, %v11172_v3  ;;  %9945 = vmatprep.mubr.msk.bf16.mxu1 (!%p187_p2), %vm11119_vm2, %v11118_v26  ;;  %vm1266_vm5 = vcmask (!%p187_p2), 25600   ;;  %vm1366_vm6 = vcmask (!%p187_p2), 31744   ;;  %s11123_s14 = smov (!%p187_p2), 112   ;;  %s11124_s15 = smov (!%p187_p2), 80   ;;  %vm2747_vm7 = vcmask (!%p187_p2), 130112  }
   0xa   : > { %v231_v5 = vsub.s32 (!%p187_p2), %v228_v4, %v11172_v3  ;;  %s11125_s16 = smov (!%p187_p2), 104   ;;  %s11126_s17 = smov (!%p187_p2), 72   ;;  %vm3686_vm8 = vcmask (!%p187_p2), 195712   ;;  %vm4625_vm9 = vcmask (!%p187_p2), 261312   ;;  %vm5353_vm10 = vcmask (!%p187_p2), 1040384  }
   0xb   : > { %9924 = vmatpush3.bf16.msra.mxu0 (!%p187_p2), %v10795_v27  ;;  %v11249_v36 = vrot.slane (!%p187_p2), %v668_v35, %v11182_v7  ;;  %s11127_s21 = smov (!%p187_p2), 8   ;;  %s11128_s22 = smov (!%p187_p2), 16   ;;  %vm5249_vm11 = vcmask (!%p187_p2), 11264   ;;  %vm5349_vm12 = vcmask (!%p187_p2), 15360   ;;  %vm9375_vm13 = vcmask (!%p187_p2), 257024  }
   0xc   : > { %s11129_s30 = smov (!%p187_p2), 24   ;;  %vm9381_vm14 = vcmask (!%p187_p2), 519424   ;;  %vm9387_vm15 = vcmask (!%p187_p2), 781824  }
   0xd   : > { %s13333_s19 = smov (!%p213_p3, %s9466_s19), 1 }
   0xe   : > { %s9471_s20 = sshll.u32 %s13333_s19, 3  ;;  %9926 = vmatmul.mubr.msk.bf16.vlgmr.msra.gmra.mrb[0].mxu0 %vm689_vm1, %v672_v30 }
   0xf   : > { %s216_s23 = scalar_lea.vmem %s13326_s0, %s9471_s20  ;;  %s13298_s29 = scalar_lea.vmem %s13331_s5, %s9471_s20 }
  0x10   : > { %v291_v6 = vld [vmem:[%s216_s23] sm:$0xff] }
  0x11   : > { %v300_v8 = vrot.slane %v291_v6, %v231_v5  ;;  %v225_v9 = vcombine.high %v291_v6, %v291_v6 }
  0x13   : > { %v316_v10 = vrot.slane %v300_v8, %v231_v5  ;;  %v239_v11 = vrot.slane %v225_v9, %v231_v5  ;;  %v240_v12 = vcombine.high %v300_v8, %v300_v8 }
  0x15   : > { %v345_v13 = vrot.slane %v316_v10, %v11182_v7  ;;  %v241_v14 = vcombine.high %v239_v11, %v239_v11  ;;  %v255_v15 = vrot.slane %v239_v11, %v231_v5  ;;  %v262_v16 = vrot.slane %v240_v12, %v231_v5  ;;  %283 = vst.msk [vmem:[#allocation2] sm:$0x1] %vm282_vm0, %v316_v10 }
  0x16   : > { %v270_v17 = vcombine.high %v316_v10, %v316_v10 }
  0x17   : > { %374 = vrot.lane.b32.xlu0 %v345_v13, %s11115_s24  ;;  %v269_v18 = vrot.slane %v241_v14, %v231_v5  ;;  %v271_v19 = vcombine.high %v255_v15, %v255_v15  ;;  %v272_v20 = vcombine.high %v262_v16, %v262_v16  ;;  %284 = vst.msk [vmem:[#allocation2 + $0x4] sm:$0x1] %vm282_vm0, %v262_v16  ;;  %287 = vst.msk [vmem:[#allocation2 + $0x10] sm:$0x1] %vm282_vm0, %v255_v15 }
  0x18   : > { %285 = vst.msk [vmem:[#allocation2 + $0x8] sm:$0x1] %vm282_vm0, %v270_v17  ;;  %v353_v21 = vrot.slane %v270_v17, %v11182_v7  ;;  %v464_v23 = vrot.slane %v262_v16, %v11182_v7  ;;  %v361_v31 = vrot.slane %v255_v15, %v11182_v7 }
  0x19   : > { %v273_v22 = vcombine.high %v269_v18, %v269_v18  ;;  %286 = vst.msk [vmem:[#allocation2 + $0xc] sm:$0x1] %vm282_vm0, %v272_v20  ;;  %288 = vst.msk [vmem:[#allocation2 + $0x14] sm:$0x1] %vm282_vm0, %v269_v18  ;;  %v357_v24 = vrot.slane %v272_v20, %v11182_v7  ;;  %v365_v32 = vrot.slane %v269_v18, %v11182_v7 }
  0x1a   : > { %289 = vst.msk [vmem:[#allocation2 + $0x18] sm:$0x1] %vm282_vm0, %v271_v19  ;;  %378 = vrot.lane.b32.xlu1 %v353_v21, %s11115_s24  ;;  %v369_v33 = vrot.slane %v271_v19, %v11182_v7  ;;  %v11120_v19 = vmov 1983009808  }
  0x1b   : > { %290 = vst.msk [vmem:[#allocation2 + $0x1c] sm:$0x1] %vm282_vm0, %v273_v22  ;;  %489 = vrot.lane.b32.xlu0 %v345_v13, %s11116_s25  ;;  %v373_v34 = vrot.slane %v273_v22, %v11182_v7  ;;  %v738_v20 = vunpack.c.l.s4 %v11120_v19 }
  0x1e   : > { %491 = vrot.lane.b32.xlu1 %v464_v23, %s11116_s25 }
  0x1f   : > { %376 = vrot.lane.b32.xlu0 %v464_v23, %s11115_s24 }
  0x22   : > { %606 = vrot.lane.b32.xlu1 %v464_v23, %s11117_s26 }
  0x23   : > { %493 = vrot.lane.b32.xlu0 %v353_v21, %s11116_s25 }
  0x26   : > { %380 = vrot.lane.b32.xlu1 %v357_v24, %s11115_s24 }
  0x27   : > { %604 = vrot.lane.b32.xlu0 %v345_v13, %s11117_s26 }
  0x2a   : > { %495 = vrot.lane.b32.xlu1 %v357_v24, %s11116_s25 }
  0x2b   : > { %608 = vrot.lane.b32.xlu0 %v353_v21, %s11117_s26  ;;  %v739_v21 = vunpack.c.0.s8 %v738_v20 }
  0x2d   : > { %v11291_v28 = vsub.s32 %v739_v21, %v11172_v3 }
  0x2e   : > { %610 = vrot.lane.b32.xlu1 %v357_v24, %s11117_s26 }
  0x2f   : > { %382 = vrot.lane.b32.xlu0 %v361_v31, %s11115_s24 }
  0x32   : > { %384 = vrot.lane.b32.xlu1 %v365_v32, %s11115_s24 }
  0x33   : > { %386 = vrot.lane.b32.xlu0 %v369_v33, %s11115_s24 }
  0x36   : > { %388 = vrot.lane.b32.xlu1 %v373_v34, %s11115_s24 }
  0x37   : > { %497 = vrot.lane.b32.xlu0 %v361_v31, %s11116_s25 }
  0x3a   : > { %499 = vrot.lane.b32.xlu1 %v365_v32, %s11116_s25 }
  0x3b   : > { %501 = vrot.lane.b32.xlu0 %v369_v33, %s11116_s25 }
  0x3e   : > { %503 = vrot.lane.b32.xlu1 %v373_v34, %s11116_s25 }
  0x3f   : > { %612 = vrot.lane.b32.xlu0 %v361_v31, %s11117_s26 }
  0x42   : > { %614 = vrot.lane.b32.xlu1 %v365_v32, %s11117_s26 }
  0x43   : > { %616 = vrot.lane.b32.xlu0 %v369_v33, %s11117_s26 }
  0x46   : > { %618 = vrot.lane.b32.xlu1 %v373_v34, %s11117_s26 }
  0x47   : > { %796 = vrot.lane.b32.xlu0 %v10792_v25, %s11115_s24 }
  0x4a   : > { %798 = vrot.lane.b32.xlu1 %v10795_v27, %s11115_s24 }
  0x4b   : > { %803 = vrot.lane.b32.xlu0 %v11249_v36, %s11115_s24 }
  0x89   : > { %v375_v37 = vpop.permute.xlu0 %374 }
  0x8a   : > { %398 = vst.msk [vmem:[#allocation2 + $0x1] sm:$0x1] %vm282_vm0, %v375_v37 }
  0x8c   : > { %v379_v38 = vpop.permute.xlu1 %378 }
  0x8d   : > { %400 = vst.msk [vmem:[#allocation2 + $0x9] sm:$0x1] %vm282_vm0, %v379_v38  ;;  %v490_v39 = vpop.permute.xlu0 %489 }
  0x8e   : > { %513 = vst.msk [vmem:[#allocation2 + $0x2] sm:$0x1] %vm282_vm0, %v490_v39 }
  0x90   : > { %v492_v40 = vpop.permute.xlu1 %491 }
  0x91   : > { %514 = vst.msk [vmem:[#allocation2 + $0x6] sm:$0x1] %vm282_vm0, %v492_v40  ;;  %v377_v41 = vpop.permute.xlu0 %376 }
  0x92   : > { %399 = vst.msk [vmem:[#allocation2 + $0x5] sm:$0x1] %vm282_vm0, %v377_v41 }
  0x94   : > { %v607_v42 = vpop.permute.xlu1 %606 }
  0x95   : > { %629 = vst.msk [vmem:[#allocation2 + $0x7] sm:$0x1] %vm282_vm0, %v607_v42  ;;  %v494_v43 = vpop.permute.xlu0 %493 }
  0x96   : > { %515 = vst.msk [vmem:[#allocation2 + $0xa] sm:$0x1] %vm282_vm0, %v494_v43 }
  0x98   : > { %v381_v44 = vpop.permute.xlu1 %380 }
  0x99   : > { %401 = vst.msk [vmem:[#allocation2 + $0xd] sm:$0x1] %vm282_vm0, %v381_v44  ;;  %v605_v45 = vpop.permute.xlu0 %604 }
  0x9a   : > { %628 = vst.msk [vmem:[#allocation2 + $0x3] sm:$0x1] %vm282_vm0, %v605_v45 }
  0x9c   : > { %v496_v46 = vpop.permute.xlu1 %495  ;;  %v637_v54 = vld [vmem:[#allocation2 + $0x4] sm:$0xf] }
  0x9d   : > { %516 = vst.msk [vmem:[#allocation2 + $0xe] sm:$0x1] %vm282_vm0, %v496_v46  ;;  %v609_v47 = vpop.permute.xlu0 %608 }
  0x9e   : > { %630 = vst.msk [vmem:[#allocation2 + $0xb] sm:$0x1] %vm282_vm0, %v609_v47 }
  0xa0   : > { %v611_v48 = vpop.permute.xlu1 %610 }
  0xa1   : > { %631 = vst.msk [vmem:[#allocation2 + $0xf] sm:$0x1] %vm282_vm0, %v611_v48  ;;  %v383_v49 = vpop.permute.xlu0 %382  ;;  %v636_v52 = vld [vmem:[#allocation2] sm:$0xf] }
  0xa2   : > { %402 = vst.msk [vmem:[#allocation2 + $0x11] sm:$0x1] %vm282_vm0, %v383_v49  ;;  %v786_v58 = vcombine.low %v636_v52, %v637_v54 }
  0xa4   : > { %v385_v50 = vpop.permute.xlu1 %384 }
  0xa5   : > { %403 = vst.msk [vmem:[#allocation2 + $0x15] sm:$0x1] %vm282_vm0, %v385_v50  ;;  %v387_v51 = vpop.permute.xlu0 %386  ;;  %v638_v55 = vld [vmem:[#allocation2 + $0x8] sm:$0xf] }
  0xa6   : > { %404 = vst.msk [vmem:[#allocation2 + $0x19] sm:$0x1] %vm282_vm0, %v387_v51 }
  0xa8   : > { %v389_v53 = vpop.permute.xlu1 %388  ;;  %v639_v56 = vld [vmem:[#allocation2 + $0xc] sm:$0xf] }
  0xa9   : > { %405 = vst.msk [vmem:[#allocation2 + $0x1d] sm:$0x1] %vm282_vm0, %v389_v53  ;;  %v498_v57 = vpop.permute.xlu0 %497  ;;  %v787_v59 = vcombine.low %v638_v55, %v639_v56 }
  0xaa   : > { %517 = vst.msk [vmem:[#allocation2 + $0x12] sm:$0x1] %vm282_vm0, %v498_v57 }
  0xab   : > { %v11271_v60 = vpack.c.bf16 %v787_v59, %v786_v58 }
  0xac   : > { %v500_v61 = vpop.permute.xlu1 %499 }
  0xad   : > { %518 = vst.msk [vmem:[#allocation2 + $0x16] sm:$0x1] %vm282_vm0, %v500_v61  ;;  %9933 = vmatprep.mubr.msk.bf16.mxu0 %vm689_vm1, %v11271_v60  ;;  %v502_v62 = vpop.permute.xlu0 %501 }
  0xae   : > { %519 = vst.msk [vmem:[#allocation2 + $0x1a] sm:$0x1] %vm282_vm0, %v502_v62 }
  0xb0   : > { %v504_v63 = vpop.permute.xlu1 %503 }
  0xb1   : > { %520 = vst.msk [vmem:[#allocation2 + $0x1e] sm:$0x1] %vm282_vm0, %v504_v63  ;;  %v613_v0 = vpop.permute.xlu0 %612 }
  0xb2   : > { %632 = vst.msk [vmem:[#allocation2 + $0x13] sm:$0x1] %vm282_vm0, %v613_v0 }
  0xb4   : > { %v615_v1 = vpop.permute.xlu1 %614 }
  0xb5   : > { %633 = vst.msk [vmem:[#allocation2 + $0x17] sm:$0x1] %vm282_vm0, %v615_v1  ;;  %v617_v2 = vpop.permute.xlu0 %616 }
  0xb6   : > { %634 = vst.msk [vmem:[#allocation2 + $0x1b] sm:$0x1] %vm282_vm0, %v617_v2 }
  0xb8   : > { %v619_v4 = vpop.permute.xlu1 %618 }
  0xb9   : > { %635 = vst.msk [vmem:[#allocation2 + $0x1f] sm:$0x1] %vm282_vm0, %v619_v4  ;;  %v797_v5 = vpop.permute.xlu0 %796  ;;  %v640_v9 = vld [vmem:[#allocation2 + $0x10] sm:$0xf]  ;;  %vm9393_vm0 = vcmask 1044224  }
  0xba   : > { %9929 = vmatprep.subr.bf16.mxu0 %v797_v5 }
  0xbb   : > { %9930 = vmatpush3.bf16.msra.mxu0 %v797_v5 }
  0xbc   : > { %v799_v6 = vpop.permute.xlu1 %798  ;;  %v641_v8 = vld [vmem:[#allocation2 + $0x14] sm:$0xf] }
  0xbd   : > { %9931 = vmatprep.subr.bf16.mxu0 %v799_v6  ;;  %v642_v10 = vld [vmem:[#allocation2 + $0x18] sm:$0xf]  ;;  %v788_v12 = vcombine.low %v640_v9, %v641_v8  ;;  %v804_v22 = vpop.permute.xlu0 %803 }
  0xbf   : > { %9932 = vmatpush3.bf16.msra.mxu0 %v799_v6 }
  0xc0   : > { %v643_v11 = vld [vmem:[#allocation2 + $0x1c] sm:$0xf]  ;;  %9937 = vmatprep.subr.bf16.mxu0 %v11118_v26 }
  0xc1   : > { %v789_v13 = vcombine.low %v642_v10, %v643_v11 }
  0xc3   : > { %v11283_v14 = vpack.c.bf16 %v789_v13, %v788_v12 }
  0xc5   : > { %9934 = vmatmul.mubr.msk.bf16.vlgmr.msra.gmra.mrb[4].mxu0 %vm689_vm1, %v11283_v14 }
  0xc6   : > { %9939 = vmatprep.mubr.msk.bf16.mxu0 %vm11119_vm2, %v11118_v26 }
  0xe1   : > { %v727_v15 = vpop.f32.mrb[0].mxu0 }
  0xe2   : > { %v9927_v16 = vpop.f32.mrb[1].mxu0  ;;  %v728_v27 = vadd.f32 %v727_v15, %v11249_v36 }
  0xe3   : > { %v730_v17 = vpop.f32.mrb[2].mxu0 }
  0xe4   : > { %v9928_v18 = vpop.f32.mrb[3].mxu0  ;;  %v743_v37 = vrot.slane %v728_v27, %v11291_v28  ;;  %v736_v43 = vcombine.high %v728_v27, %v728_v27  ;;  %v731_v53 = vadd.f32 %v730_v17, %v11249_v36 }
  0xe6   : > { %v751_v44 = vcombine.high %v743_v37, %v743_v37  ;;  %v11318_v46 = vpack.c.bf16 %v743_v37, %v743_v37  ;;  %v750_v47 = vrot.slane %v736_v43, %v11291_v28  ;;  %v760_v58 = vrot.slane %v731_v53, %v11291_v28 }
  0xe7   : > { %v753_v62 = vcombine.high %v731_v53, %v731_v53 }
  0xe8   : > { %v11327_v49 = vpack.c.bf16 %v751_v44, %v751_v44  ;;  %v752_v52 = vcombine.high %v750_v47, %v750_v47  ;;  %v11340_v54 = vpack.c.bf16 %v750_v47, %v750_v47  ;;  %v768_v63 = vcombine.high %v760_v58, %v760_v58 }
  0xe9   : > { %v11363_v1 = vpack.c.bf16 %v760_v58, %v760_v58  ;;  %v767_v4 = vrot.slane %v753_v62, %v11291_v28 }
  0xea   : > { %v11344_v57 = vpack.c.bf16 %v752_v52, %v752_v52  ;;  %v11368_v5 = vpack.c.bf16 %v768_v63, %v768_v63 }
  0xeb   : > { %v769_v9 = vcombine.high %v767_v4, %v767_v4  ;;  %v11384_v10 = vpack.c.bf16 %v767_v4, %v767_v4 }
  0xed   : > { %v11386_v11 = vpack.c.bf16 %v769_v9, %v769_v9 }
 0x198   : > { %v9935_v23 = vpop.f32.mrb[4].mxu0 }
 0x199   : > { %v855_v24 = vadd.f32 %v9935_v23, %v804_v22  ;;  %v846_v25 = vpop.f32.mrb[5].mxu0 }
 0x19a   : > { %v847_v29 = vadd.f32 %v846_v25, %v804_v22  ;;  %v9936_v30 = vpop.f32.mrb[6].mxu0 }
 0x19b   : > { %v11293_v31 = vpack.c.bf16 %v855_v24, %v855_v24  ;;  %v849_v32 = vpop.f32.mrb[7].mxu0  ;;  %v867_v50 = vcombine.high %v855_v24, %v855_v24  ;;  %v858_v56 = vadd.f32 %v9936_v30, %v804_v22 }
 0x19c   : > { %v865_v33 = vcombine.high %v847_v29, %v847_v29  ;;  %v11295_v34 = vpack.c.bf16 %v847_v29, %v847_v29  ;;  %v850_v35 = vadd.f32 %v849_v32, %v804_v22 }
 0x19d   : > { %1562 = vrot.lane.b32.xlu1 %v11293_v31, %s11115_s24  ;;  %v11342_v55 = vpack.c.bf16 %v867_v50, %v867_v50  ;;  %v1078_v59 = vsel %vm889_vm3, %v11293_v31, 0  ;;  %v868_v36 = vcombine.high %v858_v56, %v858_v56  ;;  %v11360_v0 = vpack.c.bf16 %v858_v56, %v858_v56 }
 0x19e   : > { %v11300_v38 = vpack.c.bf16 %v865_v33, %v865_v33  ;;  %v866_v39 = vcombine.high %v850_v35, %v850_v35  ;;  %1364 = vrot.lane.b32.xlu0 %v11295_v34, %s11115_s24  ;;  %v894_v40 = vsel %vm889_vm3, %v11295_v34, 0  ;;  %v11313_v45 = vpack.c.bf16 %v850_v35, %v850_v35 }
 0x19f   : > { %9938 = vmatpush3.bf16.xpose.msra.mxu0 %v894_v40  ;;  %v1124_v61 = vsel %vm889_vm3, %v11342_v55, 0  ;;  %v11365_v2 = vpack.c.bf16 %v868_v36, %v868_v36  ;;  %v1170_v6 = vsel %vm889_vm3, %v11360_v0, 0 }
 0x1a0   : > { %v11306_v41 = vpack.c.bf16 %v866_v39, %v866_v39  ;;  %v940_v42 = vsel %vm889_vm3, %v11300_v38, 0  ;;  %9949 = vmatprep.subr.bf16.mxu0 %v11118_v26  ;;  %v986_v48 = vsel %vm889_vm3, %v11313_v45, 0 }
 0x1a1   : > { %1415 = vrot.lane.b32.xlu1 %v11300_v38, %s11115_s24  ;;  %9944 = vmatpush3.bf16.xpose.msra.mxu1 %v940_v42  ;;  %v1216_v8 = vsel %vm889_vm3, %v11365_v2, 0 }
 0x1a2   : > { %1513 = vrot.lane.b32.xlu0 %v11306_v41, %s11115_s24  ;;  %9955 = vmatprep.subr.bf16.mxu1 %v11118_v26  ;;  %v1032_v51 = vsel %vm889_vm3, %v11306_v41, 0 }
 0x1a5   : > { %1464 = vrot.lane.b32.xlu1 %v11313_v45, %s11115_s24 }
 0x1a6   : > { %9940 = vmatmul.mubr.msk.bf16.vlgmr.msra.gmra.mrb[8].mxu0 %vm889_vm3, %v11318_v46 }
 0x1a7   : > { %9950 = vmatpush3.bf16.xpose.msra.mxu0 %v986_v48  ;;  %9951 = vmatprep.mubr.msk.bf16.mxu0 %vm11119_vm2, %v11118_v26 }
 0x1a8   : > { %9946 = vmatmul.mubr.msk.bf16.vlgmr.msra.gmra.mrb[0].mxu1 %vm889_vm3, %v11327_v49  ;;  %9961 = vmatprep.subr.bf16.mxu0 %v11118_v26 }
 0x1a9   : > { %9956 = vmatpush3.bf16.xpose.msra.mxu1 %v1032_v51  ;;  %9957 = vmatprep.mubr.msk.bf16.mxu1 %vm11119_vm2, %v11118_v26 }
 0x1aa   : > { %9967 = vmatprep.subr.bf16.mxu1 %v11118_v26 }
 0x1ae   : > { %9952 = vmatmul.mubr.msk.bf16.vlgmr.msra.gmra.mrb[12].mxu0 %vm889_vm3, %v11340_v54 }
 0x1af   : > { %9962 = vmatpush3.bf16.xpose.msra.mxu0 %v1078_v59  ;;  %9963 = vmatprep.mubr.msk.bf16.mxu0 %vm11119_vm2, %v11118_v26 }
 0x1b0   : > { %9958 = vmatmul.mubr.msk.bf16.vlgmr.msra.gmra.mrb[4].mxu1 %vm889_vm3, %v11344_v57  ;;  %9973 = vmatprep.subr.bf16.mxu0 %v11118_v26 }
 0x1b1   : > { %9968 = vmatpush3.bf16.xpose.msra.mxu1 %v1124_v61  ;;  %9969 = vmatprep.mubr.msk.bf16.mxu1 %vm11119_vm2, %v11118_v26 }
 0x1b2   : > { %9979 = vmatprep.subr.bf16.mxu1 %v11118_v26 }
 0x1b6   : > { %9964 = vmatmul.mubr.msk.bf16.vlgmr.msra.gmra.mrb[16].mxu0 %vm889_vm3, %v11363_v1 }
 0x1b7   : > { %9974 = vmatpush3.bf16.xpose.msra.mxu0 %v1170_v6  ;;  %9975 = vmatprep.mubr.msk.bf16.mxu0 %vm11119_vm2, %v11118_v26 }
 0x1b8   : > { %9970 = vmatmul.mubr.msk.bf16.vlgmr.msra.gmra.mrb[8].mxu1 %vm889_vm3, %v11368_v5  ;;  %9985 = vmatprep.subr.bf16.mxu0 %v11118_v26 }
 0x1b9   : > { %9980 = vmatpush3.bf16.xpose.msra.mxu1 %v1216_v8  ;;  %9981 = vmatprep.mubr.msk.bf16.mxu1 %vm11119_vm2, %v11118_v26 }
 0x1ba   : > { %9991 = vmatprep.subr.bf16.mxu1 %v11118_v26 }
 0x1be   : > { %9976 = vmatmul.mubr.msk.bf16.vlgmr.msra.gmra.mrb[20].mxu0 %vm889_vm3, %v11384_v10 }
 0x1bf   : > { %9987 = vmatprep.mubr.msk.bf16.mxu0 %vm11119_vm2, %v11118_v26 }
 0x1c0   : > { %9982 = vmatmul.mubr.msk.bf16.vlgmr.msra.gmra.mrb[12].mxu1 %vm889_vm3, %v11386_v11 }
 0x1c1   : > { %9993 = vmatprep.mubr.msk.bf16.mxu1 %vm11119_vm2, %v11118_v26 }
 0x20f   : > { %v11396_v12 = vpop.permute.xlu1 %1562 }
 0x210   : > { %v1365_v13 = vpop.permute.xlu0 %1364 }
 0x211   : > { %v1372_v15 = vsel %vm1370_vm4, %v1365_v13, 0 }
 0x212   : > { %9986 = vmatpush3.bf16.msra.mxu0 %v1372_v15 }
 0x213   : > { %v1416_v16 = vpop.permute.xlu1 %1415  ;;  %9997 = vmatprep.subr.bf16.mxu0 %v11118_v26 }
 0x214   : > { %v1421_v17 = vsel %vm1370_vm4, %v1416_v16, 0 }
 0x215   : > { %9992 = vmatpush3.bf16.msra.mxu1 %v1421_v17 }
 0x216   : > { %10003 = vmatprep.subr.bf16.mxu1 %v11118_v26 }
 0x279   : > { %v930_v18 = vpop.f32.mrb[8].mxu0 }
 0x27a   : > { %v9941_v19 = vpop.f32.mrb[9].mxu0  ;;  %v1258_v20 = vmul.f32 0.35355338, %v930_v18 }
 0x27b   : > { %v933_v21 = vpop.f32.mrb[10].mxu0  ;;  %v976_v22 = vpop.f32.mrb[0].mxu1 }
 0x27c   : > { %v9942_v23 = vpop.f32.mrb[11].mxu0  ;;  %v9947_v24 = vpop.f32.mrb[1].mxu1  ;;  %v1267_v25 = vsel %vm1266_vm5, %v1258_v20, -inf  ;;  %v1259_v27 = vmul.f32 0.35355338, %v976_v22 }
 0x27d   : > { %1268 = vmax.xlane.f32.xlu1 %v1267_v25  ;;  %v979_v29 = vpop.f32.mrb[2].mxu1 }
 0x27e   : > { %v9948_v30 = vpop.f32.mrb[3].mxu1  ;;  %v1270_v32 = vsel %vm1266_vm5, %v1259_v27, -inf  ;;  %v11420_v29 = vpop.permute.xlu1 %1464 }
 0x27f   : > { %1271 = vmax.xlane.f32.xlu0 %v1270_v32  ;;  %v11422_v30 = vpop.permute.xlu0 %1513 }
 0x281   : > { %v1022_v33 = vpop.f32.mrb[12].mxu0 }
 0x282   : > { %v9953_v35 = vpop.f32.mrb[13].mxu0  ;;  %v1260_v37 = vmul.f32 0.35355338, %v1022_v33 }
 0x283   : > { %v1025_v39 = vpop.f32.mrb[14].mxu0  ;;  %v1068_v40 = vpop.f32.mrb[4].mxu1 }
 0x284   : > { %v9954_v42 = vpop.f32.mrb[15].mxu0  ;;  %v9959_v43 = vpop.f32.mrb[5].mxu1  ;;  %v1273_v44 = vsel %vm1266_vm5, %v1260_v37, -inf  ;;  %v1261_v47 = vmul.f32 0.35355338, %v1068_v40 }
 0x285   : > { %1274 = vmax.xlane.f32.xlu0 %v1273_v44  ;;  %v1071_v48 = vpop.f32.mrb[6].mxu1 }
 0x286   : > { %v9960_v50 = vpop.f32.mrb[7].mxu1  ;;  %v1276_v51 = vsel %vm1266_vm5, %v1261_v47, -inf }
 0x287   : > { %1277 = vmax.xlane.f32.xlu1 %v1276_v51 }
 0x289   : > { %v1114_v52 = vpop.f32.mrb[16].mxu0 }
 0x28a   : > { %v9965_v53 = vpop.f32.mrb[17].mxu0  ;;  %v1262_v56 = vmul.f32 0.35355338, %v1114_v52 }
 0x28b   : > { %v1117_v58 = vpop.f32.mrb[18].mxu0  ;;  %v1160_v59 = vpop.f32.mrb[8].mxu1 }
 0x28c   : > { %v9966_v36 = vpop.f32.mrb[19].mxu0  ;;  %v9971_v61 = vpop.f32.mrb[9].mxu1  ;;  %v1279_v62 = vsel %vm1266_vm5, %v1262_v56, -inf  ;;  %v1263_v63 = vmul.f32 0.35355338, %v1160_v59 }
 0x28d   : > { %1280 = vmax.xlane.f32.xlu0 %v1279_v62  ;;  %v1163_v4 = vpop.f32.mrb[10].mxu1 }
 0x28e   : > { %v9972_v6 = vpop.f32.mrb[11].mxu1  ;;  %v1282_v8 = vsel %vm1266_vm5, %v1263_v63, -inf }
 0x28f   : > { %1283 = vmax.xlane.f32.xlu1 %v1282_v8 }
 0x291   : > { %v1206_v9 = vpop.f32.mrb[20].mxu0 }
 0x292   : > { %v11408_v13 = vmul.f32 0.35355338, %v1206_v9  ;;  %v9977_v15 = vpop.f32.mrb[21].mxu0 }
 0x293   : > { %v1209_v16 = vpop.f32.mrb[22].mxu0  ;;  %v1252_v17 = vpop.f32.mrb[12].mxu1 }
 0x294   : > { %v11410_v18 = vmul.f32 0.35355338, %v1252_v17  ;;  %v9978_v19 = vpop.f32.mrb[23].mxu0  ;;  %v9983_v21 = vpop.f32.mrb[13].mxu1  ;;  %v1285_v22 = vsel %vm1266_vm5, %v11408_v13, -inf }
 0x295   : > { %1286 = vmax.xlane.f32.xlu0 %v1285_v22  ;;  %v1255_v23 = vpop.f32.mrb[14].mxu1 }
 0x296   : > { %v9984_v24 = vpop.f32.mrb[15].mxu1  ;;  %v1288_v25 = vsel %vm1266_vm5, %v11410_v18, -inf }
 0x297   : > { %1289 = vmax.xlane.f32.xlu1 %v1288_v25 }
 0x2a8   : > { %1660 = vrot.lane.b32.xlu1 %v11360_v0, %s11115_s24 }
 0x2ab   : > { %1611 = vrot.lane.b32.xlu0 %v11342_v55, %s11115_s24 }
 0x30a   : > { %v1269_v32 = vpop.xlane.xlu1 %1268 }
 0x30b   : > { %v1291_v33 = vsub.f32 %v1258_v20, %v1269_v32 }
 0x30c   : > { %v1272_v35 = vpop.xlane.xlu0 %1271 }
 0x30d   : > { %v1299_v39 = vmul.f32 1.442695, %v1291_v33  ;;  %v1292_v40 = vsub.f32 %v1259_v27, %v1272_v35 }
 0x30f   : > { %10812 = vpow2.f32 %v1299_v39  ;;  %v1301_v42 = vmul.f32 1.442695, %v1292_v40 }
 0x311   : > { %10814 = vpow2.f32 %v1301_v42 }
 0x312   : > { %v1275_v43 = vpop.xlane.xlu0 %1274 }
 0x313   : > { %v1293_v44 = vsub.f32 %v1260_v37, %v1275_v43 }
 0x314   : > { %v1278_v48 = vpop.xlane.xlu1 %1277 }
 0x315   : > { %v1303_v50 = vmul.f32 1.442695, %v1293_v44  ;;  %v1294_v51 = vsub.f32 %v1261_v47, %v1278_v48 }
 0x317   : > { %10816 = vpow2.f32 %v1303_v50  ;;  %v1305_v52 = vmul.f32 1.442695, %v1294_v51 }
 0x319   : > { %v11424_v53 = vpop.eup %10812  ;;  %10818 = vpow2.f32 %v1305_v52 }
 0x31a   : > { %v1281_v58 = vpop.xlane.xlu0 %1280  ;;  %v1315_v20 = vsel %vm1266_vm5, %v11424_v53, 0.0 }
 0x31b   : > { %v11428_v59 = vpop.eup %10814  ;;  %v1295_v27 = vsub.f32 %v1262_v56, %v1281_v58  ;;  %1316 = vadd.xlane.f32.xlu0 %v1315_v20  ;;  %v1470_v58 = vsel %vm1370_vm4, %v11420_v29, 0 }
 0x31c   : > { %v1284_v36 = vpop.xlane.xlu1 %1283  ;;  %v1318_v37 = vsel %vm1266_vm5, %v11428_v59, 0.0 }
 0x31d   : > { %v1307_v61 = vmul.f32 1.442695, %v1295_v27  ;;  %v1296_v62 = vsub.f32 %v1263_v63, %v1284_v36  ;;  %1319 = vadd.xlane.f32.xlu1 %v1318_v37 }
 0x31f   : > { %10820 = vpow2.f32 %v1307_v61  ;;  %v1309_v47 = vmul.f32 1.442695, %v1296_v62 }
 0x321   : > { %v11432_v4 = vpop.eup %10816  ;;  %10822 = vpow2.f32 %v1309_v47 }
 0x322   : > { %v1321_v6 = vsel %vm1266_vm5, %v11432_v4, 0.0  ;;  %v1287_v17 = vpop.xlane.xlu0 %1286 }
 0x323   : > { %v11436_v8 = vpop.eup %10818  ;;  %1322 = vadd.xlane.f32.xlu0 %v1321_v6  ;;  %v1297_v21 = vsub.f32 %v11408_v13, %v1287_v17 }
 0x324   : > { %v1324_v56 = vsel %vm1266_vm5, %v11436_v8, 0.0  ;;  %v1290_v19 = vpop.xlane.xlu1 %1289 }
 0x325   : > { %1325 = vadd.xlane.f32.xlu1 %v1324_v56  ;;  %v1298_v22 = vsub.f32 %v11410_v18, %v1290_v19  ;;  %v1311_v23 = vmul.f32 1.442695, %v1297_v21 }
 0x326   : > { %v1612_v13 = vpop.permute.xlu0 %1611 }
 0x327   : > { %v1313_v24 = vmul.f32 1.442695, %v1298_v22  ;;  %10824 = vpow2.f32 %v1311_v23  ;;  %v1617_v6 = vsel %vm1370_vm4, %v1612_v13, 0 }
 0x328   : > { %v1661_v18 = vpop.permute.xlu1 %1660 }
 0x329   : > { %v11440_v9 = vpop.eup %10820  ;;  %10826 = vpow2.f32 %v1313_v24  ;;  %v1666_v17 = vsel %vm1370_vm4, %v1661_v18, 0 }
 0x32a   : > { %v1327_v63 = vsel %vm1266_vm5, %v11440_v9, 0.0 }
 0x32b   : > { %v11444_v15 = vpop.eup %10822  ;;  %1328 = vadd.xlane.f32.xlu0 %v1327_v63 }
 0x32c   : > { %v1330_v16 = vsel %vm1266_vm5, %v11444_v15, 0.0 }
 0x32d   : > { %1331 = vadd.xlane.f32.xlu1 %v1330_v16 }
 0x331   : > { %v11454_v25 = vpop.eup %10824 }
 0x332   : > { %v1333_v33 = vsel %vm1266_vm5, %v11454_v25, 0.0 }
 0x333   : > { %v11456_v32 = vpop.eup %10826 }
 0x334   : > { %v1336_v35 = vsel %vm1266_vm5, %v11456_v32, 0.0 }
 0x33e   : > { %1806 = vrot.lane.b32.xlu1 %v11295_v34, %s11121_s12 }
 0x341   : > { %1709 = vrot.lane.b32.xlu0 %v11365_v2, %s11115_s24 }
 0x360   : > { %1334 = vadd.xlane.f32.xlu0 %v1333_v33 }
 0x362   : > { %1337 = vadd.xlane.f32.xlu1 %v1336_v35 }
 0x373   : > { %1804 = vrot.lane.b32.xlu1 %v11318_v46, %s11121_s12 }
 0x376   : > { %1857 = vrot.lane.b32.xlu0 %v11300_v38, %s11121_s12 }
 0x377   : > { %1908 = vrot.lane.b32.xlu1 %v11313_v45, %s11121_s12 }
 0x37a   : > { %1855 = vrot.lane.b32.xlu0 %v11327_v49, %s11121_s12 }
 0x37b   : > { %1906 = vrot.lane.b32.xlu1 %v11340_v54, %s11121_s12 }
 0x37e   : > { %1959 = vrot.lane.b32.xlu0 %v11306_v41, %s11121_s12 }
 0x37f   : > { %2010 = vrot.lane.b32.xlu1 %v11293_v31, %s11121_s12 }
 0x382   : > { %1957 = vrot.lane.b32.xlu0 %v11344_v57, %s11121_s12 }
 0x383   : > { %2008 = vrot.lane.b32.xlu1 %v11363_v1, %s11121_s12 }
 0x386   : > { %2061 = vrot.lane.b32.xlu0 %v11342_v55, %s11121_s12 }
 0x387   : > { %2112 = vrot.lane.b32.xlu1 %v11360_v0, %s11121_s12 }
 0x38a   : > { %2059 = vrot.lane.b32.xlu0 %v11368_v5, %s11121_s12 }
 0x38b   : > { %2110 = vrot.lane.b32.xlu1 %v11384_v10, %s11121_s12 }
 0x38e   : > { %2163 = vrot.lane.b32.xlu0 %v11365_v2, %s11121_s12 }
 0x38f   : > { %2363 = vrot.lane.b32.xlu1 %v11300_v38, %s11122_s13 }
 0x392   : > { %2161 = vrot.lane.b32.xlu0 %v11386_v11, %s11121_s12 }
 0x393   : > { %2411 = vrot.lane.b32.xlu1 %v11313_v45, %s11122_s13 }
 0x396   : > { %2315 = vrot.lane.b32.xlu0 %v11295_v34, %s11122_s13 }
 0x397   : > { %2507 = vrot.lane.b32.xlu1 %v11293_v31, %s11122_s13 }
 0x39a   : > { %2459 = vrot.lane.b32.xlu0 %v11306_v41, %s11122_s13 }
 0x3a8   : > { %v1317_v39 = vpop.xlane.xlu0 %1316 }
 0x3a9   : > { %10828 = vrcp.f32 %v1317_v39 }
 0x3aa   : > { %v1320_v40 = vpop.xlane.xlu1 %1319 }
 0x3ab   : > { %10830 = vrcp.f32 %v1320_v40 }
 0x3b0   : > { %v1323_v42 = vpop.xlane.xlu0 %1322 }
 0x3b1   : > { %10832 = vrcp.f32 %v1323_v42 }
 0x3b2   : > { %v1326_v43 = vpop.xlane.xlu1 %1325 }
 0x3b3   : > { %v10829_v44 = vpop.eup %10828  ;;  %10834 = vrcp.f32 %v1326_v43 }
 0x3b4   : > { %v1347_v48 = vmul.f32 %v10829_v44, %v11424_v53  ;;  %v1519_v53 = vsel %vm1370_vm4, %v11422_v30, 0  ;;  %v1568_v30 = vsel %vm1370_vm4, %v11396_v12, 0 }
 0x3b5   : > { %v10831_v50 = vpop.eup %10830 }
 0x3b6   : > { %v1355_v51 = vpack.c.bf16 %v1347_v48, %v1347_v48  ;;  %v1348_v52 = vmul.f32 %v10831_v50, %v11428_v59 }
 0x3b8   : > { %9988 = vmatmul.mubr.msk.bf16.vlgmr.msra.gmra.mrb[24].mxu0 %vm1366_vm6, %v1355_v51  ;;  %v1329_v20 = vpop.xlane.xlu0 %1328  ;;  %v1356_v27 = vpack.c.bf16 %v1348_v52, %v1348_v52 }
 0x3b9   : > { %9998 = vmatpush3.bf16.msra.mxu0 %v1470_v58  ;;  %10836 = vrcp.f32 %v1329_v20  ;;  %9999 = vmatprep.mubr.msk.bf16.mxu0 %vm11119_vm2, %v11118_v26 }
 0x3ba   : > { %9994 = vmatmul.mubr.msk.bf16.vlgmr.msra.gmra.mrb[16].mxu1 %vm1366_vm6, %v1356_v27  ;;  %v1332_v36 = vpop.xlane.xlu1 %1331  ;;  %10009 = vmatprep.subr.bf16.mxu0 %v11118_v26 }
 0x3bb   : > { %v10833_v59 = vpop.eup %10832  ;;  %10004 = vmatpush3.bf16.msra.mxu1 %v1519_v53  ;;  %10838 = vrcp.f32 %v1332_v36  ;;  %10005 = vmatprep.mubr.msk.bf16.mxu1 %vm11119_vm2, %v11118_v26 }
 0x3bc   : > { %v1349_v29 = vmul.f32 %v10833_v59, %v11432_v4  ;;  %10015 = vmatprep.subr.bf16.mxu1 %v11118_v26  ;;  %v1710_v16 = vpop.permute.xlu0 %1709 }
 0x3bd   : > { %v10835_v37 = vpop.eup %10834  ;;  %v1715_v21 = vsel %vm1370_vm4, %v1710_v16, 0 }
 0x3be   : > { %v1357_v61 = vpack.c.bf16 %v1349_v29, %v1349_v29  ;;  %v1350_v62 = vmul.f32 %v10835_v37, %v11436_v8 }
 0x3c0   : > { %10000 = vmatmul.mubr.msk.bf16.vlgmr.msra.gmra.mrb[28].mxu0 %vm1366_vm6, %v1357_v61  ;;  %v1358_v47 = vpack.c.bf16 %v1350_v62, %v1350_v62 }
 0x3c1   : > { %10010 = vmatpush3.bf16.msra.mxu0 %v1568_v30  ;;  %10011 = vmatprep.mubr.msk.bf16.mxu0 %vm11119_vm2, %v11118_v26 }
 0x3c2   : > { %10006 = vmatmul.mubr.msk.bf16.vlgmr.msra.gmra.mrb[20].mxu1 %vm1366_vm6, %v1358_v47  ;;  %10021 = vmatprep.subr.bf16.mxu0 %v11118_v26 }
 0x3c3   : > { %v10837_v4 = vpop.eup %10836  ;;  %10016 = vmatpush3.bf16.msra.mxu1 %v1617_v6  ;;  %10017 = vmatprep.mubr.msk.bf16.mxu1 %vm11119_vm2, %v11118_v26 }
 0x3c4   : > { %v1351_v12 = vmul.f32 %v10837_v4, %v11440_v9  ;;  %10027 = vmatprep.subr.bf16.mxu1 %v11118_v26  ;;  %v1807_v9 = vpop.permute.xlu1 %1806 }
 0x3c5   : > { %v10839_v8 = vpop.eup %10838  ;;  %v1812_v44 = vsel %vm889_vm3, %v1807_v9, 0 }
 0x3c6   : > { %v1359_v56 = vpack.c.bf16 %v1351_v12, %v1351_v12  ;;  %v1352_v63 = vmul.f32 %v10839_v8, %v11444_v15 }
 0x3c8   : > { %10012 = vmatmul.mubr.msk.bf16.vlgmr.msra.gmra.mrb[32].mxu0 %vm1366_vm6, %v1359_v56  ;;  %v1360_v19 = vpack.c.bf16 %v1352_v63, %v1352_v63 }
 0x3c9   : > { %10022 = vmatpush3.bf16.msra.mxu0 %v1666_v17  ;;  %10023 = vmatprep.mubr.msk.bf16.mxu0 %vm11119_vm2, %v11118_v26 }
 0x3ca   : > { %10018 = vmatmul.mubr.msk.bf16.vlgmr.msra.gmra.mrb[24].mxu1 %vm1366_vm6, %v1360_v19  ;;  %10033 = vmatprep.subr.bf16.mxu0 %v11118_v26 }
 0x3cb   : > { %10028 = vmatpush3.bf16.msra.mxu1 %v1715_v21  ;;  %10029 = vmatprep.mubr.msk.bf16.mxu1 %vm11119_vm2, %v11118_v26 }
 0x3cc   : > { %10039 = vmatprep.subr.bf16.mxu1 %v11118_v26 }
 0x3ed   : > { %v1335_v15 = vpop.xlane.xlu0 %1334 }
 0x3ee   : > { %10840 = vrcp.f32 %v1335_v15 }
 0x3ef   : > { %v1338_v22 = vpop.xlane.xlu1 %1337 }
 0x3f0   : > { %10842 = vrcp.f32 %v1338_v22 }
 0x3f1   : > { %v1858_v23 = vpop.permute.xlu0 %1857 }
 0x3f2   : > { %v1863_v52 = vsel %vm889_vm3, %v1858_v23, 0 }
 0x3f3   : > { %v1805_v24 = vpop.permute.xlu1 %1804 }
 0x3f5   : > { %v1856_v33 = vpop.permute.xlu0 %1855 }
 0x3f7   : > { %v1909_v13 = vpop.permute.xlu1 %1908 }
 0x3f8   : > { %v10841_v35 = vpop.eup %10840  ;;  %v1914_v58 = vsel %vm889_vm3, %v1909_v13, 0 }
 0x3f9   : > { %v1960_v18 = vpop.permute.xlu0 %1959  ;;  %v1353_v39 = vmul.f32 %v10841_v35, %v11454_v25 }
 0x3fa   : > { %v10843_v40 = vpop.eup %10842  ;;  %v1965_v20 = vsel %vm889_vm3, %v1960_v18, 0 }
 0x3fb   : > { %v1361_v42 = vpack.c.bf16 %v1353_v39, %v1353_v39  ;;  %v1354_v43 = vmul.f32 %v10843_v40, %v11456_v32  ;;  %v1907_v51 = vpop.permute.xlu1 %1906 }
 0x3fd   : > { %v1958_v48 = vpop.permute.xlu0 %1957  ;;  %10024 = vmatmul.mubr.msk.bf16.vlgmr.msra.gmra.mrb[36].mxu0 %vm1366_vm6, %v1361_v42  ;;  %v1362_v50 = vpack.c.bf16 %v1354_v43, %v1354_v43 }
 0x3fe   : > { %10034 = vmatpush3.bf16.xpose.msra.mxu0 %v1812_v44  ;;  %10035 = vmatprep.mubr.msk.bf16.mxu0 %vm11119_vm2, %v11118_v26 }
 0x3ff   : > { %10030 = vmatmul.mubr.msk.bf16.vlgmr.msra.gmra.mrb[28].mxu1 %vm1366_vm6, %v1362_v50  ;;  %10045 = vmatprep.subr.bf16.mxu0 %v11118_v26  ;;  %v2011_v32 = vpop.permute.xlu1 %2010 }
 0x400   : > { %10040 = vmatpush3.bf16.xpose.msra.mxu1 %v1863_v52  ;;  %10041 = vmatprep.mubr.msk.bf16.mxu1 %vm11119_vm2, %v11118_v26  ;;  %v2016_v36 = vsel %vm889_vm3, %v2011_v32, 0 }
 0x401   : > { %10051 = vmatprep.subr.bf16.mxu1 %v11118_v26  ;;  %v2062_v25 = vpop.permute.xlu0 %2061 }
 0x402   : > { %v2067_v29 = vsel %vm889_vm3, %v2062_v25, 0 }
 0x403   : > { %v2009_v53 = vpop.permute.xlu1 %2008 }
 0x405   : > { %10036 = vmatmul.mubr.msk.bf16.vlgmr.msra.gmra.mrb[40].mxu0 %vm889_vm3, %v1805_v24  ;;  %v2060_v27 = vpop.permute.xlu0 %2059 }
 0x406   : > { %10046 = vmatpush3.bf16.xpose.msra.mxu0 %v1914_v58  ;;  %10047 = vmatprep.mubr.msk.bf16.mxu0 %vm11119_vm2, %v11118_v26 }
 0x407   : > { %10042 = vmatmul.mubr.msk.bf16.vlgmr.msra.gmra.mrb[32].mxu1 %vm889_vm3, %v1856_v33  ;;  %10057 = vmatprep.subr.bf16.mxu0 %v11118_v26  ;;  %v2113_v37 = vpop.permute.xlu1 %2112 }
 0x408   : > { %10052 = vmatpush3.bf16.xpose.msra.mxu1 %v1965_v20  ;;  %10053 = vmatprep.mubr.msk.bf16.mxu1 %vm11119_vm2, %v11118_v26  ;;  %v2118_v62 = vsel %vm889_vm3, %v2113_v37, 0 }
 0x409   : > { %10063 = vmatprep.subr.bf16.mxu1 %v11118_v26  ;;  %v2164_v59 = vpop.permute.xlu0 %2163 }
 0x40a   : > { %v2169_v47 = vsel %vm889_vm3, %v2164_v59, 0 }
 0x40b   : > { %v2111_v30 = vpop.permute.xlu1 %2110 }
 0x40d   : > { %10048 = vmatmul.mubr.msk.bf16.vlgmr.msra.gmra.mrb[44].mxu0 %vm889_vm3, %v1907_v51  ;;  %v2162_v61 = vpop.permute.xlu0 %2161 }
 0x40e   : > { %10058 = vmatpush3.bf16.xpose.msra.mxu0 %v2016_v36  ;;  %10059 = vmatprep.mubr.msk.bf16.mxu0 %vm11119_vm2, %v11118_v26 }
 0x40f   : > { %10054 = vmatmul.mubr.msk.bf16.vlgmr.msra.gmra.mrb[36].mxu1 %vm889_vm3, %v1958_v48  ;;  %10069 = vmatprep.subr.bf16.mxu0 %v11118_v26  ;;  %v2364_v4 = vpop.permute.xlu1 %2363 }
 0x410   : > { %10064 = vmatpush3.bf16.xpose.msra.mxu1 %v2067_v29  ;;  %10065 = vmatprep.mubr.msk.bf16.mxu1 %vm11119_vm2, %v11118_v26  ;;  %v2369_v8 = vsel %vm1370_vm4, %v2364_v4, 0 }
 0x411   : > { %10075 = vmatprep.subr.bf16.mxu1 %v11118_v26  ;;  %v2316_v6 = vpop.permute.xlu0 %2315 }
 0x412   : > { %v2321_v12 = vsel %vm1370_vm4, %v2316_v6, 0 }
 0x415   : > { %10060 = vmatmul.mubr.msk.bf16.vlgmr.msra.gmra.mrb[48].mxu0 %vm889_vm3, %v2009_v53 }
 0x416   : > { %10070 = vmatpush3.bf16.xpose.msra.mxu0 %v2118_v62  ;;  %10071 = vmatprep.mubr.msk.bf16.mxu0 %vm11119_vm2, %v11118_v26 }
 0x417   : > { %10066 = vmatmul.mubr.msk.bf16.vlgmr.msra.gmra.mrb[40].mxu1 %vm889_vm3, %v2060_v27  ;;  %10081 = vmatprep.subr.bf16.mxu0 %v11118_v26 }
 0x418   : > { %10076 = vmatpush3.bf16.xpose.msra.mxu1 %v2169_v47  ;;  %10077 = vmatprep.mubr.msk.bf16.mxu1 %vm11119_vm2, %v11118_v26 }
 0x419   : > { %10087 = vmatprep.subr.bf16.mxu1 %v11118_v26 }
 0x41d   : > { %10072 = vmatmul.mubr.msk.bf16.vlgmr.msra.gmra.mrb[52].mxu0 %vm889_vm3, %v2111_v30 }
 0x41e   : > { %10082 = vmatpush3.bf16.msra.mxu0 %v2321_v12  ;;  %10083 = vmatprep.mubr.msk.bf16.mxu0 %vm11119_vm2, %v11118_v26 }
 0x41f   : > { %10078 = vmatmul.mubr.msk.bf16.vlgmr.msra.gmra.mrb[44].mxu1 %vm889_vm3, %v2162_v61  ;;  %10093 = vmatprep.subr.bf16.mxu0 %v11118_v26 }
 0x420   : > { %10088 = vmatpush3.bf16.msra.mxu1 %v2369_v8  ;;  %10089 = vmatprep.mubr.msk.bf16.mxu1 %vm11119_vm2, %v11118_v26 }
 0x421   : > { %10099 = vmatprep.subr.bf16.mxu1 %v11118_v26 }
 0x48b   : > { %v1408_v56 = vpop.f32.mrb[24].mxu0 }
 0x48c   : > { %v9989_v63 = vpop.f32.mrb[25].mxu0 }
 0x48d   : > { %v1411_v16 = vpop.f32.mrb[26].mxu0  ;;  %v1457_v17 = vpop.f32.mrb[16].mxu1 }
 0x48e   : > { %v1765_v19 = vcombine.low %v1408_v56, %v1457_v17  ;;  %v9990_v21 = vpop.f32.mrb[27].mxu0  ;;  %v9995_v9 = vpop.f32.mrb[17].mxu1 }
 0x48f   : > { %v1460_v15 = vpop.f32.mrb[18].mxu1 }
 0x490   : > { %v9996_v22 = vpop.f32.mrb[19].mxu1  ;;  %v1773_v42 = vrot.slane %v1765_v19, %v11291_v28 }
 0x493   : > { %v1506_v23 = vpop.f32.mrb[28].mxu0 }
 0x494   : > { %v10001_v24 = vpop.f32.mrb[29].mxu0 }
 0x495   : > { %v1509_v33 = vpop.f32.mrb[30].mxu0  ;;  %v1555_v35 = vpop.f32.mrb[20].mxu1 }
 0x496   : > { %v1766_v13 = vcombine.low %v1506_v23, %v1555_v35  ;;  %v10002_v18 = vpop.f32.mrb[31].mxu0  ;;  %v10007_v39 = vpop.f32.mrb[21].mxu1 }
 0x497   : > { %v1558_v40 = vpop.f32.mrb[22].mxu1 }
 0x498   : > { %v1780_v43 = vrot.slane %v1766_v13, %v11291_v28  ;;  %v10008_v44 = vpop.f32.mrb[23].mxu1 }
 0x49a   : > { %v1781_v48 = vcombine.low %v1773_v42, %v1780_v43 }
 0x49b   : > { %v1604_v50 = vpop.f32.mrb[32].mxu0 }
 0x49c   : > { %1801 = vst.msk [vmem:[#allocation3] sm:$0xff] %vm889_vm3, %v1781_v48  ;;  %v10013_v51 = vpop.f32.mrb[33].mxu0 }
 0x49d   : > { %v1607_v52 = vpop.f32.mrb[34].mxu0  ;;  %v1653_v25 = vpop.f32.mrb[24].mxu1 }
 0x49e   : > { %v1782_v32 = vcombine.low %v1604_v50, %v1653_v25  ;;  %v10014_v58 = vpop.f32.mrb[35].mxu0  ;;  %v10019_v20 = vpop.f32.mrb[25].mxu1 }
 0x49f   : > { %v1656_v27 = vpop.f32.mrb[26].mxu1 }
 0x4a0   : > { %v10020_v53 = vpop.f32.mrb[27].mxu1  ;;  %v1790_v6 = vrot.slane %v1782_v32, %v11291_v28 }
 0x4d0   : > { %v1702_v36 = vpop.f32.mrb[36].mxu0 }
 0x4d1   : > { %v10025_v59 = vpop.f32.mrb[37].mxu0 }
 0x4d2   : > { %v1705_v29 = vpop.f32.mrb[38].mxu0  ;;  %v1751_v37 = vpop.f32.mrb[28].mxu1 }
 0x4d3   : > { %v1783_v61 = vcombine.low %v1702_v36, %v1751_v37  ;;  %v10026_v62 = vpop.f32.mrb[39].mxu0  ;;  %v10031_v30 = vpop.f32.mrb[29].mxu1 }
 0x4d4   : > { %v1754_v47 = vpop.f32.mrb[30].mxu1 }
 0x4d5   : > { %v1797_v4 = vrot.slane %v1783_v61, %v11291_v28  ;;  %v10032_v12 = vpop.f32.mrb[31].mxu1 }
 0x4d7   : > { %v1798_v8 = vcombine.low %v1790_v6, %v1797_v4 }
 0x4d8   : > { %v1848_v56 = vpop.f32.mrb[40].mxu0 }
 0x4d9   : > { %1802 = vst.msk [vmem:[#allocation3 + $0x8] sm:$0xff] %vm889_vm3, %v1798_v8  ;;  %v11599_v63 = vmul.f32 0.35355338, %v1848_v56  ;;  %v10037_v16 = vpop.f32.mrb[41].mxu0 }
 0x4da   : > { %v1851_v17 = vpop.f32.mrb[42].mxu0  ;;  %v1899_v19 = vpop.f32.mrb[32].mxu1 }
 0x4db   : > { %v2212_v21 = vmul.f32 0.35355338, %v1899_v19  ;;  %v10038_v9 = vpop.f32.mrb[43].mxu0  ;;  %v10043_v15 = vpop.f32.mrb[33].mxu1  ;;  %v2219_v22 = vsel %vm1266_vm5, %v11599_v63, -inf }
 0x4dc   : > { %2220 = vmax.xlane.f32.xlu1 %v2219_v22  ;;  %v1902_v23 = vpop.f32.mrb[34].mxu1  ;;  %v11620_v22 = vpop.permute.xlu1 %2411 }
 0x4dd   : > { %v10044_v24 = vpop.f32.mrb[35].mxu1  ;;  %v2222_v33 = vsel %vm1266_vm5, %v2212_v21, -inf }
 0x4de   : > { %2223 = vmax.xlane.f32.xlu0 %v2222_v33  ;;  %v11624_v24 = vpop.permute.xlu0 %2459 }
 0x4e0   : > { %v1950_v35 = vpop.f32.mrb[44].mxu0  ;;  %v11622_v23 = vpop.permute.xlu1 %2507 }
 0x4e1   : > { %v2213_v13 = vmul.f32 0.35355338, %v1950_v35  ;;  %v10049_v18 = vpop.f32.mrb[45].mxu0 }
 0x4e2   : > { %v1953_v39 = vpop.f32.mrb[46].mxu0  ;;  %v2001_v40 = vpop.f32.mrb[36].mxu1 }
 0x4e3   : > { %v2214_v42 = vmul.f32 0.35355338, %v2001_v40  ;;  %v10050_v43 = vpop.f32.mrb[47].mxu0  ;;  %v10055_v44 = vpop.f32.mrb[37].mxu1  ;;  %v2225_v48 = vsel %vm1266_vm5, %v2213_v13, -inf }
 0x4e4   : > { %2226 = vmax.xlane.f32.xlu0 %v2225_v48  ;;  %v2004_v50 = vpop.f32.mrb[38].mxu1 }
 0x4e5   : > { %v10056_v51 = vpop.f32.mrb[39].mxu1  ;;  %v2228_v52 = vsel %vm1266_vm5, %v2214_v42, -inf }
 0x4e6   : > { %2229 = vmax.xlane.f32.xlu1 %v2228_v52 }
 0x4e8   : > { %v2052_v25 = vpop.f32.mrb[48].mxu0 }
 0x4e9   : > { %v2215_v32 = vmul.f32 0.35355338, %v2052_v25  ;;  %v10061_v58 = vpop.f32.mrb[49].mxu0 }
 0x4ea   : > { %v2055_v20 = vpop.f32.mrb[50].mxu0  ;;  %v2103_v27 = vpop.f32.mrb[40].mxu1 }
 0x4eb   : > { %v2216_v53 = vmul.f32 0.35355338, %v2103_v27  ;;  %v10062_v36 = vpop.f32.mrb[51].mxu0  ;;  %v10067_v59 = vpop.f32.mrb[41].mxu1  ;;  %v2231_v29 = vsel %vm1266_vm5, %v2215_v32, -inf }
 0x4ec   : > { %2232 = vmax.xlane.f32.xlu0 %v2231_v29  ;;  %v2106_v37 = vpop.f32.mrb[42].mxu1 }
 0x4ed   : > { %v10068_v61 = vpop.f32.mrb[43].mxu1  ;;  %v2234_v62 = vsel %vm1266_vm5, %v2216_v53, -inf }
 0x4ee   : > { %2235 = vmax.xlane.f32.xlu1 %v2234_v62 }
 0x4f0   : > { %v2154_v30 = vpop.f32.mrb[52].mxu0 }
 0x4f1   : > { %v11608_v47 = vmul.f32 0.35355338, %v2154_v30  ;;  %v10073_v6 = vpop.f32.mrb[53].mxu0 }
 0x4f2   : > { %v2157_v4 = vpop.f32.mrb[54].mxu0  ;;  %v2205_v12 = vpop.f32.mrb[44].mxu1 }
 0x4f3   : > { %v11610_v8 = vmul.f32 0.35355338, %v2205_v12  ;;  %v10074_v56 = vpop.f32.mrb[55].mxu0  ;;  %v10079_v16 = vpop.f32.mrb[45].mxu1  ;;  %v2237_v17 = vsel %vm1266_vm5, %v11608_v47, -inf }
 0x4f4   : > { %2238 = vmax.xlane.f32.xlu0 %v2237_v17  ;;  %v2208_v19 = vpop.f32.mrb[46].mxu1 }
 0x4f5   : > { %v10080_v9 = vpop.f32.mrb[47].mxu1  ;;  %v2240_v15 = vsel %vm1266_vm5, %v11610_v8, -inf }
 0x4f6   : > { %2241 = vmax.xlane.f32.xlu1 %v2240_v15 }
 0x507   : > { %2603 = vrot.lane.b32.xlu1 %v11360_v0, %s11122_s13 }
 0x50a   : > { %2555 = vrot.lane.b32.xlu0 %v11342_v55, %s11122_s13 }
 0x569   : > { %v2221_v33 = vpop.xlane.xlu1 %2220 }
 0x56a   : > { %v2243_v35 = vsub.f32 %v11599_v63, %v2221_v33 }
 0x56b   : > { %v2224_v18 = vpop.xlane.xlu0 %2223 }
 0x56c   : > { %v2251_v39 = vmul.f32 1.442695, %v2243_v35  ;;  %v2244_v40 = vsub.f32 %v2212_v21, %v2224_v18 }
 0x56e   : > { %10844 = vpow2.f32 %v2251_v39  ;;  %v2253_v43 = vmul.f32 1.442695, %v2244_v40 }
 0x570   : > { %10846 = vpow2.f32 %v2253_v43 }
 0x571   : > { %v2227_v44 = vpop.xlane.xlu0 %2226 }
 0x572   : > { %v2245_v48 = vsub.f32 %v2213_v13, %v2227_v44 }
 0x573   : > { %v2230_v50 = vpop.xlane.xlu1 %2229 }
 0x574   : > { %v2255_v51 = vmul.f32 1.442695, %v2245_v48  ;;  %v2246_v52 = vsub.f32 %v2214_v42, %v2230_v50 }
 0x576   : > { %10848 = vpow2.f32 %v2255_v51  ;;  %v2257_v25 = vmul.f32 1.442695, %v2246_v52 }
 0x578   : > { %v11627_v58 = vpop.eup %10844  ;;  %10850 = vpow2.f32 %v2257_v25 }
 0x579   : > { %v2233_v20 = vpop.xlane.xlu0 %2232  ;;  %v2267_v63 = vsel %vm1266_vm5, %v11627_v58, 0.0 }
 0x57a   : > { %v11631_v27 = vpop.eup %10846  ;;  %v2247_v21 = vsub.f32 %v2215_v32, %v2233_v20  ;;  %2268 = vadd.xlane.f32.xlu0 %v2267_v63  ;;  %v2417_v20 = vsel %vm1370_vm4, %v11620_v22, 0 }
 0x57b   : > { %v2236_v36 = vpop.xlane.xlu1 %2235  ;;  %v2270_v13 = vsel %vm1266_vm5, %v11631_v27, 0.0 }
 0x57c   : > { %v2259_v59 = vmul.f32 1.442695, %v2247_v21  ;;  %v2248_v29 = vsub.f32 %v2216_v53, %v2236_v36  ;;  %2271 = vadd.xlane.f32.xlu1 %v2270_v13  ;;  %v2465_v36 = vsel %vm1370_vm4, %v11624_v24, 0  ;;  %v2513_v24 = vsel %vm1370_vm4, %v11622_v23, 0 }
 0x57e   : > { %10852 = vpow2.f32 %v2259_v59  ;;  %v2261_v42 = vmul.f32 1.442695, %v2248_v29 }
 0x580   : > { %v11635_v37 = vpop.eup %10848  ;;  %10854 = vpow2.f32 %v2261_v42 }
 0x581   : > { %v2273_v61 = vsel %vm1266_vm5, %v11635_v37, 0.0  ;;  %v2239_v12 = vpop.xlane.xlu0 %2238 }
 0x582   : > { %v11639_v62 = vpop.eup %10850  ;;  %2274 = vadd.xlane.f32.xlu0 %v2273_v61  ;;  %v2249_v16 = vsub.f32 %v11608_v47, %v2239_v12 }
 0x583   : > { %v2276_v32 = vsel %vm1266_vm5, %v11639_v62, 0.0  ;;  %v2242_v56 = vpop.xlane.xlu1 %2241 }
 0x584   : > { %2277 = vadd.xlane.f32.xlu1 %v2276_v32  ;;  %v2250_v17 = vsub.f32 %v11610_v8, %v2242_v56  ;;  %v2263_v19 = vmul.f32 1.442695, %v2249_v16 }
 0x585   : > { %v2556_v47 = vpop.permute.xlu0 %2555 }
 0x586   : > { %v2265_v9 = vmul.f32 1.442695, %v2250_v17  ;;  %10856 = vpow2.f32 %v2263_v19  ;;  %v2561_v61 = vsel %vm1370_vm4, %v2556_v47, 0 }
 0x587   : > { %v2604_v8 = vpop.permute.xlu1 %2603 }
 0x588   : > { %v11643_v30 = vpop.eup %10852  ;;  %10858 = vpow2.f32 %v2265_v9  ;;  %v2609_v12 = vsel %vm1370_vm4, %v2604_v8, 0 }
 0x589   : > { %v2279_v53 = vsel %vm1266_vm5, %v11643_v30, 0.0 }
 0x58a   : > { %v11647_v6 = vpop.eup %10854  ;;  %2280 = vadd.xlane.f32.xlu0 %v2279_v53 }
 0x58b   : > { %v2282_v4 = vsel %vm1266_vm5, %v11647_v6, 0.0 }
 0x58c   : > { %2283 = vadd.xlane.f32.xlu1 %v2282_v4 }
 0x590   : > { %v11657_v15 = vpop.eup %10856 }
 0x591   : > { %v2285_v35 = vsel %vm1266_vm5, %v11657_v15, 0.0 }
 0x592   : > { %v11659_v33 = vpop.eup %10858 }
 0x593   : > { %v2288_v18 = vsel %vm1266_vm5, %v11659_v33, 0.0 }
 0x59d   : > { %2752 = vrot.lane.b32.xlu1 %v11295_v34, %s11123_s14 }
 0x5a0   : > { %2651 = vrot.lane.b32.xlu0 %v11365_v2, %s11122_s13 }
 0x5bf   : > { %2286 = vadd.xlane.f32.xlu0 %v2285_v35 }
 0x5c1   : > { %2289 = vadd.xlane.f32.xlu1 %v2288_v18 }
 0x5d2   : > { %2750 = vrot.lane.b32.xlu1 %v11318_v46, %s11123_s14 }
 0x5d5   : > { %2802 = vrot.lane.b32.xlu0 %v11300_v38, %s11123_s14 }
 0x5d6   : > { %2852 = vrot.lane.b32.xlu1 %v11313_v45, %s11123_s14 }
 0x5d9   : > { %2800 = vrot.lane.b32.xlu0 %v11327_v49, %s11123_s14 }
 0x5da   : > { %2850 = vrot.lane.b32.xlu1 %v11340_v54, %s11123_s14 }
 0x5dd   : > { %2902 = vrot.lane.b32.xlu0 %v11306_v41, %s11123_s14 }
 0x5de   : > { %2952 = vrot.lane.b32.xlu1 %v11293_v31, %s11123_s14 }
 0x5e1   : > { %2900 = vrot.lane.b32.xlu0 %v11344_v57, %s11123_s14 }
 0x5e2   : > { %2950 = vrot.lane.b32.xlu1 %v11363_v1, %s11123_s14 }
 0x5e5   : > { %3002 = vrot.lane.b32.xlu0 %v11342_v55, %s11123_s14 }
 0x5e6   : > { %3052 = vrot.lane.b32.xlu1 %v11360_v0, %s11123_s14 }
 0x5e9   : > { %3000 = vrot.lane.b32.xlu0 %v11368_v5, %s11123_s14 }
 0x5ea   : > { %3050 = vrot.lane.b32.xlu1 %v11384_v10, %s11123_s14 }
 0x5ed   : > { %3102 = vrot.lane.b32.xlu0 %v11365_v2, %s11123_s14 }
 0x5ee   : > { %3302 = vrot.lane.b32.xlu1 %v11300_v38, %s11124_s15 }
 0x5f1   : > { %3100 = vrot.lane.b32.xlu0 %v11386_v11, %s11123_s14 }
 0x5f2   : > { %3350 = vrot.lane.b32.xlu1 %v11313_v45, %s11124_s15 }
 0x5f5   : > { %3254 = vrot.lane.b32.xlu0 %v11295_v34, %s11124_s15 }
 0x5f6   : > { %3446 = vrot.lane.b32.xlu1 %v11293_v31, %s11124_s15 }
 0x5f9   : > { %3398 = vrot.lane.b32.xlu0 %v11306_v41, %s11124_s15 }
 0x607   : > { %v2269_v39 = vpop.xlane.xlu0 %2268 }
 0x608   : > { %10860 = vrcp.f32 %v2269_v39 }
 0x609   : > { %v2272_v40 = vpop.xlane.xlu1 %2271 }
 0x60a   : > { %10862 = vrcp.f32 %v2272_v40 }
 0x60f   : > { %v2275_v43 = vpop.xlane.xlu0 %2274 }
 0x610   : > { %10864 = vrcp.f32 %v2275_v43 }
 0x611   : > { %v2278_v44 = vpop.xlane.xlu1 %2277 }
 0x612   : > { %v10861_v48 = vpop.eup %10860  ;;  %10866 = vrcp.f32 %v2278_v44 }
 0x613   : > { %v2299_v50 = vmul.f32 %v10861_v48, %v11627_v58 }
 0x614   : > { %v10863_v51 = vpop.eup %10862 }
 0x615   : > { %v2307_v52 = vpack.c.bf16 %v2299_v50, %v2299_v50  ;;  %v2300_v25 = vmul.f32 %v10863_v51, %v11631_v27 }
 0x617   : > { %10084 = vmatmul.mubr.msk.bf16.vlgmr.msra.gmra.mrb[56].mxu0 %vm1366_vm6, %v2307_v52  ;;  %v2281_v63 = vpop.xlane.xlu0 %2280  ;;  %v2308_v21 = vpack.c.bf16 %v2300_v25, %v2300_v25 }
 0x618   : > { %10094 = vmatpush3.bf16.msra.mxu0 %v2417_v20  ;;  %10868 = vrcp.f32 %v2281_v63  ;;  %10095 = vmatprep.mubr.msk.bf16.mxu0 %vm11119_vm2, %v11118_v26 }
 0x619   : > { %10090 = vmatmul.mubr.msk.bf16.vlgmr.msra.gmra.mrb[48].mxu1 %vm1366_vm6, %v2308_v21  ;;  %v2284_v58 = vpop.xlane.xlu1 %2283  ;;  %10105 = vmatprep.subr.bf16.mxu0 %v11118_v26 }
 0x61a   : > { %v10865_v27 = vpop.eup %10864  ;;  %10100 = vmatpush3.bf16.msra.mxu1 %v2465_v36  ;;  %10870 = vrcp.f32 %v2284_v58  ;;  %10101 = vmatprep.mubr.msk.bf16.mxu1 %vm11119_vm2, %v11118_v26 }
 0x61b   : > { %v2301_v22 = vmul.f32 %v10865_v27, %v11635_v37  ;;  %10111 = vmatprep.subr.bf16.mxu1 %v11118_v26  ;;  %v2652_v4 = vpop.permute.xlu0 %2651 }
 0x61c   : > { %v10867_v13 = vpop.eup %10866  ;;  %v2657_v16 = vsel %vm1370_vm4, %v2652_v4, 0 }
 0x61d   : > { %v2309_v59 = vpack.c.bf16 %v2301_v22, %v2301_v22  ;;  %v2302_v29 = vmul.f32 %v10867_v13, %v11639_v62 }
 0x61f   : > { %10096 = vmatmul.mubr.msk.bf16.vlgmr.msra.gmra.mrb[60].mxu0 %vm1366_vm6, %v2309_v59  ;;  %v2310_v42 = vpack.c.bf16 %v2302_v29, %v2302_v29 }
 0x620   : > { %10106 = vmatpush3.bf16.msra.mxu0 %v2513_v24  ;;  %10107 = vmatprep.mubr.msk.bf16.mxu0 %vm11119_vm2, %v11118_v26 }
 0x621   : > { %10102 = vmatmul.mubr.msk.bf16.vlgmr.msra.gmra.mrb[52].mxu1 %vm1366_vm6, %v2310_v42  ;;  %10117 = vmatprep.subr.bf16.mxu0 %v11118_v26 }
 0x622   : > { %v10869_v37 = vpop.eup %10868  ;;  %10112 = vmatpush3.bf16.msra.mxu1 %v2561_v61  ;;  %10113 = vmatprep.mubr.msk.bf16.mxu1 %vm11119_vm2, %v11118_v26 }
 0x623   : > { %v2303_v23 = vmul.f32 %v10869_v37, %v11643_v30  ;;  %10123 = vmatprep.subr.bf16.mxu1 %v11118_v26  ;;  %v2753_v30 = vpop.permute.xlu1 %2752 }
 0x624   : > { %v10871_v62 = vpop.eup %10870  ;;  %v2758_v48 = vsel %vm889_vm3, %v2753_v30, 0 }
 0x625   : > { %v2311_v32 = vpack.c.bf16 %v2303_v23, %v2303_v23  ;;  %v2304_v53 = vmul.f32 %v10871_v62, %v11647_v6 }
 0x627   : > { %10108 = vmatmul.mubr.msk.bf16.vlgmr.msra.gmra.mrb[64].mxu0 %vm1366_vm6, %v2311_v32  ;;  %v2312_v56 = vpack.c.bf16 %v2304_v53, %v2304_v53 }
 0x628   : > { %10118 = vmatpush3.bf16.msra.mxu0 %v2609_v12  ;;  %10119 = vmatprep.mubr.msk.bf16.mxu0 %vm11119_vm2, %v11118_v26 }
 0x629   : > { %10114 = vmatmul.mubr.msk.bf16.vlgmr.msra.gmra.mrb[56].mxu1 %vm1366_vm6, %v2312_v56  ;;  %10129 = vmatprep.subr.bf16.mxu0 %v11118_v26 }
 0x62a   : > { %10124 = vmatpush3.bf16.msra.mxu1 %v2657_v16  ;;  %10125 = vmatprep.mubr.msk.bf16.mxu1 %vm11119_vm2, %v11118_v26 }
 0x62b   : > { %10135 = vmatprep.subr.bf16.mxu1 %v11118_v26 }
 0x64c   : > { %v2287_v6 = vpop.xlane.xlu0 %2286 }
 0x64d   : > { %10872 = vrcp.f32 %v2287_v6 }
 0x64e   : > { %v2290_v17 = vpop.xlane.xlu1 %2289 }
 0x64f   : > { %10874 = vrcp.f32 %v2290_v17 }
 0x650   : > { %v2803_v19 = vpop.permute.xlu0 %2802 }
 0x651   : > { %v2808_v25 = vsel %vm889_vm3, %v2803_v19, 0 }
 0x652   : > { %v2751_v9 = vpop.permute.xlu1 %2750 }
 0x654   : > { %v2801_v35 = vpop.permute.xlu0 %2800 }
 0x656   : > { %v2853_v47 = vpop.permute.xlu1 %2852 }
 0x657   : > { %v10873_v18 = vpop.eup %10872  ;;  %v2858_v20 = vsel %vm889_vm3, %v2853_v47, 0 }
 0x658   : > { %v2903_v8 = vpop.permute.xlu0 %2902  ;;  %v2305_v39 = vmul.f32 %v10873_v18, %v11657_v15 }
 0x659   : > { %v10875_v40 = vpop.eup %10874  ;;  %v2908_v63 = vsel %vm889_vm3, %v2903_v8, 0 }
 0x65a   : > { %v2313_v43 = vpack.c.bf16 %v2305_v39, %v2305_v39  ;;  %v2306_v44 = vmul.f32 %v10875_v40, %v11659_v33  ;;  %v2851_v52 = vpop.permute.xlu1 %2850 }
 0x65c   : > { %v2901_v50 = vpop.permute.xlu0 %2900  ;;  %10120 = vmatmul.mubr.msk.bf16.vlgmr.msra.gmra.mrb[68].mxu0 %vm1366_vm6, %v2313_v43  ;;  %v2314_v51 = vpack.c.bf16 %v2306_v44, %v2306_v44 }
 0x65d   : > { %10130 = vmatpush3.bf16.xpose.msra.mxu0 %v2758_v48  ;;  %10131 = vmatprep.mubr.msk.bf16.mxu0 %vm11119_vm2, %v11118_v26 }
 0x65e   : > { %10126 = vmatmul.mubr.msk.bf16.vlgmr.msra.gmra.mrb[60].mxu1 %vm1366_vm6, %v2314_v51  ;;  %10141 = vmatprep.subr.bf16.mxu0 %v11118_v26  ;;  %v2953_v33 = vpop.permute.xlu1 %2952 }
 0x65f   : > { %10136 = vmatpush3.bf16.xpose.msra.mxu1 %v2808_v25  ;;  %10137 = vmatprep.mubr.msk.bf16.mxu1 %vm11119_vm2, %v11118_v26  ;;  %v2958_v58 = vsel %vm889_vm3, %v2953_v33, 0 }
 0x660   : > { %10147 = vmatprep.subr.bf16.mxu1 %v11118_v26  ;;  %v3003_v15 = vpop.permute.xlu0 %3002 }
 0x661   : > { %v3008_v22 = vsel %vm889_vm3, %v3003_v15, 0 }
 0x662   : > { %v2951_v36 = vpop.permute.xlu1 %2950 }
 0x664   : > { %10132 = vmatmul.mubr.msk.bf16.vlgmr.msra.gmra.mrb[72].mxu0 %vm889_vm3, %v2751_v9  ;;  %v3001_v21 = vpop.permute.xlu0 %3000 }
 0x665   : > { %10142 = vmatpush3.bf16.xpose.msra.mxu0 %v2858_v20  ;;  %10143 = vmatprep.mubr.msk.bf16.mxu0 %vm11119_vm2, %v11118_v26 }
 0x666   : > { %10138 = vmatmul.mubr.msk.bf16.vlgmr.msra.gmra.mrb[64].mxu1 %vm889_vm3, %v2801_v35  ;;  %10153 = vmatprep.subr.bf16.mxu0 %v11118_v26  ;;  %v3053_v13 = vpop.permute.xlu1 %3052 }
 0x667   : > { %10148 = vmatpush3.bf16.xpose.msra.mxu1 %v2908_v63  ;;  %10149 = vmatprep.mubr.msk.bf16.mxu1 %vm11119_vm2, %v11118_v26  ;;  %v3058_v29 = vsel %vm889_vm3, %v3053_v13, 0 }
 0x668   : > { %10159 = vmatprep.subr.bf16.mxu1 %v11118_v26  ;;  %v3103_v27 = vpop.permute.xlu0 %3102 }
 0x669   : > { %v3108_v42 = vsel %vm889_vm3, %v3103_v27, 0 }
 0x66a   : > { %v3051_v24 = vpop.permute.xlu1 %3050 }
 0x66c   : > { %10144 = vmatmul.mubr.msk.bf16.vlgmr.msra.gmra.mrb[76].mxu0 %vm889_vm3, %v2851_v52  ;;  %v3101_v59 = vpop.permute.xlu0 %3100 }
 0x66d   : > { %10154 = vmatpush3.bf16.xpose.msra.mxu0 %v2958_v58  ;;  %10155 = vmatprep.mubr.msk.bf16.mxu0 %vm11119_vm2, %v11118_v26 }
 0x66e   : > { %10150 = vmatmul.mubr.msk.bf16.vlgmr.msra.gmra.mrb[68].mxu1 %vm889_vm3, %v2901_v50  ;;  %10165 = vmatprep.subr.bf16.mxu0 %v11118_v26  ;;  %v3303_v37 = vpop.permute.xlu1 %3302 }
 0x66f   : > { %10160 = vmatpush3.bf16.xpose.msra.mxu1 %v3008_v22  ;;  %10161 = vmatprep.mubr.msk.bf16.mxu1 %vm11119_vm2, %v11118_v26  ;;  %v3308_v62 = vsel %vm1370_vm4, %v3303_v37, 0 }
 0x670   : > { %10171 = vmatprep.subr.bf16.mxu1 %v11118_v26  ;;  %v3255_v61 = vpop.permute.xlu0 %3254 }
 0x671   : > { %v3260_v23 = vsel %vm1370_vm4, %v3255_v61, 0 }
 0x674   : > { %10156 = vmatmul.mubr.msk.bf16.vlgmr.msra.gmra.mrb[80].mxu0 %vm889_vm3, %v2951_v36 }
 0x675   : > { %10166 = vmatpush3.bf16.xpose.msra.mxu0 %v3058_v29  ;;  %10167 = vmatprep.mubr.msk.bf16.mxu0 %vm11119_vm2, %v11118_v26 }
 0x676   : > { %10162 = vmatmul.mubr.msk.bf16.vlgmr.msra.gmra.mrb[72].mxu1 %vm889_vm3, %v3001_v21  ;;  %10177 = vmatprep.subr.bf16.mxu0 %v11118_v26 }
 0x677   : > { %10172 = vmatpush3.bf16.xpose.msra.mxu1 %v3108_v42  ;;  %10173 = vmatprep.mubr.msk.bf16.mxu1 %vm11119_vm2, %v11118_v26 }
 0x678   : > { %10183 = vmatprep.subr.bf16.mxu1 %v11118_v26 }
 0x67c   : > { %10168 = vmatmul.mubr.msk.bf16.vlgmr.msra.gmra.mrb[84].mxu0 %vm889_vm3, %v3051_v24 }
 0x67d   : > { %10178 = vmatpush3.bf16.msra.mxu0 %v3260_v23  ;;  %10179 = vmatprep.mubr.msk.bf16.mxu0 %vm11119_vm2, %v11118_v26 }
 0x67e   : > { %10174 = vmatmul.mubr.msk.bf16.vlgmr.msra.gmra.mrb[76].mxu1 %vm889_vm3, %v3101_v59  ;;  %10189 = vmatprep.subr.bf16.mxu0 %v11118_v26 }
 0x67f   : > { %10184 = vmatpush3.bf16.msra.mxu1 %v3308_v62  ;;  %10185 = vmatprep.mubr.msk.bf16.mxu1 %vm11119_vm2, %v11118_v26 }
 0x680   : > { %10195 = vmatprep.subr.bf16.mxu1 %v11118_v26 }
 0x6ea   : > { %v2357_v32 = vpop.f32.mrb[56].mxu0 }
 0x6eb   : > { %v10085_v53 = vpop.f32.mrb[57].mxu0 }
 0x6ec   : > { %v2360_v4 = vpop.f32.mrb[58].mxu0  ;;  %v2405_v12 = vpop.f32.mrb[48].mxu1 }
 0x6ed   : > { %v2707_v56 = vcombine.low %v2357_v32, %v2405_v12  ;;  %v10086_v16 = vpop.f32.mrb[59].mxu0  ;;  %v10091_v30 = vpop.f32.mrb[49].mxu1 }
 0x6ee   : > { %v2408_v6 = vpop.f32.mrb[50].mxu1 }
 0x6ef   : > { %v10092_v17 = vpop.f32.mrb[51].mxu1  ;;  %v11797_v43 = vrot.slane %v2707_v56, %v11291_v28 }
 0x6f2   : > { %v2453_v19 = vpop.f32.mrb[60].mxu0 }
 0x6f3   : > { %v10097_v9 = vpop.f32.mrb[61].mxu0 }
 0x6f4   : > { %v2456_v35 = vpop.f32.mrb[62].mxu0  ;;  %v2501_v18 = vpop.f32.mrb[52].mxu1 }
 0x6f5   : > { %v2708_v47 = vcombine.low %v2453_v19, %v2501_v18  ;;  %v10098_v8 = vpop.f32.mrb[63].mxu0  ;;  %v10103_v39 = vpop.f32.mrb[53].mxu1 }
 0x6f6   : > { %v2504_v40 = vpop.f32.mrb[54].mxu1 }
 0x6f7   : > { %v11800_v44 = vrot.slane %v2708_v47, %v11291_v28  ;;  %v10104_v48 = vpop.f32.mrb[55].mxu1 }
 0x6f9   : > { %v2723_v50 = vcombine.low %v11797_v43, %v11800_v44 }
 0x6fa   : > { %v2549_v51 = vpop.f32.mrb[64].mxu0 }
 0x6fb   : > { %v10109_v52 = vpop.f32.mrb[65].mxu0 }
 0x6fc   : > { %v2552_v25 = vpop.f32.mrb[66].mxu0  ;;  %v2597_v15 = vpop.f32.mrb[56].mxu1 }
 0x6fd   : > { %v2724_v33 = vcombine.low %v2549_v51, %v2597_v15  ;;  %v10110_v20 = vpop.f32.mrb[67].mxu0  ;;  %v10115_v63 = vpop.f32.mrb[57].mxu1 }
 0x6fe   : > { %v2600_v21 = vpop.f32.mrb[58].mxu1 }
 0x6ff   : > { %v10116_v36 = vpop.f32.mrb[59].mxu1  ;;  %v11805_v61 = vrot.slane %v2724_v33, %v11291_v28 }
 0x72f   : > { %v2645_v58 = vpop.f32.mrb[68].mxu0 }
 0x730   : > { %v10121_v27 = vpop.f32.mrb[69].mxu0 }
 0x731   : > { %v2648_v22 = vpop.f32.mrb[70].mxu0  ;;  %v2693_v13 = vpop.f32.mrb[60].mxu1 }
 0x732   : > { %v2725_v59 = vcombine.low %v2645_v58, %v2693_v13  ;;  %v10122_v29 = vpop.f32.mrb[71].mxu0  ;;  %v10127_v24 = vpop.f32.mrb[61].mxu1 }
 0x733   : > { %v2696_v42 = vpop.f32.mrb[62].mxu1 }
 0x734   : > { %v11808_v37 = vrot.slane %v2725_v59, %v11291_v28  ;;  %v10128_v23 = vpop.f32.mrb[63].mxu1 }
 0x736   : > { %v2740_v62 = vcombine.low %v11805_v61, %v11808_v37 }
 0x737   : > { %v2794_v32 = vpop.f32.mrb[72].mxu0 }
 0x738   : > { %v11812_v53 = vmul.f32 0.35355338, %v2794_v32  ;;  %v10133_v4 = vpop.f32.mrb[73].mxu0 }
 0x739   : > { %v2797_v12 = vpop.f32.mrb[74].mxu0  ;;  %v2844_v56 = vpop.f32.mrb[64].mxu1 }
 0x73a   : > { %v3151_v16 = vmul.f32 0.35355338, %v2844_v56  ;;  %v10134_v30 = vpop.f32.mrb[75].mxu0  ;;  %v10139_v6 = vpop.f32.mrb[65].mxu1  ;;  %v3158_v17 = vsel %vm1266_vm5, %v11812_v53, -inf }
 0x73b   : > { %3159 = vmax.xlane.f32.xlu1 %v3158_v17  ;;  %v2847_v19 = vpop.f32.mrb[66].mxu1 }
 0x73c   : > { %v10140_v9 = vpop.f32.mrb[67].mxu1  ;;  %v3161_v35 = vsel %vm1266_vm5, %v3151_v16, -inf }
 0x73d   : > { %3162 = vmax.xlane.f32.xlu0 %v3161_v35 }
 0x73f   : > { %v2894_v18 = vpop.f32.mrb[76].mxu0 }
 0x740   : > { %v3152_v47 = vmul.f32 0.35355338, %v2894_v18  ;;  %v10145_v8 = vpop.f32.mrb[77].mxu0 }
 0x741   : > { %v2897_v39 = vpop.f32.mrb[78].mxu0  ;;  %v2944_v40 = vpop.f32.mrb[68].mxu1 }
 0x742   : > { %v3153_v48 = vmul.f32 0.35355338, %v2944_v40  ;;  %v10146_v51 = vpop.f32.mrb[79].mxu0  ;;  %v10151_v52 = vpop.f32.mrb[69].mxu1  ;;  %v3164_v25 = vsel %vm1266_vm5, %v3152_v47, -inf }
 0x743   : > { %3165 = vmax.xlane.f32.xlu0 %v3164_v25  ;;  %v2947_v15 = vpop.f32.mrb[70].mxu1  ;;  %v11833_v39 = vpop.permute.xlu1 %3350 }
 0x744   : > { %v10152_v33 = vpop.f32.mrb[71].mxu1  ;;  %v3167_v20 = vsel %vm1266_vm5, %v3153_v48, -inf  ;;  %v11837_v51 = vpop.permute.xlu0 %3398 }
 0x745   : > { %3168 = vmax.xlane.f32.xlu1 %v3167_v20 }
 0x747   : > { %v2994_v63 = vpop.f32.mrb[80].mxu0  ;;  %v11835_v40 = vpop.permute.xlu1 %3446 }
 0x748   : > { %v3154_v21 = vmul.f32 0.35355338, %v2994_v63  ;;  %v10157_v36 = vpop.f32.mrb[81].mxu0 }
 0x749   : > { %v2997_v58 = vpop.f32.mrb[82].mxu0  ;;  %v3044_v27 = vpop.f32.mrb[72].mxu1 }
 0x74a   : > { %v3155_v22 = vmul.f32 0.35355338, %v3044_v27  ;;  %v10158_v13 = vpop.f32.mrb[83].mxu0  ;;  %v10163_v59 = vpop.f32.mrb[73].mxu1  ;;  %v3170_v29 = vsel %vm1266_vm5, %v3154_v21, -inf }
 0x74b   : > { %3171 = vmax.xlane.f32.xlu0 %v3170_v29  ;;  %v3047_v24 = vpop.f32.mrb[74].mxu1 }
 0x74c   : > { %v10164_v42 = vpop.f32.mrb[75].mxu1  ;;  %v3173_v23 = vsel %vm1266_vm5, %v3155_v22, -inf }
 0x74d   : > { %3174 = vmax.xlane.f32.xlu1 %v3173_v23 }
 0x74f   : > { %v3094_v32 = vpop.f32.mrb[84].mxu0 }
 0x750   : > { %v11821_v4 = vmul.f32 0.35355338, %v3094_v32  ;;  %v10169_v12 = vpop.f32.mrb[85].mxu0 }
 0x751   : > { %v3097_v56 = vpop.f32.mrb[86].mxu0  ;;  %v3144_v30 = vpop.f32.mrb[76].mxu1 }
 0x752   : > { %v11823_v6 = vmul.f32 0.35355338, %v3144_v30  ;;  %v10170_v17 = vpop.f32.mrb[87].mxu0  ;;  %v10175_v19 = vpop.f32.mrb[77].mxu1  ;;  %v3176_v9 = vsel %vm1266_vm5, %v11821_v4, -inf }
 0x753   : > { %3177 = vmax.xlane.f32.xlu0 %v3176_v9  ;;  %v3147_v35 = vpop.f32.mrb[78].mxu1 }
 0x754   : > { %v10176_v18 = vpop.f32.mrb[79].mxu1  ;;  %v3179_v8 = vsel %vm1266_vm5, %v11823_v6, -inf }
 0x755   : > { %3180 = vmax.xlane.f32.xlu1 %v3179_v8 }
 0x766   : > { %3542 = vrot.lane.b32.xlu1 %v11360_v0, %s11124_s15 }
 0x769   : > { %3494 = vrot.lane.b32.xlu0 %v11342_v55, %s11124_s15 }
 0x7c8   : > { %v3160_v52 = vpop.xlane.xlu1 %3159 }
 0x7c9   : > { %v3182_v25 = vsub.f32 %v11812_v53, %v3160_v52 }
 0x7ca   : > { %v3163_v15 = vpop.xlane.xlu0 %3162 }
 0x7cb   : > { %v3190_v33 = vmul.f32 1.442695, %v3182_v25  ;;  %v3183_v20 = vsub.f32 %v3151_v16, %v3163_v15 }
 0x7cd   : > { %10876 = vpow2.f32 %v3190_v33  ;;  %v3192_v63 = vmul.f32 1.442695, %v3183_v20 }
 0x7cf   : > { %10878 = vpow2.f32 %v3192_v63 }
 0x7d0   : > { %v3166_v36 = vpop.xlane.xlu0 %3165 }
 0x7d1   : > { %v3184_v58 = vsub.f32 %v3152_v47, %v3166_v36 }
 0x7d2   : > { %v3169_v27 = vpop.xlane.xlu1 %3168 }
 0x7d3   : > { %v3194_v13 = vmul.f32 1.442695, %v3184_v58  ;;  %v3185_v59 = vsub.f32 %v3153_v48, %v3169_v27 }
 0x7d5   : > { %10880 = vpow2.f32 %v3194_v13  ;;  %v3196_v29 = vmul.f32 1.442695, %v3185_v59 }
 0x7d7   : > { %v11840_v24 = vpop.eup %10876  ;;  %10882 = vpow2.f32 %v3196_v29  ;;  %v3404_v29 = vsel %vm1370_vm4, %v11837_v51, 0  ;;  %v3452_v51 = vsel %vm1370_vm4, %v11835_v40, 0 }
 0x7d8   : > { %v3172_v42 = vpop.xlane.xlu0 %3171  ;;  %v3206_v53 = vsel %vm1266_vm5, %v11840_v24, 0.0 }
 0x7d9   : > { %v11844_v23 = vpop.eup %10878  ;;  %v3186_v16 = vsub.f32 %v3154_v21, %v3172_v42  ;;  %3207 = vadd.xlane.f32.xlu0 %v3206_v53 }
 0x7da   : > { %v3175_v32 = vpop.xlane.xlu1 %3174  ;;  %v3209_v47 = vsel %vm1266_vm5, %v11844_v23, 0.0 }
 0x7db   : > { %v3198_v12 = vmul.f32 1.442695, %v3186_v16  ;;  %v3187_v56 = vsub.f32 %v3155_v22, %v3175_v32  ;;  %3210 = vadd.xlane.f32.xlu1 %v3209_v47 }
 0x7dd   : > { %10884 = vpow2.f32 %v3198_v12  ;;  %v3200_v48 = vmul.f32 1.442695, %v3187_v56 }
 0x7df   : > { %v11848_v30 = vpop.eup %10880  ;;  %10886 = vpow2.f32 %v3200_v48 }
 0x7e0   : > { %v3212_v17 = vsel %vm1266_vm5, %v11848_v30, 0.0  ;;  %v3178_v8 = vpop.xlane.xlu0 %3177 }
 0x7e1   : > { %v11852_v19 = vpop.eup %10882  ;;  %3213 = vadd.xlane.f32.xlu0 %v3212_v17  ;;  %v3188_v25 = vsub.f32 %v11821_v4, %v3178_v8 }
 0x7e2   : > { %v3215_v21 = vsel %vm1266_vm5, %v11852_v19, 0.0  ;;  %v3181_v52 = vpop.xlane.xlu1 %3180 }
 0x7e3   : > { %3216 = vadd.xlane.f32.xlu1 %v3215_v21  ;;  %v3189_v15 = vsub.f32 %v11823_v6, %v3181_v52  ;;  %v3202_v33 = vmul.f32 1.442695, %v3188_v25 }
 0x7e5   : > { %v3204_v20 = vmul.f32 1.442695, %v3189_v15  ;;  %10888 = vpow2.f32 %v3202_v33 }
 0x7e7   : > { %v11856_v9 = vpop.eup %10884  ;;  %10890 = vpow2.f32 %v3204_v20 }
 0x7e8   : > { %v3218_v22 = vsel %vm1266_vm5, %v11856_v9, 0.0 }
 0x7e9   : > { %v11860_v35 = vpop.eup %10886  ;;  %3219 = vadd.xlane.f32.xlu0 %v3218_v22 }
 0x7ea   : > { %v3221_v18 = vsel %vm1266_vm5, %v11860_v35, 0.0 }
 0x7eb   : > { %3222 = vadd.xlane.f32.xlu1 %v3221_v18 }
 0x7ef   : > { %v11870_v63 = vpop.eup %10888 }
 0x7f0   : > { %v3224_v58 = vsel %vm1266_vm5, %v11870_v63, 0.0 }
 0x7f1   : > { %v11872_v36 = vpop.eup %10890 }
 0x7f2   : > { %v3227_v27 = vsel %vm1266_vm5, %v11872_v36, 0.0 }
 0x7fc   : > { %3691 = vrot.lane.b32.xlu1 %v11295_v34, %s11125_s16 }
 0x7ff   : > { %3590 = vrot.lane.b32.xlu0 %v11365_v2, %s11124_s15 }
 0x81e   : > { %3225 = vadd.xlane.f32.xlu0 %v3224_v58 }
 0x820   : > { %3228 = vadd.xlane.f32.xlu1 %v3227_v27 }
 0x831   : > { %3689 = vrot.lane.b32.xlu1 %v11318_v46, %s11125_s16  ;;  %v3495_v46 = vpop.permute.xlu0 %3494 }
 0x832   : > { %v3500_v47 = vsel %vm1370_vm4, %v3495_v46, 0 }
 0x834   : > { %3741 = vrot.lane.b32.xlu0 %v11300_v38, %s11125_s16 }
 0x835   : > { %3791 = vrot.lane.b32.xlu1 %v11313_v45, %s11125_s16 }
 0x838   : > { %3739 = vrot.lane.b32.xlu0 %v11327_v49, %s11125_s16  ;;  %v3543_v49 = vpop.permute.xlu1 %3542 }
 0x839   : > { %3789 = vrot.lane.b32.xlu1 %v11340_v54, %s11125_s16 }
 0x83c   : > { %3841 = vrot.lane.b32.xlu0 %v11306_v41, %s11125_s16 }
 0x83d   : > { %3891 = vrot.lane.b32.xlu1 %v11293_v31, %s11125_s16 }
 0x840   : > { %3839 = vrot.lane.b32.xlu0 %v11344_v57, %s11125_s16 }
 0x841   : > { %3889 = vrot.lane.b32.xlu1 %v11363_v1, %s11125_s16 }
 0x844   : > { %3941 = vrot.lane.b32.xlu0 %v11342_v55, %s11125_s16 }
 0x845   : > { %3991 = vrot.lane.b32.xlu1 %v11360_v0, %s11125_s16 }
 0x848   : > { %3939 = vrot.lane.b32.xlu0 %v11368_v5, %s11125_s16 }
 0x849   : > { %3989 = vrot.lane.b32.xlu1 %v11384_v10, %s11125_s16 }
 0x84c   : > { %4041 = vrot.lane.b32.xlu0 %v11365_v2, %s11125_s16 }
 0x84d   : > { %4241 = vrot.lane.b32.xlu1 %v11300_v38, %s11126_s17 }
 0x850   : > { %4039 = vrot.lane.b32.xlu0 %v11386_v11, %s11125_s16 }
 0x854   : > { %4193 = vrot.lane.b32.xlu0 %v11295_v34, %s11126_s17  ;;  %v3356_v34 = vsel %vm1370_vm4, %v11833_v39, 0 }
 0x866   : > { %v3208_v54 = vpop.xlane.xlu0 %3207 }
 0x867   : > { %10892 = vrcp.f32 %v3208_v54 }
 0x868   : > { %v3211_v57 = vpop.xlane.xlu1 %3210 }
 0x869   : > { %10894 = vrcp.f32 %v3211_v57 }
 0x86e   : > { %v3214_v1 = vpop.xlane.xlu0 %3213 }
 0x86f   : > { %10896 = vrcp.f32 %v3214_v1 }
 0x870   : > { %v3217_v5 = vpop.xlane.xlu1 %3216 }
 0x871   : > { %v10893_v10 = vpop.eup %10892  ;;  %10898 = vrcp.f32 %v3217_v5 }
 0x872   : > { %v3238_v4 = vmul.f32 %v10893_v10, %v11840_v24 }
 0x873   : > { %v10895_v38 = vpop.eup %10894 }
 0x874   : > { %v3246_v6 = vpack.c.bf16 %v3238_v4, %v3238_v4  ;;  %v3239_v11 = vmul.f32 %v10895_v38, %v11844_v23 }
 0x876   : > { %10180 = vmatmul.mubr.msk.bf16.vlgmr.msra.gmra.mrb[88].mxu0 %vm1366_vm6, %v3246_v6  ;;  %v3220_v13 = vpop.xlane.xlu0 %3219  ;;  %v3247_v59 = vpack.c.bf16 %v3239_v11, %v3239_v11 }
 0x877   : > { %10190 = vmatpush3.bf16.msra.mxu0 %v3356_v34  ;;  %10900 = vrcp.f32 %v3220_v13  ;;  %10191 = vmatprep.mubr.msk.bf16.mxu0 %vm11119_vm2, %v11118_v26 }
 0x878   : > { %10186 = vmatmul.mubr.msk.bf16.vlgmr.msra.gmra.mrb[80].mxu1 %vm1366_vm6, %v3247_v59  ;;  %v3223_v24 = vpop.xlane.xlu1 %3222  ;;  %10201 = vmatprep.subr.bf16.mxu0 %v11118_v26 }
 0x879   : > { %v10897_v42 = vpop.eup %10896  ;;  %10196 = vmatpush3.bf16.msra.mxu1 %v3404_v29  ;;  %10902 = vrcp.f32 %v3223_v24  ;;  %10197 = vmatprep.mubr.msk.bf16.mxu1 %vm11119_vm2, %v11118_v26 }
 0x87a   : > { %v3240_v39 = vmul.f32 %v10897_v42, %v11848_v30  ;;  %10207 = vmatprep.subr.bf16.mxu1 %v11118_v26  ;;  %v3591_v17 = vpop.permute.xlu0 %3590 }
 0x87b   : > { %v10899_v53 = vpop.eup %10898  ;;  %v3596_v22 = vsel %vm1370_vm4, %v3591_v17, 0 }
 0x87c   : > { %v3248_v23 = vpack.c.bf16 %v3240_v39, %v3240_v39  ;;  %v3241_v16 = vmul.f32 %v10899_v53, %v11852_v19  ;;  %v3548_v19 = vsel %vm1370_vm4, %v3543_v49, 0 }
 0x87e   : > { %10192 = vmatmul.mubr.msk.bf16.vlgmr.msra.gmra.mrb[92].mxu0 %vm1366_vm6, %v3248_v23  ;;  %v3249_v32 = vpack.c.bf16 %v3241_v16, %v3241_v16 }
 0x87f   : > { %10202 = vmatpush3.bf16.msra.mxu0 %v3452_v51  ;;  %10203 = vmatprep.mubr.msk.bf16.mxu0 %vm11119_vm2, %v11118_v26 }
 0x880   : > { %10198 = vmatmul.mubr.msk.bf16.vlgmr.msra.gmra.mrb[84].mxu1 %vm1366_vm6, %v3249_v32  ;;  %10213 = vmatprep.subr.bf16.mxu0 %v11118_v26 }
 0x881   : > { %v10901_v12 = vpop.eup %10900  ;;  %10208 = vmatpush3.bf16.msra.mxu1 %v3500_v47  ;;  %10209 = vmatprep.mubr.msk.bf16.mxu1 %vm11119_vm2, %v11118_v26 }
 0x882   : > { %v3242_v40 = vmul.f32 %v10901_v12, %v11856_v9  ;;  %10219 = vmatprep.subr.bf16.mxu1 %v11118_v26  ;;  %v3692_v9 = vpop.permute.xlu1 %3691 }
 0x883   : > { %v10903_v56 = vpop.eup %10902  ;;  %v3697_v54 = vsel %vm889_vm3, %v3692_v9, 0 }
 0x884   : > { %v3250_v48 = vpack.c.bf16 %v3242_v40, %v3242_v40  ;;  %v3243_v30 = vmul.f32 %v10903_v56, %v11860_v35 }
 0x886   : > { %10204 = vmatmul.mubr.msk.bf16.vlgmr.msra.gmra.mrb[96].mxu0 %vm1366_vm6, %v3250_v48  ;;  %v3251_v21 = vpack.c.bf16 %v3243_v30, %v3243_v30 }
 0x887   : > { %10214 = vmatpush3.bf16.msra.mxu0 %v3548_v19  ;;  %10215 = vmatprep.mubr.msk.bf16.mxu0 %vm11119_vm2, %v11118_v26 }
 0x888   : > { %10210 = vmatmul.mubr.msk.bf16.vlgmr.msra.gmra.mrb[88].mxu1 %vm1366_vm6, %v3251_v21  ;;  %10225 = vmatprep.subr.bf16.mxu0 %v11118_v26 }
 0x889   : > { %10220 = vmatpush3.bf16.msra.mxu1 %v3596_v22  ;;  %10221 = vmatprep.mubr.msk.bf16.mxu1 %vm11119_vm2, %v11118_v26 }
 0x88a   : > { %10231 = vmatprep.subr.bf16.mxu1 %v11118_v26 }
 0x8ab   : > { %v3226_v35 = vpop.xlane.xlu0 %3225 }
 0x8ac   : > { %10904 = vrcp.f32 %v3226_v35 }
 0x8ad   : > { %v3229_v18 = vpop.xlane.xlu1 %3228 }
 0x8ae   : > { %10906 = vrcp.f32 %v3229_v18 }
 0x8af   : > { %v3742_v8 = vpop.permute.xlu0 %3741 }
 0x8b0   : > { %v3747_v10 = vsel %vm889_vm3, %v3742_v8, 0 }
 0x8b1   : > { %v3690_v52 = vpop.permute.xlu1 %3689 }
 0x8b3   : > { %v3740_v25 = vpop.permute.xlu0 %3739 }
 0x8b5   : > { %v3792_v33 = vpop.permute.xlu1 %3791 }
 0x8b6   : > { %v10905_v15 = vpop.eup %10904  ;;  %v3797_v4 = vsel %vm889_vm3, %v3792_v33, 0 }
 0x8b7   : > { %v3842_v20 = vpop.permute.xlu0 %3841  ;;  %v3244_v58 = vmul.f32 %v10905_v15, %v11870_v63 }
 0x8b8   : > { %v10907_v27 = vpop.eup %10906  ;;  %v3847_v38 = vsel %vm889_vm3, %v3842_v20, 0 }
 0x8b9   : > { %v3252_v46 = vpack.c.bf16 %v3244_v58, %v3244_v58  ;;  %v3245_v49 = vmul.f32 %v10907_v27, %v11872_v36  ;;  %v3790_v5 = vpop.permute.xlu1 %3789 }
 0x8bb   : > { %v3840_v57 = vpop.permute.xlu0 %3839  ;;  %10216 = vmatmul.mubr.msk.bf16.vlgmr.msra.gmra.mrb[100].mxu0 %vm1366_vm6, %v3252_v46  ;;  %v3253_v1 = vpack.c.bf16 %v3245_v49, %v3245_v49 }
 0x8bc   : > { %10226 = vmatpush3.bf16.xpose.msra.mxu0 %v3697_v54  ;;  %10227 = vmatprep.mubr.msk.bf16.mxu0 %vm11119_vm2, %v11118_v26 }
 0x8bd   : > { %10222 = vmatmul.mubr.msk.bf16.vlgmr.msra.gmra.mrb[92].mxu1 %vm1366_vm6, %v3253_v1  ;;  %10237 = vmatprep.subr.bf16.mxu0 %v11118_v26  ;;  %v3892_v36 = vpop.permute.xlu1 %3891 }
 0x8be   : > { %10232 = vmatpush3.bf16.xpose.msra.mxu1 %v3747_v10  ;;  %10233 = vmatprep.mubr.msk.bf16.mxu1 %vm11119_vm2, %v11118_v26  ;;  %v3897_v34 = vsel %vm889_vm3, %v3892_v36, 0 }
 0x8bf   : > { %10243 = vmatprep.subr.bf16.mxu1 %v11118_v26  ;;  %v3942_v63 = vpop.permute.xlu0 %3941 }
 0x8c0   : > { %v3947_v59 = vsel %vm889_vm3, %v3942_v63, 0 }
 0x8c1   : > { %v3890_v11 = vpop.permute.xlu1 %3889 }
 0x8c3   : > { %10228 = vmatmul.mubr.msk.bf16.vlgmr.msra.gmra.mrb[104].mxu0 %vm889_vm3, %v3690_v52  ;;  %v3940_v6 = vpop.permute.xlu0 %3939 }
 0x8c4   : > { %10238 = vmatpush3.bf16.xpose.msra.mxu0 %v3797_v4  ;;  %10239 = vmatprep.mubr.msk.bf16.mxu0 %vm11119_vm2, %v11118_v26 }
 0x8c5   : > { %10234 = vmatmul.mubr.msk.bf16.vlgmr.msra.gmra.mrb[96].mxu1 %vm889_vm3, %v3740_v25  ;;  %10249 = vmatprep.subr.bf16.mxu0 %v11118_v26  ;;  %v3992_v29 = vpop.permute.xlu1 %3991 }
 0x8c6   : > { %10244 = vmatpush3.bf16.xpose.msra.mxu1 %v3847_v38  ;;  %10245 = vmatprep.mubr.msk.bf16.mxu1 %vm11119_vm2, %v11118_v26  ;;  %v3997_v42 = vsel %vm889_vm3, %v3992_v29, 0 }
 0x8c7   : > { %10255 = vmatprep.subr.bf16.mxu1 %v11118_v26  ;;  %v4042_v13 = vpop.permute.xlu0 %4041 }
 0x8c8   : > { %v4047_v53 = vsel %vm889_vm3, %v4042_v13, 0 }
 0x8c9   : > { %v3990_v39 = vpop.permute.xlu1 %3989 }
 0x8cb   : > { %10240 = vmatmul.mubr.msk.bf16.vlgmr.msra.gmra.mrb[108].mxu0 %vm889_vm3, %v3790_v5  ;;  %v4040_v24 = vpop.permute.xlu0 %4039 }
 0x8cc   : > { %10250 = vmatpush3.bf16.xpose.msra.mxu0 %v3897_v34  ;;  %10251 = vmatprep.mubr.msk.bf16.mxu0 %vm11119_vm2, %v11118_v26 }
 0x8cd   : > { %10246 = vmatmul.mubr.msk.bf16.vlgmr.msra.gmra.mrb[100].mxu1 %vm889_vm3, %v3840_v57  ;;  %10261 = vmatprep.subr.bf16.mxu0 %v11118_v26  ;;  %v4242_v16 = vpop.permute.xlu1 %4241 }
 0x8ce   : > { %10256 = vmatpush3.bf16.xpose.msra.mxu1 %v3947_v59  ;;  %10257 = vmatprep.mubr.msk.bf16.mxu1 %vm11119_vm2, %v11118_v26  ;;  %v4247_v32 = vsel %vm1370_vm4, %v4242_v16, 0 }
 0x8cf   : > { %10267 = vmatprep.subr.bf16.mxu1 %v11118_v26  ;;  %v4194_v23 = vpop.permute.xlu0 %4193 }
 0x8d0   : > { %v4199_v51 = vsel %vm1370_vm4, %v4194_v23, 0 }
 0x8d3   : > { %10252 = vmatmul.mubr.msk.bf16.vlgmr.msra.gmra.mrb[112].mxu0 %vm889_vm3, %v3890_v11 }
 0x8d4   : > { %10262 = vmatpush3.bf16.xpose.msra.mxu0 %v3997_v42  ;;  %10263 = vmatprep.mubr.msk.bf16.mxu0 %vm11119_vm2, %v11118_v26 }
 0x8d5   : > { %10258 = vmatmul.mubr.msk.bf16.vlgmr.msra.gmra.mrb[104].mxu1 %vm889_vm3, %v3940_v6  ;;  %10273 = vmatprep.subr.bf16.mxu0 %v11118_v26 }
 0x8d6   : > { %10268 = vmatpush3.bf16.xpose.msra.mxu1 %v4047_v53  ;;  %10269 = vmatprep.mubr.msk.bf16.mxu1 %vm11119_vm2, %v11118_v26 }
 0x8d7   : > { %10279 = vmatprep.subr.bf16.mxu1 %v11118_v26 }
 0x8db   : > { %10264 = vmatmul.mubr.msk.bf16.vlgmr.msra.gmra.mrb[116].mxu0 %vm889_vm3, %v3990_v39 }
 0x8dc   : > { %10274 = vmatpush3.bf16.msra.mxu0 %v4199_v51  ;;  %10275 = vmatprep.mubr.msk.bf16.mxu0 %vm11119_vm2, %v11118_v26 }
 0x8dd   : > { %10270 = vmatmul.mubr.msk.bf16.vlgmr.msra.gmra.mrb[108].mxu1 %vm889_vm3, %v4040_v24  ;;  %10285 = vmatprep.subr.bf16.mxu0 %v11118_v26 }
 0x8de   : > { %10280 = vmatpush3.bf16.msra.mxu1 %v4247_v32  ;;  %10281 = vmatprep.mubr.msk.bf16.mxu1 %vm11119_vm2, %v11118_v26 }
 0x8df   : > { %10291 = vmatprep.subr.bf16.mxu1 %v11118_v26 }
 0x949   : > { %v3296_v47 = vpop.f32.mrb[88].mxu0 }
 0x94a   : > { %v10181_v12 = vpop.f32.mrb[89].mxu0 }
 0x94b   : > { %v3299_v40 = vpop.f32.mrb[90].mxu0  ;;  %v3344_v56 = vpop.f32.mrb[80].mxu1 }
 0x94c   : > { %v3646_v48 = vcombine.low %v3296_v47, %v3344_v56  ;;  %v10182_v30 = vpop.f32.mrb[91].mxu0  ;;  %v10187_v17 = vpop.f32.mrb[81].mxu1 }
 0x94d   : > { %v3347_v19 = vpop.f32.mrb[82].mxu1 }
 0x94e   : > { %v10188_v21 = vpop.f32.mrb[83].mxu1  ;;  %v12004_v33 = vrot.slane %v3646_v48, %v11291_v28 }
 0x951   : > { %v3392_v22 = vpop.f32.mrb[92].mxu0 }
 0x952   : > { %v10193_v9 = vpop.f32.mrb[93].mxu0 }
 0x953   : > { %v3395_v35 = vpop.f32.mrb[94].mxu0  ;;  %v3440_v18 = vpop.f32.mrb[84].mxu1 }
 0x954   : > { %v3647_v8 = vcombine.low %v3392_v22, %v3440_v18  ;;  %v10194_v52 = vpop.f32.mrb[95].mxu0  ;;  %v10199_v25 = vpop.f32.mrb[85].mxu1 }
 0x955   : > { %v3443_v15 = vpop.f32.mrb[86].mxu1 }
 0x956   : > { %v12007_v20 = vrot.slane %v3647_v8, %v11291_v28  ;;  %v10200_v58 = vpop.f32.mrb[87].mxu1 }
 0x958   : > { %v3662_v27 = vcombine.low %v12004_v33, %v12007_v20 }
 0x959   : > { %v3488_v46 = vpop.f32.mrb[96].mxu0 }
 0x95a   : > { %v10205_v49 = vpop.f32.mrb[97].mxu0 }
 0x95b   : > { %v3491_v54 = vpop.f32.mrb[98].mxu0  ;;  %v3536_v57 = vpop.f32.mrb[88].mxu1 }
 0x95c   : > { %v3663_v1 = vcombine.low %v3488_v46, %v3536_v57  ;;  %v10206_v5 = vpop.f32.mrb[99].mxu0  ;;  %v10211_v10 = vpop.f32.mrb[89].mxu1 }
 0x95d   : > { %v3539_v63 = vpop.f32.mrb[90].mxu1 }
 0x95e   : > { %v10212_v36 = vpop.f32.mrb[91].mxu1  ;;  %v12012_v24 = vrot.slane %v3663_v1, %v11291_v28 }
 0x98e   : > { %v3584_v4 = vpop.f32.mrb[100].mxu0 }
 0x98f   : > { %v10217_v38 = vpop.f32.mrb[101].mxu0 }
 0x990   : > { %v3587_v6 = vpop.f32.mrb[102].mxu0  ;;  %v3632_v11 = vpop.f32.mrb[92].mxu1 }
 0x991   : > { %v3664_v34 = vcombine.low %v3584_v4, %v3632_v11  ;;  %v10218_v13 = vpop.f32.mrb[103].mxu0  ;;  %v10223_v59 = vpop.f32.mrb[93].mxu1 }
 0x992   : > { %v3635_v29 = vpop.f32.mrb[94].mxu1 }
 0x993   : > { %v12015_v42 = vrot.slane %v3664_v34, %v11291_v28  ;;  %v10224_v39 = vpop.f32.mrb[95].mxu1 }
 0x995   : > { %v3679_v53 = vcombine.low %v12012_v24, %v12015_v42 }
 0x996   : > { %v3733_v23 = vpop.f32.mrb[104].mxu0 }
 0x997   : > { %v4089_v16 = vmul.f32 0.35355338, %v3733_v23  ;;  %v10229_v51 = vpop.f32.mrb[105].mxu0 }
 0x998   : > { %v3736_v32 = vpop.f32.mrb[106].mxu0  ;;  %v3783_v47 = vpop.f32.mrb[96].mxu1 }
 0x999   : > { %v4090_v12 = vmul.f32 0.35355338, %v3783_v47  ;;  %v10230_v40 = vpop.f32.mrb[107].mxu0  ;;  %v10235_v56 = vpop.f32.mrb[97].mxu1  ;;  %v4097_v48 = vsel %vm1266_vm5, %v4089_v16, -inf }
 0x99a   : > { %4098 = vmax.xlane.f32.xlu1 %v4097_v48  ;;  %v3786_v30 = vpop.f32.mrb[98].mxu1 }
 0x99b   : > { %v10236_v17 = vpop.f32.mrb[99].mxu1  ;;  %v4100_v19 = vsel %vm1266_vm5, %v4090_v12, -inf }
 0x99c   : > { %4101 = vmax.xlane.f32.xlu0 %v4100_v19 }
 0x99e   : > { %v3833_v21 = vpop.f32.mrb[108].mxu0 }
 0x99f   : > { %v4091_v22 = vmul.f32 0.35355338, %v3833_v21  ;;  %v10241_v9 = vpop.f32.mrb[109].mxu0 }
 0x9a0   : > { %v3836_v35 = vpop.f32.mrb[110].mxu0  ;;  %v3883_v18 = vpop.f32.mrb[100].mxu1 }
 0x9a1   : > { %v12021_v8 = vmul.f32 0.35355338, %v3883_v18  ;;  %v10242_v52 = vpop.f32.mrb[111].mxu0  ;;  %v10247_v25 = vpop.f32.mrb[101].mxu1  ;;  %v4103_v15 = vsel %vm1266_vm5, %v4091_v22, -inf }
 0x9a2   : > { %4104 = vmax.xlane.f32.xlu0 %v4103_v15  ;;  %v3886_v58 = vpop.f32.mrb[102].mxu1 }
 0x9a3   : > { %v10248_v46 = vpop.f32.mrb[103].mxu1  ;;  %v4106_v49 = vsel %vm1266_vm5, %v12021_v8, -inf }
 0x9a4   : > { %4107 = vmax.xlane.f32.xlu1 %v4106_v49 }
 0x9a6   : > { %v3933_v54 = vpop.f32.mrb[112].mxu0 }
 0x9a7   : > { %v12026_v57 = vmul.f32 0.35355338, %v3933_v54  ;;  %v10253_v1 = vpop.f32.mrb[113].mxu0 }
 0x9a8   : > { %v3936_v5 = vpop.f32.mrb[114].mxu0  ;;  %v3983_v10 = vpop.f32.mrb[104].mxu1 }
 0x9a9   : > { %v4094_v63 = vmul.f32 0.35355338, %v3983_v10  ;;  %v10254_v36 = vpop.f32.mrb[115].mxu0  ;;  %v10259_v4 = vpop.f32.mrb[105].mxu1  ;;  %v4109_v38 = vsel %vm1266_vm5, %v12026_v57, -inf }
 0x9aa   : > { %4110 = vmax.xlane.f32.xlu0 %v4109_v38  ;;  %v3986_v6 = vpop.f32.mrb[106].mxu1 }
 0x9ab   : > { %v10260_v11 = vpop.f32.mrb[107].mxu1  ;;  %v4112_v34 = vsel %vm1266_vm5, %v4094_v63, -inf }
 0x9ac   : > { %4113 = vmax.xlane.f32.xlu1 %v4112_v34 }
 0x9ae   : > { %v4033_v13 = vpop.f32.mrb[116].mxu0 }
 0x9af   : > { %v4095_v59 = vmul.f32 0.35355338, %v4033_v13  ;;  %v10265_v29 = vpop.f32.mrb[117].mxu0 }
 0x9b0   : > { %v4036_v39 = vpop.f32.mrb[118].mxu0  ;;  %v4083_v23 = vpop.f32.mrb[108].mxu1 }
 0x9b1   : > { %v4096_v51 = vmul.f32 0.35355338, %v4083_v23  ;;  %v10266_v32 = vpop.f32.mrb[119].mxu0  ;;  %v10271_v47 = vpop.f32.mrb[109].mxu1  ;;  %v4115_v40 = vsel %vm1266_vm5, %v4095_v59, -inf }
 0x9b2   : > { %4116 = vmax.xlane.f32.xlu0 %v4115_v40  ;;  %v4086_v56 = vpop.f32.mrb[110].mxu1 }
 0x9b3   : > { %v10272_v48 = vpop.f32.mrb[111].mxu1  ;;  %v4118_v30 = vsel %vm1266_vm5, %v4096_v51, -inf }
 0x9b4   : > { %4119 = vmax.xlane.f32.xlu1 %v4118_v30 }
 0x9c5   : > { %4289 = vrot.lane.b32.xlu1 %v11313_v45, %s11126_s17 }
 0x9c8   : > { %4337 = vrot.lane.b32.xlu0 %v11306_v41, %s11126_s17 }
 0xa27   : > { %v4099_v17 = vpop.xlane.xlu1 %4098 }
 0xa28   : > { %v4121_v19 = vsub.f32 %v4089_v16, %v4099_v17 }
 0xa29   : > { %v4102_v21 = vpop.xlane.xlu0 %4101 }
 0xa2a   : > { %v4129_v9 = vmul.f32 1.442695, %v4121_v19  ;;  %v4122_v35 = vsub.f32 %v4090_v12, %v4102_v21 }
 0xa2c   : > { %10908 = vpow2.f32 %v4129_v9  ;;  %v4131_v18 = vmul.f32 1.442695, %v4122_v35 }
 0xa2e   : > { %10910 = vpow2.f32 %v4131_v18 }
 0xa2f   : > { %v4105_v52 = vpop.xlane.xlu0 %4104 }
 0xa30   : > { %v4123_v25 = vsub.f32 %v4091_v22, %v4105_v52 }
 0xa31   : > { %v4108_v22 = vpop.xlane.xlu1 %4107 }
 0xa32   : > { %v4133_v15 = vmul.f32 1.442695, %v4123_v25  ;;  %v4124_v49 = vsub.f32 %v12021_v8, %v4108_v22 }
 0xa34   : > { %10912 = vpow2.f32 %v4133_v15  ;;  %v4135_v5 = vmul.f32 1.442695, %v4124_v49 }
 0xa36   : > { %v12037_v58 = vpop.eup %10908  ;;  %10914 = vpow2.f32 %v4135_v5 }
 0xa37   : > { %v4145_v45 = vsel %vm1266_vm5, %v12037_v58, 0.0  ;;  %v4111_v1 = vpop.xlane.xlu0 %4110 }
 0xa38   : > { %v12041_v46 = vpop.eup %10910  ;;  %4146 = vadd.xlane.f32.xlu0 %v4145_v45  ;;  %v4125_v4 = vsub.f32 %v12026_v57, %v4111_v1 }
 0xa39   : > { %v4148_v41 = vsel %vm1266_vm5, %v12041_v46, 0.0  ;;  %v4114_v54 = vpop.xlane.xlu1 %4113 }
 0xa3a   : > { %4149 = vadd.xlane.f32.xlu1 %v4148_v41  ;;  %v4126_v10 = vsub.f32 %v4094_v63, %v4114_v54  ;;  %v4137_v34 = vmul.f32 1.442695, %v4125_v4 }
 0xa3c   : > { %v4139_v6 = vmul.f32 1.442695, %v4126_v10 }
 0xa3e   : > { %v12045_v16 = vpop.eup %10912  ;;  %10916 = vpow2.f32 %v4139_v6 }
 0xa3f   : > { %v4151_v12 = vsel %vm1266_vm5, %v12045_v16, 0.0  ;;  %v4117_v38 = vpop.xlane.xlu0 %4116  ;;  %10918 = vpow2.f32 %v4137_v34 }
 0xa40   : > { %4152 = vadd.xlane.f32.xlu0 %v4151_v12  ;;  %v4127_v13 = vsub.f32 %v4095_v59, %v4117_v38 }
 0xa41   : > { %v4120_v36 = vpop.xlane.xlu1 %4119 }
 0xa42   : > { %v4128_v11 = vsub.f32 %v4096_v51, %v4120_v36  ;;  %v4141_v29 = vmul.f32 1.442695, %v4127_v13  ;;  %v12127_v36 = vld [vmem:[%s13328_s2 + $0x4] ss:$12 sps:$4 sm:$0xff]  }
 0xa45   : > { %v4290_v43 = vpop.permute.xlu1 %4289 }
 0xa46   : > { %v4295_v37 = vsel %vm1370_vm4, %v4290_v43, 0 }
 0xa4b   : > { %4385 = vrot.lane.b32.xlu1 %v11293_v31, %s11126_s17  ;;  %v4143_v31 = vmul.f32 1.442695, %v4128_v11 }
 0xa4d   : > { %10920 = vpow2.f32 %v4143_v31 }
 0xa4e   : > { %10922 = vpow2.f32 %v4141_v29 }
 0xa56   : > { %4433 = vrot.lane.b32.xlu0 %v11342_v55, %s11126_s17  ;;  %v12055_v55 = vpop.eup %10914 }
 0xa57   : > { %v4154_v8 = vsel %vm1266_vm5, %v12055_v55, 0.0  ;;  %v12059_v63 = vpop.eup %10916 }
 0xa58   : > { %v12061_v57 = vpop.eup %10918  ;;  %v4160_v39 = vsel %vm1266_vm5, %v12059_v63, 0.0 }
 0xa59   : > { %v12065_v59 = vpop.eup %10920  ;;  %v4157_v23 = vsel %vm1266_vm5, %v12061_v57, 0.0 }
 0xa5a   : > { %v12069_v51 = vpop.eup %10922  ;;  %v4166_v32 = vsel %vm1266_vm5, %v12065_v59, 0.0 }
 0xa5b   : > { %v4163_v47 = vsel %vm1266_vm5, %v12069_v51, 0.0 }
 0xa6f   : > { %4155 = vadd.xlane.f32.xlu1 %v4154_v8 }
 0xa73   : > { %4161 = vadd.xlane.f32.xlu1 %v4160_v39 }
 0xa75   : > { %4158 = vadd.xlane.f32.xlu0 %v4157_v23 }
 0xa77   : > { %4167 = vadd.xlane.f32.xlu1 %v4166_v32 }
 0xa79   : > { %4164 = vadd.xlane.f32.xlu0 %v4163_v47 }
 0xa88   : > { %4481 = vrot.lane.b32.xlu1 %v11360_v0, %s11126_s17  ;;  %v4338_v0 = vpop.permute.xlu0 %4337 }
 0xa89   : > { %v4343_v24 = vsel %vm1370_vm4, %v4338_v0, 0 }
 0xa8c   : > { %2741 = vrot.lane.b32.xlu1 %v2723_v50, %s11127_s21 }
 0xa8f   : > { %4529 = vrot.lane.b32.xlu0 %v11365_v2, %s11126_s17 }
 0xa90   : > { %3680 = vrot.lane.b32.xlu1 %v3662_v27, %s11128_s22 }
 0xa93   : > { %2743 = vrot.lane.b32.xlu0 %v2740_v62, %s11127_s21 }
 0xa97   : > { %3682 = vrot.lane.b32.xlu0 %v3679_v53, %s11128_s22 }
 0xac5   : > { %v4147_v44 = vpop.xlane.xlu0 %4146 }
 0xac6   : > { %10924 = vrcp.f32 %v4147_v44 }
 0xac7   : > { %v4150_v2 = vpop.xlane.xlu1 %4149 }
 0xac8   : > { %10926 = vrcp.f32 %v4150_v2 }
 0xacb   : > { %v4386_v56 = vpop.permute.xlu1 %4385 }
 0xacc   : > { %v4391_v30 = vsel %vm1370_vm4, %v4386_v56, 0 }
 0xacd   : > { %v4153_v50 = vpop.xlane.xlu0 %4152 }
 0xace   : > { %10928 = vrcp.f32 %v4153_v50 }
 0xad0   : > { %v10925_v33 = vpop.eup %10924 }
 0xad1   : > { %v4177_v20 = vmul.f32 %v10925_v33, %v12037_v58  ;;  %v4434_v19 = vpop.permute.xlu0 %4433 }
 0xad2   : > { %v10927_v27 = vpop.eup %10926  ;;  %v4439_v41 = vsel %vm1370_vm4, %v4434_v19, 0 }
 0xad3   : > { %v4185_v40 = vpack.c.bf16 %v4177_v20, %v4177_v20  ;;  %v4178_v61 = vmul.f32 %v10927_v27, %v12041_v46 }
 0xad5   : > { %10276 = vmatmul.mubr.msk.bf16.vlgmr.msra.gmra.mrb[120].mxu0 %vm1366_vm6, %v4185_v40  ;;  %v4186_v62 = vpack.c.bf16 %v4178_v61, %v4178_v61 }
 0xad6   : > { %10286 = vmatpush3.bf16.msra.mxu0 %v4295_v37  ;;  %10287 = vmatprep.mubr.msk.bf16.mxu0 %vm11119_vm2, %v11118_v26 }
 0xad7   : > { %10282 = vmatmul.mubr.msk.bf16.vlgmr.msra.gmra.mrb[112].mxu1 %vm1366_vm6, %v4186_v62  ;;  %10297 = vmatprep.subr.bf16.mxu0 %v11118_v26 }
 0xad8   : > { %v10929_v42 = vpop.eup %10928  ;;  %10292 = vmatpush3.bf16.msra.mxu1 %v4343_v24  ;;  %10293 = vmatprep.mubr.msk.bf16.mxu1 %vm11119_vm2, %v11118_v26 }
 0xad9   : > { %v4179_v53 = vmul.f32 %v10929_v42, %v12045_v16  ;;  %10303 = vmatprep.subr.bf16.mxu1 %v11118_v26 }
 0xadb   : > { %v4187_v48 = vpack.c.bf16 %v4179_v53, %v4179_v53 }
 0xadd   : > { %10288 = vmatmul.mubr.msk.bf16.vlgmr.msra.gmra.mrb[124].mxu0 %vm1366_vm6, %v4187_v48 }
 0xade   : > { %10298 = vmatpush3.bf16.msra.mxu0 %v4391_v30  ;;  %10299 = vmatprep.mubr.msk.bf16.mxu0 %vm11119_vm2, %v11118_v26 }
 0xadf   : > { %10309 = vmatprep.subr.bf16.mxu0 %v11118_v26 }
 0xafc   : > { %v4156_v17 = vpop.xlane.xlu1 %4155 }
 0xafd   : > { %10930 = vrcp.f32 %v4156_v17 }
 0xb00   : > { %v4162_v21 = vpop.xlane.xlu1 %4161 }
 0xb01   : > { %10932 = vrcp.f32 %v4162_v21  ;;  %v11092_v21 = vld [vmem:[%s13328_s2] ss:$12 sps:$4 sm:$0xff]  }
 0xb02   : > { %v4159_v9 = vpop.xlane.xlu0 %4158 }
 0xb03   : > { %10934 = vrcp.f32 %v4159_v9  ;;  %v4687_v9 = vsub.s32 2, %v11172_v3 }
 0xb04   : > { %v4168_v35 = vpop.xlane.xlu1 %4167 }
 0xb06   : > { %v4165_v18 = vpop.xlane.xlu0 %4164 }
 0xb07   : > { %v10931_v52 = vpop.eup %10930  ;;  %10936 = vrcp.f32 %v4165_v18 }
 0xb08   : > { %v4482_v25 = vpop.permute.xlu1 %4481  ;;  %v4180_v15 = vmul.f32 %v10931_v52, %v12055_v55  ;;  %10938 = vrcp.f32 %v4168_v35  ;;  %v12145_v55 = vld [vmem:[%s13328_s2 + $0x1c] ss:$12 sps:$4 sm:$0xff]  }
 0xb09   : > { %v4487_v4 = vsel %vm1370_vm4, %v4482_v25, 0 }
 0xb0a   : > { %v4530_v58 = vpop.permute.xlu0 %4529  ;;  %v4188_v45 = vpack.c.bf16 %v4180_v15, %v4180_v15 }
 0xb0b   : > { %v10933_v46 = vpop.eup %10932  ;;  %v4535_v34 = vsel %vm1370_vm4, %v4530_v58, 0 }
 0xb0c   : > { %10294 = vmatmul.mubr.msk.bf16.vlgmr.msra.gmra.mrb[116].mxu1 %vm1366_vm6, %v4188_v45  ;;  %v2742_v16 = vpop.permute.xlu1 %2741  ;;  %v4182_v54 = vmul.f32 %v10933_v46, %v12059_v63  ;;  %v11093_v46 = vld [vmem:[%s13330_s4] sm:$0xff] }
 0xb0d   : > { %v10935_v12 = vpop.eup %10934  ;;  %10304 = vmatpush3.bf16.msra.mxu1 %v4439_v41  ;;  %2748 = vst.msk [vmem:[#allocation3] sm:$0xff] %vm2747_vm7, %v2742_v16  ;;  %10305 = vmatprep.mubr.msk.bf16.mxu1 %vm11119_vm2, %v11118_v26  ;;  %v4688_v41 = vrot.slane %v11093_v46, %v4687_v9 }
 0xb0e   : > { %v2744_v22 = vpop.permute.xlu0 %2743  ;;  %v4181_v49 = vmul.f32 %v10935_v12, %v12061_v57  ;;  %10315 = vmatprep.subr.bf16.mxu1 %v11118_v26  ;;  %v4190_v6 = vpack.c.bf16 %v4182_v54, %v4182_v54 }
 0xb0f   : > { %2749 = vst.msk [vmem:[#allocation3 + $0x8] sm:$0xff] %vm2747_vm7, %v2744_v22 }
 0xb10   : > { %v3681_v1 = vpop.permute.xlu1 %3680  ;;  %v4189_v5 = vpack.c.bf16 %v4181_v49, %v4181_v49 }
 0xb11   : > { %v10937_v10 = vpop.eup %10936  ;;  %3687 = vst.msk [vmem:[#allocation3] sm:$0xff] %vm3686_vm8, %v3681_v1 }
 0xb12   : > { %v3683_v38 = vpop.permute.xlu0 %3682  ;;  %10300 = vmatmul.mubr.msk.bf16.vlgmr.msra.gmra.mrb[128].mxu0 %vm1366_vm6, %v4189_v5  ;;  %v10939_v11 = vpop.eup %10938  ;;  %v4183_v13 = vmul.f32 %v10937_v10, %v12069_v51 }
 0xb13   : > { %3688 = vst.msk [vmem:[#allocation3 + $0x8] sm:$0xff] %vm3686_vm8, %v3683_v38  ;;  %10310 = vmatpush3.bf16.msra.mxu0 %v4487_v4  ;;  %10311 = vmatprep.mubr.msk.bf16.mxu0 %vm11119_vm2, %v11118_v26  ;;  %v4184_v31 = vmul.f32 %v10939_v11, %v12065_v59  ;;  %v11094_v11 = vld [vmem:[%s13328_s2 + $0x18] ss:$12 sps:$4 sm:$0xff]  }
 0xb14   : > { %10306 = vmatmul.mubr.msk.bf16.vlgmr.msra.gmra.mrb[120].mxu1 %vm1366_vm6, %v4190_v6  ;;  %10321 = vmatprep.subr.bf16.mxu0 %v11118_v26  ;;  %v4191_v29 = vpack.c.bf16 %v4183_v13, %v4183_v13 }
 0xb15   : > { %10316 = vmatpush3.bf16.msra.mxu1 %v4535_v34  ;;  %10317 = vmatprep.mubr.msk.bf16.mxu1 %vm11119_vm2, %v11118_v26  ;;  %v4192_v8 = vpack.c.bf16 %v4184_v31, %v4184_v31 }
 0xb16   : > { %10329 = vmatprep.subr.bf16.mxu1 %v12127_v36 }
 0xb1a   : > { %10312 = vmatmul.mubr.msk.bf16.vlgmr.msra.gmra.mrb[132].mxu0 %vm1366_vm6, %v4191_v29 }
 0xb1b   : > { %10325 = vmatprep.mubr.msk.bf16.mxu0 %vm11119_vm2, %v11118_v26 }
 0xb1c   : > { %10318 = vmatmul.mubr.msk.bf16.vlgmr.msra.gmra.mrb[124].mxu1 %vm1366_vm6, %v4192_v8 }
 0xb1d   : > { %10330 = vmatpush3.bf16.msra.mxu1 %v12127_v36  ;;  %10333 = vmatprep.mubr.msk.bf16.mxu1 %vm689_vm1, %v11271_v60 }
 0xb1e   : > { %10331 = vmatprep.subr.bf16.mxu1 %v12145_v55 }
 0xb21   : > { %10332 = vmatpush3.bf16.msra.mxu1 %v12145_v55 }
 0xb22   : > { %10345 = vmatprep.subr.bf16.mxu1 %v11118_v26 }
 0xb24   : > { %10334 = vmatmul.mubr.msk.bf16.vlgmr.msra.gmra.mrb[128].mxu1 %vm689_vm1, %v11283_v14 }
 0xb25   : > { %10347 = vmatprep.mubr.msk.bf16.mxu1 %vm11119_vm2, %v11118_v26 }
 0xba8   : > { %v4235_v63 = vpop.f32.mrb[120].mxu0 }
 0xba9   : > { %v10277_v57 = vpop.f32.mrb[121].mxu0 }
 0xbaa   : > { %v4238_v39 = vpop.f32.mrb[122].mxu0  ;;  %v4283_v59 = vpop.f32.mrb[112].mxu1 }
 0xbab   : > { %v4585_v23 = vcombine.low %v4235_v63, %v4283_v59  ;;  %v10278_v51 = vpop.f32.mrb[123].mxu0  ;;  %v10283_v32 = vpop.f32.mrb[113].mxu1 }
 0xbac   : > { %v4286_v60 = vpop.f32.mrb[114].mxu1 }
 0xbad   : > { %v10284_v47 = vpop.f32.mrb[115].mxu1  ;;  %v4593_v27 = vrot.slane %v4585_v23, %v11291_v28  ;;  %v4633_v23 = vsub.s32 1, %v11172_v3 }
 0xbaf   : > { %v4634_v51 = vrot.slane %v11093_v46, %v4633_v23 }
 0xbb0   : > { %v4331_v0 = vpop.f32.mrb[124].mxu0 }
 0xbb1   : > { %v10289_v43 = vpop.f32.mrb[125].mxu0 }
 0xbb2   : > { %v4334_v44 = vpop.f32.mrb[126].mxu0 }
 0xbb3   : > { %v10290_v2 = vpop.f32.mrb[127].mxu0 }
 0xbdf   : > { %v4379_v50 = vpop.f32.mrb[116].mxu1 }
 0xbe0   : > { %v4586_v33 = vcombine.low %v4331_v0, %v4379_v50  ;;  %v10295_v20 = vpop.f32.mrb[117].mxu1 }
 0xbe1   : > { %v4382_v14 = vpop.f32.mrb[118].mxu1 }
 0xbe2   : > { %v4600_v40 = vrot.slane %v4586_v33, %v11291_v28  ;;  %v10296_v61 = vpop.f32.mrb[119].mxu1 }
 0xbe4   : > { %v4601_v37 = vcombine.low %v4593_v27, %v4600_v40 }
 0xbe5   : > { %v4427_v62 = vpop.f32.mrb[128].mxu0 }
 0xbe6   : > { %v10301_v24 = vpop.f32.mrb[129].mxu0  ;;  %4619 = vrot.lane.b32.xlu1 %v4601_v37, %s11129_s30 }
 0xbe7   : > { %v4430_v42 = vpop.f32.mrb[130].mxu0  ;;  %v4475_v53 = vpop.f32.mrb[120].mxu1 }
 0xbe8   : > { %v4602_v56 = vcombine.low %v4427_v62, %v4475_v53  ;;  %v10302_v48 = vpop.f32.mrb[131].mxu0  ;;  %v10307_v30 = vpop.f32.mrb[121].mxu1 }
 0xbe9   : > { %v4478_v17 = vpop.f32.mrb[122].mxu1 }
 0xbea   : > { %v10308_v19 = vpop.f32.mrb[123].mxu1  ;;  %4635 = vrot.lane.b32.xlu1 %v11092_v21, %s11117_s26  ;;  %v4610_v12 = vrot.slane %v4602_v56, %v11291_v28 }
 0xbed   : > { %v4523_v35 = vpop.f32.mrb[132].mxu0 }
 0xbee   : > { %v10313_v18 = vpop.f32.mrb[133].mxu0  ;;  %4759 = vrot.lane.b32.xlu1 %v12127_v36, %s11115_s24 }
 0xbef   : > { %v4526_v52 = vpop.f32.mrb[134].mxu0  ;;  %v4571_v25 = vpop.f32.mrb[124].mxu1 }
 0xbf0   : > { %v4603_v15 = vcombine.low %v4523_v35, %v4571_v25  ;;  %v10314_v58 = vpop.f32.mrb[135].mxu0  ;;  %v10319_v45 = vpop.f32.mrb[125].mxu1 }
 0xbf1   : > { %v4574_v16 = vpop.f32.mrb[126].mxu1 }
 0xbf2   : > { %v4617_v22 = vrot.slane %v4603_v15, %v11291_v28  ;;  %v10320_v49 = vpop.f32.mrb[127].mxu1  ;;  %4766 = vrot.lane.b32.xlu1 %v4688_v41, %s11115_s24 }
 0xbf4   : > { %v4618_v54 = vcombine.low %v4610_v12, %v4617_v22 }
 0xbf6   : > { %4621 = vrot.lane.b32.xlu0 %v4618_v54, %s11129_s30 }
 0xbf7   : > { %v10335_v1 = vpop.f32.mrb[128].mxu1 }
 0xbf8   : > { %v12178_v5 = vadd.f32 %v10335_v1, %v4688_v41  ;;  %v4731_v10 = vpop.f32.mrb[129].mxu1 }
 0xbf9   : > { %v12180_v36 = vadd.f32 %v4731_v10, %v4688_v41  ;;  %v10336_v4 = vpop.f32.mrb[130].mxu1 }
 0xbfa   : > { %v12182_v38 = vadd.f32 %v10336_v4, %v4688_v41  ;;  %v4734_v6 = vpop.f32.mrb[131].mxu1  ;;  %4637 = vrot.lane.b32.xlu0 %v11094_v11, %s11117_s26  ;;  %v4752_v10 = vcombine.high %v12178_v5, %v12178_v5 }
 0xbfb   : > { %v12188_v34 = vadd.f32 %v4734_v6, %v4688_v41  ;;  %v4750_v21 = vcombine.high %v12180_v36, %v12180_v36  ;;  %v12234_v18 = vpack.c.bf16 %v12180_v36, %v12180_v36  ;;  %v12289_v6 = vpack.c.bf16 %v12178_v5, %v12178_v5 }
 0xbfc   : > { %v12291_v11 = vpack.c.bf16 %v4752_v10, %v4752_v10  ;;  %v4753_v5 = vcombine.high %v12182_v38, %v12182_v38 }
 0xbfd   : > { %v12236_v52 = vpack.c.bf16 %v4750_v21, %v4750_v21  ;;  %v4751_v46 = vcombine.high %v12188_v34, %v12188_v34  ;;  %v12263_v22 = vpack.c.bf16 %v12188_v34, %v12188_v34 }
 0xbfe   : > { %4761 = vrot.lane.b32.xlu0 %v12145_v55, %s11115_s24 }
 0xbff   : > { %v12265_v49 = vpack.c.bf16 %v4751_v46, %v4751_v46 }
 0xc58   : > { %v4620_v13 = vpop.permute.xlu1 %4619 }
 0xc59   : > { %4626 = vst.msk [vmem:[#allocation3] sm:$0xff] %vm4625_vm9, %v4620_v13 }
 0xc5c   : > { %v4636_v31 = vpop.permute.xlu1 %4635 }
 0xc5d   : > { %10322 = vmatpush3.bf16.msra.mxu0 %v4636_v31  ;;  %v12311_v31 = vpack.c.bf16 %v12182_v38, %v12182_v38 }
 0xc5e   : > { %10323 = vmatprep.subr.bf16.mxu0 %v11118_v26 }
 0xc60   : > { %v4628_v63 = vld [vmem:[#allocation3] sm:$0xff]  ;;  %v4760_v59 = vpop.permute.xlu1 %4759 }
 0xc64   : > { %v4767_v50 = vpop.permute.xlu1 %4766 }
 0xc68   : > { %v4622_v29 = vpop.permute.xlu0 %4621 }
 0xc69   : > { %4627 = vst.msk [vmem:[#allocation3 + $0x8] sm:$0xff] %vm4625_vm9, %v4622_v29  ;;  %v12313_v29 = vpack.c.bf16 %v4753_v5, %v4753_v5 }
 0xc6c   : > { %v4638_v8 = vpop.permute.xlu0 %4637 }
 0xc6d   : > { %10324 = vmatpush3.bf16.msra.mxu0 %v4638_v8 }
 0xc6e   : > { %10337 = vmatprep.subr.bf16.mxu0 %v11118_v26 }
 0xc70   : > { %v4629_v57 = vld [vmem:[#allocation3 + $0x8] sm:$0xff]  ;;  %v4762_v55 = vpop.permute.xlu0 %4761 }
 0xc71   : > { %v4630_v39 = vpack.c.bf16 %v4629_v57, %v4628_v63 }
 0xc73   : > { %10326 = vmatmul.mubr.msk.bf16.vlgmr.msra.gmra.mrb[136].mxu0 %vm689_vm1, %v4630_v39 }
 0xc74   : > { %10338 = vmatpush3.bf16.msra.mxu0 %v4760_v59  ;;  %10341 = vmatprep.mubr.msk.bf16.mxu0 %vm11119_vm2, %v11118_v26 }
 0xc75   : > { %10339 = vmatprep.subr.bf16.mxu0 %v11118_v26 }
 0xc78   : > { %10340 = vmatpush3.bf16.msra.mxu0 %v4762_v55 }
 0xc79   : > { %10351 = vmatprep.subr.bf16.mxu0 %v11118_v26 }
 0xd46   : > { %v4678_v32 = vpop.f32.mrb[136].mxu0 }
 0xd47   : > { %v10327_v60 = vpop.f32.mrb[137].mxu0  ;;  %v4679_v0 = vadd.f32 %v4678_v32, %v4634_v51 }
 0xd48   : > { %v4681_v47 = vpop.f32.mrb[138].mxu0 }
 0xd49   : > { %v4682_v43 = vadd.f32 %v4681_v47, %v4634_v51  ;;  %v10328_v44 = vpop.f32.mrb[139].mxu0 }
 0xd4b   : > { %v4758_v2 = vpack.c.bf16 %v4682_v43, %v4679_v0 }
 0xd4d   : > { %10342 = vmatmul.mubr.msk.bf16.vlgmr.msra.gmra.mrb[140].mxu0 %vm689_vm1, %v4758_v2 }
 0xd4e   : > { %10353 = vmatprep.mubr.msk.bf16.mxu0 %vm11119_vm2, %v11118_v26 }
 0xe20   : > { %v4806_v33 = vpop.f32.mrb[140].mxu0 }
 0xe21   : > { %v4807_v20 = vadd.f32 %v4806_v33, %v4767_v50  ;;  %v10343_v14 = vpop.f32.mrb[141].mxu0 }
 0xe22   : > { %v4809_v27 = vpop.f32.mrb[142].mxu0 }
 0xe23   : > { %v4815_v40 = vcombine.high %v4807_v20, %v4807_v20  ;;  %v4822_v61 = vrot.slane %v4807_v20, %v11291_v28  ;;  %v10344_v37 = vpop.f32.mrb[143].mxu0  ;;  %v4810_v17 = vadd.f32 %v4809_v27, %v4767_v50 }
 0xe25   : > { %v4829_v62 = vrot.slane %v4815_v40, %v11291_v28  ;;  %v4830_v24 = vcombine.high %v4822_v61, %v4822_v61  ;;  %v12209_v42 = vpack.c.bf16 %v4822_v61, %v4822_v61  ;;  %v4839_v35 = vrot.slane %v4810_v17, %v11291_v28 }
 0xe26   : > { %v4832_v15 = vcombine.high %v4810_v17, %v4810_v17 }
 0xe27   : > { %v12211_v53 = vpack.c.bf16 %v4830_v24, %v4830_v24  ;;  %5347 = vrot.lane.b32.xlu1 %v12209_v42, %s11115_s24  ;;  %v4877_v56 = vsel %vm889_vm3, %v12209_v42, 0  ;;  %v4831_v48 = vcombine.high %v4829_v62, %v4829_v62  ;;  %v12217_v30 = vpack.c.bf16 %v4829_v62, %v4829_v62 }
 0xe28   : > { %10346 = vmatpush3.bf16.xpose.msra.mxu1 %v4877_v56  ;;  %v4847_v58 = vcombine.high %v4839_v35, %v4839_v35  ;;  %v12255_v41 = vpack.c.bf16 %v4839_v35, %v4839_v35  ;;  %v4846_v16 = vrot.slane %v4832_v15, %v11291_v28 }
 0xe29   : > { %5398 = vrot.lane.b32.xlu0 %v12211_v53, %s11115_s24  ;;  %v4923_v19 = vsel %vm889_vm3, %v12211_v53, 0  ;;  %10357 = vmatprep.subr.bf16.mxu1 %v11118_v26  ;;  %v12229_v9 = vpack.c.bf16 %v4831_v48, %v4831_v48  ;;  %v4969_v25 = vsel %vm889_vm3, %v12217_v30, 0 }
 0xe2a   : > { %10352 = vmatpush3.bf16.xpose.msra.mxu0 %v4923_v19  ;;  %v12259_v12 = vpack.c.bf16 %v4847_v58, %v4847_v58  ;;  %v5061_v54 = vsel %vm889_vm3, %v12255_v41, 0  ;;  %v4848_v1 = vcombine.high %v4846_v16, %v4846_v16  ;;  %v12282_v36 = vpack.c.bf16 %v4846_v16, %v4846_v16 }
 0xe2b   : > { %5447 = vrot.lane.b32.xlu1 %v12217_v30, %s11115_s24  ;;  %10363 = vmatprep.subr.bf16.mxu0 %v11118_v26  ;;  %v5015_v45 = vsel %vm889_vm3, %v12229_v9, 0 }
 0xe2c   : > { %v5107_v28 = vsel %vm889_vm3, %v12259_v12, 0  ;;  %v12285_v4 = vpack.c.bf16 %v4848_v1, %v4848_v1  ;;  %v5153_v34 = vsel %vm889_vm3, %v12282_v36, 0 }
 0xe2e   : > { %v5199_v13 = vsel %vm889_vm3, %v12285_v4, 0 }
 0xe2f   : > { %5496 = vrot.lane.b32.xlu1 %v12229_v9, %s11115_s24  ;;  %10348 = vmatmul.mubr.msk.bf16.vlgmr.msra.gmra.mrb[132].mxu1 %vm889_vm3, %v12234_v18 }
 0xe30   : > { %10358 = vmatpush3.bf16.xpose.msra.mxu1 %v4969_v25  ;;  %10359 = vmatprep.mubr.msk.bf16.mxu1 %vm11119_vm2, %v11118_v26 }
 0xe31   : > { %10354 = vmatmul.mubr.msk.bf16.vlgmr.msra.gmra.mrb[144].mxu0 %vm889_vm3, %v12236_v52  ;;  %10369 = vmatprep.subr.bf16.mxu1 %v11118_v26 }
 0xe32   : > { %10364 = vmatpush3.bf16.xpose.msra.mxu0 %v5015_v45  ;;  %10365 = vmatprep.mubr.msk.bf16.mxu0 %vm11119_vm2, %v11118_v26 }
 0xe33   : > { %10375 = vmatprep.subr.bf16.mxu0 %v11118_v26 }
 0xe37   : > { %10360 = vmatmul.mubr.msk.bf16.vlgmr.msra.gmra.mrb[136].mxu1 %vm889_vm3, %v12263_v22 }
 0xe38   : > { %10370 = vmatpush3.bf16.xpose.msra.mxu1 %v5061_v54  ;;  %10371 = vmatprep.mubr.msk.bf16.mxu1 %vm11119_vm2, %v11118_v26 }
 0xe39   : > { %10366 = vmatmul.mubr.msk.bf16.vlgmr.msra.gmra.mrb[148].mxu0 %vm889_vm3, %v12265_v49  ;;  %10381 = vmatprep.subr.bf16.mxu1 %v11118_v26 }
 0xe3a   : > { %10376 = vmatpush3.bf16.xpose.msra.mxu0 %v5107_v28  ;;  %10377 = vmatprep.mubr.msk.bf16.mxu0 %vm11119_vm2, %v11118_v26 }
 0xe3b   : > { %10387 = vmatprep.subr.bf16.mxu0 %v11118_v26 }
 0xe3f   : > { %10372 = vmatmul.mubr.msk.bf16.vlgmr.msra.gmra.mrb[140].mxu1 %vm889_vm3, %v12289_v6 }
 0xe40   : > { %10382 = vmatpush3.bf16.xpose.msra.mxu1 %v5153_v34  ;;  %10383 = vmatprep.mubr.msk.bf16.mxu1 %vm11119_vm2, %v11118_v26 }
 0xe41   : > { %10378 = vmatmul.mubr.msk.bf16.vlgmr.msra.gmra.mrb[152].mxu0 %vm889_vm3, %v12291_v11  ;;  %10393 = vmatprep.subr.bf16.mxu1 %v11118_v26 }
 0xe42   : > { %10388 = vmatpush3.bf16.xpose.msra.mxu0 %v5199_v13  ;;  %10389 = vmatprep.mubr.msk.bf16.mxu0 %vm11119_vm2, %v11118_v26 }
 0xe43   : > { %10399 = vmatprep.subr.bf16.mxu0 %v11118_v26 }
 0xe47   : > { %10384 = vmatmul.mubr.msk.bf16.vlgmr.msra.gmra.mrb[144].mxu1 %vm889_vm3, %v12311_v31 }
 0xe48   : > { %10395 = vmatprep.mubr.msk.bf16.mxu1 %vm11119_vm2, %v11118_v26 }
 0xe49   : > { %10390 = vmatmul.mubr.msk.bf16.vlgmr.msra.gmra.mrb[156].mxu0 %vm889_vm3, %v12313_v29 }
 0xe4a   : > { %10401 = vmatprep.mubr.msk.bf16.mxu0 %vm11119_vm2, %v11118_v26 }
 0xe99   : > { %v5348_v8 = vpop.permute.xlu1 %5347 }
 0xe9a   : > { %v5355_v63 = vsel %vm5353_vm10, %v5348_v8, 0 }
 0xe9b   : > { %v5399_v38 = vpop.permute.xlu0 %5398  ;;  %10394 = vmatpush3.bf16.msra.mxu1 %v5355_v63 }
 0xe9c   : > { %v5404_v57 = vsel %vm5353_vm10, %v5399_v38, 0  ;;  %10405 = vmatprep.subr.bf16.mxu1 %v11118_v26 }
 0xe9d   : > { %10400 = vmatpush3.bf16.msra.mxu0 %v5404_v57 }
 0xe9e   : > { %10411 = vmatprep.subr.bf16.mxu0 %v11118_v26 }
 0xf02   : > { %v4913_v39 = vpop.f32.mrb[132].mxu1 }
 0xf03   : > { %v12327_v59 = vmul.f32 0.35355338, %v4913_v39  ;;  %v10349_v55 = vpop.f32.mrb[133].mxu1 }
 0xf04   : > { %v4959_v51 = vpop.f32.mrb[144].mxu0  ;;  %v4916_v32 = vpop.f32.mrb[134].mxu1 }
 0xf05   : > { %v5242_v60 = vmul.f32 0.35355338, %v4959_v51  ;;  %v10355_v47 = vpop.f32.mrb[145].mxu0  ;;  %v10350_v0 = vpop.f32.mrb[135].mxu1  ;;  %v5250_v43 = vsel %vm5249_vm11, %v12327_v59, -inf }
 0xf06   : > { %v4962_v44 = vpop.f32.mrb[146].mxu0  ;;  %5251 = vmax.xlane.f32.xlu0 %v5250_v43  ;;  %v12345_v47 = vpop.permute.xlu1 %5447 }
 0xf07   : > { %v10356_v2 = vpop.f32.mrb[147].mxu0  ;;  %v5253_v50 = vsel %vm5249_vm11, %v5242_v60, -inf }
 0xf08   : > { %5254 = vmax.xlane.f32.xlu1 %v5253_v50 }
 0xf0a   : > { %v5005_v33 = vpop.f32.mrb[136].mxu1  ;;  %v12347_v0 = vpop.permute.xlu1 %5496 }
 0xf0b   : > { %v5243_v20 = vmul.f32 0.35355338, %v5005_v33  ;;  %v10361_v14 = vpop.f32.mrb[137].mxu1 }
 0xf0c   : > { %v5051_v27 = vpop.f32.mrb[148].mxu0  ;;  %v5008_v40 = vpop.f32.mrb[138].mxu1 }
 0xf0d   : > { %v10367_v61 = vpop.f32.mrb[149].mxu0  ;;  %v5244_v37 = vmul.f32 0.35355338, %v5051_v27  ;;  %v10362_v62 = vpop.f32.mrb[139].mxu1  ;;  %v5256_v24 = vsel %vm5249_vm11, %v5243_v20, -inf }
 0xf0e   : > { %v5054_v56 = vpop.f32.mrb[150].mxu0  ;;  %5257 = vmax.xlane.f32.xlu0 %v5256_v24 }
 0xf0f   : > { %v10368_v48 = vpop.f32.mrb[151].mxu0  ;;  %v5259_v17 = vsel %vm5249_vm11, %v5244_v37, -inf }
 0xf12   : > { %v5097_v19 = vpop.f32.mrb[140].mxu1  ;;  %5260 = vmax.xlane.f32.xlu0 %v5259_v17 }
 0xf13   : > { %v5245_v21 = vmul.f32 0.35355338, %v5097_v19  ;;  %v10373_v35 = vpop.f32.mrb[141].mxu1 }
 0xf14   : > { %v5143_v25 = vpop.f32.mrb[152].mxu0  ;;  %v5100_v15 = vpop.f32.mrb[142].mxu1 }
 0xf15   : > { %v5246_v58 = vmul.f32 0.35355338, %v5143_v25  ;;  %v10379_v45 = vpop.f32.mrb[153].mxu0  ;;  %v10374_v46 = vpop.f32.mrb[143].mxu1  ;;  %v5262_v16 = vsel %vm5249_vm11, %v5245_v21, -inf }
 0xf16   : > { %v5146_v54 = vpop.f32.mrb[154].mxu0  ;;  %5263 = vmax.xlane.f32.xlu1 %v5262_v16 }
 0xf17   : > { %v10380_v1 = vpop.f32.mrb[155].mxu0  ;;  %v5265_v28 = vsel %vm5249_vm11, %v5246_v58, -inf }
 0xf18   : > { %5266 = vmax.xlane.f32.xlu0 %v5265_v28 }
 0xf1a   : > { %v5189_v10 = vpop.f32.mrb[144].mxu1 }
 0xf1b   : > { %v12336_v34 = vmul.f32 0.35355338, %v5189_v10  ;;  %v10385_v13 = vpop.f32.mrb[145].mxu1 }
 0xf1c   : > { %v5235_v5 = vpop.f32.mrb[156].mxu0  ;;  %v5192_v8 = vpop.f32.mrb[146].mxu1 }
 0xf1d   : > { %v5248_v63 = vmul.f32 0.35355338, %v5235_v5  ;;  %v10391_v38 = vpop.f32.mrb[157].mxu0  ;;  %v10386_v57 = vpop.f32.mrb[147].mxu1  ;;  %v5268_v39 = vsel %vm5249_vm11, %v12336_v34, -inf }
 0xf1e   : > { %v5238_v55 = vpop.f32.mrb[158].mxu0  ;;  %5269 = vmax.xlane.f32.xlu1 %v5268_v39 }
 0xf1f   : > { %v10392_v51 = vpop.f32.mrb[159].mxu0  ;;  %v5271_v32 = vsel %vm5249_vm11, %v5248_v63, -inf }
 0xf20   : > { %5272 = vmax.xlane.f32.xlu0 %v5271_v32 }
 0xf2f   : > { %5594 = vrot.lane.b32.xlu1 %v12259_v12, %s11115_s24 }
 0xf36   : > { %5545 = vrot.lane.b32.xlu0 %v12255_v41, %s11115_s24 }
 0xf93   : > { %v5252_v43 = vpop.xlane.xlu0 %5251 }
 0xf94   : > { %v5274_v44 = vsub.f32 %v12327_v59, %v5252_v43 }
 0xf95   : > { %v5255_v2 = vpop.xlane.xlu1 %5254 }
 0xf96   : > { %v5275_v50 = vsub.f32 %v5242_v60, %v5255_v2  ;;  %v5282_v33 = vmul.f32 1.442695, %v5274_v44 }
 0xf98   : > { %v5284_v14 = vmul.f32 1.442695, %v5275_v50  ;;  %10940 = vpow2.f32 %v5282_v33 }
 0xf9a   : > { %10942 = vpow2.f32 %v5284_v14 }
 0xf9b   : > { %v5258_v27 = vpop.xlane.xlu0 %5257 }
 0xf9c   : > { %v5276_v40 = vsub.f32 %v5243_v20, %v5258_v27 }
 0xf9e   : > { %v5286_v61 = vmul.f32 1.442695, %v5276_v40 }
 0xf9f   : > { %v5261_v62 = vpop.xlane.xlu0 %5260 }
 0xfa0   : > { %10944 = vpow2.f32 %v5286_v61  ;;  %v5277_v24 = vsub.f32 %v5244_v37, %v5261_v62 }
 0xfa2   : > { %v12350_v56 = vpop.eup %10940  ;;  %v5288_v48 = vmul.f32 1.442695, %v5277_v24  ;;  %v5453_v24 = vsel %vm5353_vm10, %v12345_v47, 0 }
 0xfa3   : > { %v5264_v19 = vpop.xlane.xlu1 %5263  ;;  %v5298_v59 = vsel %vm5249_vm11, %v12350_v56, 0.0 }
 0xfa4   : > { %v12352_v17 = vpop.eup %10942  ;;  %10946 = vpow2.f32 %v5288_v48  ;;  %v5278_v60 = vsub.f32 %v5245_v21, %v5264_v19  ;;  %5299 = vadd.xlane.f32.xlu1 %v5298_v59  ;;  %v5502_v19 = vsel %vm5353_vm10, %v12347_v0, 0 }
 0xfa5   : > { %v5267_v35 = vpop.xlane.xlu0 %5266  ;;  %v5301_v20 = vsel %vm5249_vm11, %v12352_v17, 0.0 }
 0xfa6   : > { %v5279_v25 = vsub.f32 %v5246_v58, %v5267_v35  ;;  %5302 = vadd.xlane.f32.xlu0 %v5301_v20  ;;  %v5290_v15 = vmul.f32 1.442695, %v5278_v60 }
 0xfa8   : > { %v5292_v37 = vmul.f32 1.442695, %v5279_v25  ;;  %10948 = vpow2.f32 %v5290_v15 }
 0xfaa   : > { %10950 = vpow2.f32 %v5292_v37  ;;  %v12358_v45 = vpop.eup %10944 }
 0xfab   : > { %v5304_v46 = vsel %vm5249_vm11, %v12358_v45, 0.0  ;;  %v5270_v10 = vpop.xlane.xlu1 %5269 }
 0xfac   : > { %5305 = vadd.xlane.f32.xlu1 %v5304_v46  ;;  %v5280_v5 = vsub.f32 %v12336_v34, %v5270_v10 }
 0xfad   : > { %v5273_v13 = vpop.xlane.xlu0 %5272 }
 0xfae   : > { %v12362_v16 = vpop.eup %10946  ;;  %v5281_v8 = vsub.f32 %v5248_v63, %v5273_v13  ;;  %v5294_v38 = vmul.f32 1.442695, %v5280_v5 }
 0xfaf   : > { %v5307_v21 = vsel %vm5249_vm11, %v12362_v16, 0.0  ;;  %v5595_v34 = vpop.permute.xlu1 %5594 }
 0xfb0   : > { %5308 = vadd.xlane.f32.xlu0 %v5307_v21  ;;  %v5296_v57 = vmul.f32 1.442695, %v5281_v8  ;;  %10952 = vpow2.f32 %v5294_v38  ;;  %v5600_v37 = vsel %vm5353_vm10, %v5595_v34, 0 }
 0xfb1   : > { %v5546_v63 = vpop.permute.xlu0 %5545 }
 0xfb2   : > { %v12366_v54 = vpop.eup %10948  ;;  %10954 = vpow2.f32 %v5296_v57  ;;  %v5551_v60 = vsel %vm5353_vm10, %v5546_v63, 0 }
 0xfb3   : > { %v5310_v1 = vsel %vm5249_vm11, %v12366_v54, 0.0 }
 0xfb4   : > { %v12368_v58 = vpop.eup %10950  ;;  %5311 = vadd.xlane.f32.xlu1 %v5310_v1 }
 0xfb5   : > { %v5313_v28 = vsel %vm5249_vm11, %v12368_v58, 0.0 }
 0xfb6   : > { %5314 = vadd.xlane.f32.xlu0 %v5313_v28 }
 0xfba   : > { %v12379_v39 = vpop.eup %10952 }
 0xfbb   : > { %v5316_v51 = vsel %vm5249_vm11, %v12379_v39, 0.0 }
 0xfbc   : > { %v12381_v55 = vpop.eup %10954 }
 0xfbd   : > { %v5319_v32 = vsel %vm5249_vm11, %v12381_v55, 0.0 }
 0xfc5   : > { %5692 = vrot.lane.b32.xlu1 %v12285_v4, %s11115_s24 }
 0xfcc   : > { %5643 = vrot.lane.b32.xlu0 %v12282_v36, %s11115_s24 }
 0xfe9   : > { %5317 = vadd.xlane.f32.xlu1 %v5316_v51 }
 0xfeb   : > { %5320 = vadd.xlane.f32.xlu0 %v5319_v32 }
 0xffa   : > { %5814 = vrot.lane.b32.xlu1 %v12211_v53, %s11121_s12 }
 0xffe   : > { %5812 = vrot.lane.b32.xlu1 %v12236_v52, %s11121_s12 }
0x1001   : > { %5763 = vrot.lane.b32.xlu0 %v12209_v42, %s11121_s12 }
0x1002   : > { %5916 = vrot.lane.b32.xlu1 %v12229_v9, %s11121_s12 }
0x1005   : > { %5761 = vrot.lane.b32.xlu0 %v12234_v18, %s11121_s12 }
0x1006   : > { %5914 = vrot.lane.b32.xlu1 %v12265_v49, %s11121_s12 }
0x1009   : > { %5865 = vrot.lane.b32.xlu0 %v12217_v30, %s11121_s12 }
0x100a   : > { %6018 = vrot.lane.b32.xlu1 %v12259_v12, %s11121_s12 }
0x100d   : > { %5863 = vrot.lane.b32.xlu0 %v12263_v22, %s11121_s12 }
0x100e   : > { %6016 = vrot.lane.b32.xlu1 %v12291_v11, %s11121_s12 }
0x1011   : > { %5967 = vrot.lane.b32.xlu0 %v12255_v41, %s11121_s12 }
0x1012   : > { %6120 = vrot.lane.b32.xlu1 %v12285_v4, %s11121_s12 }
0x1015   : > { %5965 = vrot.lane.b32.xlu0 %v12289_v6, %s11121_s12 }
0x1016   : > { %6118 = vrot.lane.b32.xlu1 %v12313_v29, %s11121_s12 }
0x1019   : > { %6069 = vrot.lane.b32.xlu0 %v12282_v36, %s11121_s12 }
0x101a   : > { %6272 = vrot.lane.b32.xlu1 %v12209_v42, %s11122_s13 }
0x101d   : > { %6067 = vrot.lane.b32.xlu0 %v12311_v31, %s11121_s12 }
0x101e   : > { %6368 = vrot.lane.b32.xlu1 %v12217_v30, %s11122_s13 }
0x1021   : > { %6320 = vrot.lane.b32.xlu0 %v12211_v53, %s11122_s13 }
0x1022   : > { %6416 = vrot.lane.b32.xlu1 %v12229_v9, %s11122_s13 }
0x1031   : > { %v5300_v43 = vpop.xlane.xlu1 %5299 }
0x1032   : > { %10956 = vrcp.f32 %v5300_v43 }
0x1033   : > { %v5303_v44 = vpop.xlane.xlu0 %5302 }
0x1034   : > { %10958 = vrcp.f32 %v5303_v44 }
0x1039   : > { %v5306_v2 = vpop.xlane.xlu1 %5305 }
0x103a   : > { %10960 = vrcp.f32 %v5306_v2 }
0x103c   : > { %v10957_v50 = vpop.eup %10956 }
0x103d   : > { %v5309_v14 = vpop.xlane.xlu0 %5308  ;;  %v5330_v27 = vmul.f32 %v10957_v50, %v12350_v56 }
0x103e   : > { %v10959_v33 = vpop.eup %10958  ;;  %10962 = vrcp.f32 %v5309_v14 }
0x103f   : > { %v5331_v40 = vmul.f32 %v10959_v33, %v12352_v17  ;;  %v5338_v61 = vpack.c.bf16 %v5330_v27, %v5330_v27 }
0x1041   : > { %v5339_v62 = vpack.c.bf16 %v5331_v40, %v5331_v40  ;;  %10396 = vmatmul.mubr.msk.bf16.vlgmr.msra.gmra.mrb[148].mxu1 %vm5349_vm12, %v5338_v61  ;;  %v5312_v48 = vpop.xlane.xlu1 %5311 }
0x1042   : > { %10406 = vmatpush3.bf16.msra.mxu1 %v5453_v24  ;;  %10964 = vrcp.f32 %v5312_v48  ;;  %10407 = vmatprep.mubr.msk.bf16.mxu1 %vm11119_vm2, %v11118_v26 }
0x1043   : > { %10402 = vmatmul.mubr.msk.bf16.vlgmr.msra.gmra.mrb[160].mxu0 %vm5349_vm12, %v5339_v62  ;;  %v5315_v56 = vpop.xlane.xlu0 %5314  ;;  %10417 = vmatprep.subr.bf16.mxu1 %v11118_v26 }
0x1044   : > { %10412 = vmatpush3.bf16.msra.mxu0 %v5502_v19  ;;  %10966 = vrcp.f32 %v5315_v56  ;;  %v10961_v17 = vpop.eup %10960  ;;  %10413 = vmatprep.mubr.msk.bf16.mxu0 %vm11119_vm2, %v11118_v26 }
0x1045   : > { %v5332_v47 = vmul.f32 %v10961_v17, %v12358_v45  ;;  %10423 = vmatprep.subr.bf16.mxu0 %v11118_v26  ;;  %v5693_v28 = vpop.permute.xlu1 %5692 }
0x1046   : > { %v5698_v10 = vsel %vm5353_vm10, %v5693_v28, 0 }
0x1047   : > { %v5340_v0 = vpack.c.bf16 %v5332_v47, %v5332_v47  ;;  %v5644_v46 = vpop.permute.xlu0 %5643 }
0x1048   : > { %v10963_v59 = vpop.eup %10962  ;;  %v5649_v1 = vsel %vm5353_vm10, %v5644_v46, 0 }
0x1049   : > { %10408 = vmatmul.mubr.msk.bf16.vlgmr.msra.gmra.mrb[152].mxu1 %vm5349_vm12, %v5340_v0  ;;  %v5333_v35 = vmul.f32 %v10963_v59, %v12362_v16 }
0x104a   : > { %10418 = vmatpush3.bf16.msra.mxu1 %v5551_v60  ;;  %10419 = vmatprep.mubr.msk.bf16.mxu1 %vm11119_vm2, %v11118_v26 }
0x104b   : > { %v5341_v20 = vpack.c.bf16 %v5333_v35, %v5333_v35  ;;  %10429 = vmatprep.subr.bf16.mxu1 %v11118_v26 }
0x104c   : > { %v10965_v25 = vpop.eup %10964 }
0x104d   : > { %10414 = vmatmul.mubr.msk.bf16.vlgmr.msra.gmra.mrb[164].mxu0 %vm5349_vm12, %v5341_v20  ;;  %v5334_v45 = vmul.f32 %v10965_v25, %v12366_v54 }
0x104e   : > { %v10967_v15 = vpop.eup %10966  ;;  %10424 = vmatpush3.bf16.msra.mxu0 %v5600_v37  ;;  %10425 = vmatprep.mubr.msk.bf16.mxu0 %vm11119_vm2, %v11118_v26 }
0x104f   : > { %v5342_v16 = vpack.c.bf16 %v5334_v45, %v5334_v45  ;;  %10435 = vmatprep.subr.bf16.mxu0 %v11118_v26  ;;  %v5335_v21 = vmul.f32 %v10967_v15, %v12368_v58 }
0x1051   : > { %10420 = vmatmul.mubr.msk.bf16.vlgmr.msra.gmra.mrb[156].mxu1 %vm5349_vm12, %v5342_v16  ;;  %v5343_v54 = vpack.c.bf16 %v5335_v21, %v5335_v21 }
0x1052   : > { %10430 = vmatpush3.bf16.msra.mxu1 %v5649_v1  ;;  %10431 = vmatprep.mubr.msk.bf16.mxu1 %vm11119_vm2, %v11118_v26 }
0x1053   : > { %10441 = vmatprep.subr.bf16.mxu1 %v11118_v26 }
0x1055   : > { %10426 = vmatmul.mubr.msk.bf16.vlgmr.msra.gmra.mrb[168].mxu0 %vm5349_vm12, %v5343_v54 }
0x1056   : > { %10436 = vmatpush3.bf16.msra.mxu0 %v5698_v10  ;;  %10437 = vmatprep.mubr.msk.bf16.mxu0 %vm11119_vm2, %v11118_v26 }
0x1057   : > { %10447 = vmatprep.subr.bf16.mxu0 %v11118_v26 }
0x1076   : > { %v5318_v58 = vpop.xlane.xlu1 %5317 }
0x1077   : > { %10968 = vrcp.f32 %v5318_v58 }
0x1078   : > { %v5321_v13 = vpop.xlane.xlu0 %5320 }
0x1079   : > { %10970 = vrcp.f32 %v5321_v13 }
0x107a   : > { %v5815_v5 = vpop.permute.xlu1 %5814 }
0x107b   : > { %v5820_v27 = vsel %vm889_vm3, %v5815_v5, 0 }
0x107c   : > { %v5764_v8 = vpop.permute.xlu0 %5763 }
0x107d   : > { %v5769_v33 = vsel %vm889_vm3, %v5764_v8, 0 }
0x107e   : > { %v5813_v38 = vpop.permute.xlu1 %5812 }
0x1080   : > { %v5762_v57 = vpop.permute.xlu0 %5761 }
0x1081   : > { %v10969_v51 = vpop.eup %10968 }
0x1082   : > { %v5917_v34 = vpop.permute.xlu1 %5916  ;;  %v5336_v63 = vmul.f32 %v10969_v51, %v12379_v39 }
0x1083   : > { %v10971_v32 = vpop.eup %10970  ;;  %v5922_v62 = vsel %vm889_vm3, %v5917_v34, 0 }
0x1084   : > { %v5866_v43 = vpop.permute.xlu0 %5865  ;;  %v5337_v44 = vmul.f32 %v10971_v32, %v12381_v55  ;;  %v5344_v2 = vpack.c.bf16 %v5336_v63, %v5336_v63 }
0x1085   : > { %v5871_v61 = vsel %vm889_vm3, %v5866_v43, 0 }
0x1086   : > { %v5345_v50 = vpack.c.bf16 %v5337_v44, %v5337_v44  ;;  %v5915_v14 = vpop.permute.xlu1 %5914  ;;  %10432 = vmatmul.mubr.msk.bf16.vlgmr.msra.gmra.mrb[160].mxu1 %vm5349_vm12, %v5344_v2 }
0x1087   : > { %10442 = vmatpush3.bf16.xpose.msra.mxu1 %v5769_v33  ;;  %10443 = vmatprep.mubr.msk.bf16.mxu1 %vm11119_vm2, %v11118_v26 }
0x1088   : > { %10438 = vmatmul.mubr.msk.bf16.vlgmr.msra.gmra.mrb[172].mxu0 %vm5349_vm12, %v5345_v50  ;;  %v5864_v40 = vpop.permute.xlu0 %5863  ;;  %10453 = vmatprep.subr.bf16.mxu1 %v11118_v26 }
0x1089   : > { %10448 = vmatpush3.bf16.xpose.msra.mxu0 %v5820_v27  ;;  %10449 = vmatprep.mubr.msk.bf16.mxu0 %vm11119_vm2, %v11118_v26 }
0x108a   : > { %10459 = vmatprep.subr.bf16.mxu0 %v11118_v26  ;;  %v6019_v39 = vpop.permute.xlu1 %6018 }
0x108b   : > { %v6024_v56 = vsel %vm889_vm3, %v6019_v39, 0 }
0x108c   : > { %v5968_v55 = vpop.permute.xlu0 %5967 }
0x108d   : > { %v5973_v19 = vsel %vm889_vm3, %v5968_v55, 0 }
0x108e   : > { %10444 = vmatmul.mubr.msk.bf16.vlgmr.msra.gmra.mrb[164].mxu1 %vm889_vm3, %v5762_v57  ;;  %v6017_v24 = vpop.permute.xlu1 %6016 }
0x108f   : > { %10454 = vmatpush3.bf16.xpose.msra.mxu1 %v5871_v61  ;;  %10455 = vmatprep.mubr.msk.bf16.mxu1 %vm11119_vm2, %v11118_v26 }
0x1090   : > { %10450 = vmatmul.mubr.msk.bf16.vlgmr.msra.gmra.mrb[176].mxu0 %vm889_vm3, %v5813_v38  ;;  %10465 = vmatprep.subr.bf16.mxu1 %v11118_v26  ;;  %v5966_v48 = vpop.permute.xlu0 %5965 }
0x1091   : > { %10460 = vmatpush3.bf16.xpose.msra.mxu0 %v5922_v62  ;;  %10461 = vmatprep.mubr.msk.bf16.mxu0 %vm11119_vm2, %v11118_v26 }
0x1092   : > { %10471 = vmatprep.subr.bf16.mxu0 %v11118_v26  ;;  %v6121_v17 = vpop.permute.xlu1 %6120 }
0x1093   : > { %v6126_v35 = vsel %vm889_vm3, %v6121_v17, 0 }
0x1094   : > { %v6070_v47 = vpop.permute.xlu0 %6069 }
0x1095   : > { %v6075_v59 = vsel %vm889_vm3, %v6070_v47, 0 }
0x1096   : > { %10456 = vmatmul.mubr.msk.bf16.vlgmr.msra.gmra.mrb[168].mxu1 %vm889_vm3, %v5864_v40  ;;  %v6119_v0 = vpop.permute.xlu1 %6118 }
0x1097   : > { %10466 = vmatpush3.bf16.xpose.msra.mxu1 %v5973_v19  ;;  %10467 = vmatprep.mubr.msk.bf16.mxu1 %vm11119_vm2, %v11118_v26 }
0x1098   : > { %10462 = vmatmul.mubr.msk.bf16.vlgmr.msra.gmra.mrb[180].mxu0 %vm889_vm3, %v5915_v14  ;;  %10477 = vmatprep.subr.bf16.mxu1 %v11118_v26  ;;  %v6068_v60 = vpop.permute.xlu0 %6067 }
0x1099   : > { %10472 = vmatpush3.bf16.xpose.msra.mxu0 %v6024_v56  ;;  %10473 = vmatprep.mubr.msk.bf16.mxu0 %vm11119_vm2, %v11118_v26 }
0x109a   : > { %10483 = vmatprep.subr.bf16.mxu0 %v11118_v26  ;;  %v6273_v20 = vpop.permute.xlu1 %6272 }
0x109b   : > { %v6278_v15 = vsel %vm5353_vm10, %v6273_v20, 0 }
0x109c   : > { %v6321_v25 = vpop.permute.xlu0 %6320 }
0x109d   : > { %v6326_v37 = vsel %vm5353_vm10, %v6321_v25, 0 }
0x109e   : > { %10468 = vmatmul.mubr.msk.bf16.vlgmr.msra.gmra.mrb[172].mxu1 %vm889_vm3, %v5966_v48 }
0x109f   : > { %10478 = vmatpush3.bf16.xpose.msra.mxu1 %v6075_v59  ;;  %10479 = vmatprep.mubr.msk.bf16.mxu1 %vm11119_vm2, %v11118_v26 }
0x10a0   : > { %10474 = vmatmul.mubr.msk.bf16.vlgmr.msra.gmra.mrb[184].mxu0 %vm889_vm3, %v6017_v24  ;;  %10489 = vmatprep.subr.bf16.mxu1 %v11118_v26 }
0x10a1   : > { %10484 = vmatpush3.bf16.xpose.msra.mxu0 %v6126_v35  ;;  %10485 = vmatprep.mubr.msk.bf16.mxu0 %vm11119_vm2, %v11118_v26 }
0x10a2   : > { %10495 = vmatprep.subr.bf16.mxu0 %v11118_v26 }
0x10a6   : > { %10480 = vmatmul.mubr.msk.bf16.vlgmr.msra.gmra.mrb[176].mxu1 %vm889_vm3, %v6068_v60 }
0x10a7   : > { %10490 = vmatpush3.bf16.msra.mxu1 %v6278_v15  ;;  %10491 = vmatprep.mubr.msk.bf16.mxu1 %vm11119_vm2, %v11118_v26 }
0x10a8   : > { %10486 = vmatmul.mubr.msk.bf16.vlgmr.msra.gmra.mrb[188].mxu0 %vm889_vm3, %v6119_v0  ;;  %10501 = vmatprep.subr.bf16.mxu1 %v11118_v26 }
0x10a9   : > { %10496 = vmatpush3.bf16.msra.mxu0 %v6326_v37  ;;  %10497 = vmatprep.mubr.msk.bf16.mxu0 %vm11119_vm2, %v11118_v26 }
0x10aa   : > { %10507 = vmatprep.subr.bf16.mxu0 %v11118_v26 }
0x1114   : > { %v5391_v45 = vpop.f32.mrb[148].mxu1 }
0x1115   : > { %v10397_v46 = vpop.f32.mrb[149].mxu1 }
0x1116   : > { %v5440_v16 = vpop.f32.mrb[160].mxu0  ;;  %v5394_v21 = vpop.f32.mrb[150].mxu1 }
0x1117   : > { %v5748_v1 = vcombine.low %v5391_v45, %v5440_v16  ;;  %v10403_v28 = vpop.f32.mrb[161].mxu0  ;;  %v10398_v54 = vpop.f32.mrb[151].mxu1 }
0x1118   : > { %v5443_v10 = vpop.f32.mrb[162].mxu0 }
0x1119   : > { %5756 = vst.msk [vmem:[#allocation3] sm:$0xff] %vm889_vm3, %v5748_v1  ;;  %v10404_v58 = vpop.f32.mrb[163].mxu0 }
0x111c   : > { %v5489_v13 = vpop.f32.mrb[152].mxu1 }
0x111d   : > { %v10409_v5 = vpop.f32.mrb[153].mxu1 }
0x111e   : > { %v5492_v8 = vpop.f32.mrb[154].mxu1 }
0x111f   : > { %v10410_v38 = vpop.f32.mrb[155].mxu1 }
0x1120   : > { %v5538_v57 = vpop.f32.mrb[164].mxu0 }
0x1121   : > { %v5749_v51 = vcombine.low %v5489_v13, %v5538_v57  ;;  %v10415_v32 = vpop.f32.mrb[165].mxu0 }
0x1122   : > { %v5541_v34 = vpop.f32.mrb[166].mxu0 }
0x1123   : > { %5757 = vst.msk [vmem:[#allocation3 + $0x8] sm:$0xff] %vm889_vm3, %v5749_v51  ;;  %v10416_v63 = vpop.f32.mrb[167].mxu0 }
0x1124   : > { %v5587_v43 = vpop.f32.mrb[156].mxu1 }
0x1125   : > { %v10421_v44 = vpop.f32.mrb[157].mxu1 }
0x1126   : > { %v5590_v2 = vpop.f32.mrb[158].mxu1 }
0x1127   : > { %v10422_v50 = vpop.f32.mrb[159].mxu1 }
0x1128   : > { %v5636_v33 = vpop.f32.mrb[168].mxu0 }
0x1129   : > { %v5750_v14 = vcombine.low %v5587_v43, %v5636_v33  ;;  %v10427_v27 = vpop.f32.mrb[169].mxu0 }
0x112a   : > { %v5639_v40 = vpop.f32.mrb[170].mxu0 }
0x112b   : > { %5758 = vst.msk [vmem:[#allocation3 + $0x10] sm:$0xff] %vm889_vm3, %v5750_v14  ;;  %v10428_v39 = vpop.f32.mrb[171].mxu0 }
0x1159   : > { %v5685_v55 = vpop.f32.mrb[160].mxu1 }
0x115a   : > { %v10433_v61 = vpop.f32.mrb[161].mxu1 }
0x115b   : > { %v5734_v62 = vpop.f32.mrb[172].mxu0  ;;  %v5688_v24 = vpop.f32.mrb[162].mxu1 }
0x115c   : > { %v5751_v48 = vcombine.low %v5685_v55, %v5734_v62  ;;  %v10439_v19 = vpop.f32.mrb[173].mxu0  ;;  %v10434_v56 = vpop.f32.mrb[163].mxu1 }
0x115d   : > { %v5737_v17 = vpop.f32.mrb[174].mxu0 }
0x115e   : > { %5759 = vst.msk [vmem:[#allocation3 + $0x18] sm:$0xff] %vm889_vm3, %v5751_v48  ;;  %v10440_v47 = vpop.f32.mrb[175].mxu0 }
0x1161   : > { %v5805_v0 = vpop.f32.mrb[164].mxu1 }
0x1162   : > { %v12521_v59 = vmul.f32 0.35355338, %v5805_v0  ;;  %v10445_v60 = vpop.f32.mrb[165].mxu1 }
0x1163   : > { %v5856_v35 = vpop.f32.mrb[176].mxu0  ;;  %v5808_v20 = vpop.f32.mrb[166].mxu1 }
0x1164   : > { %v6169_v25 = vmul.f32 0.35355338, %v5856_v35  ;;  %v10451_v15 = vpop.f32.mrb[177].mxu0  ;;  %v10446_v37 = vpop.f32.mrb[167].mxu1  ;;  %v6176_v45 = vsel %vm5249_vm11, %v12521_v59, -inf }
0x1165   : > { %v5859_v46 = vpop.f32.mrb[178].mxu0  ;;  %6177 = vmax.xlane.f32.xlu0 %v6176_v45  ;;  %v12539_v15 = vpop.permute.xlu1 %6368 }
0x1166   : > { %v10452_v16 = vpop.f32.mrb[179].mxu0  ;;  %v6179_v21 = vsel %vm5249_vm11, %v6169_v25, -inf }
0x1167   : > { %6180 = vmax.xlane.f32.xlu1 %v6179_v21 }
0x1169   : > { %v5907_v1 = vpop.f32.mrb[168].mxu1  ;;  %v12541_v37 = vpop.permute.xlu1 %6416 }
0x116a   : > { %v6170_v28 = vmul.f32 0.35355338, %v5907_v1  ;;  %v10457_v54 = vpop.f32.mrb[169].mxu1 }
0x116b   : > { %v5958_v10 = vpop.f32.mrb[180].mxu0  ;;  %v5910_v58 = vpop.f32.mrb[170].mxu1 }
0x116c   : > { %v10463_v13 = vpop.f32.mrb[181].mxu0  ;;  %v6171_v5 = vmul.f32 0.35355338, %v5958_v10  ;;  %v10458_v8 = vpop.f32.mrb[171].mxu1  ;;  %v6182_v38 = vsel %vm5249_vm11, %v6170_v28, -inf }
0x116d   : > { %v5961_v57 = vpop.f32.mrb[182].mxu0  ;;  %6183 = vmax.xlane.f32.xlu0 %v6182_v38 }
0x116e   : > { %v10464_v51 = vpop.f32.mrb[183].mxu0  ;;  %v6185_v32 = vsel %vm5249_vm11, %v6171_v5, -inf }
0x1171   : > { %v6009_v34 = vpop.f32.mrb[172].mxu1  ;;  %6186 = vmax.xlane.f32.xlu0 %v6185_v32 }
0x1172   : > { %v6172_v63 = vmul.f32 0.35355338, %v6009_v34  ;;  %v10469_v43 = vpop.f32.mrb[173].mxu1 }
0x1173   : > { %v6060_v44 = vpop.f32.mrb[184].mxu0  ;;  %v6012_v2 = vpop.f32.mrb[174].mxu1 }
0x1174   : > { %v6173_v50 = vmul.f32 0.35355338, %v6060_v44  ;;  %v10475_v33 = vpop.f32.mrb[185].mxu0  ;;  %v10470_v14 = vpop.f32.mrb[175].mxu1  ;;  %v6188_v27 = vsel %vm5249_vm11, %v6172_v63, -inf }
0x1175   : > { %v6063_v40 = vpop.f32.mrb[186].mxu0  ;;  %6189 = vmax.xlane.f32.xlu1 %v6188_v27 }
0x1176   : > { %v10476_v39 = vpop.f32.mrb[187].mxu0  ;;  %v6191_v55 = vsel %vm5249_vm11, %v6173_v50, -inf }
0x1177   : > { %6192 = vmax.xlane.f32.xlu0 %v6191_v55 }
0x1179   : > { %v6111_v61 = vpop.f32.mrb[176].mxu1 }
0x117a   : > { %v12530_v62 = vmul.f32 0.35355338, %v6111_v61  ;;  %v10481_v24 = vpop.f32.mrb[177].mxu1 }
0x117b   : > { %v6162_v48 = vpop.f32.mrb[188].mxu0  ;;  %v6114_v19 = vpop.f32.mrb[178].mxu1 }
0x117c   : > { %v6175_v56 = vmul.f32 0.35355338, %v6162_v48  ;;  %v10487_v17 = vpop.f32.mrb[189].mxu0  ;;  %v10482_v47 = vpop.f32.mrb[179].mxu1  ;;  %v6194_v0 = vsel %vm5249_vm11, %v12530_v62, -inf }
0x117d   : > { %v6165_v60 = vpop.f32.mrb[190].mxu0  ;;  %6195 = vmax.xlane.f32.xlu1 %v6194_v0 }
0x117e   : > { %v10488_v35 = vpop.f32.mrb[191].mxu0  ;;  %v6197_v20 = vsel %vm5249_vm11, %v6175_v56, -inf }
0x117f   : > { %6198 = vmax.xlane.f32.xlu0 %v6197_v20 }
0x118e   : > { %6512 = vrot.lane.b32.xlu1 %v12259_v12, %s11122_s13 }
0x1195   : > { %6464 = vrot.lane.b32.xlu0 %v12255_v41, %s11122_s13 }
0x11f2   : > { %v6178_v45 = vpop.xlane.xlu0 %6177 }
0x11f3   : > { %v6200_v46 = vsub.f32 %v12521_v59, %v6178_v45 }
0x11f4   : > { %v6181_v16 = vpop.xlane.xlu1 %6180 }
0x11f5   : > { %v6201_v21 = vsub.f32 %v6169_v25, %v6181_v16  ;;  %v6208_v1 = vmul.f32 1.442695, %v6200_v46 }
0x11f7   : > { %v6210_v54 = vmul.f32 1.442695, %v6201_v21  ;;  %10972 = vpow2.f32 %v6208_v1 }
0x11f9   : > { %10974 = vpow2.f32 %v6210_v54 }
0x11fa   : > { %v6184_v10 = vpop.xlane.xlu0 %6183 }
0x11fb   : > { %v6202_v58 = vsub.f32 %v6170_v28, %v6184_v10 }
0x11fd   : > { %v6212_v13 = vmul.f32 1.442695, %v6202_v58 }
0x11fe   : > { %v6187_v8 = vpop.xlane.xlu0 %6186 }
0x11ff   : > { %10976 = vpow2.f32 %v6212_v13  ;;  %v6203_v38 = vsub.f32 %v6171_v5, %v6187_v8 }
0x1201   : > { %v12544_v57 = vpop.eup %10972  ;;  %v6214_v51 = vmul.f32 1.442695, %v6203_v38  ;;  %v6374_v38 = vsel %vm5353_vm10, %v12539_v15, 0 }
0x1202   : > { %v6190_v34 = vpop.xlane.xlu1 %6189  ;;  %v6224_v59 = vsel %vm5249_vm11, %v12544_v57, 0.0 }
0x1203   : > { %v12546_v32 = vpop.eup %10974  ;;  %10978 = vpow2.f32 %v6214_v51  ;;  %v6204_v25 = vsub.f32 %v6172_v63, %v6190_v34  ;;  %6225 = vadd.xlane.f32.xlu1 %v6224_v59  ;;  %v6422_v34 = vsel %vm5353_vm10, %v12541_v37, 0 }
0x1204   : > { %v6193_v43 = vpop.xlane.xlu0 %6192  ;;  %v6227_v28 = vsel %vm5249_vm11, %v12546_v32, 0.0 }
0x1205   : > { %v6205_v44 = vsub.f32 %v6173_v50, %v6193_v43  ;;  %6228 = vadd.xlane.f32.xlu0 %v6227_v28  ;;  %v6216_v2 = vmul.f32 1.442695, %v6204_v25 }
0x1207   : > { %v6218_v5 = vmul.f32 1.442695, %v6205_v44  ;;  %10980 = vpow2.f32 %v6216_v2 }
0x1209   : > { %10982 = vpow2.f32 %v6218_v5  ;;  %v12552_v33 = vpop.eup %10976 }
0x120a   : > { %v6230_v14 = vsel %vm5249_vm11, %v12552_v33, 0.0  ;;  %v6196_v61 = vpop.xlane.xlu1 %6195 }
0x120b   : > { %6231 = vadd.xlane.f32.xlu1 %v6230_v14  ;;  %v6206_v48 = vsub.f32 %v12530_v62, %v6196_v61 }
0x120c   : > { %v6199_v24 = vpop.xlane.xlu0 %6198 }
0x120d   : > { %v12556_v27 = vpop.eup %10978  ;;  %v6207_v19 = vsub.f32 %v6175_v56, %v6199_v24  ;;  %v6220_v17 = vmul.f32 1.442695, %v6206_v48 }
0x120e   : > { %v6233_v63 = vsel %vm5249_vm11, %v12556_v27, 0.0  ;;  %v6513_v62 = vpop.permute.xlu1 %6512 }
0x120f   : > { %6234 = vadd.xlane.f32.xlu0 %v6233_v63  ;;  %v6222_v47 = vmul.f32 1.442695, %v6207_v19  ;;  %10984 = vpow2.f32 %v6220_v17  ;;  %v6518_v5 = vsel %vm5353_vm10, %v6513_v62, 0 }
0x1210   : > { %v6465_v56 = vpop.permute.xlu0 %6464 }
0x1211   : > { %v12560_v40 = vpop.eup %10980  ;;  %10986 = vpow2.f32 %v6222_v47  ;;  %v6470_v25 = vsel %vm5353_vm10, %v6465_v56, 0 }
0x1212   : > { %v6236_v39 = vsel %vm5249_vm11, %v12560_v40, 0.0 }
0x1213   : > { %v12562_v50 = vpop.eup %10982  ;;  %6237 = vadd.xlane.f32.xlu1 %v6236_v39 }
0x1214   : > { %v6239_v55 = vsel %vm5249_vm11, %v12562_v50, 0.0 }
0x1215   : > { %6240 = vadd.xlane.f32.xlu0 %v6239_v55 }
0x1219   : > { %v12573_v0 = vpop.eup %10984 }
0x121a   : > { %v6242_v35 = vsel %vm5249_vm11, %v12573_v0, 0.0 }
0x121b   : > { %v12575_v60 = vpop.eup %10986 }
0x121c   : > { %v6245_v20 = vsel %vm5249_vm11, %v12575_v60, 0.0 }
0x1224   : > { %6608 = vrot.lane.b32.xlu1 %v12285_v4, %s11122_s13 }
0x122b   : > { %6560 = vrot.lane.b32.xlu0 %v12282_v36, %s11122_s13 }
0x1248   : > { %6243 = vadd.xlane.f32.xlu1 %v6242_v35 }
0x124a   : > { %6246 = vadd.xlane.f32.xlu0 %v6245_v20 }
0x1259   : > { %6736 = vrot.lane.b32.xlu1 %v12211_v53, %s11123_s14 }
0x125d   : > { %6734 = vrot.lane.b32.xlu1 %v12236_v52, %s11123_s14 }
0x1260   : > { %6686 = vrot.lane.b32.xlu0 %v12209_v42, %s11123_s14 }
0x1261   : > { %6836 = vrot.lane.b32.xlu1 %v12229_v9, %s11123_s14 }
0x1264   : > { %6684 = vrot.lane.b32.xlu0 %v12234_v18, %s11123_s14 }
0x1265   : > { %6834 = vrot.lane.b32.xlu1 %v12265_v49, %s11123_s14 }
0x1268   : > { %6786 = vrot.lane.b32.xlu0 %v12217_v30, %s11123_s14 }
0x1269   : > { %6936 = vrot.lane.b32.xlu1 %v12259_v12, %s11123_s14 }
0x126c   : > { %6784 = vrot.lane.b32.xlu0 %v12263_v22, %s11123_s14 }
0x126d   : > { %6934 = vrot.lane.b32.xlu1 %v12291_v11, %s11123_s14 }
0x1270   : > { %6886 = vrot.lane.b32.xlu0 %v12255_v41, %s11123_s14 }
0x1271   : > { %7036 = vrot.lane.b32.xlu1 %v12285_v4, %s11123_s14 }
0x1274   : > { %6884 = vrot.lane.b32.xlu0 %v12289_v6, %s11123_s14 }
0x1275   : > { %7034 = vrot.lane.b32.xlu1 %v12313_v29, %s11123_s14 }
0x1278   : > { %6986 = vrot.lane.b32.xlu0 %v12282_v36, %s11123_s14 }
0x1279   : > { %7188 = vrot.lane.b32.xlu1 %v12209_v42, %s11124_s15 }
0x127c   : > { %6984 = vrot.lane.b32.xlu0 %v12311_v31, %s11123_s14 }
0x127d   : > { %7284 = vrot.lane.b32.xlu1 %v12217_v30, %s11124_s15 }
0x1280   : > { %7236 = vrot.lane.b32.xlu0 %v12211_v53, %s11124_s15 }
0x1281   : > { %7332 = vrot.lane.b32.xlu1 %v12229_v9, %s11124_s15 }
0x1290   : > { %v6226_v45 = vpop.xlane.xlu1 %6225 }
0x1291   : > { %10988 = vrcp.f32 %v6226_v45 }
0x1292   : > { %v6229_v46 = vpop.xlane.xlu0 %6228 }
0x1293   : > { %10990 = vrcp.f32 %v6229_v46 }
0x1298   : > { %v6232_v16 = vpop.xlane.xlu1 %6231 }
0x1299   : > { %10992 = vrcp.f32 %v6232_v16 }
0x129b   : > { %v10989_v21 = vpop.eup %10988 }
0x129c   : > { %v6235_v54 = vpop.xlane.xlu0 %6234  ;;  %v6256_v10 = vmul.f32 %v10989_v21, %v12544_v57 }
0x129d   : > { %v10991_v1 = vpop.eup %10990  ;;  %10994 = vrcp.f32 %v6235_v54 }
0x129e   : > { %v6257_v58 = vmul.f32 %v10991_v1, %v12546_v32  ;;  %v6264_v13 = vpack.c.bf16 %v6256_v10, %v6256_v10 }
0x12a0   : > { %v6265_v8 = vpack.c.bf16 %v6257_v58, %v6257_v58  ;;  %10492 = vmatmul.mubr.msk.bf16.vlgmr.msra.gmra.mrb[180].mxu1 %vm5349_vm12, %v6264_v13  ;;  %v6238_v51 = vpop.xlane.xlu1 %6237 }
0x12a1   : > { %10502 = vmatpush3.bf16.msra.mxu1 %v6374_v38  ;;  %10996 = vrcp.f32 %v6238_v51  ;;  %10503 = vmatprep.mubr.msk.bf16.mxu1 %vm11119_vm2, %v11118_v26 }
0x12a2   : > { %10498 = vmatmul.mubr.msk.bf16.vlgmr.msra.gmra.mrb[192].mxu0 %vm5349_vm12, %v6265_v8  ;;  %v6241_v59 = vpop.xlane.xlu0 %6240  ;;  %10513 = vmatprep.subr.bf16.mxu1 %v11118_v26 }
0x12a3   : > { %10508 = vmatpush3.bf16.msra.mxu0 %v6422_v34  ;;  %10998 = vrcp.f32 %v6241_v59  ;;  %v10993_v57 = vpop.eup %10992  ;;  %10509 = vmatprep.mubr.msk.bf16.mxu0 %vm11119_vm2, %v11118_v26 }
0x12a4   : > { %v6258_v15 = vmul.f32 %v10993_v57, %v12552_v33  ;;  %10519 = vmatprep.subr.bf16.mxu0 %v11118_v26  ;;  %v6609_v55 = vpop.permute.xlu1 %6608 }
0x12a5   : > { %v6614_v61 = vsel %vm5353_vm10, %v6609_v55, 0 }
0x12a6   : > { %v6266_v37 = vpack.c.bf16 %v6258_v15, %v6258_v15  ;;  %v6561_v14 = vpop.permute.xlu0 %6560 }
0x12a7   : > { %v10995_v32 = vpop.eup %10994  ;;  %v6566_v39 = vsel %vm5353_vm10, %v6561_v14, 0 }
0x12a8   : > { %10504 = vmatmul.mubr.msk.bf16.vlgmr.msra.gmra.mrb[184].mxu1 %vm5349_vm12, %v6266_v37  ;;  %v6259_v43 = vmul.f32 %v10995_v32, %v12556_v27 }
0x12a9   : > { %10514 = vmatpush3.bf16.msra.mxu1 %v6470_v25  ;;  %10515 = vmatprep.mubr.msk.bf16.mxu1 %vm11119_vm2, %v11118_v26 }
0x12aa   : > { %v6267_v28 = vpack.c.bf16 %v6259_v43, %v6259_v43  ;;  %10525 = vmatprep.subr.bf16.mxu1 %v11118_v26 }
0x12ab   : > { %v10997_v44 = vpop.eup %10996 }
0x12ac   : > { %10510 = vmatmul.mubr.msk.bf16.vlgmr.msra.gmra.mrb[196].mxu0 %vm5349_vm12, %v6267_v28  ;;  %v6260_v33 = vmul.f32 %v10997_v44, %v12560_v40 }
0x12ad   : > { %v10999_v2 = vpop.eup %10998  ;;  %10520 = vmatpush3.bf16.msra.mxu0 %v6518_v5  ;;  %10521 = vmatprep.mubr.msk.bf16.mxu0 %vm11119_vm2, %v11118_v26 }
0x12ae   : > { %v6268_v27 = vpack.c.bf16 %v6260_v33, %v6260_v33  ;;  %10531 = vmatprep.subr.bf16.mxu0 %v11118_v26  ;;  %v6261_v63 = vmul.f32 %v10999_v2, %v12562_v50 }
0x12b0   : > { %10516 = vmatmul.mubr.msk.bf16.vlgmr.msra.gmra.mrb[188].mxu1 %vm5349_vm12, %v6268_v27  ;;  %v6269_v40 = vpack.c.bf16 %v6261_v63, %v6261_v63 }
0x12b1   : > { %10526 = vmatpush3.bf16.msra.mxu1 %v6566_v39  ;;  %10527 = vmatprep.mubr.msk.bf16.mxu1 %vm11119_vm2, %v11118_v26 }
0x12b2   : > { %10537 = vmatprep.subr.bf16.mxu1 %v11118_v26 }
0x12b4   : > { %10522 = vmatmul.mubr.msk.bf16.vlgmr.msra.gmra.mrb[200].mxu0 %vm5349_vm12, %v6269_v40 }
0x12b5   : > { %10532 = vmatpush3.bf16.msra.mxu0 %v6614_v61  ;;  %10533 = vmatprep.mubr.msk.bf16.mxu0 %vm11119_vm2, %v11118_v26 }
0x12b6   : > { %10543 = vmatprep.subr.bf16.mxu0 %v11118_v26 }
0x12d5   : > { %v6244_v50 = vpop.xlane.xlu1 %6243 }
0x12d6   : > { %11000 = vrcp.f32 %v6244_v50 }
0x12d7   : > { %v6247_v24 = vpop.xlane.xlu0 %6246 }
0x12d8   : > { %11002 = vrcp.f32 %v6247_v24 }
0x12d9   : > { %v6737_v48 = vpop.permute.xlu1 %6736 }
0x12da   : > { %v6742_v10 = vsel %vm889_vm3, %v6737_v48, 0 }
0x12db   : > { %v6687_v19 = vpop.permute.xlu0 %6686 }
0x12dc   : > { %v6692_v1 = vsel %vm889_vm3, %v6687_v19, 0 }
0x12dd   : > { %v6735_v17 = vpop.permute.xlu1 %6734 }
0x12df   : > { %v6685_v47 = vpop.permute.xlu0 %6684 }
0x12e0   : > { %v11001_v35 = vpop.eup %11000 }
0x12e1   : > { %v6837_v62 = vpop.permute.xlu1 %6836  ;;  %v6262_v56 = vmul.f32 %v11001_v35, %v12573_v0 }
0x12e2   : > { %v11003_v20 = vpop.eup %11002  ;;  %v6842_v8 = vsel %vm889_vm3, %v6837_v62, 0 }
0x12e3   : > { %v6787_v45 = vpop.permute.xlu0 %6786  ;;  %v6263_v46 = vmul.f32 %v11003_v20, %v12575_v60  ;;  %v6270_v16 = vpack.c.bf16 %v6262_v56, %v6262_v56 }
0x12e4   : > { %v6792_v13 = vsel %vm889_vm3, %v6787_v45, 0 }
0x12e5   : > { %v6271_v21 = vpack.c.bf16 %v6263_v46, %v6263_v46  ;;  %v6835_v54 = vpop.permute.xlu1 %6834  ;;  %10528 = vmatmul.mubr.msk.bf16.vlgmr.msra.gmra.mrb[192].mxu1 %vm5349_vm12, %v6270_v16 }
0x12e6   : > { %10538 = vmatpush3.bf16.xpose.msra.mxu1 %v6692_v1  ;;  %10539 = vmatprep.mubr.msk.bf16.mxu1 %vm11119_vm2, %v11118_v26 }
0x12e7   : > { %10534 = vmatmul.mubr.msk.bf16.vlgmr.msra.gmra.mrb[204].mxu0 %vm5349_vm12, %v6271_v21  ;;  %v6785_v58 = vpop.permute.xlu0 %6784  ;;  %10549 = vmatprep.subr.bf16.mxu1 %v11118_v26 }
0x12e8   : > { %10544 = vmatpush3.bf16.xpose.msra.mxu0 %v6742_v10  ;;  %10545 = vmatprep.mubr.msk.bf16.mxu0 %vm11119_vm2, %v11118_v26 }
0x12e9   : > { %10555 = vmatprep.subr.bf16.mxu0 %v11118_v26  ;;  %v6937_v0 = vpop.permute.xlu1 %6936 }
0x12ea   : > { %v6942_v59 = vsel %vm889_vm3, %v6937_v0, 0 }
0x12eb   : > { %v6887_v60 = vpop.permute.xlu0 %6886 }
0x12ec   : > { %v6892_v34 = vsel %vm889_vm3, %v6887_v60, 0 }
0x12ed   : > { %10540 = vmatmul.mubr.msk.bf16.vlgmr.msra.gmra.mrb[196].mxu1 %vm889_vm3, %v6685_v47  ;;  %v6935_v38 = vpop.permute.xlu1 %6934 }
0x12ee   : > { %10550 = vmatpush3.bf16.xpose.msra.mxu1 %v6792_v13  ;;  %10551 = vmatprep.mubr.msk.bf16.mxu1 %vm11119_vm2, %v11118_v26 }
0x12ef   : > { %10546 = vmatmul.mubr.msk.bf16.vlgmr.msra.gmra.mrb[208].mxu0 %vm889_vm3, %v6735_v17  ;;  %10561 = vmatprep.subr.bf16.mxu1 %v11118_v26  ;;  %v6885_v51 = vpop.permute.xlu0 %6884 }
0x12f0   : > { %10556 = vmatpush3.bf16.xpose.msra.mxu0 %v6842_v8  ;;  %10557 = vmatprep.mubr.msk.bf16.mxu0 %vm11119_vm2, %v11118_v26 }
0x12f1   : > { %10567 = vmatprep.subr.bf16.mxu0 %v11118_v26  ;;  %v7037_v57 = vpop.permute.xlu1 %7036 }
0x12f2   : > { %v7042_v43 = vsel %vm889_vm3, %v7037_v57, 0 }
0x12f3   : > { %v6987_v15 = vpop.permute.xlu0 %6986 }
0x12f4   : > { %v6992_v32 = vsel %vm889_vm3, %v6987_v15, 0 }
0x12f5   : > { %10552 = vmatmul.mubr.msk.bf16.vlgmr.msra.gmra.mrb[200].mxu1 %vm889_vm3, %v6785_v58  ;;  %v7035_v37 = vpop.permute.xlu1 %7034 }
0x12f6   : > { %10562 = vmatpush3.bf16.xpose.msra.mxu1 %v6892_v34  ;;  %10563 = vmatprep.mubr.msk.bf16.mxu1 %vm11119_vm2, %v11118_v26 }
0x12f7   : > { %10558 = vmatmul.mubr.msk.bf16.vlgmr.msra.gmra.mrb[212].mxu0 %vm889_vm3, %v6835_v54  ;;  %10573 = vmatprep.subr.bf16.mxu1 %v11118_v26  ;;  %v6985_v25 = vpop.permute.xlu0 %6984 }
0x12f8   : > { %10568 = vmatpush3.bf16.xpose.msra.mxu0 %v6942_v59  ;;  %10569 = vmatprep.mubr.msk.bf16.mxu0 %vm11119_vm2, %v11118_v26 }
0x12f9   : > { %10579 = vmatprep.subr.bf16.mxu0 %v11118_v26  ;;  %v7189_v28 = vpop.permute.xlu1 %7188 }
0x12fa   : > { %v7194_v2 = vsel %vm5353_vm10, %v7189_v28, 0 }
0x12fb   : > { %v7237_v44 = vpop.permute.xlu0 %7236 }
0x12fc   : > { %v7242_v5 = vsel %vm5353_vm10, %v7237_v44, 0 }
0x12fd   : > { %10564 = vmatmul.mubr.msk.bf16.vlgmr.msra.gmra.mrb[204].mxu1 %vm889_vm3, %v6885_v51 }
0x12fe   : > { %10574 = vmatpush3.bf16.xpose.msra.mxu1 %v6992_v32  ;;  %10575 = vmatprep.mubr.msk.bf16.mxu1 %vm11119_vm2, %v11118_v26 }
0x12ff   : > { %10570 = vmatmul.mubr.msk.bf16.vlgmr.msra.gmra.mrb[216].mxu0 %vm889_vm3, %v6935_v38  ;;  %10585 = vmatprep.subr.bf16.mxu1 %v11118_v26 }
0x1300   : > { %10580 = vmatpush3.bf16.xpose.msra.mxu0 %v7042_v43  ;;  %10581 = vmatprep.mubr.msk.bf16.mxu0 %vm11119_vm2, %v11118_v26 }
0x1301   : > { %10591 = vmatprep.subr.bf16.mxu0 %v11118_v26 }
0x1305   : > { %10576 = vmatmul.mubr.msk.bf16.vlgmr.msra.gmra.mrb[208].mxu1 %vm889_vm3, %v6985_v25 }
0x1306   : > { %10586 = vmatpush3.bf16.msra.mxu1 %v7194_v2  ;;  %10587 = vmatprep.mubr.msk.bf16.mxu1 %vm11119_vm2, %v11118_v26 }
0x1307   : > { %10582 = vmatmul.mubr.msk.bf16.vlgmr.msra.gmra.mrb[220].mxu0 %vm889_vm3, %v7035_v37  ;;  %10597 = vmatprep.subr.bf16.mxu1 %v11118_v26 }
0x1308   : > { %10592 = vmatpush3.bf16.msra.mxu0 %v7242_v5  ;;  %10593 = vmatprep.mubr.msk.bf16.mxu0 %vm11119_vm2, %v11118_v26 }
0x1309   : > { %10603 = vmatprep.subr.bf16.mxu0 %v11118_v26 }
0x1373   : > { %v12711_v33 = vpop.f32.mrb[180].mxu1 }
0x1374   : > { %v10493_v14 = vpop.f32.mrb[181].mxu1 }
0x1375   : > { %v12713_v27 = vpop.f32.mrb[192].mxu0  ;;  %v6317_v63 = vpop.f32.mrb[182].mxu1 }
0x1376   : > { %v6664_v39 = vcombine.low %v12711_v33, %v12713_v27  ;;  %v10499_v55 = vpop.f32.mrb[193].mxu0  ;;  %v10494_v40 = vpop.f32.mrb[183].mxu1 }
0x1377   : > { %v6365_v61 = vpop.f32.mrb[194].mxu0 }
0x1378   : > { %v10500_v50 = vpop.f32.mrb[195].mxu0 }
0x137b   : > { %v12717_v24 = vpop.f32.mrb[184].mxu1 }
0x137c   : > { %v10505_v48 = vpop.f32.mrb[185].mxu1 }
0x137d   : > { %v6413_v19 = vpop.f32.mrb[186].mxu1 }
0x137e   : > { %v10506_v17 = vpop.f32.mrb[187].mxu1 }
0x137f   : > { %v12719_v47 = vpop.f32.mrb[196].mxu0 }
0x1380   : > { %v6665_v35 = vcombine.low %v12717_v24, %v12719_v47  ;;  %v10511_v20 = vpop.f32.mrb[197].mxu0 }
0x1381   : > { %v6461_v62 = vpop.f32.mrb[198].mxu0 }
0x1382   : > { %v10512_v56 = vpop.f32.mrb[199].mxu0 }
0x1383   : > { %v12723_v45 = vpop.f32.mrb[188].mxu1 }
0x1384   : > { %v10517_v46 = vpop.f32.mrb[189].mxu1 }
0x1385   : > { %v6509_v16 = vpop.f32.mrb[190].mxu1 }
0x1386   : > { %v10518_v21 = vpop.f32.mrb[191].mxu1 }
0x1387   : > { %v12725_v1 = vpop.f32.mrb[200].mxu0 }
0x1388   : > { %v6666_v54 = vcombine.low %v12723_v45, %v12725_v1  ;;  %v10523_v10 = vpop.f32.mrb[201].mxu0 }
0x1389   : > { %v6557_v58 = vpop.f32.mrb[202].mxu0 }
0x138a   : > { %v10524_v0 = vpop.f32.mrb[203].mxu0 }
0x13b8   : > { %v12729_v60 = vpop.f32.mrb[192].mxu1 }
0x13b9   : > { %v10529_v13 = vpop.f32.mrb[193].mxu1 }
0x13ba   : > { %v12731_v8 = vpop.f32.mrb[204].mxu0  ;;  %v6605_v38 = vpop.f32.mrb[194].mxu1 }
0x13bb   : > { %v6667_v51 = vcombine.low %v12729_v60, %v12731_v8  ;;  %v10535_v34 = vpop.f32.mrb[205].mxu0  ;;  %v10530_v59 = vpop.f32.mrb[195].mxu1 }
0x13bc   : > { %v6653_v57 = vpop.f32.mrb[206].mxu0 }
0x13bd   : > { %v10536_v15 = vpop.f32.mrb[207].mxu0 }
0x13c0   : > { %v6728_v37 = vpop.f32.mrb[196].mxu1 }
0x13c1   : > { %v12735_v32 = vmul.f32 0.35355338, %v6728_v37  ;;  %v10541_v25 = vpop.f32.mrb[197].mxu1 }
0x13c2   : > { %v6778_v43 = vpop.f32.mrb[208].mxu0  ;;  %v6731_v28 = vpop.f32.mrb[198].mxu1 }
0x13c3   : > { %v7085_v44 = vmul.f32 0.35355338, %v6778_v43  ;;  %v10547_v2 = vpop.f32.mrb[209].mxu0  ;;  %v10542_v5 = vpop.f32.mrb[199].mxu1  ;;  %v7092_v14 = vsel %vm5249_vm11, %v12735_v32, -inf }
0x13c4   : > { %v6781_v63 = vpop.f32.mrb[210].mxu0  ;;  %7093 = vmax.xlane.f32.xlu0 %v7092_v14 }
0x13c5   : > { %v10548_v55 = vpop.f32.mrb[211].mxu0  ;;  %v7095_v40 = vsel %vm5249_vm11, %v7085_v44, -inf }
0x13c6   : > { %7096 = vmax.xlane.f32.xlu1 %v7095_v40 }
0x13c8   : > { %v6828_v61 = vpop.f32.mrb[200].mxu1 }
0x13c9   : > { %v7086_v50 = vmul.f32 0.35355338, %v6828_v61  ;;  %v10553_v48 = vpop.f32.mrb[201].mxu1 }
0x13ca   : > { %v6878_v19 = vpop.f32.mrb[212].mxu0  ;;  %v6831_v17 = vpop.f32.mrb[202].mxu1 }
0x13cb   : > { %v10559_v20 = vpop.f32.mrb[213].mxu0  ;;  %v7087_v62 = vmul.f32 0.35355338, %v6878_v19  ;;  %v10554_v56 = vpop.f32.mrb[203].mxu1  ;;  %v7098_v46 = vsel %vm5249_vm11, %v7086_v50, -inf }
0x13cc   : > { %v6881_v16 = vpop.f32.mrb[214].mxu0  ;;  %7099 = vmax.xlane.f32.xlu0 %v7098_v46  ;;  %v12753_v46 = vpop.permute.xlu1 %7284 }
0x13cd   : > { %v10560_v21 = vpop.f32.mrb[215].mxu0  ;;  %v7101_v10 = vsel %vm5249_vm11, %v7087_v62, -inf }
0x13d0   : > { %v6928_v58 = vpop.f32.mrb[204].mxu1  ;;  %7102 = vmax.xlane.f32.xlu0 %v7101_v10  ;;  %v12755_v16 = vpop.permute.xlu1 %7332 }
0x13d1   : > { %v7088_v0 = vmul.f32 0.35355338, %v6928_v58  ;;  %v10565_v13 = vpop.f32.mrb[205].mxu1 }
0x13d2   : > { %v6978_v38 = vpop.f32.mrb[216].mxu0  ;;  %v6931_v34 = vpop.f32.mrb[206].mxu1 }
0x13d3   : > { %v7089_v59 = vmul.f32 0.35355338, %v6978_v38  ;;  %v10571_v57 = vpop.f32.mrb[217].mxu0  ;;  %v10566_v15 = vpop.f32.mrb[207].mxu1  ;;  %v7104_v37 = vsel %vm5249_vm11, %v7088_v0, -inf }
0x13d4   : > { %v6981_v25 = vpop.f32.mrb[218].mxu0  ;;  %7105 = vmax.xlane.f32.xlu1 %v7104_v37 }
0x13d5   : > { %v10572_v43 = vpop.f32.mrb[219].mxu0  ;;  %v7107_v28 = vsel %vm5249_vm11, %v7089_v59, -inf }
0x13d6   : > { %7108 = vmax.xlane.f32.xlu0 %v7107_v28 }
0x13d8   : > { %v7028_v2 = vpop.f32.mrb[208].mxu1 }
0x13d9   : > { %v12744_v5 = vmul.f32 0.35355338, %v7028_v2  ;;  %v10577_v14 = vpop.f32.mrb[209].mxu1 }
0x13da   : > { %v7078_v63 = vpop.f32.mrb[220].mxu0  ;;  %v7031_v55 = vpop.f32.mrb[210].mxu1 }
0x13db   : > { %v7091_v40 = vmul.f32 0.35355338, %v7078_v63  ;;  %v10583_v61 = vpop.f32.mrb[221].mxu0  ;;  %v10578_v48 = vpop.f32.mrb[211].mxu1  ;;  %v7110_v19 = vsel %vm5249_vm11, %v12744_v5, -inf }
0x13dc   : > { %v7081_v17 = vpop.f32.mrb[222].mxu0  ;;  %7111 = vmax.xlane.f32.xlu1 %v7110_v19 }
0x13dd   : > { %v10584_v20 = vpop.f32.mrb[223].mxu0  ;;  %v7113_v56 = vsel %vm5249_vm11, %v7091_v40, -inf }
0x13de   : > { %7114 = vmax.xlane.f32.xlu0 %v7113_v56 }
0x13ed   : > { %7428 = vrot.lane.b32.xlu1 %v12259_v12, %s11124_s15 }
0x13f4   : > { %7380 = vrot.lane.b32.xlu0 %v12255_v41, %s11124_s15 }
0x1451   : > { %v7094_v21 = vpop.xlane.xlu0 %7093 }
0x1452   : > { %v7116_v10 = vsub.f32 %v12735_v32, %v7094_v21 }
0x1453   : > { %v7097_v58 = vpop.xlane.xlu1 %7096 }
0x1454   : > { %v7117_v13 = vsub.f32 %v7085_v44, %v7097_v58  ;;  %v7124_v38 = vmul.f32 1.442695, %v7116_v10 }
0x1456   : > { %v7126_v34 = vmul.f32 1.442695, %v7117_v13  ;;  %11004 = vpow2.f32 %v7124_v38 }
0x1458   : > { %11006 = vpow2.f32 %v7126_v34 }
0x1459   : > { %v7100_v57 = vpop.xlane.xlu0 %7099 }
0x145a   : > { %v7118_v15 = vsub.f32 %v7086_v50, %v7100_v57 }
0x145c   : > { %v7128_v37 = vmul.f32 1.442695, %v7118_v15 }
0x145d   : > { %v7103_v25 = vpop.xlane.xlu0 %7102 }
0x145e   : > { %11008 = vpow2.f32 %v7128_v37  ;;  %v7119_v43 = vsub.f32 %v7087_v62, %v7103_v25 }
0x1460   : > { %v12758_v28 = vpop.eup %11004  ;;  %v7130_v2 = vmul.f32 1.442695, %v7119_v43 }
0x1461   : > { %v7106_v63 = vpop.xlane.xlu1 %7105  ;;  %v7140_v32 = vsel %vm5249_vm11, %v12758_v28, 0.0 }
0x1462   : > { %v12760_v14 = vpop.eup %11006  ;;  %11010 = vpow2.f32 %v7130_v2  ;;  %v7120_v44 = vsub.f32 %v7088_v0, %v7106_v63  ;;  %7141 = vadd.xlane.f32.xlu1 %v7140_v32 }
0x1463   : > { %v7109_v55 = vpop.xlane.xlu0 %7108  ;;  %v7143_v50 = vsel %vm5249_vm11, %v12760_v14, 0.0 }
0x1464   : > { %v7121_v61 = vsub.f32 %v7089_v59, %v7109_v55  ;;  %7144 = vadd.xlane.f32.xlu0 %v7143_v50  ;;  %v7132_v48 = vmul.f32 1.442695, %v7120_v44  ;;  %v7338_v55 = vsel %vm5353_vm10, %v12755_v16, 0 }
0x1466   : > { %v7134_v62 = vmul.f32 1.442695, %v7121_v61  ;;  %11012 = vpow2.f32 %v7132_v48 }
0x1468   : > { %11014 = vpow2.f32 %v7134_v62  ;;  %v12766_v19 = vpop.eup %11008 }
0x1469   : > { %v7146_v17 = vsel %vm5249_vm11, %v12766_v19, 0.0  ;;  %v7112_v58 = vpop.xlane.xlu1 %7111 }
0x146a   : > { %7147 = vadd.xlane.f32.xlu1 %v7146_v17  ;;  %v7122_v38 = vsub.f32 %v12744_v5, %v7112_v58 }
0x146b   : > { %v7115_v13 = vpop.xlane.xlu0 %7114 }
0x146c   : > { %v12770_v20 = vpop.eup %11010  ;;  %v7123_v34 = vsub.f32 %v7091_v40, %v7115_v13  ;;  %v7136_v57 = vmul.f32 1.442695, %v7122_v38 }
0x146d   : > { %v7149_v0 = vsel %vm5249_vm11, %v12770_v20, 0.0 }
0x146e   : > { %7150 = vadd.xlane.f32.xlu0 %v7149_v0  ;;  %v7138_v15 = vmul.f32 1.442695, %v7123_v34  ;;  %11016 = vpow2.f32 %v7136_v57 }
0x1470   : > { %v12774_v56 = vpop.eup %11012  ;;  %11018 = vpow2.f32 %v7138_v15 }
0x1471   : > { %v7152_v21 = vsel %vm5249_vm11, %v12774_v56, 0.0 }
0x1472   : > { %v12776_v59 = vpop.eup %11014  ;;  %7153 = vadd.xlane.f32.xlu1 %v7152_v21 }
0x1473   : > { %v7155_v10 = vsel %vm5249_vm11, %v12776_v59, 0.0 }
0x1474   : > { %7156 = vadd.xlane.f32.xlu0 %v7155_v10 }
0x1478   : > { %v12787_v37 = vpop.eup %11016 }
0x1479   : > { %v7158_v43 = vsel %vm5249_vm11, %v12787_v37, 0.0 }
0x147a   : > { %v12789_v25 = vpop.eup %11018 }
0x147b   : > { %v7161_v2 = vsel %vm5249_vm11, %v12789_v25, 0.0 }
0x1483   : > { %7524 = vrot.lane.b32.xlu1 %v12285_v4, %s11124_s15 }
0x148a   : > { %7476 = vrot.lane.b32.xlu0 %v12282_v36, %s11124_s15 }
0x14a7   : > { %7159 = vadd.xlane.f32.xlu1 %v7158_v43 }
0x14a9   : > { %7162 = vadd.xlane.f32.xlu0 %v7161_v2 }
0x14b8   : > { %7652 = vrot.lane.b32.xlu1 %v12211_v53, %s11125_s16 }
0x14bc   : > { %7650 = vrot.lane.b32.xlu1 %v12236_v52, %s11125_s16  ;;  %v7381_v52 = vpop.permute.xlu0 %7380 }
0x14bd   : > { %v7386_v61 = vsel %vm5353_vm10, %v7381_v52, 0 }
0x14bf   : > { %7602 = vrot.lane.b32.xlu0 %v12209_v42, %s11125_s16 }
0x14c0   : > { %7752 = vrot.lane.b32.xlu1 %v12229_v9, %s11125_s16 }
0x14c3   : > { %7600 = vrot.lane.b32.xlu0 %v12234_v18, %s11125_s16  ;;  %v7429_v18 = vpop.permute.xlu1 %7428 }
0x14c4   : > { %7750 = vrot.lane.b32.xlu1 %v12265_v49, %s11125_s16 }
0x14c7   : > { %7702 = vrot.lane.b32.xlu0 %v12217_v30, %s11125_s16 }
0x14c8   : > { %7852 = vrot.lane.b32.xlu1 %v12259_v12, %s11125_s16 }
0x14cb   : > { %7700 = vrot.lane.b32.xlu0 %v12263_v22, %s11125_s16 }
0x14cc   : > { %7850 = vrot.lane.b32.xlu1 %v12291_v11, %s11125_s16 }
0x14cf   : > { %7802 = vrot.lane.b32.xlu0 %v12255_v41, %s11125_s16 }
0x14d0   : > { %7952 = vrot.lane.b32.xlu1 %v12285_v4, %s11125_s16 }
0x14d3   : > { %7800 = vrot.lane.b32.xlu0 %v12289_v6, %s11125_s16 }
0x14d4   : > { %7950 = vrot.lane.b32.xlu1 %v12313_v29, %s11125_s16 }
0x14d7   : > { %7902 = vrot.lane.b32.xlu0 %v12282_v36, %s11125_s16 }
0x14d8   : > { %8104 = vrot.lane.b32.xlu1 %v12209_v42, %s11126_s17 }
0x14db   : > { %7900 = vrot.lane.b32.xlu0 %v12311_v31, %s11125_s16  ;;  %v7290_v31 = vsel %vm5353_vm10, %v12753_v46, 0 }
0x14ef   : > { %v7142_v22 = vpop.xlane.xlu1 %7141 }
0x14f0   : > { %11020 = vrcp.f32 %v7142_v22 }
0x14f1   : > { %v7145_v49 = vpop.xlane.xlu0 %7144 }
0x14f2   : > { %11022 = vrcp.f32 %v7145_v49 }
0x14f7   : > { %v7148_v11 = vpop.xlane.xlu1 %7147 }
0x14f8   : > { %11024 = vrcp.f32 %v7148_v11 }
0x14fa   : > { %v11021_v6 = vpop.eup %11020 }
0x14fb   : > { %v7172_v29 = vmul.f32 %v11021_v6, %v12758_v28  ;;  %v7151_v40 = vpop.xlane.xlu0 %7150 }
0x14fc   : > { %v11023_v5 = vpop.eup %11022  ;;  %11026 = vrcp.f32 %v7151_v40 }
0x14fd   : > { %v7173_v63 = vmul.f32 %v11023_v5, %v12760_v14  ;;  %v7180_v42 = vpack.c.bf16 %v7172_v29, %v7172_v29 }
0x14ff   : > { %v7181_v32 = vpack.c.bf16 %v7173_v63, %v7173_v63  ;;  %10588 = vmatmul.mubr.msk.bf16.vlgmr.msra.gmra.mrb[212].mxu1 %vm5349_vm12, %v7180_v42  ;;  %v7154_v44 = vpop.xlane.xlu1 %7153 }
0x1500   : > { %10598 = vmatpush3.bf16.msra.mxu1 %v7290_v31  ;;  %11028 = vrcp.f32 %v7154_v44  ;;  %10599 = vmatprep.mubr.msk.bf16.mxu1 %vm11119_vm2, %v11118_v26 }
0x1501   : > { %10594 = vmatmul.mubr.msk.bf16.vlgmr.msra.gmra.mrb[224].mxu0 %vm5349_vm12, %v7181_v32  ;;  %v7157_v28 = vpop.xlane.xlu0 %7156  ;;  %10609 = vmatprep.subr.bf16.mxu1 %v11118_v26 }
0x1502   : > { %10604 = vmatpush3.bf16.msra.mxu0 %v7338_v55  ;;  %11030 = vrcp.f32 %v7157_v28  ;;  %v11025_v14 = vpop.eup %11024  ;;  %10605 = vmatprep.mubr.msk.bf16.mxu0 %vm11119_vm2, %v11118_v26 }
0x1503   : > { %v7174_v46 = vmul.f32 %v11025_v14, %v12766_v19  ;;  %10615 = vmatprep.subr.bf16.mxu0 %v11118_v26  ;;  %v7434_v19 = vsel %vm5353_vm10, %v7429_v18, 0  ;;  %v7525_v38 = vpop.permute.xlu1 %7524 }
0x1504   : > { %v7530_v34 = vsel %vm5353_vm10, %v7525_v38, 0 }
0x1505   : > { %v7182_v16 = vpack.c.bf16 %v7174_v46, %v7174_v46  ;;  %v7477_v10 = vpop.permute.xlu0 %7476 }
0x1506   : > { %v11027_v50 = vpop.eup %11026  ;;  %v7482_v13 = vsel %vm5353_vm10, %v7477_v10, 0 }
0x1507   : > { %v7175_v48 = vmul.f32 %v11027_v50, %v12770_v20  ;;  %10600 = vmatmul.mubr.msk.bf16.vlgmr.msra.gmra.mrb[216].mxu1 %vm5349_vm12, %v7182_v16 }
0x1508   : > { %10610 = vmatpush3.bf16.msra.mxu1 %v7386_v61  ;;  %10611 = vmatprep.mubr.msk.bf16.mxu1 %vm11119_vm2, %v11118_v26 }
0x1509   : > { %v7183_v62 = vpack.c.bf16 %v7175_v48, %v7175_v48  ;;  %10621 = vmatprep.subr.bf16.mxu1 %v11118_v26 }
0x150a   : > { %v11029_v17 = vpop.eup %11028 }
0x150b   : > { %v7176_v21 = vmul.f32 %v11029_v17, %v12774_v56  ;;  %10606 = vmatmul.mubr.msk.bf16.vlgmr.msra.gmra.mrb[228].mxu0 %vm5349_vm12, %v7183_v62 }
0x150c   : > { %v11031_v0 = vpop.eup %11030  ;;  %10616 = vmatpush3.bf16.msra.mxu0 %v7434_v19  ;;  %10617 = vmatprep.mubr.msk.bf16.mxu0 %vm11119_vm2, %v11118_v26 }
0x150d   : > { %v7177_v20 = vmul.f32 %v11031_v0, %v12776_v59  ;;  %v7184_v58 = vpack.c.bf16 %v7176_v21, %v7176_v21  ;;  %10627 = vmatprep.subr.bf16.mxu0 %v11118_v26 }
0x150f   : > { %10612 = vmatmul.mubr.msk.bf16.vlgmr.msra.gmra.mrb[220].mxu1 %vm5349_vm12, %v7184_v58  ;;  %v7185_v56 = vpack.c.bf16 %v7177_v20, %v7177_v20 }
0x1510   : > { %10622 = vmatpush3.bf16.msra.mxu1 %v7482_v13  ;;  %10623 = vmatprep.mubr.msk.bf16.mxu1 %vm11119_vm2, %v11118_v26 }
0x1511   : > { %10633 = vmatprep.subr.bf16.mxu1 %v11118_v26 }
0x1513   : > { %10618 = vmatmul.mubr.msk.bf16.vlgmr.msra.gmra.mrb[232].mxu0 %vm5349_vm12, %v7185_v56 }
0x1514   : > { %10628 = vmatpush3.bf16.msra.mxu0 %v7530_v34  ;;  %10629 = vmatprep.mubr.msk.bf16.mxu0 %vm11119_vm2, %v11118_v26 }
0x1515   : > { %10639 = vmatprep.subr.bf16.mxu0 %v11118_v26 }
0x1534   : > { %v7160_v59 = vpop.xlane.xlu1 %7159 }
0x1535   : > { %11032 = vrcp.f32 %v7160_v59 }
0x1536   : > { %v7163_v57 = vpop.xlane.xlu0 %7162 }
0x1537   : > { %11034 = vrcp.f32 %v7163_v57 }
0x1538   : > { %v7653_v15 = vpop.permute.xlu1 %7652 }
0x1539   : > { %v7658_v32 = vsel %vm889_vm3, %v7653_v15, 0 }
0x153a   : > { %v7603_v43 = vpop.permute.xlu0 %7602 }
0x153b   : > { %v7608_v63 = vsel %vm889_vm3, %v7603_v43, 0 }
0x153c   : > { %v7651_v2 = vpop.permute.xlu1 %7650 }
0x153e   : > { %v7601_v18 = vpop.permute.xlu0 %7600 }
0x153f   : > { %v11033_v52 = vpop.eup %11032 }
0x1540   : > { %v7178_v49 = vmul.f32 %v11033_v52, %v12787_v37  ;;  %v7753_v11 = vpop.permute.xlu1 %7752 }
0x1541   : > { %v11035_v22 = vpop.eup %11034  ;;  %v7758_v44 = vsel %vm889_vm3, %v7753_v11, 0 }
0x1542   : > { %v7179_v6 = vmul.f32 %v11035_v22, %v12789_v25  ;;  %v7703_v5 = vpop.permute.xlu0 %7702  ;;  %v7186_v29 = vpack.c.bf16 %v7178_v49, %v7178_v49 }
0x1543   : > { %v7708_v31 = vsel %vm889_vm3, %v7703_v5, 0 }
0x1544   : > { %v7187_v40 = vpack.c.bf16 %v7179_v6, %v7179_v6  ;;  %v7751_v42 = vpop.permute.xlu1 %7750  ;;  %10624 = vmatmul.mubr.msk.bf16.vlgmr.msra.gmra.mrb[224].mxu1 %vm5349_vm12, %v7186_v29 }
0x1545   : > { %10634 = vmatpush3.bf16.xpose.msra.mxu1 %v7608_v63  ;;  %10635 = vmatprep.mubr.msk.bf16.mxu1 %vm11119_vm2, %v11118_v26 }
0x1546   : > { %10630 = vmatmul.mubr.msk.bf16.vlgmr.msra.gmra.mrb[236].mxu0 %vm5349_vm12, %v7187_v40  ;;  %v7701_v37 = vpop.permute.xlu0 %7700  ;;  %10645 = vmatprep.subr.bf16.mxu1 %v11118_v26 }
0x1547   : > { %10640 = vmatpush3.bf16.xpose.msra.mxu0 %v7658_v32  ;;  %10641 = vmatprep.mubr.msk.bf16.mxu0 %vm11119_vm2, %v11118_v26 }
0x1548   : > { %10651 = vmatprep.subr.bf16.mxu0 %v11118_v26  ;;  %v7853_v25 = vpop.permute.xlu1 %7852 }
0x1549   : > { %v7858_v16 = vsel %vm889_vm3, %v7853_v25, 0 }
0x154a   : > { %v7803_v55 = vpop.permute.xlu0 %7802 }
0x154b   : > { %v7808_v46 = vsel %vm889_vm3, %v7803_v55, 0 }
0x154c   : > { %10636 = vmatmul.mubr.msk.bf16.vlgmr.msra.gmra.mrb[228].mxu1 %vm889_vm3, %v7601_v18  ;;  %v7851_v28 = vpop.permute.xlu1 %7850 }
0x154d   : > { %10646 = vmatpush3.bf16.xpose.msra.mxu1 %v7708_v31  ;;  %10647 = vmatprep.mubr.msk.bf16.mxu1 %vm11119_vm2, %v11118_v26 }
0x154e   : > { %10642 = vmatmul.mubr.msk.bf16.vlgmr.msra.gmra.mrb[240].mxu0 %vm889_vm3, %v7651_v2  ;;  %10657 = vmatprep.subr.bf16.mxu1 %v11118_v26  ;;  %v7801_v14 = vpop.permute.xlu0 %7800 }
0x154f   : > { %10652 = vmatpush3.bf16.xpose.msra.mxu0 %v7758_v44  ;;  %10653 = vmatprep.mubr.msk.bf16.mxu0 %vm11119_vm2, %v11118_v26 }
0x1550   : > { %10663 = vmatprep.subr.bf16.mxu0 %v11118_v26  ;;  %v7953_v50 = vpop.permute.xlu1 %7952 }
0x1551   : > { %v7958_v17 = vsel %vm889_vm3, %v7953_v50, 0 }
0x1552   : > { %v7903_v61 = vpop.permute.xlu0 %7902 }
0x1553   : > { %v7908_v62 = vsel %vm889_vm3, %v7903_v61, 0 }
0x1554   : > { %10648 = vmatmul.mubr.msk.bf16.vlgmr.msra.gmra.mrb[232].mxu1 %vm889_vm3, %v7701_v37  ;;  %v7951_v48 = vpop.permute.xlu1 %7950 }
0x1555   : > { %10658 = vmatpush3.bf16.xpose.msra.mxu1 %v7808_v46  ;;  %10659 = vmatprep.mubr.msk.bf16.mxu1 %vm11119_vm2, %v11118_v26 }
0x1556   : > { %10654 = vmatmul.mubr.msk.bf16.vlgmr.msra.gmra.mrb[244].mxu0 %vm889_vm3, %v7751_v42  ;;  %10669 = vmatprep.subr.bf16.mxu1 %v11118_v26  ;;  %v7901_v19 = vpop.permute.xlu0 %7900 }
0x1557   : > { %10664 = vmatpush3.bf16.xpose.msra.mxu0 %v7858_v16  ;;  %10665 = vmatprep.mubr.msk.bf16.mxu0 %vm11119_vm2, %v11118_v26 }
0x1558   : > { %10675 = vmatprep.subr.bf16.mxu0 %v11118_v26  ;;  %v8105_v0 = vpop.permute.xlu1 %8104 }
0x1559   : > { %v8110_v21 = vsel %vm5353_vm10, %v8105_v0, 0 }
0x155c   : > { %10660 = vmatmul.mubr.msk.bf16.vlgmr.msra.gmra.mrb[236].mxu1 %vm889_vm3, %v7801_v14 }
0x155d   : > { %10670 = vmatpush3.bf16.xpose.msra.mxu1 %v7908_v62  ;;  %10671 = vmatprep.mubr.msk.bf16.mxu1 %vm11119_vm2, %v11118_v26 }
0x155e   : > { %10666 = vmatmul.mubr.msk.bf16.vlgmr.msra.gmra.mrb[248].mxu0 %vm889_vm3, %v7851_v28  ;;  %10681 = vmatprep.subr.bf16.mxu1 %v11118_v26 }
0x155f   : > { %10676 = vmatpush3.bf16.xpose.msra.mxu0 %v7958_v17  ;;  %10677 = vmatprep.mubr.msk.bf16.mxu0 %vm11119_vm2, %v11118_v26 }
0x1560   : > { %10687 = vmatprep.subr.bf16.mxu0 %v11118_v26 }
0x1564   : > { %10672 = vmatmul.mubr.msk.bf16.vlgmr.msra.gmra.mrb[240].mxu1 %vm889_vm3, %v7901_v19 }
0x1565   : > { %10682 = vmatpush3.bf16.msra.mxu1 %v8110_v21  ;;  %10683 = vmatprep.mubr.msk.bf16.mxu1 %vm11119_vm2, %v11118_v26 }
0x1566   : > { %10678 = vmatmul.mubr.msk.bf16.vlgmr.msra.gmra.mrb[252].mxu0 %vm889_vm3, %v7951_v48  ;;  %10693 = vmatprep.subr.bf16.mxu1 %v11118_v26 }
0x1567   : > { %10689 = vmatprep.mubr.msk.bf16.mxu0 %vm11119_vm2, %v11118_v26 }
0x15d2   : > { %v12917_v10 = vpop.f32.mrb[212].mxu1 }
0x15d3   : > { %v10589_v20 = vpop.f32.mrb[213].mxu1 }
0x15d4   : > { %v12919_v58 = vpop.f32.mrb[224].mxu0  ;;  %v7233_v13 = vpop.f32.mrb[214].mxu1 }
0x15d5   : > { %v7580_v38 = vcombine.low %v12917_v10, %v12919_v58  ;;  %v10595_v56 = vpop.f32.mrb[225].mxu0  ;;  %v10590_v34 = vpop.f32.mrb[215].mxu1 }
0x15d6   : > { %v7281_v59 = vpop.f32.mrb[226].mxu0 }
0x15d7   : > { %v10596_v57 = vpop.f32.mrb[227].mxu0 }
0x15da   : > { %v12923_v15 = vpop.f32.mrb[216].mxu1 }
0x15db   : > { %v10601_v43 = vpop.f32.mrb[217].mxu1 }
0x15dc   : > { %v7329_v2 = vpop.f32.mrb[218].mxu1 }
0x15dd   : > { %v10602_v18 = vpop.f32.mrb[219].mxu1 }
0x15de   : > { %v12925_v52 = vpop.f32.mrb[228].mxu0 }
0x15df   : > { %v7581_v22 = vcombine.low %v12923_v15, %v12925_v52  ;;  %v10607_v49 = vpop.f32.mrb[229].mxu0 }
0x15e0   : > { %v7377_v11 = vpop.f32.mrb[230].mxu0 }
0x15e1   : > { %v10608_v6 = vpop.f32.mrb[231].mxu0 }
0x15e2   : > { %v12929_v5 = vpop.f32.mrb[220].mxu1 }
0x15e3   : > { %v10613_v29 = vpop.f32.mrb[221].mxu1 }
0x15e4   : > { %v7425_v40 = vpop.f32.mrb[222].mxu1 }
0x15e5   : > { %v10614_v63 = vpop.f32.mrb[223].mxu1 }
0x15e6   : > { %v12931_v42 = vpop.f32.mrb[232].mxu0 }
0x15e7   : > { %v7582_v32 = vcombine.low %v12929_v5, %v12931_v42  ;;  %v10619_v37 = vpop.f32.mrb[233].mxu0 }
0x15e8   : > { %v7473_v25 = vpop.f32.mrb[234].mxu0 }
0x15e9   : > { %v10620_v31 = vpop.f32.mrb[235].mxu0 }
0x1617   : > { %v12935_v44 = vpop.f32.mrb[224].mxu1 }
0x1618   : > { %v10625_v55 = vpop.f32.mrb[225].mxu1 }
0x1619   : > { %v12937_v28 = vpop.f32.mrb[236].mxu0  ;;  %v7521_v14 = vpop.f32.mrb[226].mxu1 }
0x161a   : > { %v7583_v46 = vcombine.low %v12935_v44, %v12937_v28  ;;  %v10631_v16 = vpop.f32.mrb[237].mxu0  ;;  %v10626_v50 = vpop.f32.mrb[227].mxu1 }
0x161b   : > { %v7569_v61 = vpop.f32.mrb[238].mxu0 }
0x161c   : > { %v10632_v48 = vpop.f32.mrb[239].mxu0 }
0x161f   : > { %v7644_v62 = vpop.f32.mrb[228].mxu1 }
0x1620   : > { %v8000_v17 = vmul.f32 0.35355338, %v7644_v62  ;;  %v10637_v0 = vpop.f32.mrb[229].mxu1 }
0x1621   : > { %v7694_v19 = vpop.f32.mrb[240].mxu0  ;;  %v7647_v21 = vpop.f32.mrb[230].mxu1 }
0x1622   : > { %v8001_v20 = vmul.f32 0.35355338, %v7694_v19  ;;  %v10643_v13 = vpop.f32.mrb[241].mxu0  ;;  %v10638_v56 = vpop.f32.mrb[231].mxu1  ;;  %v8008_v34 = vsel %vm5249_vm11, %v8000_v17, -inf }
0x1623   : > { %v7697_v59 = vpop.f32.mrb[242].mxu0  ;;  %8009 = vmax.xlane.f32.xlu0 %v8008_v34 }
0x1624   : > { %v10644_v57 = vpop.f32.mrb[243].mxu0  ;;  %v8011_v43 = vsel %vm5249_vm11, %v8001_v20, -inf }
0x1625   : > { %8012 = vmax.xlane.f32.xlu1 %v8011_v43 }
0x1627   : > { %v7744_v2 = vpop.f32.mrb[232].mxu1 }
0x1628   : > { %v8002_v18 = vmul.f32 0.35355338, %v7744_v2  ;;  %v10649_v49 = vpop.f32.mrb[233].mxu1 }
0x1629   : > { %v7794_v11 = vpop.f32.mrb[244].mxu0  ;;  %v7747_v6 = vpop.f32.mrb[234].mxu1 }
0x162a   : > { %v10655_v29 = vpop.f32.mrb[245].mxu0  ;;  %v8003_v40 = vmul.f32 0.35355338, %v7794_v11  ;;  %v10650_v63 = vpop.f32.mrb[235].mxu1  ;;  %v8014_v37 = vsel %vm5249_vm11, %v8002_v18, -inf }
0x162b   : > { %v7797_v25 = vpop.f32.mrb[246].mxu0  ;;  %8015 = vmax.xlane.f32.xlu0 %v8014_v37 }
0x162c   : > { %v10656_v31 = vpop.f32.mrb[247].mxu0  ;;  %v8017_v55 = vsel %vm5249_vm11, %v8003_v40, -inf }
0x162f   : > { %v7844_v14 = vpop.f32.mrb[236].mxu1  ;;  %8018 = vmax.xlane.f32.xlu0 %v8017_v55 }
0x1630   : > { %v12945_v16 = vmul.f32 0.35355338, %v7844_v14  ;;  %v10661_v50 = vpop.f32.mrb[237].mxu1 }
0x1631   : > { %v7894_v61 = vpop.f32.mrb[248].mxu0  ;;  %v7847_v48 = vpop.f32.mrb[238].mxu1 }
0x1632   : > { %v12947_v62 = vmul.f32 0.35355338, %v7894_v61  ;;  %v10667_v0 = vpop.f32.mrb[249].mxu0  ;;  %v10662_v19 = vpop.f32.mrb[239].mxu1  ;;  %v8020_v21 = vsel %vm5249_vm11, %v12945_v16, -inf }
0x1633   : > { %v7897_v13 = vpop.f32.mrb[250].mxu0  ;;  %8021 = vmax.xlane.f32.xlu1 %v8020_v21 }
0x1634   : > { %v10668_v56 = vpop.f32.mrb[251].mxu0  ;;  %v8023_v34 = vsel %vm5249_vm11, %v12947_v62, -inf }
0x1635   : > { %8024 = vmax.xlane.f32.xlu0 %v8023_v34 }
0x1637   : > { %v7944_v59 = vpop.f32.mrb[240].mxu1 }
0x1638   : > { %v8006_v57 = vmul.f32 0.35355338, %v7944_v59  ;;  %v10673_v43 = vpop.f32.mrb[241].mxu1 }
0x1639   : > { %v7994_v2 = vpop.f32.mrb[252].mxu0  ;;  %v7947_v49 = vpop.f32.mrb[242].mxu1 }
0x163a   : > { %v8007_v11 = vmul.f32 0.35355338, %v7994_v2  ;;  %v10679_v6 = vpop.f32.mrb[253].mxu0  ;;  %v10674_v29 = vpop.f32.mrb[243].mxu1  ;;  %v8026_v63 = vsel %vm5249_vm11, %v8006_v57, -inf }
0x163b   : > { %v7997_v37 = vpop.f32.mrb[254].mxu0  ;;  %8027 = vmax.xlane.f32.xlu1 %v8026_v63 }
0x163c   : > { %v10680_v25 = vpop.f32.mrb[255].mxu0  ;;  %v8029_v31 = vsel %vm5249_vm11, %v8007_v11, -inf }
0x163d   : > { %8030 = vmax.xlane.f32.xlu0 %v8029_v31 }
0x164c   : > { %8200 = vrot.lane.b32.xlu1 %v12217_v30, %s11126_s17 }
0x1650   : > { %8248 = vrot.lane.b32.xlu1 %v12229_v9, %s11126_s17 }
0x1653   : > { %8152 = vrot.lane.b32.xlu0 %v12211_v53, %s11126_s17 }
0x16b0   : > { %v8010_v55 = vpop.xlane.xlu0 %8009 }
0x16b1   : > { %v8032_v14 = vsub.f32 %v8000_v17, %v8010_v55 }
0x16b2   : > { %v8013_v50 = vpop.xlane.xlu1 %8012 }
0x16b3   : > { %v8033_v61 = vsub.f32 %v8001_v20, %v8013_v50  ;;  %v8040_v48 = vmul.f32 1.442695, %v8032_v14 }
0x16b5   : > { %v8042_v0 = vmul.f32 1.442695, %v8033_v61  ;;  %11036 = vpow2.f32 %v8040_v48 }
0x16b7   : > { %11038 = vpow2.f32 %v8042_v0 }
0x16b8   : > { %v8016_v19 = vpop.xlane.xlu0 %8015 }
0x16b9   : > { %v8034_v21 = vsub.f32 %v8002_v18, %v8016_v19 }
0x16bb   : > { %v8044_v13 = vmul.f32 1.442695, %v8034_v21 }
0x16bc   : > { %v8019_v56 = vpop.xlane.xlu0 %8018 }
0x16bd   : > { %11040 = vpow2.f32 %v8044_v13  ;;  %v8035_v30 = vsub.f32 %v8003_v40, %v8019_v56 }
0x16bf   : > { %v12961_v34 = vpop.eup %11036  ;;  %v8046_v9 = vmul.f32 1.442695, %v8035_v30 }
0x16c0   : > { %v8056_v53 = vsel %vm5249_vm11, %v12961_v34, 0.0  ;;  %v8022_v63 = vpop.xlane.xlu1 %8021 }
0x16c1   : > { %v12963_v59 = vpop.eup %11038  ;;  %11042 = vpow2.f32 %v8046_v9  ;;  %8057 = vadd.xlane.f32.xlu1 %v8056_v53  ;;  %v8036_v37 = vsub.f32 %v12945_v16, %v8022_v63 }
0x16c2   : > { %v8059_v17 = vsel %vm5249_vm11, %v12963_v59, 0.0  ;;  %v8025_v20 = vpop.xlane.xlu0 %8024 }
0x16c3   : > { %8060 = vadd.xlane.f32.xlu0 %v8059_v17  ;;  %v8037_v31 = vsub.f32 %v12947_v62, %v8025_v20  ;;  %v8048_v55 = vmul.f32 1.442695, %v8036_v37 }
0x16c5   : > { %v8050_v50 = vmul.f32 1.442695, %v8037_v31  ;;  %11044 = vpow2.f32 %v8048_v55 }
0x16c7   : > { %v12969_v18 = vpop.eup %11040  ;;  %11046 = vpow2.f32 %v8050_v50 }
0x16c8   : > { %v8062_v40 = vsel %vm5249_vm11, %v12969_v18, 0.0  ;;  %v8028_v25 = vpop.xlane.xlu1 %8027 }
0x16c9   : > { %8063 = vadd.xlane.f32.xlu1 %v8062_v40  ;;  %v8038_v14 = vsub.f32 %v8006_v57, %v8028_v25 }
0x16ca   : > { %v8031_v43 = vpop.xlane.xlu0 %8030 }
0x16cb   : > { %v12973_v2 = vpop.eup %11042  ;;  %v8052_v61 = vmul.f32 1.442695, %v8038_v14  ;;  %v8039_v48 = vsub.f32 %v8007_v11, %v8031_v43 }
0x16cc   : > { %v8065_v49 = vsel %vm5249_vm11, %v12973_v2, 0.0 }
0x16cd   : > { %8066 = vadd.xlane.f32.xlu0 %v8065_v49  ;;  %11048 = vpow2.f32 %v8052_v61  ;;  %v8054_v0 = vmul.f32 1.442695, %v8039_v48 }
0x16ce   : > { %v8153_v6 = vpop.permute.xlu0 %8152 }
0x16cf   : > { %v8158_v29 = vsel %vm5353_vm10, %v8153_v6, 0  ;;  %11050 = vpow2.f32 %v8054_v0 }
0x16d0   : > { %10688 = vmatpush3.bf16.msra.mxu0 %v8158_v29 }
0x16d1   : > { %10699 = vmatprep.subr.bf16.mxu0 %v11118_v26 }
0x16da   : > { %8344 = vrot.lane.b32.xlu1 %v12259_v12, %s11126_s17  ;;  %v12985_v12 = vpop.eup %11044 }
0x16db   : > { %v12987_v19 = vpop.eup %11046 }
0x16dc   : > { %v12991_v16 = vpop.eup %11048  ;;  %v8071_v57 = vsel %vm5249_vm11, %v12987_v19, 0.0 }
0x16dd   : > { %v8074_v62 = vsel %vm5249_vm11, %v12991_v16, 0.0  ;;  %v12997_v11 = vpop.eup %11050 }
0x16de   : > { %v8077_v21 = vsel %vm5249_vm11, %v12997_v11, 0.0 }
0x16e3   : > { %8296 = vrot.lane.b32.xlu0 %v12255_v41, %s11126_s17  ;;  %v8068_v41 = vsel %vm5249_vm11, %v12985_v12, 0.0 }
0x16fe   : > { %8069 = vadd.xlane.f32.xlu1 %v8068_v41 }
0x1702   : > { %8075 = vadd.xlane.f32.xlu1 %v8074_v62  ;;  %8072 = vadd.xlane.f32.xlu0 %v8071_v57 }
0x1706   : > { %8078 = vadd.xlane.f32.xlu0 %v8077_v21 }
0x1713   : > { %8440 = vrot.lane.b32.xlu1 %v12285_v4, %s11126_s17 }
0x1717   : > { %6670 = vrot.lane.b32.xlu1 %v6665_v35, %s11127_s21 }
0x171b   : > { %6674 = vrot.lane.b32.xlu1 %v6667_v51, %s11127_s21 }
0x171c   : > { %8392 = vrot.lane.b32.xlu0 %v12282_v36, %s11126_s17  ;;  %v8201_v36 = vpop.permute.xlu1 %8200 }
0x171d   : > { %v8206_v8 = vsel %vm5353_vm10, %v8201_v36, 0 }
0x171f   : > { %7586 = vrot.lane.b32.xlu1 %v7581_v22, %s11128_s22 }
0x1720   : > { %6668 = vrot.lane.b32.xlu0 %v6664_v39, %s11127_s21  ;;  %v8249_v4 = vpop.permute.xlu1 %8248 }
0x1721   : > { %v8254_v51 = vsel %vm5353_vm10, %v8249_v4, 0 }
0x1723   : > { %7590 = vrot.lane.b32.xlu1 %v7583_v46, %s11128_s22 }
0x1724   : > { %6672 = vrot.lane.b32.xlu0 %v6666_v54, %s11127_s21 }
0x1728   : > { %7584 = vrot.lane.b32.xlu0 %v7580_v38, %s11128_s22 }
0x172c   : > { %7588 = vrot.lane.b32.xlu0 %v7582_v32, %s11128_s22 }
0x174e   : > { %v8058_v33 = vpop.xlane.xlu1 %8057 }
0x174f   : > { %11052 = vrcp.f32 %v8058_v33 }
0x1750   : > { %v8061_v27 = vpop.xlane.xlu0 %8060 }
0x1751   : > { %11054 = vrcp.f32 %v8061_v27 }
0x1756   : > { %v8064_v39 = vpop.xlane.xlu1 %8063 }
0x1757   : > { %11056 = vrcp.f32 %v8064_v39 }
0x1759   : > { %v11053_v24 = vpop.eup %11052 }
0x175a   : > { %v8088_v35 = vmul.f32 %v11053_v24, %v12961_v34  ;;  %v8067_v45 = vpop.xlane.xlu0 %8066  ;;  %v8345_v42 = vpop.permute.xlu1 %8344 }
0x175b   : > { %v11055_v47 = vpop.eup %11054  ;;  %11058 = vrcp.f32 %v8067_v45  ;;  %v8350_v44 = vsel %vm5353_vm10, %v8345_v42, 0 }
0x175c   : > { %v8089_v1 = vmul.f32 %v11055_v47, %v12963_v59  ;;  %v8096_v54 = vpack.c.bf16 %v8088_v35, %v8088_v35 }
0x175e   : > { %v8097_v60 = vpack.c.bf16 %v8089_v1, %v8089_v1  ;;  %10684 = vmatmul.mubr.msk.bf16.vlgmr.msra.gmra.mrb[244].mxu1 %vm5349_vm12, %v8096_v54  ;;  %v8297_v38 = vpop.permute.xlu0 %8296 }
0x175f   : > { %10694 = vmatpush3.bf16.msra.mxu1 %v8206_v8  ;;  %10695 = vmatprep.mubr.msk.bf16.mxu1 %vm11119_vm2, %v11118_v26  ;;  %v8302_v5 = vsel %vm5353_vm10, %v8297_v38, 0 }
0x1760   : > { %10690 = vmatmul.mubr.msk.bf16.vlgmr.msra.gmra.mrb[0].mxu0 %vm5349_vm12, %v8097_v60  ;;  %10705 = vmatprep.subr.bf16.mxu1 %v11118_v26 }
0x1761   : > { %10700 = vmatpush3.bf16.msra.mxu0 %v8254_v51  ;;  %v11057_v10 = vpop.eup %11056  ;;  %10701 = vmatprep.mubr.msk.bf16.mxu0 %vm11119_vm2, %v11118_v26 }
0x1762   : > { %v8090_v58 = vmul.f32 %v11057_v10, %v12969_v18  ;;  %10711 = vmatprep.subr.bf16.mxu0 %v11118_v26 }
0x1764   : > { %v8098_v15 = vpack.c.bf16 %v8090_v58, %v8090_v58 }
0x1765   : > { %v11059_v52 = vpop.eup %11058 }
0x1766   : > { %v8091_v22 = vmul.f32 %v11059_v52, %v12973_v2  ;;  %10696 = vmatmul.mubr.msk.bf16.vlgmr.msra.gmra.mrb[248].mxu1 %vm5349_vm12, %v8098_v15 }
0x1767   : > { %10706 = vmatpush3.bf16.msra.mxu1 %v8302_v5  ;;  %10707 = vmatprep.mubr.msk.bf16.mxu1 %vm11119_vm2, %v11118_v26 }
0x1768   : > { %v8099_v32 = vpack.c.bf16 %v8091_v22, %v8091_v22  ;;  %10717 = vmatprep.subr.bf16.mxu1 %v11118_v26 }
0x176a   : > { %10702 = vmatmul.mubr.msk.bf16.vlgmr.msra.gmra.mrb[4].mxu0 %vm5349_vm12, %v8099_v32  ;;  %v11095_v32 = vld [vmem:[%s13328_s2 + $0x4] ss:$12 sps:$4 sm:$0xff]  }
0x176b   : > { %10712 = vmatpush3.bf16.msra.mxu0 %v8350_v44  ;;  %10713 = vmatprep.mubr.msk.bf16.mxu0 %vm11119_vm2, %v11118_v26 }
0x176c   : > { %10723 = vmatprep.subr.bf16.mxu0 %v11118_v26 }
0x178b   : > { %v8070_v28 = vpop.xlane.xlu1 %8069 }
0x178c   : > { %11060 = vrcp.f32 %v8070_v28 }
0x178f   : > { %v8076_v46 = vpop.xlane.xlu1 %8075  ;;  %v8073_v13 = vpop.xlane.xlu0 %8072 }
0x1790   : > { %11062 = vrcp.f32 %v8076_v46 }
0x1791   : > { %11064 = vrcp.f32 %v8073_v13 }
0x1793   : > { %v8441_v56 = vpop.permute.xlu1 %8440  ;;  %v8079_v30 = vpop.xlane.xlu0 %8078 }
0x1794   : > { %11066 = vrcp.f32 %v8079_v30  ;;  %v8446_v31 = vsel %vm5353_vm10, %v8441_v56, 0  ;;  %v11096_v30 = vld [vmem:[%s13328_s2 + $0x1c] ss:$12 sps:$4 sm:$0xff]  }
0x1796   : > { %v11061_v34 = vpop.eup %11060 }
0x1797   : > { %v8092_v9 = vmul.f32 %v11061_v34, %v12985_v12  ;;  %v6671_v59 = vpop.permute.xlu1 %6670  ;;  %v8393_v53 = vpop.permute.xlu0 %8392 }
0x1798   : > { %6681 = vst.msk [vmem:[#allocation3 + $0x8] sm:$0xff] %vm2747_vm7, %v6671_v59  ;;  %v8398_v40 = vsel %vm5353_vm10, %v8393_v53, 0 }
0x1799   : > { %v8100_v17 = vpack.c.bf16 %v8092_v9, %v8092_v9 }
0x179a   : > { %v11063_v20 = vpop.eup %11062 }
0x179b   : > { %v11065_v18 = vpop.eup %11064  ;;  %v6675_v43 = vpop.permute.xlu1 %6674  ;;  %10708 = vmatmul.mubr.msk.bf16.vlgmr.msra.gmra.mrb[252].mxu1 %vm5349_vm12, %v8100_v17  ;;  %v8094_v6 = vmul.f32 %v11063_v20, %v12991_v16 }
0x179c   : > { %v6669_v2 = vpop.permute.xlu0 %6668  ;;  %v8093_v49 = vmul.f32 %v11065_v18, %v12987_v19  ;;  %6683 = vst.msk [vmem:[#allocation3 + $0x18] sm:$0xff] %vm2747_vm7, %v6675_v43  ;;  %10718 = vmatpush3.bf16.msra.mxu1 %v8398_v40  ;;  %10719 = vmatprep.mubr.msk.bf16.mxu1 %vm11119_vm2, %v11118_v26 }
0x179d   : > { %6680 = vst.msk [vmem:[#allocation3] sm:$0xff] %vm2747_vm7, %v6669_v2  ;;  %v8102_v55 = vpack.c.bf16 %v8094_v6, %v8094_v6 }
0x179e   : > { %v8101_v29 = vpack.c.bf16 %v8093_v49, %v8093_v49  ;;  %v11067_v63 = vpop.eup %11066 }
0x179f   : > { %v7587_v37 = vpop.permute.xlu1 %7586  ;;  %v8095_v14 = vmul.f32 %v11067_v63, %v12997_v11  ;;  %v13105_v63 = vld [vmem:[%s13330_s4] sm:$0xff] }
0x17a0   : > { %v6673_v25 = vpop.permute.xlu0 %6672  ;;  %7597 = vst.msk [vmem:[#allocation3 + $0x8] sm:$0xff] %vm3686_vm8, %v7587_v37  ;;  %10714 = vmatmul.mubr.msk.bf16.vlgmr.msra.gmra.mrb[8].mxu0 %vm5349_vm12, %v8101_v29  ;;  %v8524_v29 = vsub.s32 3, %v11172_v3 }
0x17a1   : > { %6682 = vst.msk [vmem:[#allocation3 + $0x10] sm:$0xff] %vm2747_vm7, %v6673_v25  ;;  %10724 = vmatpush3.bf16.msra.mxu0 %v8446_v31  ;;  %10725 = vmatprep.mubr.msk.bf16.mxu0 %vm11119_vm2, %v11118_v26  ;;  %v8103_v48 = vpack.c.bf16 %v8095_v14, %v8095_v14 }
0x17a2   : > { %v8525_v37 = vrot.slane %v13105_v63, %v8524_v29 }
0x17a3   : > { %v7591_v50 = vpop.permute.xlu1 %7590  ;;  %10720 = vmatmul.mubr.msk.bf16.vlgmr.msra.gmra.mrb[0].mxu1 %vm5349_vm12, %v8102_v55 }
0x17a4   : > { %v7585_v61 = vpop.permute.xlu0 %7584  ;;  %7599 = vst.msk [vmem:[#allocation3 + $0x18] sm:$0xff] %vm3686_vm8, %v7591_v50 }
0x17a5   : > { %7596 = vst.msk [vmem:[#allocation3] sm:$0xff] %vm3686_vm8, %v7585_v61 }
0x17a8   : > { %v7589_v0 = vpop.permute.xlu0 %7588  ;;  %10726 = vmatmul.mubr.msk.bf16.vlgmr.msra.gmra.mrb[12].mxu0 %vm5349_vm12, %v8103_v48 }
0x17a9   : > { %7598 = vst.msk [vmem:[#allocation3 + $0x10] sm:$0xff] %vm3686_vm8, %v7589_v0 }
0x1831   : > { %v8146_v12 = vpop.f32.mrb[244].mxu1 }
0x1832   : > { %v10685_v19 = vpop.f32.mrb[245].mxu1 }
0x1833   : > { %v8194_v41 = vpop.f32.mrb[0].mxu0  ;;  %v8149_v26 = vpop.f32.mrb[246].mxu1 }
0x1834   : > { %v8496_v16 = vcombine.low %v8146_v12, %v8194_v41  ;;  %v10691_v62 = vpop.f32.mrb[1].mxu0  ;;  %v10686_v57 = vpop.f32.mrb[247].mxu1  ;;  %v11098_v41 = vld [vmem:[#allocation2] sm:$0xf] }
0x1835   : > { %v8197_v11 = vpop.f32.mrb[2].mxu0  ;;  %v11100_v57 = vld [vmem:[#allocation2 + $0x4] sm:$0xf] }
0x1836   : > { %8500 = vrot.lane.b32.xlu0 %v8496_v16, %s11129_s30  ;;  %v10692_v21 = vpop.f32.mrb[3].mxu0  ;;  %v11099_v16 = vld [vmem:[#allocation2 + $0x14] sm:$0xf] }
0x1839   : > { %v8242_v36 = vpop.f32.mrb[248].mxu1 }
0x183a   : > { %v10697_v4 = vpop.f32.mrb[249].mxu1 }
0x183b   : > { %v8245_v33 = vpop.f32.mrb[250].mxu1  ;;  %v11101_v4 = vld [vmem:[#allocation2 + $0x10] sm:$0xf] }
0x183c   : > { %v10698_v27 = vpop.f32.mrb[251].mxu1 }
0x183d   : > { %v8290_v39 = vpop.f32.mrb[4].mxu0  ;;  %v11102_v27 = vld [vmem:[#allocation2 + $0x8] sm:$0xf] }
0x183e   : > { %v8497_v24 = vcombine.low %v8242_v36, %v8290_v39  ;;  %v10703_v47 = vpop.f32.mrb[5].mxu0 }
0x183f   : > { %v8293_v35 = vpop.f32.mrb[6].mxu0 }
0x1840   : > { %8502 = vrot.lane.b32.xlu1 %v8497_v24, %s11129_s30  ;;  %v10704_v45 = vpop.f32.mrb[7].mxu0  ;;  %v11103_v24 = vld [vmem:[#allocation2 + $0xc] sm:$0xf] }
0x1841   : > { %v11104_v45 = vld [vmem:[#allocation2 + $0x1c] sm:$0xf] }
0x186e   : > { %v8338_v1 = vpop.f32.mrb[252].mxu1 }
0x186f   : > { %v10709_v54 = vpop.f32.mrb[253].mxu1 }
0x1870   : > { %v8341_v60 = vpop.f32.mrb[254].mxu1 }
0x1871   : > { %v10710_v8 = vpop.f32.mrb[255].mxu1 }
0x1873   : > { %v8386_v51 = vpop.f32.mrb[8].mxu0 }
0x1874   : > { %v8498_v10 = vcombine.low %v8338_v1, %v8386_v51  ;;  %v10715_v58 = vpop.f32.mrb[9].mxu0  ;;  %v11105_v51 = vld [vmem:[#allocation2 + $0x18] sm:$0xf] }
0x1875   : > { %v8389_v38 = vpop.f32.mrb[10].mxu0 }
0x1876   : > { %8504 = vrot.lane.b32.xlu0 %v8498_v10, %s11129_s30  ;;  %v10716_v15 = vpop.f32.mrb[11].mxu0  ;;  %v8434_v52 = vpop.f32.mrb[0].mxu1 }
0x1877   : > { %v10721_v22 = vpop.f32.mrb[1].mxu1 }
0x1878   : > { %v8437_v5 = vpop.f32.mrb[2].mxu1  ;;  %v11130_v22 = vmov 839922192  }
0x1879   : > { %v10722_v42 = vpop.f32.mrb[3].mxu1  ;;  %v8645_v5 = vunpack.c.l.s4 %v11130_v22  ;;  %v8842_v22 = vsub.s32 4, %v11172_v3 }
0x187a   : > { %8526 = vrot.lane.b32.xlu0 %v11095_v32, %s11117_s26  ;;  %v11131_v42 = vmov 1985246804  }
0x187b   : > { %v8482_v44 = vpop.f32.mrb[12].mxu0  ;;  %v8652_v32 = vunpack.c.l.s4 %v11131_v42 }
0x187c   : > { %v8499_v28 = vcombine.low %v8434_v52, %v8482_v44  ;;  %v10727_v46 = vpop.f32.mrb[13].mxu0  ;;  %v8646_v44 = vunpack.c.0.s8 %v8645_v5 }
0x187d   : > { %v8485_v13 = vpop.f32.mrb[14].mxu0 }
0x187e   : > { %8506 = vrot.lane.b32.xlu1 %v8499_v28, %s11129_s30  ;;  %v10728_v56 = vpop.f32.mrb[15].mxu0  ;;  %v8653_v28 = vunpack.c.0.s8 %v8652_v32  ;;  %v13113_v46 = vsub.s32 %v8646_v44, %v11172_v3  ;;  %v8857_v32 = vsub.s32 5, %v11172_v3 }
0x1880   : > { %v13116_v13 = vsub.s32 %v8653_v28, %v11172_v3 }
0x1882   : > { %8528 = vrot.lane.b32.xlu1 %v11096_v30, %s11117_s26 }
0x18a8   : > { %v8501_v34 = vpop.permute.xlu0 %8500 }
0x18a9   : > { %8512 = vst.msk [vmem:[#allocation3] sm:$0xff] %vm4625_vm9, %v8501_v34 }
0x18b0   : > { %v8516_v59 = vld [vmem:[#allocation3] sm:$0xff] }
0x18b2   : > { %v8503_v9 = vpop.permute.xlu1 %8502 }
0x18b3   : > { %8513 = vst.msk [vmem:[#allocation3 + $0x8] sm:$0xff] %vm4625_vm9, %v8503_v9 }
0x18ba   : > { %v8517_v53 = vld [vmem:[#allocation3 + $0x8] sm:$0xff] }
0x18bb   : > { %v8520_v17 = vpack.c.bf16 %v8517_v53, %v8516_v59 }
0x18bd   : > { %10733 = vmatprep.mubr.msk.bf16.mxu1 %vm689_vm1, %v8520_v17 }
0x18e8   : > { %v8505_v20 = vpop.permute.xlu0 %8504 }
0x18e9   : > { %8514 = vst.msk [vmem:[#allocation3 + $0x10] sm:$0xff] %vm4625_vm9, %v8505_v20 }
0x18ec   : > { %v8527_v18 = vpop.permute.xlu0 %8526 }
0x18ed   : > { %10729 = vmatprep.subr.bf16.mxu1 %v8527_v18 }
0x18ee   : > { %10730 = vmatpush3.bf16.msra.mxu1 %v8527_v18 }
0x18f0   : > { %v8507_v40 = vpop.permute.xlu1 %8506  ;;  %v8518_v2 = vld [vmem:[#allocation3 + $0x10] sm:$0xff] }
0x18f1   : > { %8515 = vst.msk [vmem:[#allocation3 + $0x18] sm:$0xff] %vm4625_vm9, %v8507_v40 }
0x18f4   : > { %v8529_v43 = vpop.permute.xlu1 %8528 }
0x18f5   : > { %10731 = vmatprep.subr.bf16.mxu1 %v8529_v43 }
0x18f6   : > { %10732 = vmatpush3.bf16.msra.mxu1 %v8529_v43 }
0x18f8   : > { %v8519_v49 = vld [vmem:[#allocation3 + $0x18] sm:$0xff] }
0x18f9   : > { %v8521_v6 = vpack.c.bf16 %v8519_v49, %v8518_v2 }
0x18fb   : > { %10734 = vmatmul.mubr.msk.bf16.vlgmr.msra.gmra.mrb[4].mxu1 %vm689_vm1, %v8521_v6 }
0x19ce   : > { %v10735_v25 = vpop.f32.mrb[4].mxu1 }
0x19cf   : > { %v8581_v31 = vadd.f32 %v10735_v25, %v8525_v37  ;;  %v8572_v55 = vpop.f32.mrb[5].mxu1 }
0x19d0   : > { %v8573_v14 = vadd.f32 %v8572_v55, %v8525_v37  ;;  %v10736_v50 = vpop.f32.mrb[6].mxu1 }
0x19d1   : > { %v8593_v61 = vcombine.high %v8581_v31, %v8581_v31  ;;  %v8584_v48 = vadd.f32 %v10736_v50, %v8525_v37  ;;  %v8575_v0 = vpop.f32.mrb[7].mxu1  ;;  %v8603_v33 = vadd.f32 %v11101_v4, %v8581_v31 }
0x19d2   : > { %v8591_v12 = vcombine.high %v8573_v14, %v8573_v14  ;;  %v8576_v19 = vadd.f32 %v8575_v0, %v8525_v37  ;;  %v8599_v26 = vadd.f32 %v11098_v41, %v8573_v14 }
0x19d3   : > { %v8604_v62 = vadd.f32 %v11099_v16, %v8593_v61  ;;  %v8594_v21 = vcombine.high %v8584_v48, %v8584_v48  ;;  %v8605_v10 = vadd.f32 %v11105_v51, %v8584_v48 }
0x19d4   : > { %v8600_v11 = vadd.f32 %v11100_v57, %v8591_v12  ;;  %v8592_v36 = vcombine.high %v8576_v19, %v8576_v19  ;;  %v8601_v39 = vadd.f32 %v11102_v27, %v8576_v19 }
0x19d5   : > { %v8606_v1 = vadd.f32 %v11104_v45, %v8594_v21  ;;  %v8617_v8 = vcombine.low %v8603_v33, %v8604_v62  ;;  %v10803_v45 = vld [vmem:[%s13328_s2 + $0x20] ss:$12 sps:$4 sm:$0xff]  }
0x19d6   : > { %v8602_v47 = vadd.f32 %v11103_v24, %v8592_v36  ;;  %v8615_v35 = vcombine.low %v8599_v26, %v8600_v11 }
0x19d7   : > { %v8629_v38 = vsel %vm689_vm1, %v8617_v8, 0.0  ;;  %v8618_v15 = vcombine.low %v8605_v10, %v8606_v1 }
0x19d8   : > { %v8623_v54 = vsel %vm689_vm1, %v8615_v35, 0.0  ;;  %v8616_v60 = vcombine.low %v8601_v39, %v8602_v47  ;;  %v10802_v35 = vld [vmem:[%s13328_s2 + $0x8] ss:$12 sps:$4 sm:$0xff]  }
0x19d9   : > { %8624 = vadd.xlane.f32.xlu0 %v8623_v54  ;;  %v8632_v52 = vsel %vm689_vm1, %v8618_v15, 0.0  ;;  %10737 = vmatprep.subr.bf16.mxu0 %v10802_v35  ;;  %v10805_v54 = vld [vmem:[%s13329_s3 + $0x8] sm:$0xff]  }
0x19da   : > { %v8626_v58 = vsel %vm689_vm1, %v8616_v60, 0.0  ;;  %10738 = vmatpush3.bf16.msra.mxu0 %v10802_v35 }
0x19db   : > { %8627 = vadd.xlane.f32.xlu1 %v8626_v58  ;;  %10739 = vmatprep.subr.bf16.mxu0 %v10803_v45 }
0x19dd   : > { %8630 = vadd.xlane.f32.xlu0 %v8629_v38 }
0x19de   : > { %10740 = vmatpush3.bf16.msra.mxu0 %v10803_v45 }
0x19e1   : > { %8633 = vadd.xlane.f32.xlu0 %v8632_v52 }
0x1a66   : > { %v8625_v56 = vpop.xlane.xlu0 %8624 }
0x1a67   : > { %v8636_v30 = vmul.f32 0.03125, %v8625_v56  ;;  %v8843_v56 = vrot.slane %v13105_v63, %v8842_v22  ;;  %v8890_v22 = vsub.s32 6, %v11172_v3 }
0x1a68   : > { %v8628_v34 = vpop.xlane.xlu1 %8627 }
0x1a69   : > { %v8650_v9 = vrot.slane %v8636_v30, %v13113_v46  ;;  %v8657_v59 = vrot.slane %v8636_v30, %v13116_v13  ;;  %v8637_v53 = vmul.f32 0.03125, %v8628_v34  ;;  %v8858_v30 = vrot.slane %v13105_v63, %v8857_v32 }
0x1a6a   : > { %v8631_v17 = vpop.xlane.xlu0 %8630 }
0x1a6b   : > { %v13120_v20 = vsub.f32 %v8599_v26, %v8650_v9  ;;  %v13122_v18 = vsub.f32 %v8600_v11, %v8657_v59  ;;  %v8664_v40 = vrot.slane %v8637_v53, %v13113_v46  ;;  %v8671_v43 = vrot.slane %v8637_v53, %v13116_v13 }
0x1a6c   : > { %v8638_v2 = vmul.f32 0.03125, %v8631_v17  ;;  %v8845_v53 = vcombine.high %v8843_v56, %v8843_v56 }
0x1a6d   : > { %v13126_v49 = vsub.f32 %v8601_v39, %v8664_v40  ;;  %v13128_v6 = vsub.f32 %v8602_v47, %v8671_v43  ;;  %v8716_v29 = vmul.f32 %v13120_v20, %v13120_v20  ;;  %v8717_v37 = vmul.f32 %v13122_v18, %v13122_v18 }
0x1a6e   : > { %v8678_v25 = vrot.slane %v8638_v2, %v13113_v46  ;;  %v8685_v31 = vrot.slane %v8638_v2, %v13116_v13  ;;  %v8634_v55 = vpop.xlane.xlu0 %8633  ;;  %v8860_v40 = vcombine.high %v8858_v30, %v8858_v30 }
0x1a6f   : > { %v8639_v14 = vmul.f32 0.03125, %v8634_v55  ;;  %v8732_v50 = vcombine.low %v8716_v29, %v8717_v37  ;;  %v8718_v61 = vmul.f32 %v13126_v49, %v13126_v49  ;;  %v8719_v48 = vmul.f32 %v13128_v6, %v13128_v6 }
0x1a70   : > { %v13140_v0 = vsub.f32 %v8603_v33, %v8678_v25  ;;  %v13142_v12 = vsub.f32 %v8604_v62, %v8685_v31 }
0x1a71   : > { %v8692_v19 = vrot.slane %v8639_v14, %v13113_v46  ;;  %v8699_v41 = vrot.slane %v8639_v14, %v13116_v13  ;;  %v8740_v26 = vsel %vm689_vm1, %v8732_v50, 0.0  ;;  %v8733_v16 = vcombine.low %v8718_v61, %v8719_v48 }
0x1a72   : > { %8741 = vadd.xlane.f32.xlu1 %v8740_v26  ;;  %v8720_v57 = vmul.f32 %v13140_v0, %v13140_v0  ;;  %v8721_v11 = vmul.f32 %v13142_v12, %v13142_v12 }
0x1a73   : > { %v13151_v21 = vsub.f32 %v8605_v10, %v8692_v19  ;;  %v13153_v36 = vsub.f32 %v8606_v1, %v8699_v41  ;;  %v8743_v62 = vsel %vm689_vm1, %v8733_v16, 0.0  ;;  %v10804_v1 = vld [vmem:[%s13329_s3] sm:$0xff]  }
0x1a74   : > { %8744 = vadd.xlane.f32.xlu0 %v8743_v62  ;;  %v8734_v4 = vcombine.low %v8720_v57, %v8721_v11  ;;  %10745 = vmatprep.subr.bf16.mxu1 %v10804_v1 }
0x1a75   : > { %v8722_v33 = vmul.f32 %v13151_v21, %v13151_v21  ;;  %v8723_v27 = vmul.f32 %v13153_v36, %v13153_v36  ;;  %10746 = vmatpush3.bf16.msra.mxu1 %v10804_v1 }
0x1a76   : > { %v8746_v39 = vsel %vm689_vm1, %v8734_v4, 0.0  ;;  %10747 = vmatprep.subr.bf16.mxu1 %v10805_v54 }
0x1a77   : > { %8747 = vadd.xlane.f32.xlu1 %v8746_v39  ;;  %v8735_v24 = vcombine.low %v8722_v33, %v8723_v27 }
0x1a79   : > { %v8749_v47 = vsel %vm689_vm1, %v8735_v24, 0.0  ;;  %10748 = vmatpush3.bf16.msra.mxu1 %v10805_v54 }
0x1a7a   : > { %8750 = vadd.xlane.f32.xlu0 %v8749_v47 }
0x1aff   : > { %v8742_v60 = vpop.xlane.xlu1 %8741 }
0x1b00   : > { %v8752_v8 = vmul.f32 0.03125, %v8742_v60 }
0x1b01   : > { %v8745_v51 = vpop.xlane.xlu0 %8744 }
0x1b02   : > { %v8756_v10 = vadd.f32 1e-05, %v8752_v8  ;;  %v8753_v58 = vmul.f32 0.03125, %v8745_v51  ;;  %v10806_v51 = vld [vmem:[%s13329_s3 + $0x10] sm:$0xff]  }
0x1b03   : > { %10749 = vmatprep.subr.bf16.mxu1 %v10806_v51 }
0x1b04   : > { %11068 = vrsqrt.f32 %v8756_v10  ;;  %v8757_v38 = vadd.f32 1e-05, %v8753_v58  ;;  %v8748_v15 = vpop.xlane.xlu1 %8747  ;;  %10750 = vmatpush3.bf16.msra.mxu1 %v10806_v51  ;;  %v10807_v10 = vld [vmem:[%s13329_s3 + $0x18] sm:$0xff]   ;;  %v10808_v58 = vld [vmem:[%s13329_s3 + $0x20] sm:$0xff]  }
0x1b05   : > { %v8754_v52 = vmul.f32 0.03125, %v8748_v15  ;;  %10751 = vmatprep.subr.bf16.mxu1 %v10807_v10  ;;  %v10810_v15 = vld [vmem:[%s13329_s3 + $0x30] sm:$0xff]  }
0x1b06   : > { %11070 = vrsqrt.f32 %v8757_v38  ;;  %v10809_v38 = vld [vmem:[%s13329_s3 + $0x28] sm:$0xff]  }
0x1b07   : > { %v8758_v5 = vadd.f32 1e-05, %v8754_v52  ;;  %v8751_v42 = vpop.xlane.xlu0 %8750  ;;  %v10811_v52 = vld [vmem:[%s13329_s3 + $0x38] sm:$0xff]  }
0x1b08   : > { %v8755_v44 = vmul.f32 0.03125, %v8751_v42  ;;  %10752 = vmatpush3.bf16.msra.mxu1 %v10807_v10 }
0x1b09   : > { %11072 = vrsqrt.f32 %v8758_v5  ;;  %10753 = vmatprep.subr.bf16.mxu1 %v10808_v58  ;;  %v8891_v5 = vrot.slane %v13105_v63, %v8890_v22 }
0x1b0a   : > { %v8759_v28 = vadd.f32 1e-05, %v8755_v44 }
0x1b0c   : > { %11074 = vrsqrt.f32 %v8759_v28  ;;  %10754 = vmatpush3.bf16.msra.mxu1 %v10808_v58 }
0x1b0d   : > { %10755 = vmatprep.subr.bf16.mxu1 %v10809_v38 }
0x1b0e   : > { %v11069_v34 = vpop.eup %11068 }
0x1b0f   : > { %v8774_v9 = vrot.slane %v11069_v34, %v13113_v46  ;;  %v8781_v59 = vrot.slane %v11069_v34, %v13116_v13 }
0x1b10   : > { %v11071_v17 = vpop.eup %11070  ;;  %10756 = vmatpush3.bf16.msra.mxu1 %v10809_v38 }
0x1b11   : > { %v8832_v43 = vmul.f32 %v8774_v9, %v13120_v20  ;;  %v8833_v2 = vmul.f32 %v8781_v59, %v13122_v18  ;;  %v8788_v29 = vrot.slane %v11071_v17, %v13113_v46  ;;  %v8795_v37 = vrot.slane %v11071_v17, %v13116_v13  ;;  %10757 = vmatprep.subr.bf16.mxu1 %v10810_v15 }
0x1b13   : > { %v11073_v25 = vpop.eup %11072  ;;  %v8834_v31 = vmul.f32 %v8788_v29, %v13126_v49  ;;  %v8835_v55 = vmul.f32 %v8795_v37, %v13128_v6  ;;  %v8847_v14 = vmul.f32 %v8843_v56, %v8832_v43  ;;  %v8848_v50 = vmul.f32 %v8845_v53, %v8833_v2 }
0x1b14   : > { %v8802_v61 = vrot.slane %v11073_v25, %v13113_v46  ;;  %v8809_v48 = vrot.slane %v11073_v25, %v13116_v13  ;;  %10758 = vmatpush3.bf16.msra.mxu1 %v10810_v15 }
0x1b15   : > { %v8849_v19 = vmul.f32 %v8843_v56, %v8834_v31  ;;  %v8850_v41 = vmul.f32 %v8845_v53, %v8835_v55  ;;  %v13188_v20 = vadd.f32 %v8858_v30, %v8847_v14  ;;  %v13190_v18 = vadd.f32 %v8860_v40, %v8848_v50  ;;  %10759 = vmatprep.subr.bf16.mxu1 %v10811_v52 }
0x1b16   : > { %v11075_v26 = vpop.eup %11074  ;;  %v8836_v16 = vmul.f32 %v8802_v61, %v13140_v0  ;;  %v8837_v57 = vmul.f32 %v8809_v48, %v13142_v12 }
0x1b17   : > { %v8816_v49 = vrot.slane %v11075_v26, %v13113_v46  ;;  %v8823_v6 = vrot.slane %v11075_v26, %v13116_v13  ;;  %v13196_v11 = vadd.f32 %v8858_v30, %v8849_v19  ;;  %v13198_v62 = vadd.f32 %v8860_v40, %v8850_v41 }
0x1b18   : > { %v8851_v4 = vmul.f32 %v8843_v56, %v8836_v16  ;;  %v8852_v33 = vmul.f32 %v8845_v53, %v8837_v57  ;;  %v8878_v24 = vcombine.low %v13188_v20, %v13190_v18  ;;  %10760 = vmatpush3.bf16.msra.mxu1 %v10811_v52 }
0x1b19   : > { %v8838_v27 = vmul.f32 %v8816_v49, %v13151_v21  ;;  %v8839_v39 = vmul.f32 %v8823_v6, %v13153_v36  ;;  %v8879_v0 = vcombine.low %v13196_v11, %v13198_v62 }
0x1b1a   : > { %v13206_v12 = vadd.f32 %v8858_v30, %v8851_v4  ;;  %v13208_v47 = vadd.f32 %v8860_v40, %v8852_v33  ;;  %v9100_v4 = vsub.s32 7, %v11172_v3 }
0x1b1b   : > { %v8853_v35 = vmul.f32 %v8843_v56, %v8838_v27  ;;  %v8854_v45 = vmul.f32 %v8845_v53, %v8839_v39  ;;  %v8886_v1 = vpack.c.bf16 %v8879_v0, %v8878_v24 }
0x1b1c   : > { %v8880_v21 = vcombine.low %v13206_v12, %v13208_v47  ;;  %v9101_v33 = vrot.slane %v13105_v63, %v9100_v4 }
0x1b1d   : > { %v13210_v54 = vadd.f32 %v8858_v30, %v8853_v35  ;;  %v13212_v60 = vadd.f32 %v8860_v40, %v8854_v45  ;;  %10741 = vmatprep.mubr.msk.bf16.mxu0 %vm689_vm1, %v8886_v1 }
0x1b1e   : > { %v9103_v35 = vcombine.high %v9101_v33, %v9101_v33 }
0x1b1f   : > { %v8881_v36 = vcombine.low %v13210_v54, %v13212_v60 }
0x1b21   : > { %v8887_v8 = vpack.c.bf16 %v8881_v36, %v8880_v21 }
0x1b23   : > { %10742 = vmatmul.mubr.msk.bf16.vlgmr.msra.gmra.mrb[16].mxu0 %vm689_vm1, %v8887_v8 }
0x1bf6   : > { %v10743_v42 = vpop.f32.mrb[16].mxu0 }
0x1bf7   : > { %v8953_v32 = vadd.f32 %v10743_v42, %v8891_v5  ;;  %v8944_v44 = vpop.f32.mrb[17].mxu0 }
0x1bf8   : > { %v8945_v28 = vadd.f32 %v8944_v44, %v8891_v5  ;;  %v10744_v56 = vpop.f32.mrb[18].mxu0 }
0x1bf9   : > { %v8965_v30 = vmul.f32 0.70710677, %v8953_v32  ;;  %v8956_v34 = vadd.f32 %v10744_v56, %v8891_v5  ;;  %v8947_v9 = vpop.f32.mrb[19].mxu0  ;;  %v8961_v55 = vmul.f32 0.5, %v8953_v32 }
0x1bfa   : > { %v8963_v59 = vmul.f32 0.70710677, %v8945_v28  ;;  %v8948_v53 = vadd.f32 %v8947_v9, %v8891_v5  ;;  %v8959_v61 = vmul.f32 0.5, %v8945_v28 }
0x1bfb   : > { %11076 = verf.f32 %v8965_v30  ;;  %v8966_v17 = vmul.f32 0.70710677, %v8956_v34  ;;  %v8962_v14 = vmul.f32 0.5, %v8956_v34 }
0x1bfc   : > { %11078 = verf.f32 %v8963_v59  ;;  %v8964_v40 = vmul.f32 0.70710677, %v8948_v53  ;;  %v8960_v48 = vmul.f32 0.5, %v8948_v53 }
0x1bfd   : > { %11080 = verf.f32 %v8966_v17 }
0x1bfe   : > { %11082 = verf.f32 %v8964_v40 }
0x1c05   : > { %v11077_v43 = vpop.eup %11076 }
0x1c06   : > { %v11079_v2 = vpop.eup %11078  ;;  %v8973_v29 = vadd.f32 1.0, %v11077_v43 }
0x1c07   : > { %v11081_v37 = vpop.eup %11080  ;;  %v8971_v25 = vadd.f32 1.0, %v11079_v2 }
0x1c08   : > { %v11083_v31 = vpop.eup %11082  ;;  %v8974_v50 = vadd.f32 1.0, %v11081_v37  ;;  %v8977_v41 = vmul.f32 %v8973_v29, %v8961_v55 }
0x1c09   : > { %v8972_v19 = vadd.f32 1.0, %v11083_v31  ;;  %v8975_v16 = vmul.f32 %v8971_v25, %v8959_v61 }
0x1c0a   : > { %v8978_v26 = vmul.f32 %v8974_v50, %v8962_v14 }
0x1c0b   : > { %v8976_v57 = vmul.f32 %v8972_v19, %v8960_v48 }
0x1c0c   : > { %v8980_v49 = vpack.c.bf16 %v8978_v26, %v8977_v41 }
0x1c0d   : > { %v8979_v6 = vpack.c.bf16 %v8976_v57, %v8975_v16 }
0x1c0f   : > { %10761 = vmatprep.mubr.bf16.mxu1 %v8979_v6 }
0x1c10   : > { %10762 = vmatmul.mubr.bf16.vlgmr.msra.gmra.mrb[8].mxu1 %v8980_v49 }
0x1ce3   : > { %v10763_v27 = vpop.f32.mrb[8].mxu1 }
0x1ce4   : > { %v9084_v39 = vcombine.high %v10763_v27, %v10763_v27  ;;  %v9094_v24 = vadd.f32 %v10763_v27, %v13206_v12  ;;  %v9063_v0 = vpop.f32.mrb[9].mxu1 }
0x1ce5   : > { %v9082_v45 = vcombine.high %v9063_v0, %v9063_v0  ;;  %v9090_v1 = vadd.f32 %v9063_v0, %v13188_v20  ;;  %v10764_v21 = vpop.f32.mrb[10].mxu1 }
0x1ce6   : > { %v9095_v36 = vadd.f32 %v9084_v39, %v13208_v47  ;;  %v9085_v8 = vcombine.high %v10764_v21, %v10764_v21  ;;  %v9096_v51 = vadd.f32 %v10764_v21, %v13210_v54  ;;  %v9066_v10 = vpop.f32.mrb[11].mxu1  ;;  %v9109_v15 = vadd.f32 %v9101_v33, %v9094_v24 }
0x1ce7   : > { %v9091_v58 = vadd.f32 %v9082_v45, %v13190_v18  ;;  %v9083_v38 = vcombine.high %v9066_v10, %v9066_v10  ;;  %v9092_v63 = vadd.f32 %v9066_v10, %v13196_v11  ;;  %v9105_v22 = vadd.f32 %v9101_v33, %v9090_v1 }
0x1ce8   : > { %v9097_v12 = vadd.f32 %v9085_v8, %v13212_v60  ;;  %v9110_v52 = vadd.f32 %v9103_v35, %v9095_v36  ;;  %v9111_v42 = vadd.f32 %v9101_v33, %v9096_v51 }
0x1ce9   : > { %v9093_v5 = vadd.f32 %v9083_v38, %v13198_v62  ;;  %v9106_v20 = vadd.f32 %v9103_v35, %v9091_v58  ;;  %v9107_v44 = vadd.f32 %v9101_v33, %v9092_v63 }
0x1cea   : > { %v9123_v32 = vcombine.low %v9109_v15, %v9110_v52  ;;  %v9112_v47 = vadd.f32 %v9103_v35, %v9097_v12 }
0x1ceb   : > { %v9108_v28 = vadd.f32 %v9103_v35, %v9093_v5  ;;  %v9121_v54 = vcombine.low %v9105_v22, %v9106_v20 }
0x1cec   : > { %v9135_v56 = vsel %vm689_vm1, %v9123_v32, 0.0  ;;  %v9124_v18 = vcombine.low %v9111_v42, %v9112_v47 }
0x1ced   : > { %9136 = vadd.xlane.f32.xlu0 %v9135_v56  ;;  %v9129_v11 = vsel %vm689_vm1, %v9121_v54, 0.0  ;;  %v9122_v30 = vcombine.low %v9107_v44, %v9108_v28  ;;  %v669_v54 = vld [vmem:[%s13330_s4 + $0x8] sm:$0x3] }
0x1cee   : > { %9130 = vadd.xlane.f32.xlu1 %v9129_v11  ;;  %v9138_v60 = vsel %vm689_vm1, %v9124_v18, 0.0  ;;  %v9348_v56 = vrot.slane %v669_v54, %v11182_v7  ;;  %v9363_v18 = vrot.slane %v669_v54, %v4633_v23 }
0x1cef   : > { %v9132_v62 = vsel %vm689_vm1, %v9122_v30, 0.0 }
0x1cf1   : > { %9139 = vadd.xlane.f32.xlu0 %v9138_v60 }
0x1cf2   : > { %9133 = vadd.xlane.f32.xlu1 %v9132_v62 }
0x1d7a   : > { %v9137_v34 = vpop.xlane.xlu0 %9136 }
0x1d7b   : > { %v9143_v9 = vmul.f32 0.03125, %v9137_v34  ;;  %v9131_v59 = vpop.xlane.xlu1 %9130  ;;  %v9350_v34 = vcombine.high %v9348_v56, %v9348_v56 }
0x1d7c   : > { %v9141_v53 = vmul.f32 0.03125, %v9131_v59 }
0x1d7d   : > { %v9183_v17 = vrot.slane %v9143_v9, %v13113_v46  ;;  %v9190_v40 = vrot.slane %v9143_v9, %v13116_v13 }
0x1d7e   : > { %v9155_v43 = vrot.slane %v9141_v53, %v13113_v46  ;;  %v9162_v2 = vrot.slane %v9141_v53, %v13116_v13  ;;  %v9140_v29 = vpop.xlane.xlu0 %9139 }
0x1d7f   : > { %v9217_v37 = vsub.f32 %v9109_v15, %v9183_v17  ;;  %v9218_v25 = vsub.f32 %v9110_v52, %v9190_v40  ;;  %v9144_v31 = vmul.f32 0.03125, %v9140_v29  ;;  %v9134_v55 = vpop.xlane.xlu1 %9133  ;;  %v9365_v40 = vcombine.high %v9363_v18, %v9363_v18 }
0x1d80   : > { %v9213_v14 = vsub.f32 %v9105_v22, %v9155_v43  ;;  %v9214_v50 = vsub.f32 %v9106_v20, %v9162_v2  ;;  %v9142_v61 = vmul.f32 0.03125, %v9134_v55 }
0x1d81   : > { %v9197_v48 = vrot.slane %v9144_v31, %v13113_v46  ;;  %v9204_v19 = vrot.slane %v9144_v31, %v13116_v13  ;;  %v9225_v41 = vmul.f32 %v9217_v37, %v9217_v37  ;;  %v9226_v26 = vmul.f32 %v9218_v25, %v9218_v25 }
0x1d82   : > { %v9169_v16 = vrot.slane %v9142_v61, %v13113_v46  ;;  %v9176_v57 = vrot.slane %v9142_v61, %v13116_v13  ;;  %v9221_v49 = vmul.f32 %v9213_v14, %v9213_v14  ;;  %v9222_v6 = vmul.f32 %v9214_v50, %v9214_v50 }
0x1d83   : > { %v13262_v4 = vsub.f32 %v9111_v42, %v9197_v48  ;;  %v13264_v33 = vsub.f32 %v9112_v47, %v9204_v19  ;;  %v9239_v27 = vcombine.low %v9225_v41, %v9226_v26 }
0x1d84   : > { %v13266_v39 = vsub.f32 %v9107_v44, %v9169_v16  ;;  %v13268_v24 = vsub.f32 %v9108_v28, %v9176_v57  ;;  %v9237_v0 = vcombine.low %v9221_v49, %v9222_v6 }
0x1d85   : > { %v9251_v35 = vsel %vm689_vm1, %v9239_v27, 0.0  ;;  %v9227_v45 = vmul.f32 %v13262_v4, %v13262_v4  ;;  %v9228_v1 = vmul.f32 %v13264_v33, %v13264_v33 }
0x1d86   : > { %9252 = vadd.xlane.f32.xlu0 %v9251_v35  ;;  %v9245_v21 = vsel %vm689_vm1, %v9237_v0, 0.0  ;;  %v9223_v36 = vmul.f32 %v13266_v39, %v13266_v39  ;;  %v9224_v8 = vmul.f32 %v13268_v24, %v13268_v24 }
0x1d87   : > { %9246 = vadd.xlane.f32.xlu1 %v9245_v21  ;;  %v9240_v51 = vcombine.low %v9227_v45, %v9228_v1 }
0x1d88   : > { %v9238_v10 = vcombine.low %v9223_v36, %v9224_v8 }
0x1d89   : > { %v9254_v58 = vsel %vm689_vm1, %v9240_v51, 0.0 }
0x1d8a   : > { %9255 = vadd.xlane.f32.xlu0 %v9254_v58  ;;  %v9248_v38 = vsel %vm689_vm1, %v9238_v10, 0.0 }
0x1d8b   : > { %9249 = vadd.xlane.f32.xlu1 %v9248_v38 }
0x1e13   : > { %v9253_v63 = vpop.xlane.xlu0 %9252 }
0x1e14   : > { %v9259_v15 = vmul.f32 0.03125, %v9253_v63  ;;  %v9247_v12 = vpop.xlane.xlu1 %9246 }
0x1e15   : > { %v9257_v52 = vmul.f32 0.03125, %v9247_v12 }
0x1e16   : > { %v9263_v22 = vadd.f32 1e-05, %v9259_v15 }
0x1e17   : > { %v9261_v5 = vadd.f32 1e-05, %v9257_v52  ;;  %v9256_v20 = vpop.xlane.xlu0 %9255 }
0x1e18   : > { %11084 = vrsqrt.f32 %v9263_v22  ;;  %v9260_v42 = vmul.f32 0.03125, %v9256_v20  ;;  %v9250_v32 = vpop.xlane.xlu1 %9249 }
0x1e19   : > { %11086 = vrsqrt.f32 %v9261_v5  ;;  %v9258_v47 = vmul.f32 0.03125, %v9250_v32 }
0x1e1a   : > { %v9264_v44 = vadd.f32 1e-05, %v9260_v42 }
0x1e1b   : > { %v9262_v28 = vadd.f32 1e-05, %v9258_v47 }
0x1e1c   : > { %11088 = vrsqrt.f32 %v9264_v44 }
0x1e1d   : > { %11090 = vrsqrt.f32 %v9262_v28 }
0x1e22   : > { %v11085_v11 = vpop.eup %11084 }
0x1e23   : > { %v11087_v30 = vpop.eup %11086  ;;  %v9307_v60 = vrot.slane %v11085_v11, %v13113_v46  ;;  %v9314_v62 = vrot.slane %v11085_v11, %v13116_v13 }
0x1e24   : > { %v9279_v9 = vrot.slane %v11087_v30, %v13113_v46  ;;  %v9286_v59 = vrot.slane %v11087_v30, %v13116_v13 }
0x1e25   : > { %v9341_v53 = vmul.f32 %v9307_v60, %v9217_v37  ;;  %v9342_v17 = vmul.f32 %v9314_v62, %v9218_v25 }
0x1e26   : > { %v11089_v43 = vpop.eup %11088  ;;  %v9337_v7 = vmul.f32 %v9279_v9, %v9213_v14  ;;  %v9338_v2 = vmul.f32 %v9286_v59, %v9214_v50 }
0x1e27   : > { %v11091_v3 = vpop.eup %11090  ;;  %v9321_v23 = vrot.slane %v11089_v43, %v13113_v46  ;;  %v9357_v29 = vmul.f32 %v9350_v34, %v9342_v17  ;;  %v9356_v31 = vmul.f32 %v9348_v56, %v9341_v53  ;;  %v9328_v50 = vrot.slane %v11089_v43, %v13116_v13 }
0x1e28   : > { %v9293_v37 = vrot.slane %v11091_v3, %v13113_v46  ;;  %v9300_v25 = vrot.slane %v11091_v3, %v13116_v13  ;;  %v9353_v55 = vmul.f32 %v9350_v34, %v9338_v2  ;;  %v9352_v14 = vmul.f32 %v9348_v56, %v9337_v7 }
0x1e29   : > { %v9372_v61 = vadd.f32 %v9365_v40, %v9357_v29  ;;  %v9343_v48 = vmul.f32 %v9321_v23, %v13262_v4  ;;  %v9371_v19 = vadd.f32 %v9363_v18, %v9356_v31  ;;  %v9344_v27 = vmul.f32 %v9328_v50, %v13264_v33 }
0x1e2a   : > { %v9368_v41 = vadd.f32 %v9365_v40, %v9353_v55  ;;  %v9340_v26 = vmul.f32 %v9300_v25, %v13268_v24  ;;  %v9339_v16 = vmul.f32 %v9293_v37, %v13266_v39  ;;  %v9367_v57 = vadd.f32 %v9363_v18, %v9352_v14 }
0x1e2b   : > { %9397 = vrot.lane.b32.xlu0 %v9372_v61, %s11117_s26  ;;  %v9358_v46 = vmul.f32 %v9348_v56, %v9343_v48  ;;  %9395 = vst.msk [vmem:[%s13298_s29 + $0x4] sm:$0xf] %vm9375_vm13, %v9371_v19  ;;  %v9359_v24 = vmul.f32 %v9350_v34, %v9344_v27 }
0x1e2c   : > { %9378 = vrot.lane.b32.xlu1 %v9368_v41, %s11117_s26  ;;  %v9355_v49 = vmul.f32 %v9350_v34, %v9340_v26  ;;  %9376 = vst.msk [vmem:[%s13298_s29] sm:$0xf] %vm9375_vm13, %v9367_v57  ;;  %v9354_v4 = vmul.f32 %v9348_v56, %v9339_v16 }
0x1e2d   : > { %v9373_v13 = vadd.f32 %v9363_v18, %v9358_v46  ;;  %v9374_v0 = vadd.f32 %v9365_v40, %v9359_v24 }
0x1e2e   : > { %v9370_v6 = vadd.f32 %v9365_v40, %v9355_v49  ;;  %v9369_v39 = vadd.f32 %v9363_v18, %v9354_v4 }
0x1e30   : > { %9402 = vrot.lane.b32.xlu1 %v9373_v13, %s11116_s25  ;;  %9390 = vrot.lane.b32.xlu0 %v9370_v6, %s11115_s24 }
0x1e34   : > { %9384 = vrot.lane.b32.xlu1 %v9369_v39, %s11116_s25 }
0x1e38   : > { %9407 = vrot.lane.b32.xlu1 %v9374_v0, %s11115_s24 }
0x1e9d   : > { %v9398_v35 = vpop.permute.xlu0 %9397 }
0x1e9e   : > { %9400 = vst.msk [vmem:[%s13298_s29 + $0x4] sm:$0xf] %vm9381_vm14, %v9398_v35  ;;  %v9379_v45 = vpop.permute.xlu1 %9378 }
0x1e9f   : > { %9382 = vst.msk [vmem:[%s13298_s29] sm:$0xf] %vm9381_vm14, %v9379_v45 }
0x1ea2   : > { %v9403_v33 = vpop.permute.xlu1 %9402  ;;  %v9391_v21 = vpop.permute.xlu0 %9390 }
0x1ea3   : > { %9405 = vst.msk [vmem:[%s13298_s29 + $0x4] sm:$0xf] %vm9387_vm15, %v9403_v33 }
0x1ea6   : > { %v9385_v1 = vpop.permute.xlu1 %9384 }
0x1ea7   : > { %9388 = vst.msk [vmem:[%s13298_s29] sm:$0xf] %vm9387_vm15, %v9385_v1 }
0x1ea8   : > { %9394 = vst.msk [vmem:[%s13298_s29] sm:$0xf] %vm9393_vm0, %v9391_v21 }
0x1eaa   : > { %v9408_v36 = vpop.permute.xlu1 %9407 }
0x1eab   : > { %9410 = vst.msk [vmem:[%s13298_s29 + $0x4] sm:$0xf] %vm9393_vm0, %v9408_v36 }
0x1eac PF: > { %s15_s18 = sadd.s32 1, %s11112_s18  }
0x1ead   : > { %p12_p4 = scmp.ge.s32.totalorder %s15_s18, 4  }
0x1eaf   :  { %14 = sbr.rel (!%p12_p4) target bundleno = 1 (0x1), region = 70 }

</bundles_post_ra>
